<compile_context>
chip_gen: v7x
topology: tpu7x:2x2x1
jax: 0.10.0
libtpu: 0.0.40
codegen_flags: <defaults>
</compile_context>

<pallas_src>
import functools

import jax
import jax.numpy as jnp
from jax.experimental import pallas as pl
from jax.experimental.pallas import tpu as pltpu

BN_EPS = 1e-5
HIDDEN = 256  # fixed by the module (conv1/conv2/conv3 width, bn width)


def _round_up(a, b):
    return int(pl.cdiv(a, b) * b)


def _tile_budget():
    """Generation-aware lane-tile cap and scoped-VMEM limit."""
    cap, vmem = 4096, 48 * 1024 * 1024          # safe under v7x's 64 MiB physical VMEM
    try:
        kind = jax.devices()[0].device_kind.lower()
        if ("v5" in kind) or ("v6" in kind):    # 128 MiB VMEM generations
            cap, vmem = 8192, 96 * 1024 * 1024
    except Exception:
        pass
    return cap, vmem


def _pick_tile(p, cap):
    """Largest 128-aligned tile <= cap with low padding waste -> (tile, p_pad)."""
    p128 = _round_up(max(p, 128), 128)
    if p128 <= cap:
        return p128, p128
    nt = int(pl.cdiv(p128, cap))
    tile = _round_up(int(pl.cdiv(p128, nt)), 128)
    return tile, nt * tile


# ----------------------- in-kernel helpers (shared) --------------------------

def _conv1(x_bf16, w1, b1):
    # 1x1 conv == per-pixel matmul; bf16 operands, f32 accumulation on the MXU.
    return jnp.dot(w1, x_bf16, preferred_element_type=jnp.float32) + b1


def _fuse_z(x, y, w1, b1, w2, b2, w3, b3, sc1, sh1, cin_y):
    """z = sigmoid(conv3(y)) * conv2(relu(bn1(conv1(x)))) + conv1(x).

    Activations are (C, T) tiles: channels on sublanes, pixels on lanes.
    """
    x1 = _conv1(x, w1, b1)                                        # (256, T) f32
    h = jnp.maximum(x1 * sc1 + sh1, 0.0)                          # bn1 + relu
    x2 = jnp.dot(w2, h.astype(jnp.bfloat16),
                 preferred_element_type=jnp.float32) + b2         # conv2
    # conv3 has K = in_dim (2): do it as a rank-`in_dim` broadcast-MAC on the VPU.
    yv = b3
    for c in range(cin_y):
        yv = yv + w3[:, c:c + 1] * y[c:c + 1, :]
    gate = jax.nn.sigmoid(yv)                                     # EUP
    return gate * x2 + x1


def _write_partial_stats(st_ref, v, p_valid, tile, masked):
    """Per-tile per-channel (sum, sum-of-squares); masks padded lanes if any."""
    if masked:
        t = pl.program_id(1)
        lane = jax.lax.broadcasted_iota(jnp.int32, v.shape, 1)
        v = jnp.where(t * tile + lane < p_valid, v, 0.0)
    s = jnp.sum(v, axis=1, keepdims=True)                         # (C, 1)
    q = jnp.sum(v * v, axis=1, keepdims=True)                     # (C, 1)
    st_ref[...] = jnp.concatenate([s, q], axis=1)[None, None]     # (1, 1, C, 2)


# ------------------------------ phase kernels --------------------------------

def _phase1_kernel(x_ref, w1_ref, b1_ref, st_ref, *, p_valid, tile, masked):
    x1 = _conv1(x_ref[0], w1_ref[...], b1_ref[...])
    _write_partial_stats(st_ref, x1, p_valid, tile, masked)


def _phase2_kernel(x_ref, y_ref, w1_ref, b1_ref, w2_ref, b2_ref,
                   w3_ref, b3_ref, sc1_ref, sh1_ref, st_ref,
                   *, p_valid, tile, masked, cin_y):
    z = _fuse_z(x_ref[0], y_ref[0], w1_ref[...], b1_ref[...], w2_ref[...],
                b2_ref[...], w3_ref[...], b3_ref[...], sc1_ref[...],
                sh1_ref[...], cin_y)
    _write_partial_stats(st_ref, z, p_valid, tile, masked)


def _phase3_kernel(x_ref, y_ref, w1_ref, b1_ref, w2_ref, b2_ref,
                   w3_ref, b3_ref, sc1_ref, sh1_ref, sc2_ref, sh2_ref,
                   w4_ref, b4_ref, o_ref, *, cin_y):
    z = _fuse_z(x_ref[0], y_ref[0], w1_ref[...], b1_ref[...], w2_ref[...],
                b2_ref[...], w3_ref[...], b3_ref[...], sc1_ref[...],
                sh1_ref[...], cin_y)
    h2 = jnp.maximum(z * sc2_ref[...] + sh2_ref[...], 0.0)        # bn2 + relu
    out = jnp.dot(w4_ref[...], h2.astype(jnp.bfloat16),
                  preferred_element_type=jnp.float32) + b4_ref[...]
    o_ref[...] = out[None].astype(o_ref.dtype)


# -------------------------------- wrapper -------------------------------------

def _bn_affine(stats, gamma, beta, count):
    """Fold global (train-mode) batch-norm stats into per-channel scale/shift."""
    s = jnp.sum(stats[..., 0], axis=(0, 1))                       # (C,)
    q = jnp.sum(stats[..., 1], axis=(0, 1))                       # (C,)
    mean = s / count
    var = jnp.maximum(q / count - mean * mean, 0.0)               # clamp one-pass var
    inv = jax.lax.rsqrt(var + BN_EPS)
    scale = gamma * inv[:, None]                                  # (C, 1)
    shift = beta - mean[:, None] * scale                          # (C, 1)
    return scale, shift


def interfuse_forward(x_nchw, y_nchw, params):
    """x_nchw: (B, 100, H, W); y_nchw: (B, in_dim, H, W) -> (B, out_dim, H, W)."""
    B, cx, H, W = x_nchw.shape
    _, cy, _, _ = y_nchw.shape
    out_dim = params["w4"].shape[0]
    HW = H * W

    cap, vmem_bytes = _tile_budget()

    # Layout (G, C, P), channel-major. Small images: fold batch into the pixel
    # (lane) axis so lanes are dense and the grid isn't fragmented. Large
    # images: keep the free NCHW -> (B, C, HW) reshape (no transposes).
    fold = HW < 1024
    if fold:
        G, P = 1, B * HW
        x3 = x_nchw.reshape(B, cx, HW).transpose(1, 0, 2).reshape(1, cx, P)
        y3 = y_nchw.reshape(B, cy, HW).transpose(1, 0, 2).reshape(1, cy, P)
    else:
        G, P = B, HW
        x3 = x_nchw.reshape(B, cx, HW)
        y3 = y_nchw.reshape(B, cy, HW)

    tile, p_pad = _pick_tile(P, cap)
    nt = p_pad // tile
    masked = p_pad != P

    # x is re-read from HBM in all three phases: cast to bf16 once here.
    x3 = x3.astype(jnp.bfloat16)
    if masked:
        x3 = jnp.pad(x3, ((0, 0), (0, 0), (0, p_pad - P)))
        y3 = jnp.pad(y3, ((0, 0), (0, 0), (0, p_pad - P)))

    # bf16 MXU operands (f32 accumulation in-kernel); tiny conv3 stays f32 (VPU).
    w1 = params["w1"].astype(jnp.bfloat16)
    w2 = params["w2"].astype(jnp.bfloat16)
    w4 = params["w4"].astype(jnp.bfloat16)
    w3 = params["w3"]
    b1, b2, b3, b4 = params["b1"], params["b2"], params["b3"], params["b4"]

    cp = pltpu.CompilerParams(
        dimension_semantics=("parallel", "parallel"),   # megacore-safe on v7x
        vmem_limit_bytes=vmem_bytes,
    )
    grid = (G, nt)

    x_spec = pl.BlockSpec((1, cx, tile), lambda g, t: (g, 0, t))
    y_spec = pl.BlockSpec((1, cy, tile), lambda g, t: (g, 0, t))

    def const(arr):  # weights / BN params: DMA'd once, VMEM-resident
        return pl.BlockSpec(arr.shape, lambda g, t, _nd=arr.ndim: (0,) * _nd)

    st_spec = pl.BlockSpec((1, 1, HIDDEN, 2), lambda g, t: (g, t, 0, 0))
    st_shape = jax.ShapeDtypeStruct((G, nt, HIDDEN, 2), jnp.float32)
    count = float(B * HW)

    # phase 1: conv1 -> partial bn1 stats
    st1 = pl.pallas_call(
        functools.partial(_phase1_kernel, p_valid=P, tile=tile, masked=masked),
        grid=grid,
        in_specs=[x_spec, const(w1), const(b1)],
        out_specs=st_spec,
        out_shape=st_shape,
        compiler_params=cp,
    )(x3, w1, b1)
    sc1, sh1 = _bn_affine(st1, params["g1"], params["be1"], count)

    # phase 2: recompute through gate/residual -> partial bn2 stats
    st2 = pl.pallas_call(
        functools.partial(_phase2_kernel, p_valid=P, tile=tile,
                          masked=masked, cin_y=cy),
        grid=grid,
        in_specs=[x_spec, y_spec,
                  const(w1), const(b1), const(w2), const(b2),
                  const(w3), const(b3), const(sc1), const(sh1)],
        out_specs=st_spec,
        out_shape=st_shape,
        compiler_params=cp,
    )(x3, y3, w1, b1, w2, b2, w3, b3, sc1, sh1)
    sc2, sh2 = _bn_affine(st2, params["g2"], params["be2"], count)

    # phase 3: recompute + bn2 + relu + conv4 -> output (lane-dense stores)
    out3 = pl.pallas_call(
        functools.partial(_phase3_kernel, cin_y=cy),
        grid=grid,
        in_specs=[x_spec, y_spec,
                  const(w1), const(b1), const(w2), const(b2),
                  const(w3), const(b3), const(sc1), const(sh1),
                  const(sc2), const(sh2), const(w4), const(b4)],
        out_specs=pl.BlockSpec((1, out_dim, tile), lambda g, t: (g, 0, t)),
        out_shape=jax.ShapeDtypeStruct((G, out_dim, p_pad), jnp.float32),
        compiler_params=cp,
    )(x3, y3, w1, b1, w2, b2, w3, b3, sc1, sh1, sc2, sh2, w4, b4)

    if fold:
        out = out3[0, :, :P].reshape(out_dim, B, HW).transpose(1, 0, 2)
        return out.reshape(B, out_dim, H, W)
    return out3[:, :, :HW].reshape(B, out_dim, H, W)


# ----------------------------- params & reference -----------------------------

def make_params(key, in_dim=2, out_dim=256):
    """Deterministic init mirroring the PyTorch module's shapes/init.

    Conv weights (C_out, C_in): kaiming_normal_(fan_out, relu) -> std=sqrt(2/C_out).
    Conv biases (C_out, 1): PyTorch default U(-1/sqrt(fan_in), 1/sqrt(fan_in)).
    BN: weight=1, bias=0, stored as (C, 1) columns for the channel-major layout.
    """
    ks = jax.random.split(key, 8)

    def conv_w(k, cout, cin):
        return jax.random.normal(k, (cout, cin), jnp.float32) * (2.0 / cout) ** 0.5

    def conv_b(k, cout, cin):
        bound = 1.0 / (cin ** 0.5)
        return jax.random.uniform(k, (cout, 1), jnp.float32, -bound, bound)

    C = HIDDEN
    return {
        "w1": conv_w(ks[0], C, 100),      "b1": conv_b(ks[1], C, 100),
        "w2": conv_w(ks[2], C, C),        "b2": conv_b(ks[3], C, C),
        "w3": conv_w(ks[4], C, in_dim),   "b3": conv_b(ks[5], C, in_dim),
        "w4": conv_w(ks[6], out_dim, C),  "b4": conv_b(ks[7], out_dim, C),
        "g1": jnp.ones((C, 1), jnp.float32), "be1": jnp.zeros((C, 1), jnp.float32),
        "g2": jnp.ones((C, 1), jnp.float32), "be2": jnp.zeros((C, 1), jnp.float32),
    }


def _reference(x_nchw, y_nchw, p):
    """Plain-JAX reference of the same math (bf16 matmul operands, f32 accum,
    train-mode batch norm) used for the correctness check."""
    B, cx, H, W = x_nchw.shape
    cy = y_nchw.shape[1]
    HW = H * W
    x3 = x_nchw.reshape(B, cx, HW)
    y3 = y_nchw.reshape(B, cy, HW)

    def mm(w, a):
        return jnp.einsum("oi,bip->bop", w.astype(jnp.bfloat16),
                          a.astype(jnp.bfloat16),
                          preferred_element_type=jnp.float32)

    def bn(v, g, be):
        m = jnp.mean(v, axis=(0, 2))
        var = jnp.maximum(jnp.mean(v * v, axis=(0, 2)) - m * m, 0.0)
        sc = g * jax.lax.rsqrt(var + BN_EPS)[:, None]
        return v * sc + (be - m[:, None] * sc)

    x1 = mm(p["w1"], x3) + p["b1"]
    h = jnp.maximum(bn(x1, p["g1"], p["be1"]), 0.0)
    x2 = mm(p["w2"], h) + p["b2"]
    yv = jnp.einsum("oc,bcp->bop", p["w3"], y3) + p["b3"]
    z = jax.nn.sigmoid(yv) * x2 + x1
    h2 = jnp.maximum(bn(z, p["g2"], p["be2"]), 0.0)
    out = mm(p["w4"], h2) + p["b4"]
    return out.reshape(B, -1, H, W)


if __name__ == "__main__":
    key = jax.random.PRNGKey(0)
    kx, ky, kp = jax.random.split(key, 3)

    B, H, W = 2, 8, 8
    in_dim, out_dim = 2, 256
    x = jax.random.normal(kx, (B, 100, H, W), jnp.float32)
    y = jax.random.normal(ky, (B, in_dim, H, W), jnp.float32)
    params = make_params(kp, in_dim=in_dim, out_dim=out_dim)

    fwd = jax.jit(interfuse_forward)
    out = jax.block_until_ready(fwd(x, y, params))
    ref = jax.block_until_ready(_reference(x, y, params))

    assert out.shape == (B, out_dim, H, W)
    assert bool(jnp.allclose(out, ref, atol=3e-3, rtol=3e-3)), \
        float(jnp.max(jnp.abs(out - ref)))
    print("KERNEL_OK")
</pallas_src>

<mosaic_0001>
module attributes {stable_mosaic.version = 11 : i64} {
  func.func @_phase2_kernel(%arg0: i32, %arg1: i32, %arg2: memref<1x100x128xbf16, #tpu.memory_space<vmem>>, %arg3: memref<1x2x128xf32, #tpu.memory_space<vmem>>, %arg4: memref<256x100xbf16, #tpu.memory_space<vmem>>, %arg5: memref<256x1xf32, #tpu.memory_space<vmem>>, %arg6: memref<256x256xbf16, #tpu.memory_space<vmem>>, %arg7: memref<256x1xf32, #tpu.memory_space<vmem>>, %arg8: memref<256x2xf32, #tpu.memory_space<vmem>>, %arg9: memref<256x1xf32, #tpu.memory_space<vmem>>, %arg10: memref<256x1xf32, #tpu.memory_space<vmem>>, %arg11: memref<256x1xf32, #tpu.memory_space<vmem>>, %arg12: memref<1x1x256x2xf32, #tpu.memory_space<vmem>>) attributes {dimension_semantics = [#tpu.dimension_semantics<parallel>, #tpu.dimension_semantics<parallel>], iteration_bounds = array<i64: 1, 1>, scalar_prefetch = 0 : i64, scratch_operands = 0 : i64, tpu.core_type = #tpu.core_type<tc>, window_params = [{transform_indices = @transform_0, window_bounds = array<i64: 1, 100, 128>}, {transform_indices = @transform_1, window_bounds = array<i64: 1, 2, 128>}, {pipeline_mode = #tpu.pipeline_mode<synchronous>, transform_indices = @transform_2, window_bounds = array<i64: 256, 100>}, {pipeline_mode = #tpu.pipeline_mode<synchronous>, transform_indices = @transform_3, window_bounds = array<i64: 256, 1>}, {pipeline_mode = #tpu.pipeline_mode<synchronous>, transform_indices = @transform_4, window_bounds = array<i64: 256, 256>}, {pipeline_mode = #tpu.pipeline_mode<synchronous>, transform_indices = @transform_5, window_bounds = array<i64: 256, 1>}, {pipeline_mode = #tpu.pipeline_mode<synchronous>, transform_indices = @transform_6, window_bounds = array<i64: 256, 2>}, {pipeline_mode = #tpu.pipeline_mode<synchronous>, transform_indices = @transform_7, window_bounds = array<i64: 256, 1>}, {pipeline_mode = #tpu.pipeline_mode<synchronous>, transform_indices = @transform_8, window_bounds = array<i64: 256, 1>}, {pipeline_mode = #tpu.pipeline_mode<synchronous>, transform_indices = @transform_9, window_bounds = array<i64: 256, 1>}, {transform_indices = @transform_10, window_bounds = array<i64: 1, 1, 256, 2>}]} {
    %c0 = arith.constant 0 : index
    %c0_0 = arith.constant 0 : index
    %c0_1 = arith.constant 0 : index
    %0 = vector.load %arg2[%c0, %c0_0, %c0_1] : memref<1x100x128xbf16, #tpu.memory_space<vmem>>, vector<1x100x128xbf16>
    %1 = vector.shape_cast %0 : vector<1x100x128xbf16> to vector<100x128xbf16>
    %c0_2 = arith.constant 0 : index
    %c0_3 = arith.constant 0 : index
    %c0_4 = arith.constant 0 : index
    %2 = vector.load %arg3[%c0_2, %c0_3, %c0_4] : memref<1x2x128xf32, #tpu.memory_space<vmem>>, vector<1x2x128xf32>
    %3 = vector.shape_cast %2 : vector<1x2x128xf32> to vector<2x128xf32>
    %c0_5 = arith.constant 0 : index
    %c0_6 = arith.constant 0 : index
    %4 = vector.load %arg4[%c0_5, %c0_6] : memref<256x100xbf16, #tpu.memory_space<vmem>>, vector<256x100xbf16>
    %c0_7 = arith.constant 0 : index
    %c0_8 = arith.constant 0 : index
    %5 = vector.load %arg5[%c0_7, %c0_8] : memref<256x1xf32, #tpu.memory_space<vmem>>, vector<256x1xf32>
    %c0_9 = arith.constant 0 : index
    %c0_10 = arith.constant 0 : index
    %6 = vector.load %arg6[%c0_9, %c0_10] : memref<256x256xbf16, #tpu.memory_space<vmem>>, vector<256x256xbf16>
    %c0_11 = arith.constant 0 : index
    %c0_12 = arith.constant 0 : index
    %7 = vector.load %arg7[%c0_11, %c0_12] : memref<256x1xf32, #tpu.memory_space<vmem>>, vector<256x1xf32>
    %c0_13 = arith.constant 0 : index
    %c0_14 = arith.constant 0 : index
    %8 = vector.load %arg8[%c0_13, %c0_14] : memref<256x2xf32, #tpu.memory_space<vmem>>, vector<256x2xf32>
    %c0_15 = arith.constant 0 : index
    %c0_16 = arith.constant 0 : index
    %9 = vector.load %arg9[%c0_15, %c0_16] : memref<256x1xf32, #tpu.memory_space<vmem>>, vector<256x1xf32>
    %c0_17 = arith.constant 0 : index
    %c0_18 = arith.constant 0 : index
    %10 = vector.load %arg10[%c0_17, %c0_18] : memref<256x1xf32, #tpu.memory_space<vmem>>, vector<256x1xf32>
    %c0_19 = arith.constant 0 : index
    %c0_20 = arith.constant 0 : index
    %11 = vector.load %arg11[%c0_19, %c0_20] : memref<256x1xf32, #tpu.memory_space<vmem>>, vector<256x1xf32>
    %cst = arith.constant dense<0.000000e+00> : vector<256x128xf32>
    %12 = tpu.matmul %4, %1, %cst {dimension_numbers = #tpu.dot_dimension_numbers<[1], [0], [0], [1], [0, 0, 1, 1], [], []>} : vector<256x100xbf16>, vector<100x128xbf16>, vector<256x128xf32> -> vector<256x128xf32>
    %13 = vector.broadcast %5 : vector<256x1xf32> to vector<256x128xf32>
    %14 = arith.addf %12, %13 : vector<256x128xf32>
    %15 = vector.broadcast %10 : vector<256x1xf32> to vector<256x128xf32>
    %16 = arith.mulf %14, %15 : vector<256x128xf32>
    %17 = vector.broadcast %11 : vector<256x1xf32> to vector<256x128xf32>
    %18 = arith.addf %16, %17 : vector<256x128xf32>
    %cst_21 = arith.constant 0.000000e+00 : f32
    %19 = vector.broadcast %cst_21 : f32 to vector<256x128xf32>
    %20 = arith.maximumf %18, %19 : vector<256x128xf32>
    %21 = arith.truncf %20 : vector<256x128xf32> to vector<256x128xbf16>
    %cst_22 = arith.constant dense<0.000000e+00> : vector<256x128xf32>
    %22 = tpu.matmul %6, %21, %cst_22 {dimension_numbers = #tpu.dot_dimension_numbers<[1], [0], [0], [1], [0, 0, 1, 1], [], []>} : vector<256x256xbf16>, vector<256x128xbf16>, vector<256x128xf32> -> vector<256x128xf32>
    %23 = vector.broadcast %7 : vector<256x1xf32> to vector<256x128xf32>
    %24 = arith.addf %22, %23 : vector<256x128xf32>
    %25 = vector.extract_strided_slice %8 {offsets = [0, 0], sizes = [256, 1], strides = [1, 1]} : vector<256x2xf32> to vector<256x1xf32>
    %26 = vector.extract_strided_slice %3 {offsets = [0, 0], sizes = [1, 128], strides = [1, 1]} : vector<2x128xf32> to vector<1x128xf32>
    %27 = vector.broadcast %25 : vector<256x1xf32> to vector<256x128xf32>
    %28 = vector.broadcast %26 : vector<1x128xf32> to vector<256x128xf32>
    %29 = arith.mulf %27, %28 : vector<256x128xf32>
    %30 = vector.broadcast %9 : vector<256x1xf32> to vector<256x128xf32>
    %31 = arith.addf %30, %29 : vector<256x128xf32>
    %32 = vector.extract_strided_slice %8 {offsets = [0, 1], sizes = [256, 1], strides = [1, 1]} : vector<256x2xf32> to vector<256x1xf32>
    %33 = vector.extract_strided_slice %3 {offsets = [1, 0], sizes = [1, 128], strides = [1, 1]} : vector<2x128xf32> to vector<1x128xf32>
    %34 = vector.broadcast %32 : vector<256x1xf32> to vector<256x128xf32>
    %35 = vector.broadcast %33 : vector<1x128xf32> to vector<256x128xf32>
    %36 = arith.mulf %34, %35 : vector<256x128xf32>
    %37 = arith.addf %31, %36 : vector<256x128xf32>
    %38 = arith.negf %37 : vector<256x128xf32>
    %39 = math.exp %38 : vector<256x128xf32>
    %cst_23 = arith.constant 1.000000e+00 : f32
    %40 = vector.broadcast %cst_23 : f32 to vector<256x128xf32>
    %41 = arith.addf %40, %39 : vector<256x128xf32>
    %42 = arith.divf %40, %41 : vector<256x128xf32>
    %43 = arith.mulf %42, %24 : vector<256x128xf32>
    %44 = arith.addf %43, %14 : vector<256x128xf32>
    %cst_24 = arith.constant dense<0.000000e+00> : vector<256xf32>
    %45 = vector.multi_reduction <add>, %44, %cst_24 [1] : vector<256x128xf32> to vector<256xf32>
    %46 = vector.shape_cast %45 : vector<256xf32> to vector<256x1xf32>
    %47 = arith.mulf %44, %44 : vector<256x128xf32>
    %cst_25 = arith.constant dense<0.000000e+00> : vector<256xf32>
    %48 = vector.multi_reduction <add>, %47, %cst_25 [1] : vector<256x128xf32> to vector<256xf32>
    %49 = vector.shape_cast %48 : vector<256xf32> to vector<256x1xf32>
    %50 = tpu.concatenate %46, %49 in 1 : vector<256x1xf32>, vector<256x1xf32> -> vector<256x2xf32>
    %51 = vector.shape_cast %50 : vector<256x2xf32> to vector<1x1x256x2xf32>
    %c0_26 = arith.constant 0 : index
    %c0_27 = arith.constant 0 : index
    %c0_28 = arith.constant 0 : index
    %c0_29 = arith.constant 0 : index
    %52 = vector.load %arg12[%c0_26, %c0_27, %c0_28, %c0_29] : memref<1x1x256x2xf32, #tpu.memory_space<vmem>>, vector<1x1x256x2xf32>
    tpu.vector_store %arg12[%c0_26, %c0_27, %c0_28, %c0_29], %51 {strides = array<i32>} : memref<1x1x256x2xf32, #tpu.memory_space<vmem>>, vector<1x1x256x2xf32>,
    return
  }
  func.func @transform_0(%arg0: i32, %arg1: i32) -> (i32, i32, i32) {
    %c0_i32 = arith.constant 0 : i32
    %c0_i32_0 = arith.constant 0 : i32
    return %arg0, %c0_i32, %arg1 : i32, i32, i32
  }
  func.func @transform_1(%arg0: i32, %arg1: i32) -> (i32, i32, i32) {
    %c0_i32 = arith.constant 0 : i32
    %c0_i32_0 = arith.constant 0 : i32
    return %arg0, %c0_i32, %arg1 : i32, i32, i32
  }
  func.func @transform_2(%arg0: i32, %arg1: i32) -> (i32, i32) {
    %c0_i32 = arith.constant 0 : i32
    %c0_i32_0 = arith.constant 0 : i32
    %c0_i32_1 = arith.constant 0 : i32
    return %c0_i32, %c0_i32_0 : i32, i32
  }
  func.func @transform_3(%arg0: i32, %arg1: i32) -> (i32, i32) {
    %c0_i32 = arith.constant 0 : i32
    %c0_i32_0 = arith.constant 0 : i32
    %c0_i32_1 = arith.constant 0 : i32
    return %c0_i32, %c0_i32_0 : i32, i32
  }
  func.func @transform_4(%arg0: i32, %arg1: i32) -> (i32, i32) {
    %c0_i32 = arith.constant 0 : i32
    %c0_i32_0 = arith.constant 0 : i32
    %c0_i32_1 = arith.constant 0 : i32
    return %c0_i32, %c0_i32_0 : i32, i32
  }
  func.func @transform_5(%arg0: i32, %arg1: i32) -> (i32, i32) {
    %c0_i32 = arith.constant 0 : i32
    %c0_i32_0 = arith.constant 0 : i32
    %c0_i32_1 = arith.constant 0 : i32
    return %c0_i32, %c0_i32_0 : i32, i32
  }
  func.func @transform_6(%arg0: i32, %arg1: i32) -> (i32, i32) {
    %c0_i32 = arith.constant 0 : i32
    %c0_i32_0 = arith.constant 0 : i32
    %c0_i32_1 = arith.constant 0 : i32
    return %c0_i32, %c0_i32_0 : i32, i32
  }
  func.func @transform_7(%arg0: i32, %arg1: i32) -> (i32, i32) {
    %c0_i32 = arith.constant 0 : i32
    %c0_i32_0 = arith.constant 0 : i32
    %c0_i32_1 = arith.constant 0 : i32
    return %c0_i32, %c0_i32_0 : i32, i32
  }
  func.func @transform_8(%arg0: i32, %arg1: i32) -> (i32, i32) {
    %c0_i32 = arith.constant 0 : i32
    %c0_i32_0 = arith.constant 0 : i32
    %c0_i32_1 = arith.constant 0 : i32
    return %c0_i32, %c0_i32_0 : i32, i32
  }
  func.func @transform_9(%arg0: i32, %arg1: i32) -> (i32, i32) {
    %c0_i32 = arith.constant 0 : i32
    %c0_i32_0 = arith.constant 0 : i32
    %c0_i32_1 = arith.constant 0 : i32
    return %c0_i32, %c0_i32_0 : i32, i32
  }
  func.func @transform_10(%arg0: i32, %arg1: i32) -> (i32, i32, i32, i32) {
    %c0_i32 = arith.constant 0 : i32
    %c0_i32_0 = arith.constant 0 : i32
    %c0_i32_1 = arith.constant 0 : i32
    return %arg0, %arg1, %c0_i32, %c0_i32_0 : i32, i32, i32, i32
  }
}

module attributes {stable_mosaic.version = 11 : i64} {
  func.func @_phase1_kernel(%arg0: i32, %arg1: i32, %arg2: memref<1x100x128xbf16, #tpu.memory_space<vmem>>, %arg3: memref<256x100xbf16, #tpu.memory_space<vmem>>, %arg4: memref<256x1xf32, #tpu.memory_space<vmem>>, %arg5: memref<1x1x256x2xf32, #tpu.memory_space<vmem>>) attributes {dimension_semantics = [#tpu.dimension_semantics<parallel>, #tpu.dimension_semantics<parallel>], iteration_bounds = array<i64: 1, 1>, scalar_prefetch = 0 : i64, scratch_operands = 0 : i64, tpu.core_type = #tpu.core_type<tc>, window_params = [{transform_indices = @transform_0, window_bounds = array<i64: 1, 100, 128>}, {pipeline_mode = #tpu.pipeline_mode<synchronous>, transform_indices = @transform_1, window_bounds = array<i64: 256, 100>}, {pipeline_mode = #tpu.pipeline_mode<synchronous>, transform_indices = @transform_2, window_bounds = array<i64: 256, 1>}, {transform_indices = @transform_3, window_bounds = array<i64: 1, 1, 256, 2>}]} {
    %c0 = arith.constant 0 : index
    %c0_0 = arith.constant 0 : index
    %c0_1 = arith.constant 0 : index
    %0 = vector.load %arg2[%c0, %c0_0, %c0_1] : memref<1x100x128xbf16, #tpu.memory_space<vmem>>, vector<1x100x128xbf16>
    %1 = vector.shape_cast %0 : vector<1x100x128xbf16> to vector<100x128xbf16>
    %c0_2 = arith.constant 0 : index
    %c0_3 = arith.constant 0 : index
    %2 = vector.load %arg3[%c0_2, %c0_3] : memref<256x100xbf16, #tpu.memory_space<vmem>>, vector<256x100xbf16>
    %c0_4 = arith.constant 0 : index
    %c0_5 = arith.constant 0 : index
    %3 = vector.load %arg4[%c0_4, %c0_5] : memref<256x1xf32, #tpu.memory_space<vmem>>, vector<256x1xf32>
    %cst = arith.constant dense<0.000000e+00> : vector<256x128xf32>
    %4 = tpu.matmul %2, %1, %cst {dimension_numbers = #tpu.dot_dimension_numbers<[1], [0], [0], [1], [0, 0, 1, 1], [], []>} : vector<256x100xbf16>, vector<100x128xbf16>, vector<256x128xf32> -> vector<256x128xf32>
    %5 = vector.broadcast %3 : vector<256x1xf32> to vector<256x128xf32>
    %6 = arith.addf %4, %5 : vector<256x128xf32>
    %cst_6 = arith.constant dense<0.000000e+00> : vector<256xf32>
    %7 = vector.multi_reduction <add>, %6, %cst_6 [1] : vector<256x128xf32> to vector<256xf32>
    %8 = vector.shape_cast %7 : vector<256xf32> to vector<256x1xf32>
    %9 = arith.mulf %6, %6 : vector<256x128xf32>
    %cst_7 = arith.constant dense<0.000000e+00> : vector<256xf32>
    %10 = vector.multi_reduction <add>, %9, %cst_7 [1] : vector<256x128xf32> to vector<256xf32>
    %11 = vector.shape_cast %10 : vector<256xf32> to vector<256x1xf32>
    %12 = tpu.concatenate %8, %11 in 1 : vector<256x1xf32>, vector<256x1xf32> -> vector<256x2xf32>
    %13 = vector.shape_cast %12 : vector<256x2xf32> to vector<1x1x256x2xf32>
    %c0_8 = arith.constant 0 : index
    %c0_9 = arith.constant 0 : index
    %c0_10 = arith.constant 0 : index
    %c0_11 = arith.constant 0 : index
    %14 = vector.load %arg5[%c0_8, %c0_9, %c0_10, %c0_11] : memref<1x1x256x2xf32, #tpu.memory_space<vmem>>, vector<1x1x256x2xf32>
    tpu.vector_store %arg5[%c0_8, %c0_9, %c0_10, %c0_11], %13 {strides = array<i32>} : memref<1x1x256x2xf32, #tpu.memory_space<vmem>>, vector<1x1x256x2xf32>,
    return
  }
  func.func @transform_0(%arg0: i32, %arg1: i32) -> (i32, i32, i32) {
    %c0_i32 = arith.constant 0 : i32
    %c0_i32_0 = arith.constant 0 : i32
    return %arg0, %c0_i32, %arg1 : i32, i32, i32
  }
  func.func @transform_1(%arg0: i32, %arg1: i32) -> (i32, i32) {
    %c0_i32 = arith.constant 0 : i32
    %c0_i32_0 = arith.constant 0 : i32
    %c0_i32_1 = arith.constant 0 : i32
    return %c0_i32, %c0_i32_0 : i32, i32
  }
  func.func @transform_2(%arg0: i32, %arg1: i32) -> (i32, i32) {
    %c0_i32 = arith.constant 0 : i32
    %c0_i32_0 = arith.constant 0 : i32
    %c0_i32_1 = arith.constant 0 : i32
    return %c0_i32, %c0_i32_0 : i32, i32
  }
  func.func @transform_3(%arg0: i32, %arg1: i32) -> (i32, i32, i32, i32) {
    %c0_i32 = arith.constant 0 : i32
    %c0_i32_0 = arith.constant 0 : i32
    %c0_i32_1 = arith.constant 0 : i32
    return %arg0, %arg1, %c0_i32, %c0_i32_0 : i32, i32, i32, i32
  }
}

module attributes {stable_mosaic.version = 11 : i64} {
  func.func @_phase3_kernel(%arg0: i32, %arg1: i32, %arg2: memref<1x100x128xbf16, #tpu.memory_space<vmem>>, %arg3: memref<1x2x128xf32, #tpu.memory_space<vmem>>, %arg4: memref<256x100xbf16, #tpu.memory_space<vmem>>, %arg5: memref<256x1xf32, #tpu.memory_space<vmem>>, %arg6: memref<256x256xbf16, #tpu.memory_space<vmem>>, %arg7: memref<256x1xf32, #tpu.memory_space<vmem>>, %arg8: memref<256x2xf32, #tpu.memory_space<vmem>>, %arg9: memref<256x1xf32, #tpu.memory_space<vmem>>, %arg10: memref<256x1xf32, #tpu.memory_space<vmem>>, %arg11: memref<256x1xf32, #tpu.memory_space<vmem>>, %arg12: memref<256x1xf32, #tpu.memory_space<vmem>>, %arg13: memref<256x1xf32, #tpu.memory_space<vmem>>, %arg14: memref<256x256xbf16, #tpu.memory_space<vmem>>, %arg15: memref<256x1xf32, #tpu.memory_space<vmem>>, %arg16: memref<1x256x128xf32, #tpu.memory_space<vmem>>) attributes {dimension_semantics = [#tpu.dimension_semantics<parallel>, #tpu.dimension_semantics<parallel>], iteration_bounds = array<i64: 1, 1>, scalar_prefetch = 0 : i64, scratch_operands = 0 : i64, tpu.core_type = #tpu.core_type<tc>, window_params = [{transform_indices = @transform_0, window_bounds = array<i64: 1, 100, 128>}, {transform_indices = @transform_1, window_bounds = array<i64: 1, 2, 128>}, {pipeline_mode = #tpu.pipeline_mode<synchronous>, transform_indices = @transform_2, window_bounds = array<i64: 256, 100>}, {pipeline_mode = #tpu.pipeline_mode<synchronous>, transform_indices = @transform_3, window_bounds = array<i64: 256, 1>}, {pipeline_mode = #tpu.pipeline_mode<synchronous>, transform_indices = @transform_4, window_bounds = array<i64: 256, 256>}, {pipeline_mode = #tpu.pipeline_mode<synchronous>, transform_indices = @transform_5, window_bounds = array<i64: 256, 1>}, {pipeline_mode = #tpu.pipeline_mode<synchronous>, transform_indices = @transform_6, window_bounds = array<i64: 256, 2>}, {pipeline_mode = #tpu.pipeline_mode<synchronous>, transform_indices = @transform_7, window_bounds = array<i64: 256, 1>}, {pipeline_mode = #tpu.pipeline_mode<synchronous>, transform_indices = @transform_8, window_bounds = array<i64: 256, 1>}, {pipeline_mode = #tpu.pipeline_mode<synchronous>, transform_indices = @transform_9, window_bounds = array<i64: 256, 1>}, {pipeline_mode = #tpu.pipeline_mode<synchronous>, transform_indices = @transform_10, window_bounds = array<i64: 256, 1>}, {pipeline_mode = #tpu.pipeline_mode<synchronous>, transform_indices = @transform_11, window_bounds = array<i64: 256, 1>}, {pipeline_mode = #tpu.pipeline_mode<synchronous>, transform_indices = @transform_12, window_bounds = array<i64: 256, 256>}, {pipeline_mode = #tpu.pipeline_mode<synchronous>, transform_indices = @transform_13, window_bounds = array<i64: 256, 1>}, {transform_indices = @transform_14, window_bounds = array<i64: 1, 256, 128>}]} {
    %c0 = arith.constant 0 : index
    %c0_0 = arith.constant 0 : index
    %c0_1 = arith.constant 0 : index
    %0 = vector.load %arg2[%c0, %c0_0, %c0_1] : memref<1x100x128xbf16, #tpu.memory_space<vmem>>, vector<1x100x128xbf16>
    %1 = vector.shape_cast %0 : vector<1x100x128xbf16> to vector<100x128xbf16>
    %c0_2 = arith.constant 0 : index
    %c0_3 = arith.constant 0 : index
    %c0_4 = arith.constant 0 : index
    %2 = vector.load %arg3[%c0_2, %c0_3, %c0_4] : memref<1x2x128xf32, #tpu.memory_space<vmem>>, vector<1x2x128xf32>
    %3 = vector.shape_cast %2 : vector<1x2x128xf32> to vector<2x128xf32>
    %c0_5 = arith.constant 0 : index
    %c0_6 = arith.constant 0 : index
    %4 = vector.load %arg4[%c0_5, %c0_6] : memref<256x100xbf16, #tpu.memory_space<vmem>>, vector<256x100xbf16>
    %c0_7 = arith.constant 0 : index
    %c0_8 = arith.constant 0 : index
    %5 = vector.load %arg5[%c0_7, %c0_8] : memref<256x1xf32, #tpu.memory_space<vmem>>, vector<256x1xf32>
    %c0_9 = arith.constant 0 : index
    %c0_10 = arith.constant 0 : index
    %6 = vector.load %arg6[%c0_9, %c0_10] : memref<256x256xbf16, #tpu.memory_space<vmem>>, vector<256x256xbf16>
    %c0_11 = arith.constant 0 : index
    %c0_12 = arith.constant 0 : index
    %7 = vector.load %arg7[%c0_11, %c0_12] : memref<256x1xf32, #tpu.memory_space<vmem>>, vector<256x1xf32>
    %c0_13 = arith.constant 0 : index
    %c0_14 = arith.constant 0 : index
    %8 = vector.load %arg8[%c0_13, %c0_14] : memref<256x2xf32, #tpu.memory_space<vmem>>, vector<256x2xf32>
    %c0_15 = arith.constant 0 : index
    %c0_16 = arith.constant 0 : index
    %9 = vector.load %arg9[%c0_15, %c0_16] : memref<256x1xf32, #tpu.memory_space<vmem>>, vector<256x1xf32>
    %c0_17 = arith.constant 0 : index
    %c0_18 = arith.constant 0 : index
    %10 = vector.load %arg10[%c0_17, %c0_18] : memref<256x1xf32, #tpu.memory_space<vmem>>, vector<256x1xf32>
    %c0_19 = arith.constant 0 : index
    %c0_20 = arith.constant 0 : index
    %11 = vector.load %arg11[%c0_19, %c0_20] : memref<256x1xf32, #tpu.memory_space<vmem>>, vector<256x1xf32>
    %cst = arith.constant dense<0.000000e+00> : vector<256x128xf32>
    %12 = tpu.matmul %4, %1, %cst {dimension_numbers = #tpu.dot_dimension_numbers<[1], [0], [0], [1], [0, 0, 1, 1], [], []>} : vector<256x100xbf16>, vector<100x128xbf16>, vector<256x128xf32> -> vector<256x128xf32>
    %13 = vector.broadcast %5 : vector<256x1xf32> to vector<256x128xf32>
    %14 = arith.addf %12, %13 : vector<256x128xf32>
    %15 = vector.broadcast %10 : vector<256x1xf32> to vector<256x128xf32>
    %16 = arith.mulf %14, %15 : vector<256x128xf32>
    %17 = vector.broadcast %11 : vector<256x1xf32> to vector<256x128xf32>
    %18 = arith.addf %16, %17 : vector<256x128xf32>
    %cst_21 = arith.constant 0.000000e+00 : f32
    %19 = vector.broadcast %cst_21 : f32 to vector<256x128xf32>
    %20 = arith.maximumf %18, %19 : vector<256x128xf32>
    %21 = arith.truncf %20 : vector<256x128xf32> to vector<256x128xbf16>
    %cst_22 = arith.constant dense<0.000000e+00> : vector<256x128xf32>
    %22 = tpu.matmul %6, %21, %cst_22 {dimension_numbers = #tpu.dot_dimension_numbers<[1], [0], [0], [1], [0, 0, 1, 1], [], []>} : vector<256x256xbf16>, vector<256x128xbf16>, vector<256x128xf32> -> vector<256x128xf32>
    %23 = vector.broadcast %7 : vector<256x1xf32> to vector<256x128xf32>
    %24 = arith.addf %22, %23 : vector<256x128xf32>
    %25 = vector.extract_strided_slice %8 {offsets = [0, 0], sizes = [256, 1], strides = [1, 1]} : vector<256x2xf32> to vector<256x1xf32>
    %26 = vector.extract_strided_slice %3 {offsets = [0, 0], sizes = [1, 128], strides = [1, 1]} : vector<2x128xf32> to vector<1x128xf32>
    %27 = vector.broadcast %25 : vector<256x1xf32> to vector<256x128xf32>
    %28 = vector.broadcast %26 : vector<1x128xf32> to vector<256x128xf32>
    %29 = arith.mulf %27, %28 : vector<256x128xf32>
    %30 = vector.broadcast %9 : vector<256x1xf32> to vector<256x128xf32>
    %31 = arith.addf %30, %29 : vector<256x128xf32>
    %32 = vector.extract_strided_slice %8 {offsets = [0, 1], sizes = [256, 1], strides = [1, 1]} : vector<256x2xf32> to vector<256x1xf32>
    %33 = vector.extract_strided_slice %3 {offsets = [1, 0], sizes = [1, 128], strides = [1, 1]} : vector<2x128xf32> to vector<1x128xf32>
    %34 = vector.broadcast %32 : vector<256x1xf32> to vector<256x128xf32>
    %35 = vector.broadcast %33 : vector<1x128xf32> to vector<256x128xf32>
    %36 = arith.mulf %34, %35 : vector<256x128xf32>
    %37 = arith.addf %31, %36 : vector<256x128xf32>
    %38 = arith.negf %37 : vector<256x128xf32>
    %39 = math.exp %38 : vector<256x128xf32>
    %cst_23 = arith.constant 1.000000e+00 : f32
    %40 = vector.broadcast %cst_23 : f32 to vector<256x128xf32>
    %41 = arith.addf %40, %39 : vector<256x128xf32>
    %42 = arith.divf %40, %41 : vector<256x128xf32>
    %43 = arith.mulf %42, %24 : vector<256x128xf32>
    %44 = arith.addf %43, %14 : vector<256x128xf32>
    %c0_24 = arith.constant 0 : index
    %c0_25 = arith.constant 0 : index
    %45 = vector.load %arg12[%c0_24, %c0_25] : memref<256x1xf32, #tpu.memory_space<vmem>>, vector<256x1xf32>
    %46 = vector.broadcast %45 : vector<256x1xf32> to vector<256x128xf32>
    %47 = arith.mulf %44, %46 : vector<256x128xf32>
    %c0_26 = arith.constant 0 : index
    %c0_27 = arith.constant 0 : index
    %48 = vector.load %arg13[%c0_26, %c0_27] : memref<256x1xf32, #tpu.memory_space<vmem>>, vector<256x1xf32>
    %49 = vector.broadcast %48 : vector<256x1xf32> to vector<256x128xf32>
    %50 = arith.addf %47, %49 : vector<256x128xf32>
    %cst_28 = arith.constant 0.000000e+00 : f32
    %51 = vector.broadcast %cst_28 : f32 to vector<256x128xf32>
    %52 = arith.maximumf %50, %51 : vector<256x128xf32>
    %c0_29 = arith.constant 0 : index
    %c0_30 = arith.constant 0 : index
    %53 = vector.load %arg14[%c0_29, %c0_30] : memref<256x256xbf16, #tpu.memory_space<vmem>>, vector<256x256xbf16>
    %54 = arith.truncf %52 : vector<256x128xf32> to vector<256x128xbf16>
    %cst_31 = arith.constant dense<0.000000e+00> : vector<256x128xf32>
    %55 = tpu.matmul %53, %54, %cst_31 {dimension_numbers = #tpu.dot_dimension_numbers<[1], [0], [0], [1], [0, 0, 1, 1], [], []>} : vector<256x256xbf16>, vector<256x128xbf16>, vector<256x128xf32> -> vector<256x128xf32>
    %c0_32 = arith.constant 0 : index
    %c0_33 = arith.constant 0 : index
    %56 = vector.load %arg15[%c0_32, %c0_33] : memref<256x1xf32, #tpu.memory_space<vmem>>, vector<256x1xf32>
    %57 = vector.broadcast %56 : vector<256x1xf32> to vector<256x128xf32>
    %58 = arith.addf %55, %57 : vector<256x128xf32>
    %59 = vector.shape_cast %58 : vector<256x128xf32> to vector<1x256x128xf32>
    %c0_34 = arith.constant 0 : index
    %c0_35 = arith.constant 0 : index
    %c0_36 = arith.constant 0 : index
    %60 = vector.load %arg16[%c0_34, %c0_35, %c0_36] : memref<1x256x128xf32, #tpu.memory_space<vmem>>, vector<1x256x128xf32>
    tpu.vector_store %arg16[%c0_34, %c0_35, %c0_36], %59 {strides = array<i32>} : memref<1x256x128xf32, #tpu.memory_space<vmem>>, vector<1x256x128xf32>,
    return
  }
  func.func @transform_0(%arg0: i32, %arg1: i32) -> (i32, i32, i32) {
    %c0_i32 = arith.constant 0 : i32
    %c0_i32_0 = arith.constant 0 : i32
    return %arg0, %c0_i32, %arg1 : i32, i32, i32
  }
  func.func @transform_1(%arg0: i32, %arg1: i32) -> (i32, i32, i32) {
    %c0_i32 = arith.constant 0 : i32
    %c0_i32_0 = arith.constant 0 : i32
    return %arg0, %c0_i32, %arg1 : i32, i32, i32
  }
  func.func @transform_2(%arg0: i32, %arg1: i32) -> (i32, i32) {
    %c0_i32 = arith.constant 0 : i32
    %c0_i32_0 = arith.constant 0 : i32
    %c0_i32_1 = arith.constant 0 : i32
    return %c0_i32, %c0_i32_0 : i32, i32
  }
  func.func @transform_3(%arg0: i32, %arg1: i32) -> (i32, i32) {
    %c0_i32 = arith.constant 0 : i32
    %c0_i32_0 = arith.constant 0 : i32
    %c0_i32_1 = arith.constant 0 : i32
    return %c0_i32, %c0_i32_0 : i32, i32
  }
  func.func @transform_4(%arg0: i32, %arg1: i32) -> (i32, i32) {
    %c0_i32 = arith.constant 0 : i32
    %c0_i32_0 = arith.constant 0 : i32
    %c0_i32_1 = arith.constant 0 : i32
    return %c0_i32, %c0_i32_0 : i32, i32
  }
  func.func @transform_5(%arg0: i32, %arg1: i32) -> (i32, i32) {
    %c0_i32 = arith.constant 0 : i32
    %c0_i32_0 = arith.constant 0 : i32
    %c0_i32_1 = arith.constant 0 : i32
    return %c0_i32, %c0_i32_0 : i32, i32
  }
  func.func @transform_6(%arg0: i32, %arg1: i32) -> (i32, i32) {
    %c0_i32 = arith.constant 0 : i32
    %c0_i32_0 = arith.constant 0 : i32
    %c0_i32_1 = arith.constant 0 : i32
    return %c0_i32, %c0_i32_0 : i32, i32
  }
  func.func @transform_7(%arg0: i32, %arg1: i32) -> (i32, i32) {
    %c0_i32 = arith.constant 0 : i32
    %c0_i32_0 = arith.constant 0 : i32
    %c0_i32_1 = arith.constant 0 : i32
    return %c0_i32, %c0_i32_0 : i32, i32
  }
  func.func @transform_8(%arg0: i32, %arg1: i32) -> (i32, i32) {
    %c0_i32 = arith.constant 0 : i32
    %c0_i32_0 = arith.constant 0 : i32
    %c0_i32_1 = arith.constant 0 : i32
    return %c0_i32, %c0_i32_0 : i32, i32
  }
  func.func @transform_9(%arg0: i32, %arg1: i32) -> (i32, i32) {
    %c0_i32 = arith.constant 0 : i32
    %c0_i32_0 = arith.constant 0 : i32
    %c0_i32_1 = arith.constant 0 : i32
    return %c0_i32, %c0_i32_0 : i32, i32
  }
  func.func @transform_10(%arg0: i32, %arg1: i32) -> (i32, i32) {
    %c0_i32 = arith.constant 0 : i32
    %c0_i32_0 = arith.constant 0 : i32
    %c0_i32_1 = arith.constant 0 : i32
    return %c0_i32, %c0_i32_0 : i32, i32
  }
  func.func @transform_11(%arg0: i32, %arg1: i32) -> (i32, i32) {
    %c0_i32 = arith.constant 0 : i32
    %c0_i32_0 = arith.constant 0 : i32
    %c0_i32_1 = arith.constant 0 : i32
    return %c0_i32, %c0_i32_0 : i32, i32
  }
  func.func @transform_12(%arg0: i32, %arg1: i32) -> (i32, i32) {
    %c0_i32 = arith.constant 0 : i32
    %c0_i32_0 = arith.constant 0 : i32
    %c0_i32_1 = arith.constant 0 : i32
    return %c0_i32, %c0_i32_0 : i32, i32
  }
  func.func @transform_13(%arg0: i32, %arg1: i32) -> (i32, i32) {
    %c0_i32 = arith.constant 0 : i32
    %c0_i32_0 = arith.constant 0 : i32
    %c0_i32_1 = arith.constant 0 : i32
    return %c0_i32, %c0_i32_0 : i32, i32
  }
  func.func @transform_14(%arg0: i32, %arg1: i32) -> (i32, i32, i32) {
    %c0_i32 = arith.constant 0 : i32
    %c0_i32_0 = arith.constant 0 : i32
    return %arg0, %c0_i32, %arg1 : i32, i32, i32
  }
}

</mosaic_0001>

<bundles_post_ra>
// kernel: interfuse_forward.3
= control target key start
LH: loop header
LB: loop body
LE: loop exit
PB: predicated region body
PF: predicated region fallthrough
CT: control target
= control target key end

     0   :  { %v965_v1 = vmov 0   ;;  %vm371_vm0 = vcmask 818176   ;;  %vm420_vm1 = vcmask 1041408   ;;  %vm745_vm2 = vcmask 7168   ;;  %s1413_s0 = inlined_call_operand.vmem [shape: bf16[1,100,128], index: 0, kind: input, shape index: {}]   ;;  %s1414_s2 = inlined_call_operand.vmem [shape: f32[256,1], index: 2, kind: input, shape index: {}]   ;;  %s1415_s1 = inlined_call_operand.vmem [shape: bf16[256,100], index: 1, kind: input, shape index: {}]   ;;  %s1416_s3 = inlined_call_operand.vmem [shape: f32[1,1,256,2], index: 3, kind: output, shape index: {}]  }
   0x1   :  { %v942_v0 = vld [vmem:[%s1413_s0] sm:$0xff]   ;;  %940 = vset.pattern.permute.xlu0 %v965_v1  ;;  %941 = vset.pattern.permute.xlu1 %v965_v1  ;;  %v943_v2 = vld [vmem:[%s1413_s0 + $0x8] sm:$0xff]   ;;  %v944_v3 = vld [vmem:[%s1413_s0 + $0x10] sm:$0xff]   ;;  %vm778_vm3 = vcmask 15360  }
   0x2   :  { %877 = vmatprep.subr.bf16.mxu0 %v942_v0  ;;  %923 = vmatprep.subr.bf16.mxu1 %v942_v0  ;;  %v945_v4 = vld [vmem:[%s1413_s0 + $0x18] sm:$0xff]   ;;  %v60_v5 = vld [vmem:[%s1414_s2] sm:$0xff]  ;;  %v62_v8 = vld [vmem:[%s1414_s2 + $0x10] sm:$0xff] }
   0x3   :  { %878 = vmatpush3.bf16.msra.mxu0 %v942_v0  ;;  %930 = vmatpush3.bf16.msra.mxu1 %v942_v0  ;;  %v949_v6 = vld [vmem:[%s1415_s1] sm:$0xff]   ;;  %v61_v9 = vld [vmem:[%s1414_s2 + $0x8] sm:$0xff]  ;;  %v63_v10 = vld [vmem:[%s1414_s2 + $0x18] sm:$0xff] }
   0x4   :  { %879 = vmatprep.subr.bf16.mxu0 %v943_v2  ;;  %924 = vmatprep.subr.bf16.mxu1 %v943_v2  ;;  %v950_v7 = vld [vmem:[%s1415_s1 + $0x40] sm:$0xff]   ;;  %v65_v13 = vld [vmem:[%s1414_s2 + $0x28] sm:$0xff]  ;;  %v66_v15 = vld [vmem:[%s1414_s2 + $0x30] sm:$0xff] }
   0x5   :  { %94 = vperm.xlu0 %940, %v60_v5   ;;  %891 = vmatprep.mubr.msk.bf16.mxu0 %vm371_vm0, %v949_v6  ;;  %v946_v11 = vld [vmem:[%s1413_s0 + $0x20] sm:$0xff]   ;;  %v947_v14 = vld [vmem:[%s1413_s0 + $0x28] sm:$0xff]   ;;  %v948_v16 = vld [vmem:[%s1413_s0 + $0x30] ss:$0 sps:$4 sm:$0x33]  }
   0x6   :  { %907 = vmatprep.mubr.msk.bf16.mxu1 %vm371_vm0, %v950_v7  ;;  %104 = vperm.xlu1 %941, %v62_v8   ;;  %v64_v12 = vld [vmem:[%s1414_s2 + $0x20] sm:$0xff]  ;;  %v67_v17 = vld [vmem:[%s1414_s2 + $0x38] sm:$0xff]  ;;  %v69_v19 = vld [vmem:[%s1414_s2 + $0x48] sm:$0xff]  ;;  %v422_v20 = vsel %vm420_vm1, %v948_v16, 0 }
   0x7   :  { %880 = vmatpush3.bf16.msra.mxu0 %v943_v2  ;;  %931 = vmatpush3.bf16.msra.mxu1 %v943_v2  ;;  %v68_v18 = vld [vmem:[%s1414_s2 + $0x40] sm:$0xff]  ;;  %v951_v21 = vld [vmem:[%s1415_s1 + $0x8] sm:$0xff]   ;;  %v70_v23 = vld [vmem:[%s1414_s2 + $0x50] sm:$0xff] }
   0x8   :  { %881 = vmatprep.subr.bf16.mxu0 %v944_v3  ;;  %925 = vmatprep.subr.bf16.mxu1 %v944_v3  ;;  %v952_v22 = vld [vmem:[%s1415_s1 + $0x48] sm:$0xff]   ;;  %v953_v24 = vld [vmem:[%s1415_s1 + $0x10] sm:$0xff]   ;;  %v71_v26 = vld [vmem:[%s1414_s2 + $0x58] sm:$0xff] }
   0x9   :  { %99 = vperm.xlu0 %940, %v61_v9   ;;  %v954_v25 = vld [vmem:[%s1415_s1 + $0x50] sm:$0xff]   ;;  %v72_v27 = vld [vmem:[%s1414_s2 + $0x60] sm:$0xff]  ;;  %v73_v28 = vld [vmem:[%s1414_s2 + $0x68] sm:$0xff] }
   0xa   :  { %109 = vperm.xlu1 %941, %v63_v10   ;;  %v955_v29 = vld [vmem:[%s1415_s1 + $0x18] sm:$0xff]   ;;  %v74_v31 = vld [vmem:[%s1414_s2 + $0x70] sm:$0xff]  ;;  %v957_v32 = vld [vmem:[%s1415_s1 + $0x20] sm:$0xff]  }
   0xb   :  { %882 = vmatpush3.bf16.msra.mxu0 %v944_v3  ;;  %932 = vmatpush3.bf16.msra.mxu1 %v944_v3  ;;  %v956_v30 = vld [vmem:[%s1415_s1 + $0x58] sm:$0xff]   ;;  %v958_v33 = vld [vmem:[%s1415_s1 + $0x60] sm:$0xff]   ;;  %v77_v36 = vld [vmem:[%s1414_s2 + $0x88] sm:$0xff] }
   0xc   :  { %883 = vmatprep.subr.bf16.mxu0 %v945_v4  ;;  %926 = vmatprep.subr.bf16.mxu1 %v945_v4  ;;  %v75_v34 = vld [vmem:[%s1414_s2 + $0x78] sm:$0xff]  ;;  %v76_v35 = vld [vmem:[%s1414_s2 + $0x80] sm:$0xff]  ;;  %v959_v37 = vld [vmem:[%s1415_s1 + $0x28] sm:$0xff]  }
   0xd   :  { %114 = vperm.xlu0 %940, %v64_v12   ;;  %v960_v38 = vld [vmem:[%s1415_s1 + $0x68] sm:$0xff]   ;;  %v78_v39 = vld [vmem:[%s1414_s2 + $0x90] sm:$0xff]  ;;  %v79_v42 = vld [vmem:[%s1414_s2 + $0x98] sm:$0xff] }
   0xe   :  { %119 = vperm.xlu1 %941, %v65_v13   ;;  %v961_v40 = vld [vmem:[%s1415_s1 + $0x30] sm:$0xff]   ;;  %v80_v43 = vld [vmem:[%s1414_s2 + $0xa0] sm:$0xff]  ;;  %v81_v44 = vld [vmem:[%s1414_s2 + $0xa8] sm:$0xff] }
   0xf   :  { %884 = vmatpush3.bf16.msra.mxu0 %v945_v4  ;;  %933 = vmatpush3.bf16.msra.mxu1 %v945_v4  ;;  %v962_v41 = vld [vmem:[%s1415_s1 + $0x70] sm:$0xff]   ;;  %v963_v45 = vld [vmem:[%s1415_s1 + $0x38] sm:$0xff]   ;;  %v84_v49 = vld [vmem:[%s1414_s2 + $0xc0] sm:$0xff] }
  0x10   :  { %885 = vmatprep.subr.bf16.mxu0 %v946_v11  ;;  %927 = vmatprep.subr.bf16.mxu1 %v946_v11  ;;  %v964_v46 = vld [vmem:[%s1415_s1 + $0x78] sm:$0xff]   ;;  %v82_v47 = vld [vmem:[%s1414_s2 + $0xb0] sm:$0xff]  ;;  %v85_v50 = vld [vmem:[%s1414_s2 + $0xc8] sm:$0xff] }
  0x11   :  { %124 = vperm.xlu0 %940, %v66_v15   ;;  %v83_v48 = vld [vmem:[%s1414_s2 + $0xb8] sm:$0xff]  ;;  %v86_v51 = vld [vmem:[%s1414_s2 + $0xd0] sm:$0xff]  ;;  %v88_v53 = vld [vmem:[%s1414_s2 + $0xe0] sm:$0xff] }
  0x12   :  { %129 = vperm.xlu1 %941, %v67_v17   ;;  %v87_v52 = vld [vmem:[%s1414_s2 + $0xd8] sm:$0xff]  ;;  %v89_v54 = vld [vmem:[%s1414_s2 + $0xe8] sm:$0xff]  ;;  %v90_v55 = vld [vmem:[%s1414_s2 + $0xf0] sm:$0xff] }
  0x13   :  { %886 = vmatpush3.bf16.msra.mxu0 %v946_v11  ;;  %934 = vmatpush3.bf16.msra.mxu1 %v946_v11  ;;  %v91_v56 = vld [vmem:[%s1414_s2 + $0xf8] sm:$0xff] }
  0x14   :  { %887 = vmatprep.subr.bf16.mxu0 %v947_v14  ;;  %928 = vmatprep.subr.bf16.mxu1 %v947_v14 }
  0x15   :  { %134 = vperm.xlu0 %940, %v68_v18  }
  0x16   :  { %139 = vperm.xlu1 %941, %v69_v19  }
  0x17   :  { %888 = vmatpush3.bf16.msra.mxu0 %v947_v14  ;;  %935 = vmatpush3.bf16.msra.mxu1 %v947_v14 }
  0x18   :  { %937 = vmatprep.subr.msk.bf16.mxu0 %vm420_vm1, %v948_v16  ;;  %938 = vmatprep.subr.msk.bf16.mxu1 %vm420_vm1, %v948_v16 }
  0x19   :  { %144 = vperm.xlu0 %940, %v70_v23  }
  0x1a   :  { %149 = vperm.xlu1 %941, %v71_v26  }
  0x1b   :  { %890 = vmatpush3.bf16.msra.mxu0 %v422_v20  ;;  %936 = vmatpush3.bf16.msra.mxu1 %v422_v20 }
  0x1d   :  { %154 = vperm.xlu0 %940, %v72_v27  }
  0x1e   :  { %892 = vmatmul.mubr.msk.bf16.vlgmr.msra.gmra.mrb[0].mxu0 %vm371_vm0, %v951_v21  ;;  %908 = vmatmul.mubr.msk.bf16.vlgmr.msra.gmra.mrb[0].mxu1 %vm371_vm0, %v952_v22 }
  0x1f   :  { %895 = vmatprep.mubr.msk.bf16.mxu0 %vm371_vm0, %v953_v24  ;;  %911 = vmatprep.mubr.msk.bf16.mxu1 %vm371_vm0, %v954_v25 }
  0x20   :  { %159 = vperm.xlu1 %941, %v73_v28  }
  0x21   :  { %164 = vperm.xlu0 %940, %v74_v31  }
  0x24   :  { %169 = vperm.xlu1 %941, %v75_v34  }
  0x25   :  { %174 = vperm.xlu0 %940, %v76_v35  }
  0x26   :  { %896 = vmatmul.mubr.msk.bf16.gmra.mrb[4].mxu0 %vm371_vm0, %v955_v29  ;;  %912 = vmatmul.mubr.msk.bf16.gmra.mrb[4].mxu1 %vm371_vm0, %v956_v30 }
  0x27   :  { %899 = vmatprep.mubr.msk.bf16.mxu0 %vm371_vm0, %v957_v32  ;;  %915 = vmatprep.mubr.msk.bf16.mxu1 %vm371_vm0, %v958_v33 }
  0x28   :  { %179 = vperm.xlu1 %941, %v77_v36  }
  0x29   :  { %184 = vperm.xlu0 %940, %v78_v39  }
  0x2c   :  { %189 = vperm.xlu1 %941, %v79_v42  }
  0x2d   :  { %194 = vperm.xlu0 %940, %v80_v43  }
  0x2e   :  { %900 = vmatmul.mubr.msk.bf16.gmra.mrb[8].mxu0 %vm371_vm0, %v959_v37  ;;  %916 = vmatmul.mubr.msk.bf16.gmra.mrb[8].mxu1 %vm371_vm0, %v960_v38 }
  0x2f   :  { %903 = vmatprep.mubr.msk.bf16.mxu0 %vm371_vm0, %v961_v40  ;;  %919 = vmatprep.mubr.msk.bf16.mxu1 %vm371_vm0, %v962_v41 }
  0x30   :  { %199 = vperm.xlu1 %941, %v81_v44  }
  0x31   :  { %204 = vperm.xlu0 %940, %v82_v47  }
  0x34   :  { %209 = vperm.xlu1 %941, %v83_v48  }
  0x35   :  { %214 = vperm.xlu0 %940, %v84_v49  }
  0x36   :  { %904 = vmatmul.mubr.msk.bf16.gmra.mrb[12].mxu0 %vm371_vm0, %v963_v45  ;;  %920 = vmatmul.mubr.msk.bf16.gmra.mrb[12].mxu1 %vm371_vm0, %v964_v46 }
  0x38   :  { %219 = vperm.xlu1 %941, %v85_v50  }
  0x39   :  { %224 = vperm.xlu0 %940, %v86_v51  }
  0x3c   :  { %229 = vperm.xlu1 %941, %v87_v52  }
  0x3d   :  { %234 = vperm.xlu0 %940, %v88_v53  }
  0x40   :  { %239 = vperm.xlu1 %941, %v89_v54  }
  0x41   :  { %244 = vperm.xlu0 %940, %v90_v55  }
  0x44   :  { %249 = vperm.xlu1 %941, %v91_v56  }
  0x84   :  { %v95_v57 = vpop.permute.xlu0 %94 }
  0x85   :  { %v105_v59 = vpop.permute.xlu1 %104 }
  0x88   :  { %v100_v58 = vpop.permute.xlu0 %99 }
  0x89   :  { %v110_v61 = vpop.permute.xlu1 %109 }
  0x8c   :  { %v115_v60 = vpop.permute.xlu0 %114 }
  0x8d   :  { %v1169_v63 = vpop.permute.xlu1 %119 }
  0x90   :  { %v1167_v62 = vpop.permute.xlu0 %124 }
  0x91   :  { %v1173_v1 = vpop.permute.xlu1 %129 }
  0x94   :  { %v1171_v0 = vpop.permute.xlu0 %134 }
  0x95   :  { %v1177_v3 = vpop.permute.xlu1 %139 }
  0x98   :  { %v1175_v2 = vpop.permute.xlu0 %144 }
  0x99   :  { %v1181_v5 = vpop.permute.xlu1 %149 }
  0x9c   :  { %v1179_v4 = vpop.permute.xlu0 %154 }
  0x9f   :  { %v1185_v7 = vpop.permute.xlu1 %159 }
  0xa0   :  { %v1183_v6 = vpop.permute.xlu0 %164 }
  0xa3   :  { %v1187_v9 = vpop.permute.xlu1 %169 }
  0xa4   :  { %v175_v8 = vpop.permute.xlu0 %174 }
  0xa7   :  { %v180_v23 = vpop.permute.xlu1 %179 }
  0xa8   :  { %v185_v10 = vpop.permute.xlu0 %184 }
  0xab   :  { %v190_v35 = vpop.permute.xlu1 %189 }
  0xac   :  { %v195_v50 = vpop.permute.xlu0 %194 }
  0xf1   :  { %v893_v11 = vpop.f32.mrb[0].mxu0  ;;  %v909_v12 = vpop.f32.mrb[0].mxu1 }
  0xf2   :  { %v467_v13 = vadd.f32 %v893_v11, %v105_v59  ;;  %v531_v14 = vadd.f32 %v909_v12, %v185_v10  ;;  %v458_v15 = vpop.f32.mrb[1].mxu0  ;;  %v522_v16 = vpop.f32.mrb[1].mxu1 }
  0xf3   :  { %v894_v17 = vpop.f32.mrb[2].mxu0  ;;  %v910_v18 = vpop.f32.mrb[2].mxu1  ;;  %v459_v21 = vadd.f32 %v458_v15, %v95_v57  ;;  %v523_v22 = vadd.f32 %v522_v16, %v175_v8 }
  0xf4   :  { %621 = vadd.xlane.f32.xlu1 %v531_v14  ;;  %v525_v19 = vpop.f32.mrb[3].mxu1  ;;  %589 = vadd.xlane.f32.xlu0 %v467_v13  ;;  %v461_v20 = vpop.f32.mrb[3].mxu0  ;;  %v470_v26 = vadd.f32 %v894_v17, %v110_v61  ;;  %v651_v29 = vmul.f32 %v467_v13, %v467_v13  ;;  %v534_v36 = vadd.f32 %v910_v18, %v190_v35 }
  0xf5   :  { %v667_v37 = vmul.f32 %v531_v14, %v531_v14  ;;  %v526_v40 = vadd.f32 %v525_v19, %v180_v23  ;;  %v462_v41 = vadd.f32 %v461_v20, %v100_v58  ;;  %v649_v49 = vmul.f32 %v459_v21, %v459_v21  ;;  %v205_v10 = vpop.permute.xlu0 %204  ;;  %v200_v13 = vpop.permute.xlu1 %199 }
  0xf6   :  { %v652_v48 = vmul.f32 %v470_v26, %v470_v26  ;;  %v668_v55 = vmul.f32 %v534_v36, %v534_v36  ;;  %v665_v56 = vmul.f32 %v523_v22, %v523_v22 }
  0xf7   :  { %v650_v8 = vmul.f32 %v462_v41, %v462_v41  ;;  %v666_v12 = vmul.f32 %v526_v40, %v526_v40 }
  0xf8   :  { %617 = vadd.xlane.f32.xlu1 %v523_v22  ;;  %585 = vadd.xlane.f32.xlu0 %v459_v21 }
  0xf9   :  { %v897_v24 = vpop.f32.mrb[4].mxu0  ;;  %v913_v25 = vpop.f32.mrb[4].mxu1 }
  0xfa   :  { %v474_v27 = vpop.f32.mrb[5].mxu0  ;;  %v538_v28 = vpop.f32.mrb[5].mxu1  ;;  %v483_v61 = vadd.f32 %v897_v24, %v1167_v62  ;;  %v547_v11 = vadd.f32 %v913_v25, %v205_v10 }
  0xfb   :  { %v1189_v30 = vadd.f32 %v474_v27, %v115_v60  ;;  %v898_v31 = vpop.f32.mrb[6].mxu0  ;;  %v914_v32 = vpop.f32.mrb[6].mxu1  ;;  %v539_v16 = vadd.f32 %v538_v28, %v195_v50 }
  0xfc   :  { %v541_v33 = vpop.f32.mrb[7].mxu1  ;;  %685 = vadd.xlane.f32.xlu1 %v651_v29  ;;  %v477_v34 = vpop.f32.mrb[7].mxu0  ;;  %591 = vadd.xlane.f32.xlu0 %v470_v26  ;;  %v486_v14 = vadd.f32 %v898_v31, %v1173_v1  ;;  %v655_v18 = vmul.f32 %v483_v61, %v483_v61  ;;  %v671_v20 = vmul.f32 %v547_v11, %v547_v11 }
  0xfd   :  { %v210_v15 = vpop.permute.xlu1 %209  ;;  %v478_v62 = vadd.f32 %v477_v34, %v1169_v63  ;;  %v542_v19 = vadd.f32 %v541_v33, %v200_v13  ;;  %v653_v1 = vmul.f32 %v1189_v30, %v1189_v30  ;;  %v669_v23 = vmul.f32 %v539_v16, %v539_v16  ;;  %v215_v24 = vpop.permute.xlu0 %214 }
  0xfe   :  { %v550_v17 = vadd.f32 %v914_v32, %v210_v15  ;;  %v656_v21 = vmul.f32 %v486_v14, %v486_v14 }
  0xff   :  { %v654_v25 = vmul.f32 %v478_v62, %v478_v62  ;;  %v670_v28 = vmul.f32 %v542_v19, %v542_v19 }
 0x100   :  { %717 = vadd.xlane.f32.xlu1 %v667_v37  ;;  %623 = vadd.xlane.f32.xlu0 %v534_v36  ;;  %v672_v22 = vmul.f32 %v550_v17, %v550_v17 }
 0x101   :  { %v1191_v38 = vpop.f32.mrb[8].mxu0  ;;  %v1193_v39 = vpop.f32.mrb[8].mxu1 }
 0x102   :  { %v1195_v42 = vpop.f32.mrb[9].mxu0  ;;  %v1197_v43 = vpop.f32.mrb[9].mxu1  ;;  %v499_v63 = vadd.f32 %v1191_v38, %v1175_v2 }
 0x103   :  { %v1199_v44 = vpop.f32.mrb[10].mxu0  ;;  %v1201_v45 = vpop.f32.mrb[10].mxu1  ;;  %v555_v2 = vadd.f32 %v1197_v43, %v215_v24 }
 0x104   :  { %v1203_v46 = vpop.f32.mrb[11].mxu0  ;;  %v1205_v47 = vpop.f32.mrb[11].mxu1  ;;  %587 = vadd.xlane.f32.xlu1 %v462_v41  ;;  %619 = vadd.xlane.f32.xlu0 %v526_v40  ;;  %v502_v31 = vadd.f32 %v1199_v44, %v1181_v5  ;;  %v659_v35 = vmul.f32 %v499_v63, %v499_v63 }
 0x105   :  { %v225_v26 = vpop.permute.xlu0 %224  ;;  %v220_v29 = vpop.permute.xlu1 %219  ;;  %v494_v34 = vadd.f32 %v1203_v46, %v1177_v3 }
 0x106   :  { %v563_v27 = vadd.f32 %v1193_v39, %v225_v26  ;;  %v660_v5 = vmul.f32 %v502_v31, %v502_v31  ;;  %v673_v39 = vmul.f32 %v555_v2, %v555_v2 }
 0x107   :  { %v658_v41 = vmul.f32 %v494_v34, %v494_v34 }
 0x108   :  { %687 = vadd.xlane.f32.xlu0 %v652_v48  ;;  %681 = vadd.xlane.f32.xlu1 %v649_v49  ;;  %v675_v36 = vmul.f32 %v563_v27, %v563_v27 }
 0x109   :  { %v1207_v51 = vpop.f32.mrb[12].mxu0  ;;  %v1209_v52 = vpop.f32.mrb[12].mxu1 }
 0x10a   :  { %v1211_v53 = vpop.f32.mrb[13].mxu0  ;;  %v1213_v54 = vpop.f32.mrb[13].mxu1  ;;  %v515_v3 = vadd.f32 %v1207_v51, %v1183_v6 }
 0x10b   :  { %v1215_v57 = vpop.f32.mrb[14].mxu0  ;;  %v1217_v58 = vpop.f32.mrb[14].mxu1  ;;  %v507_v46 = vadd.f32 %v1211_v53, %v1179_v4 }
 0x10c   :  { %v1219_v59 = vpop.f32.mrb[15].mxu0  ;;  %v1221_v60 = vpop.f32.mrb[15].mxu1  ;;  %719 = vadd.xlane.f32.xlu0 %v668_v55  ;;  %713 = vadd.xlane.f32.xlu1 %v665_v56  ;;  %v663_v51 = vmul.f32 %v515_v3, %v515_v3 }
 0x10d   :  { %v230_v32 = vpop.permute.xlu1 %229  ;;  %v235_v40 = vpop.permute.xlu0 %234  ;;  %v510_v50 = vadd.f32 %v1219_v59, %v1185_v7 }
 0x10e   :  { %v566_v33 = vadd.f32 %v1201_v45, %v230_v32  ;;  %v571_v6 = vadd.f32 %v1213_v54, %v235_v40 }
 0x10f   :  { %v662_v54 = vmul.f32 %v510_v50, %v510_v50 }
 0x110   :  { %683 = vadd.xlane.f32.xlu0 %v650_v8  ;;  %597 = vadd.xlane.f32.xlu1 %v483_v61  ;;  %v676_v38 = vmul.f32 %v566_v33, %v566_v33  ;;  %v677_v53 = vmul.f32 %v571_v6, %v571_v6 }
 0x111   :  { %v240_v45 = vpop.permute.xlu1 %239 }
 0x112   :  { %v574_v4 = vadd.f32 %v1221_v60, %v240_v45 }
 0x114   :  { %715 = vadd.xlane.f32.xlu0 %v666_v12  ;;  %629 = vadd.xlane.f32.xlu1 %v547_v11  ;;  %v678_v56 = vmul.f32 %v574_v4, %v574_v4 }
 0x115   :  { %v250_v48 = vpop.permute.xlu1 %249 }
 0x116   :  { %v582_v49 = vadd.f32 %v1217_v58, %v250_v48 }
 0x118   :  { %599 = vadd.xlane.f32.xlu0 %v486_v14  ;;  %593 = vadd.xlane.f32.xlu1 %v1189_v30  ;;  %v491_v30 = vadd.f32 %v1195_v42, %v1171_v0  ;;  %v558_v0 = vadd.f32 %v1205_v47, %v220_v29  ;;  %v245_v42 = vpop.permute.xlu0 %244  ;;  %v518_v47 = vadd.f32 %v1215_v57, %v1187_v9 }
 0x119   :  { %v579_v43 = vadd.f32 %v1209_v52, %v245_v42  ;;  %v661_v52 = vmul.f32 %v507_v46, %v507_v46  ;;  %v680_v57 = vmul.f32 %v582_v49, %v582_v49 }
 0x11a   :  { %v657_v37 = vmul.f32 %v491_v30, %v491_v30  ;;  %v674_v44 = vmul.f32 %v558_v0, %v558_v0  ;;  %v664_v9 = vmul.f32 %v518_v47, %v518_v47 }
 0x11b   :  { %v679_v55 = vmul.f32 %v579_v43, %v579_v43 }
 0x11c   :  { %631 = vadd.xlane.f32.xlu0 %v550_v17  ;;  %625 = vadd.xlane.f32.xlu1 %v539_v16 }
 0x120   :  { %595 = vadd.xlane.f32.xlu0 %v478_v62  ;;  %693 = vadd.xlane.f32.xlu1 %v655_v18 }
 0x124   :  { %627 = vadd.xlane.f32.xlu0 %v542_v19  ;;  %725 = vadd.xlane.f32.xlu1 %v671_v20 }
 0x128   :  { %695 = vadd.xlane.f32.xlu0 %v656_v21  ;;  %689 = vadd.xlane.f32.xlu1 %v653_v1 }
 0x12c   :  { %727 = vadd.xlane.f32.xlu0 %v672_v22  ;;  %721 = vadd.xlane.f32.xlu1 %v669_v23 }
 0x130   :  { %691 = vadd.xlane.f32.xlu0 %v654_v25  ;;  %605 = vadd.xlane.f32.xlu1 %v499_v63 }
 0x134   :  { %723 = vadd.xlane.f32.xlu0 %v670_v28  ;;  %637 = vadd.xlane.f32.xlu1 %v563_v27 }
 0x138   :  { %607 = vadd.xlane.f32.xlu0 %v502_v31  ;;  %601 = vadd.xlane.f32.xlu1 %v491_v30 }
 0x13c   :  { %639 = vadd.xlane.f32.xlu0 %v566_v33  ;;  %633 = vadd.xlane.f32.xlu1 %v555_v2 }
 0x140   :  { %603 = vadd.xlane.f32.xlu0 %v494_v34  ;;  %701 = vadd.xlane.f32.xlu1 %v659_v35 }
 0x144   :  { %635 = vadd.xlane.f32.xlu0 %v558_v0  ;;  %733 = vadd.xlane.f32.xlu1 %v675_v36 }
 0x148   :  { %703 = vadd.xlane.f32.xlu0 %v660_v5  ;;  %697 = vadd.xlane.f32.xlu1 %v657_v37 }
 0x14c   :  { %735 = vadd.xlane.f32.xlu0 %v676_v38  ;;  %729 = vadd.xlane.f32.xlu1 %v673_v39 }
 0x150   :  { %699 = vadd.xlane.f32.xlu0 %v658_v41  ;;  %613 = vadd.xlane.f32.xlu1 %v515_v3 }
 0x154   :  { %731 = vadd.xlane.f32.xlu0 %v674_v44  ;;  %645 = vadd.xlane.f32.xlu1 %v579_v43 }
 0x158   :  { %615 = vadd.xlane.f32.xlu0 %v518_v47  ;;  %609 = vadd.xlane.f32.xlu1 %v507_v46 }
 0x15c   :  { %647 = vadd.xlane.f32.xlu0 %v582_v49  ;;  %641 = vadd.xlane.f32.xlu1 %v571_v6 }
 0x160   :  { %611 = vadd.xlane.f32.xlu0 %v510_v50  ;;  %709 = vadd.xlane.f32.xlu1 %v663_v51 }
 0x164   :  { %643 = vadd.xlane.f32.xlu0 %v574_v4  ;;  %705 = vadd.xlane.f32.xlu1 %v661_v52 }
 0x168   :  { %711 = vadd.xlane.f32.xlu0 %v664_v9  ;;  %737 = vadd.xlane.f32.xlu1 %v677_v53 }
 0x16c   :  { %707 = vadd.xlane.f32.xlu0 %v662_v54  ;;  %741 = vadd.xlane.f32.xlu1 %v679_v55 }
 0x170   :  { %739 = vadd.xlane.f32.xlu0 %v678_v56 }
 0x174   :  { %743 = vadd.xlane.f32.xlu0 %v680_v57 }
 0x181   :  { %v622_v7 = vpop.xlane.xlu1 %621  ;;  %v590_v58 = vpop.xlane.xlu0 %589 }
 0x185   :  { %v618_v59 = vpop.xlane.xlu1 %617  ;;  %v586_v61 = vpop.xlane.xlu0 %585 }
 0x189   :  { %v686_v60 = vpop.xlane.xlu1 %685  ;;  %v592_v8 = vpop.xlane.xlu0 %591 }
 0x18a   :  { %v748_v10 = vsel %vm745_vm2, %v590_v58, %v686_v60 }
 0x18b   :  { %781 = vst.msk [vmem:[%s1416_s3 + $0x10] sm:$0xff] %vm778_vm3, %v748_v10 }
 0x18d   :  { %v718_v11 = vpop.xlane.xlu1 %717  ;;  %v624_v12 = vpop.xlane.xlu0 %623 }
 0x18e   :  { %v764_v13 = vsel %vm745_vm2, %v622_v7, %v718_v11 }
 0x18f   :  { %797 = vst.msk [vmem:[%s1416_s3 + $0x90] sm:$0xff] %vm778_vm3, %v764_v13 }
 0x191   :  { %v588_v14 = vpop.xlane.xlu1 %587  ;;  %v620_v15 = vpop.xlane.xlu0 %619 }
 0x195   :  { %v688_v16 = vpop.xlane.xlu0 %687  ;;  %v682_v17 = vpop.xlane.xlu1 %681 }
 0x196   :  { %v749_v62 = vsel %vm745_vm2, %v592_v8, %v688_v16  ;;  %v746_v18 = vsel %vm745_vm2, %v586_v61, %v682_v17 }
 0x197   :  { %782 = vst.msk [vmem:[%s1416_s3 + $0x18] sm:$0xff] %vm778_vm3, %v749_v62  ;;  %779 = vst.msk [vmem:[%s1416_s3] sm:$0xff] %vm778_vm3, %v746_v18 }
 0x199   :  { %v720_v19 = vpop.xlane.xlu0 %719  ;;  %v714_v20 = vpop.xlane.xlu1 %713 }
 0x19a   :  { %v765_v21 = vsel %vm745_vm2, %v624_v12, %v720_v19  ;;  %v762_v1 = vsel %vm745_vm2, %v618_v59, %v714_v20 }
 0x19b   :  { %798 = vst.msk [vmem:[%s1416_s3 + $0x98] sm:$0xff] %vm778_vm3, %v765_v21  ;;  %795 = vst.msk [vmem:[%s1416_s3 + $0x80] sm:$0xff] %vm778_vm3, %v762_v1 }
 0x19d   :  { %v684_v22 = vpop.xlane.xlu0 %683  ;;  %v598_v23 = vpop.xlane.xlu1 %597 }
 0x19e   :  { %v747_v24 = vsel %vm745_vm2, %v588_v14, %v684_v22 }
 0x19f   :  { %780 = vst.msk [vmem:[%s1416_s3 + $0x8] sm:$0xff] %vm778_vm3, %v747_v24 }
 0x1a1   :  { %v716_v63 = vpop.xlane.xlu0 %715  ;;  %v630_v25 = vpop.xlane.xlu1 %629 }
 0x1a2   :  { %v763_v26 = vsel %vm745_vm2, %v620_v15, %v716_v63 }
 0x1a3   :  { %796 = vst.msk [vmem:[%s1416_s3 + $0x88] sm:$0xff] %vm778_vm3, %v763_v26 }
 0x1a5   :  { %v600_v27 = vpop.xlane.xlu0 %599  ;;  %v594_v28 = vpop.xlane.xlu1 %593 }
 0x1a9   :  { %v632_v29 = vpop.xlane.xlu0 %631  ;;  %v626_v30 = vpop.xlane.xlu1 %625 }
 0x1ad   :  { %v596_v31 = vpop.xlane.xlu0 %595  ;;  %v694_v32 = vpop.xlane.xlu1 %693 }
 0x1ae   :  { %v752_v2 = vsel %vm745_vm2, %v598_v23, %v694_v32 }
 0x1af   :  { %785 = vst.msk [vmem:[%s1416_s3 + $0x30] sm:$0xff] %vm778_vm3, %v752_v2 }
 0x1b1   :  { %v628_v33 = vpop.xlane.xlu0 %627  ;;  %v726_v34 = vpop.xlane.xlu1 %725 }
 0x1b2   :  { %v768_v35 = vsel %vm745_vm2, %v630_v25, %v726_v34 }
 0x1b3   :  { %801 = vst.msk [vmem:[%s1416_s3 + $0xb0] sm:$0xff] %vm778_vm3, %v768_v35 }
 0x1b5   :  { %v696_v0 = vpop.xlane.xlu0 %695  ;;  %v690_v36 = vpop.xlane.xlu1 %689 }
 0x1b6   :  { %v753_v5 = vsel %vm745_vm2, %v600_v27, %v696_v0  ;;  %v750_v37 = vsel %vm745_vm2, %v594_v28, %v690_v36 }
 0x1b7   :  { %786 = vst.msk [vmem:[%s1416_s3 + $0x38] sm:$0xff] %vm778_vm3, %v753_v5  ;;  %783 = vst.msk [vmem:[%s1416_s3 + $0x20] sm:$0xff] %vm778_vm3, %v750_v37 }
 0x1b9   :  { %v728_v38 = vpop.xlane.xlu0 %727  ;;  %v722_v39 = vpop.xlane.xlu1 %721 }
 0x1ba   :  { %v769_v40 = vsel %vm745_vm2, %v632_v29, %v728_v38  ;;  %v766_v3 = vsel %vm745_vm2, %v626_v30, %v722_v39 }
 0x1bb   :  { %802 = vst.msk [vmem:[%s1416_s3 + $0xb8] sm:$0xff] %vm778_vm3, %v769_v40  ;;  %799 = vst.msk [vmem:[%s1416_s3 + $0xa0] sm:$0xff] %vm778_vm3, %v766_v3 }
 0x1bd   :  { %v692_v41 = vpop.xlane.xlu0 %691  ;;  %v606_v42 = vpop.xlane.xlu1 %605 }
 0x1be   :  { %v751_v43 = vsel %vm745_vm2, %v596_v31, %v692_v41 }
 0x1bf   :  { %784 = vst.msk [vmem:[%s1416_s3 + $0x28] sm:$0xff] %vm778_vm3, %v751_v43 }
 0x1c1   :  { %v724_v44 = vpop.xlane.xlu0 %723  ;;  %v638_v45 = vpop.xlane.xlu1 %637 }
 0x1c2   :  { %v767_v46 = vsel %vm745_vm2, %v628_v33, %v724_v44 }
 0x1c3   :  { %800 = vst.msk [vmem:[%s1416_s3 + $0xa8] sm:$0xff] %vm778_vm3, %v767_v46 }
 0x1c5   :  { %v608_v47 = vpop.xlane.xlu0 %607  ;;  %v602_v48 = vpop.xlane.xlu1 %601 }
 0x1c9   :  { %v640_v6 = vpop.xlane.xlu0 %639  ;;  %v634_v49 = vpop.xlane.xlu1 %633 }
 0x1cd   :  { %v604_v50 = vpop.xlane.xlu0 %603  ;;  %v702_v51 = vpop.xlane.xlu1 %701 }
 0x1ce   :  { %v756_v4 = vsel %vm745_vm2, %v606_v42, %v702_v51 }
 0x1cf   :  { %789 = vst.msk [vmem:[%s1416_s3 + $0x50] sm:$0xff] %vm778_vm3, %v756_v4 }
 0x1d1   :  { %v636_v52 = vpop.xlane.xlu0 %635  ;;  %v734_v9 = vpop.xlane.xlu1 %733 }
 0x1d2   :  { %v772_v53 = vsel %vm745_vm2, %v638_v45, %v734_v9 }
 0x1d3   :  { %805 = vst.msk [vmem:[%s1416_s3 + $0xd0] sm:$0xff] %vm778_vm3, %v772_v53 }
 0x1d5   :  { %v704_v54 = vpop.xlane.xlu0 %703  ;;  %v698_v55 = vpop.xlane.xlu1 %697 }
 0x1d6   :  { %v757_v56 = vsel %vm745_vm2, %v608_v47, %v704_v54  ;;  %v754_v57 = vsel %vm745_vm2, %v602_v48, %v698_v55 }
 0x1d7   :  { %790 = vst.msk [vmem:[%s1416_s3 + $0x58] sm:$0xff] %vm778_vm3, %v757_v56  ;;  %787 = vst.msk [vmem:[%s1416_s3 + $0x40] sm:$0xff] %vm778_vm3, %v754_v57 }
 0x1d9   :  { %v736_v7 = vpop.xlane.xlu0 %735  ;;  %v730_v58 = vpop.xlane.xlu1 %729 }
 0x1da   :  { %v773_v59 = vsel %vm745_vm2, %v640_v6, %v736_v7  ;;  %v770_v61 = vsel %vm745_vm2, %v634_v49, %v730_v58 }
 0x1db   :  { %806 = vst.msk [vmem:[%s1416_s3 + $0xd8] sm:$0xff] %vm778_vm3, %v773_v59  ;;  %803 = vst.msk [vmem:[%s1416_s3 + $0xc0] sm:$0xff] %vm778_vm3, %v770_v61 }
 0x1dd   :  { %v700_v60 = vpop.xlane.xlu0 %699  ;;  %v614_v8 = vpop.xlane.xlu1 %613 }
 0x1de   :  { %v755_v10 = vsel %vm745_vm2, %v604_v50, %v700_v60 }
 0x1df   :  { %788 = vst.msk [vmem:[%s1416_s3 + $0x48] sm:$0xff] %vm778_vm3, %v755_v10 }
 0x1e1   :  { %v732_v11 = vpop.xlane.xlu0 %731  ;;  %v646_v12 = vpop.xlane.xlu1 %645 }
 0x1e2   :  { %v771_v13 = vsel %vm745_vm2, %v636_v52, %v732_v11 }
 0x1e3   :  { %804 = vst.msk [vmem:[%s1416_s3 + $0xc8] sm:$0xff] %vm778_vm3, %v771_v13 }
 0x1e5   :  { %v616_v14 = vpop.xlane.xlu0 %615  ;;  %v610_v15 = vpop.xlane.xlu1 %609 }
 0x1e9   :  { %v648_v16 = vpop.xlane.xlu0 %647  ;;  %v642_v17 = vpop.xlane.xlu1 %641 }
 0x1ed   :  { %v612_v62 = vpop.xlane.xlu0 %611  ;;  %v710_v18 = vpop.xlane.xlu1 %709 }
 0x1ee   :  { %v760_v19 = vsel %vm745_vm2, %v614_v8, %v710_v18 }
 0x1ef   :  { %793 = vst.msk [vmem:[%s1416_s3 + $0x70] sm:$0xff] %vm778_vm3, %v760_v19 }
 0x1f1   :  { %v644_v20 = vpop.xlane.xlu0 %643  ;;  %v706_v21 = vpop.xlane.xlu1 %705 }
 0x1f2   :  { %v758_v1 = vsel %vm745_vm2, %v610_v15, %v706_v21 }
 0x1f3   :  { %791 = vst.msk [vmem:[%s1416_s3 + $0x60] sm:$0xff] %vm778_vm3, %v758_v1 }
 0x1f5   :  { %v712_v22 = vpop.xlane.xlu0 %711  ;;  %v738_v23 = vpop.xlane.xlu1 %737 }
 0x1f6   :  { %v761_v24 = vsel %vm745_vm2, %v616_v14, %v712_v22  ;;  %v774_v63 = vsel %vm745_vm2, %v642_v17, %v738_v23 }
 0x1f7   :  { %794 = vst.msk [vmem:[%s1416_s3 + $0x78] sm:$0xff] %vm778_vm3, %v761_v24  ;;  %807 = vst.msk [vmem:[%s1416_s3 + $0xe0] sm:$0xff] %vm778_vm3, %v774_v63 }
 0x1f9   :  { %v708_v25 = vpop.xlane.xlu0 %707  ;;  %v742_v26 = vpop.xlane.xlu1 %741 }
 0x1fa   :  { %v759_v27 = vsel %vm745_vm2, %v612_v62, %v708_v25  ;;  %v776_v28 = vsel %vm745_vm2, %v646_v12, %v742_v26 }
 0x1fb   :  { %792 = vst.msk [vmem:[%s1416_s3 + $0x68] sm:$0xff] %vm778_vm3, %v759_v27  ;;  %809 = vst.msk [vmem:[%s1416_s3 + $0xf0] sm:$0xff] %vm778_vm3, %v776_v28 }
 0x1fd   :  { %v740_v29 = vpop.xlane.xlu0 %739 }
 0x1fe   :  { %v775_v30 = vsel %vm745_vm2, %v644_v20, %v740_v29 }
 0x1ff   :  { %808 = vst.msk [vmem:[%s1416_s3 + $0xe8] sm:$0xff] %vm778_vm3, %v775_v30 }
 0x201   :  { %v744_v31 = vpop.xlane.xlu0 %743 }
 0x202   :  { %v777_v32 = vsel %vm745_vm2, %v648_v16, %v744_v31 }
 0x203   :  { %810 = vst.msk [vmem:[%s1416_s3 + $0xf8] sm:$0xff] %vm778_vm3, %v777_v32 }

// kernel: interfuse_forward.4
= control target key start
LH: loop header
LB: loop body
LE: loop exit
PB: predicated region body
PF: predicated region fallthrough
CT: control target
= control target key end

     0   :  { %v3288_v0 = vmov 0   ;;  %vm585_vm0 = vcmask 818176   ;;  %vm634_vm1 = vcmask 1041408   ;;  %vm2712_vm2 = vcmask 7168   ;;  %s5342_s3 = inlined_call_operand.vmem [shape: f32[256,1], index: 3, kind: input, shape index: {}]   ;;  %s5343_s0 = inlined_call_operand.vmem [shape: bf16[1,100,128], index: 0, kind: input, shape index: {}]   ;;  %s5344_s2 = inlined_call_operand.vmem [shape: bf16[256,100], index: 2, kind: input, shape index: {}]   ;;  %s5345_s8 = inlined_call_operand.vmem [shape: f32[256,1], index: 8, kind: input, shape index: {}]   ;;  %s5346_s9 = inlined_call_operand.vmem [shape: f32[256,1], index: 9, kind: input, shape index: {}]   ;;  %s5347_s5 = inlined_call_operand.vmem [shape: f32[256,1], index: 5, kind: input, shape index: {}]   ;;  %s5348_s4 = inlined_call_operand.vmem [shape: bf16[256,256], index: 4, kind: input, shape index: {}]   ;;  %s5349_s6 = inlined_call_operand.vmem [shape: f32[256,2], index: 6, kind: input, shape index: {}]   ;;  %s5350_s7 = inlined_call_operand.vmem [shape: f32[256,1], index: 7, kind: input, shape index: {}]   ;;  %s5351_s1 = inlined_call_operand.vmem [shape: f32[1,2,128], index: 1, kind: input, shape index: {}]   ;;  %s5352_s10 = inlined_call_operand.vmem [shape: f32[1,1,256,2], index: 10, kind: output, shape index: {}]  }
   0x1   :  { %3086 = vset.pattern.permute.xlu1 %v3288_v0  ;;  %3085 = vset.pattern.permute.xlu0 %v3288_v0  ;;  %v84_v1 = vld [vmem:[%s5342_s3 + $0x10] sm:$0xff]  ;;  %v82_v2 = vld [vmem:[%s5342_s3] sm:$0xff]  ;;  %v85_v4 = vld [vmem:[%s5342_s3 + $0x18] sm:$0xff]  ;;  %vm2745_vm3 = vcmask 15360  }
   0x2   :  { %318 = vperm.xlu1 %3086, %v84_v1   ;;  %308 = vperm.xlu0 %3085, %v82_v2   ;;  %v3089_v3 = vld [vmem:[%s5343_s0] sm:$0xff]   ;;  %v83_v5 = vld [vmem:[%s5342_s3 + $0x8] sm:$0xff]  ;;  %v3091_v9 = vld [vmem:[%s5343_s0 + $0x10] sm:$0xff]  }
   0x3   :  { %3020 = vmatprep.subr.bf16.mxu0 %v3089_v3  ;;  %v3090_v6 = vld [vmem:[%s5343_s0 + $0x8] sm:$0xff]   ;;  %v86_v8 = vld [vmem:[%s5342_s3 + $0x20] sm:$0xff]  ;;  %v89_v10 = vld [vmem:[%s5342_s3 + $0x38] sm:$0xff] }
   0x4   :  { %3021 = vmatpush3.bf16.msra.mxu0 %v3089_v3  ;;  %v87_v7 = vld [vmem:[%s5342_s3 + $0x28] sm:$0xff]  ;;  %v88_v11 = vld [vmem:[%s5342_s3 + $0x30] sm:$0xff]  ;;  %v3092_v12 = vld [vmem:[%s5343_s0 + $0x18] sm:$0xff]  }
   0x5   :  { %3022 = vmatprep.subr.bf16.mxu0 %v3090_v6  ;;  %v3096_v13 = vld [vmem:[%s5344_s2] sm:$0xff]   ;;  %v91_v14 = vld [vmem:[%s5342_s3 + $0x48] sm:$0xff]  ;;  %v93_v17 = vld [vmem:[%s5342_s3 + $0x58] sm:$0xff] }
   0x6   :  { %323 = vperm.xlu1 %3086, %v85_v4   ;;  %313 = vperm.xlu0 %3085, %v83_v5   ;;  %v90_v15 = vld [vmem:[%s5342_s3 + $0x40] sm:$0xff]  ;;  %v92_v18 = vld [vmem:[%s5342_s3 + $0x50] sm:$0xff]  ;;  %v3094_v19 = vld [vmem:[%s5343_s0 + $0x28] sm:$0xff]  }
   0x7   :  { %v3093_v16 = vld [vmem:[%s5343_s0 + $0x20] sm:$0xff]   ;;  %3034 = vmatprep.mubr.msk.bf16.mxu0 %vm585_vm0, %v3096_v13  ;;  %v95_v20 = vld [vmem:[%s5342_s3 + $0x68] sm:$0xff]  ;;  %v3095_v21 = vld [vmem:[%s5343_s0 + $0x30] ss:$0 sps:$4 sm:$0x33]  }
   0x8   :  { %3023 = vmatpush3.bf16.msra.mxu0 %v3090_v6  ;;  %v94_v22 = vld [vmem:[%s5342_s3 + $0x60] sm:$0xff]  ;;  %v636_v23 = vsel %vm634_vm1, %v3095_v21, 0  ;;  %v97_v24 = vld [vmem:[%s5342_s3 + $0x78] sm:$0xff]  ;;  %v96_v25 = vld [vmem:[%s5342_s3 + $0x70] sm:$0xff] }
   0x9   :  { %3024 = vmatprep.subr.bf16.mxu0 %v3091_v9  ;;  %v3097_v26 = vld [vmem:[%s5344_s2 + $0x8] sm:$0xff]   ;;  %v3098_v27 = vld [vmem:[%s5344_s2 + $0x10] sm:$0xff]   ;;  %v98_v29 = vld [vmem:[%s5342_s3 + $0x80] sm:$0xff] }
   0xa   :  { %333 = vperm.xlu1 %3086, %v87_v7   ;;  %328 = vperm.xlu0 %3085, %v86_v8   ;;  %v99_v28 = vld [vmem:[%s5342_s3 + $0x88] sm:$0xff]  ;;  %v101_v30 = vld [vmem:[%s5342_s3 + $0x98] sm:$0xff]  ;;  %v100_v31 = vld [vmem:[%s5342_s3 + $0x90] sm:$0xff] }
   0xb   :  { %v3099_v32 = vld [vmem:[%s5344_s2 + $0x18] sm:$0xff]   ;;  %v3100_v33 = vld [vmem:[%s5344_s2 + $0x20] sm:$0xff]   ;;  %v103_v34 = vld [vmem:[%s5342_s3 + $0xa8] sm:$0xff] }
   0xc   :  { %3025 = vmatpush3.bf16.msra.mxu0 %v3091_v9  ;;  %v102_v35 = vld [vmem:[%s5342_s3 + $0xa0] sm:$0xff]  ;;  %v105_v36 = vld [vmem:[%s5342_s3 + $0xb8] sm:$0xff]  ;;  %v104_v37 = vld [vmem:[%s5342_s3 + $0xb0] sm:$0xff] }
   0xd   :  { %3026 = vmatprep.subr.bf16.mxu0 %v3092_v12  ;;  %v3101_v38 = vld [vmem:[%s5344_s2 + $0x28] sm:$0xff]   ;;  %v3102_v39 = vld [vmem:[%s5344_s2 + $0x30] sm:$0xff]   ;;  %v106_v41 = vld [vmem:[%s5342_s3 + $0xc0] sm:$0xff] }
   0xe   :  { %343 = vperm.xlu1 %3086, %v89_v10   ;;  %338 = vperm.xlu0 %3085, %v88_v11   ;;  %v107_v40 = vld [vmem:[%s5342_s3 + $0xc8] sm:$0xff]  ;;  %v109_v42 = vld [vmem:[%s5342_s3 + $0xd8] sm:$0xff]  ;;  %v108_v43 = vld [vmem:[%s5342_s3 + $0xd0] sm:$0xff] }
   0xf   :  { %v3103_v44 = vld [vmem:[%s5344_s2 + $0x38] sm:$0xff]   ;;  %v3104_v45 = vld [vmem:[%s5344_s2 + $0x40] sm:$0xff]   ;;  %v111_v46 = vld [vmem:[%s5342_s3 + $0xe8] sm:$0xff] }
  0x10   :  { %3027 = vmatpush3.bf16.msra.mxu0 %v3092_v12  ;;  %v110_v47 = vld [vmem:[%s5342_s3 + $0xe0] sm:$0xff]  ;;  %v113_v48 = vld [vmem:[%s5342_s3 + $0xf8] sm:$0xff]  ;;  %v112_v49 = vld [vmem:[%s5342_s3 + $0xf0] sm:$0xff] }
  0x11   :  { %3028 = vmatprep.subr.bf16.mxu0 %v3093_v16  ;;  %v3105_v50 = vld [vmem:[%s5344_s2 + $0x48] sm:$0xff]   ;;  %v3106_v51 = vld [vmem:[%s5344_s2 + $0x50] sm:$0xff]   ;;  %v242_v53 = vld [vmem:[%s5345_s8] sm:$0xff] }
  0x12   :  { %353 = vperm.xlu1 %3086, %v91_v14   ;;  %348 = vperm.xlu0 %3085, %v90_v15   ;;  %v243_v52 = vld [vmem:[%s5345_s8 + $0x8] sm:$0xff]  ;;  %v245_v54 = vld [vmem:[%s5345_s8 + $0x18] sm:$0xff]  ;;  %v244_v55 = vld [vmem:[%s5345_s8 + $0x10] sm:$0xff] }
  0x13   :  { %v3107_v56 = vld [vmem:[%s5344_s2 + $0x58] sm:$0xff]   ;;  %v3108_v57 = vld [vmem:[%s5344_s2 + $0x60] sm:$0xff]   ;;  %v247_v58 = vld [vmem:[%s5345_s8 + $0x28] sm:$0xff] }
  0x14   :  { %3029 = vmatpush3.bf16.msra.mxu0 %v3093_v16  ;;  %v246_v59 = vld [vmem:[%s5345_s8 + $0x20] sm:$0xff]  ;;  %v249_v60 = vld [vmem:[%s5345_s8 + $0x38] sm:$0xff]  ;;  %v248_v61 = vld [vmem:[%s5345_s8 + $0x30] sm:$0xff] }
  0x15   :  { %3030 = vmatprep.subr.bf16.mxu0 %v3094_v19  ;;  %v3109_v62 = vld [vmem:[%s5344_s2 + $0x68] sm:$0xff]   ;;  %v3110_v63 = vld [vmem:[%s5344_s2 + $0x70] sm:$0xff]   ;;  %v250_v1 = vld [vmem:[%s5345_s8 + $0x40] sm:$0xff] }
  0x16   :  { %363 = vperm.xlu1 %3086, %v93_v17   ;;  %358 = vperm.xlu0 %3085, %v92_v18   ;;  %v251_v0 = vld [vmem:[%s5345_s8 + $0x48] sm:$0xff]  ;;  %v253_v2 = vld [vmem:[%s5345_s8 + $0x58] sm:$0xff]  ;;  %v252_v3 = vld [vmem:[%s5345_s8 + $0x50] sm:$0xff] }
  0x17   :  { %v3111_v4 = vld [vmem:[%s5344_s2 + $0x78] sm:$0xff]   ;;  %v255_v5 = vld [vmem:[%s5345_s8 + $0x68] sm:$0xff]  ;;  %v254_v6 = vld [vmem:[%s5345_s8 + $0x60] sm:$0xff] }
  0x18   :  { %3031 = vmatpush3.bf16.msra.mxu0 %v3094_v19  ;;  %v257_v7 = vld [vmem:[%s5345_s8 + $0x78] sm:$0xff]  ;;  %v256_v8 = vld [vmem:[%s5345_s8 + $0x70] sm:$0xff]  ;;  %v259_v9 = vld [vmem:[%s5345_s8 + $0x88] sm:$0xff] }
  0x19   :  { %3082 = vmatprep.subr.msk.bf16.mxu0 %vm634_vm1, %v3095_v21  ;;  %v258_v10 = vld [vmem:[%s5345_s8 + $0x80] sm:$0xff]  ;;  %v261_v11 = vld [vmem:[%s5345_s8 + $0x98] sm:$0xff]  ;;  %v260_v12 = vld [vmem:[%s5345_s8 + $0x90] sm:$0xff] }
  0x1a   :  { %373 = vperm.xlu1 %3086, %v95_v20   ;;  %368 = vperm.xlu0 %3085, %v94_v22   ;;  %v263_v13 = vld [vmem:[%s5345_s8 + $0xa8] sm:$0xff]  ;;  %v262_v14 = vld [vmem:[%s5345_s8 + $0xa0] sm:$0xff]  ;;  %v265_v15 = vld [vmem:[%s5345_s8 + $0xb8] sm:$0xff] }
  0x1b   :  { %v264_v16 = vld [vmem:[%s5345_s8 + $0xb0] sm:$0xff]  ;;  %v267_v17 = vld [vmem:[%s5345_s8 + $0xc8] sm:$0xff]  ;;  %v266_v18 = vld [vmem:[%s5345_s8 + $0xc0] sm:$0xff] }
  0x1c   :  { %3033 = vmatpush3.bf16.msra.mxu0 %v636_v23  ;;  %v269_v19 = vld [vmem:[%s5345_s8 + $0xd8] sm:$0xff]  ;;  %v268_v20 = vld [vmem:[%s5345_s8 + $0xd0] sm:$0xff]  ;;  %v271_v21 = vld [vmem:[%s5345_s8 + $0xe8] sm:$0xff] }
  0x1d   :  { %v270_v22 = vld [vmem:[%s5345_s8 + $0xe0] sm:$0xff]  ;;  %v273_v23 = vld [vmem:[%s5345_s8 + $0xf8] sm:$0xff] }
  0x1e   :  { %383 = vperm.xlu1 %3086, %v97_v24   ;;  %378 = vperm.xlu0 %3085, %v96_v25   ;;  %v272_v24 = vld [vmem:[%s5345_s8 + $0xf0] sm:$0xff]  ;;  %v275_v25 = vld [vmem:[%s5346_s9 + $0x8] sm:$0xff] }
  0x1f   :  { %3035 = vmatmul.mubr.msk.bf16.vlgmr.msra.gmra.mrb[0].mxu0 %vm585_vm0, %v3097_v26  ;;  %v274_v26 = vld [vmem:[%s5346_s9] sm:$0xff] }
  0x20   :  { %3038 = vmatprep.mubr.msk.bf16.mxu0 %vm585_vm0, %v3098_v27 }
  0x22   :  { %393 = vperm.xlu1 %3086, %v99_v28   ;;  %388 = vperm.xlu0 %3085, %v98_v29   ;;  %v277_v29 = vld [vmem:[%s5346_s9 + $0x18] sm:$0xff] }
  0x26   :  { %403 = vperm.xlu1 %3086, %v101_v30   ;;  %398 = vperm.xlu0 %3085, %v100_v31   ;;  %v276_v30 = vld [vmem:[%s5346_s9 + $0x10] sm:$0xff] }
  0x27   :  { %3039 = vmatmul.mubr.msk.bf16.gmra.mrb[4].mxu0 %vm585_vm0, %v3099_v32 }
  0x28   :  { %3042 = vmatprep.mubr.msk.bf16.mxu0 %vm585_vm0, %v3100_v33  ;;  %v279_v33 = vld [vmem:[%s5346_s9 + $0x28] sm:$0xff] }
  0x2a   :  { %413 = vperm.xlu1 %3086, %v103_v34   ;;  %408 = vperm.xlu0 %3085, %v102_v35   ;;  %v278_v34 = vld [vmem:[%s5346_s9 + $0x20] sm:$0xff] }
  0x2e   :  { %423 = vperm.xlu1 %3086, %v105_v36   ;;  %418 = vperm.xlu0 %3085, %v104_v37   ;;  %v281_v37 = vld [vmem:[%s5346_s9 + $0x38] sm:$0xff] }
  0x2f   :  { %3043 = vmatmul.mubr.msk.bf16.gmra.mrb[8].mxu0 %vm585_vm0, %v3101_v38  ;;  %v280_v38 = vld [vmem:[%s5346_s9 + $0x30] sm:$0xff] }
  0x30   :  { %3046 = vmatprep.mubr.msk.bf16.mxu0 %vm585_vm0, %v3102_v39 }
  0x32   :  { %433 = vperm.xlu1 %3086, %v107_v40   ;;  %428 = vperm.xlu0 %3085, %v106_v41   ;;  %v283_v41 = vld [vmem:[%s5346_s9 + $0x48] sm:$0xff] }
  0x36   :  { %443 = vperm.xlu1 %3086, %v109_v42   ;;  %438 = vperm.xlu0 %3085, %v108_v43   ;;  %v282_v42 = vld [vmem:[%s5346_s9 + $0x40] sm:$0xff] }
  0x37   :  { %3047 = vmatmul.mubr.msk.bf16.gmra.mrb[12].mxu0 %vm585_vm0, %v3103_v44 }
  0x38   :  { %3050 = vmatprep.mubr.msk.bf16.mxu0 %vm585_vm0, %v3104_v45  ;;  %v285_v45 = vld [vmem:[%s5346_s9 + $0x58] sm:$0xff] }
  0x3a   :  { %453 = vperm.xlu1 %3086, %v111_v46   ;;  %448 = vperm.xlu0 %3085, %v110_v47   ;;  %v284_v46 = vld [vmem:[%s5346_s9 + $0x50] sm:$0xff] }
  0x3e   :  { %463 = vperm.xlu1 %3086, %v113_v48   ;;  %458 = vperm.xlu0 %3085, %v112_v49   ;;  %v287_v49 = vld [vmem:[%s5346_s9 + $0x68] sm:$0xff] }
  0x3f   :  { %3051 = vmatmul.mubr.msk.bf16.gmra.mrb[16].mxu0 %vm585_vm0, %v3105_v50  ;;  %v286_v50 = vld [vmem:[%s5346_s9 + $0x60] sm:$0xff] }
  0x40   :  { %3054 = vmatprep.mubr.msk.bf16.mxu0 %vm585_vm0, %v3106_v51 }
  0x42   :  { %806 = vperm.xlu1 %3086, %v243_v52   ;;  %801 = vperm.xlu0 %3085, %v242_v53   ;;  %v289_v53 = vld [vmem:[%s5346_s9 + $0x78] sm:$0xff] }
  0x46   :  { %816 = vperm.xlu1 %3086, %v245_v54   ;;  %811 = vperm.xlu0 %3085, %v244_v55   ;;  %v288_v54 = vld [vmem:[%s5346_s9 + $0x70] sm:$0xff] }
  0x47   :  { %3055 = vmatmul.mubr.msk.bf16.gmra.mrb[20].mxu0 %vm585_vm0, %v3107_v56 }
  0x48   :  { %3058 = vmatprep.mubr.msk.bf16.mxu0 %vm585_vm0, %v3108_v57  ;;  %v291_v57 = vld [vmem:[%s5346_s9 + $0x88] sm:$0xff] }
  0x4a   :  { %826 = vperm.xlu1 %3086, %v247_v58   ;;  %821 = vperm.xlu0 %3085, %v246_v59   ;;  %v290_v58 = vld [vmem:[%s5346_s9 + $0x80] sm:$0xff] }
  0x4e   :  { %836 = vperm.xlu1 %3086, %v249_v60   ;;  %831 = vperm.xlu0 %3085, %v248_v61   ;;  %v293_v61 = vld [vmem:[%s5346_s9 + $0x98] sm:$0xff] }
  0x4f   :  { %3059 = vmatmul.mubr.msk.bf16.gmra.mrb[24].mxu0 %vm585_vm0, %v3109_v62  ;;  %v292_v62 = vld [vmem:[%s5346_s9 + $0x90] sm:$0xff] }
  0x50   :  { %3062 = vmatprep.mubr.msk.bf16.mxu0 %vm585_vm0, %v3110_v63 }
  0x52   :  { %846 = vperm.xlu1 %3086, %v251_v0   ;;  %841 = vperm.xlu0 %3085, %v250_v1   ;;  %v295_v1 = vld [vmem:[%s5346_s9 + $0xa8] sm:$0xff] }
  0x56   :  { %856 = vperm.xlu1 %3086, %v253_v2   ;;  %851 = vperm.xlu0 %3085, %v252_v3   ;;  %v294_v2 = vld [vmem:[%s5346_s9 + $0xa0] sm:$0xff] }
  0x57   :  { %3063 = vmatmul.mubr.msk.bf16.gmra.mrb[28].mxu0 %vm585_vm0, %v3111_v4 }
  0x5a   :  { %866 = vperm.xlu1 %3086, %v255_v5   ;;  %861 = vperm.xlu0 %3085, %v254_v6   ;;  %v297_v5 = vld [vmem:[%s5346_s9 + $0xb8] sm:$0xff]  ;;  %v296_v6 = vld [vmem:[%s5346_s9 + $0xb0] sm:$0xff] }
  0x5e   :  { %876 = vperm.xlu1 %3086, %v257_v7   ;;  %871 = vperm.xlu0 %3085, %v256_v8  }
  0x62   :  { %886 = vperm.xlu1 %3086, %v259_v9   ;;  %881 = vperm.xlu0 %3085, %v258_v10   ;;  %v299_v9 = vld [vmem:[%s5346_s9 + $0xc8] sm:$0xff]  ;;  %v298_v10 = vld [vmem:[%s5346_s9 + $0xc0] sm:$0xff] }
  0x66   :  { %896 = vperm.xlu1 %3086, %v261_v11   ;;  %891 = vperm.xlu0 %3085, %v260_v12  }
  0x6a   :  { %906 = vperm.xlu1 %3086, %v263_v13   ;;  %901 = vperm.xlu0 %3085, %v262_v14   ;;  %v301_v13 = vld [vmem:[%s5346_s9 + $0xd8] sm:$0xff]  ;;  %v300_v14 = vld [vmem:[%s5346_s9 + $0xd0] sm:$0xff] }
  0x6e   :  { %916 = vperm.xlu1 %3086, %v265_v15   ;;  %911 = vperm.xlu0 %3085, %v264_v16  }
  0x72   :  { %926 = vperm.xlu1 %3086, %v267_v17   ;;  %921 = vperm.xlu0 %3085, %v266_v18   ;;  %v303_v17 = vld [vmem:[%s5346_s9 + $0xe8] sm:$0xff]  ;;  %v302_v18 = vld [vmem:[%s5346_s9 + $0xe0] sm:$0xff] }
  0x76   :  { %936 = vperm.xlu1 %3086, %v269_v19   ;;  %931 = vperm.xlu0 %3085, %v268_v20  }
  0x7a   :  { %946 = vperm.xlu1 %3086, %v271_v21   ;;  %941 = vperm.xlu0 %3085, %v270_v22   ;;  %v305_v21 = vld [vmem:[%s5346_s9 + $0xf8] sm:$0xff]  ;;  %v304_v22 = vld [vmem:[%s5346_s9 + $0xf0] sm:$0xff] }
  0x7e   :  { %956 = vperm.xlu1 %3086, %v273_v23   ;;  %951 = vperm.xlu0 %3085, %v272_v24  }
  0x81   :  { %v3628_v27 = vpop.permute.xlu1 %318  ;;  %v3630_v28 = vpop.permute.xlu0 %308 }
  0x82   :  { %998 = vperm.xlu1 %3086, %v275_v25   ;;  %993 = vperm.xlu0 %3085, %v274_v26   ;;  %v147_v25 = vld [vmem:[%s5347_s5 + $0x8] sm:$0xff]  ;;  %v146_v26 = vld [vmem:[%s5347_s5] sm:$0xff] }
  0x85   :  { %v3638_v31 = vpop.permute.xlu1 %323  ;;  %v3640_v32 = vpop.permute.xlu0 %313 }
  0x86   :  { %1008 = vperm.xlu1 %3086, %v277_v29   ;;  %1003 = vperm.xlu0 %3085, %v276_v30  }
  0x89   :  { %v3648_v35 = vpop.permute.xlu1 %333  ;;  %v3650_v36 = vpop.permute.xlu0 %328 }
  0x8a   :  { %1018 = vperm.xlu1 %3086, %v279_v33   ;;  %1013 = vperm.xlu0 %3085, %v278_v34   ;;  %v149_v33 = vld [vmem:[%s5347_s5 + $0x18] sm:$0xff]  ;;  %v148_v34 = vld [vmem:[%s5347_s5 + $0x10] sm:$0xff] }
  0x8d   :  { %v3658_v39 = vpop.permute.xlu1 %343  ;;  %v3660_v40 = vpop.permute.xlu0 %338 }
  0x8e   :  { %1028 = vperm.xlu1 %3086, %v281_v37   ;;  %1023 = vperm.xlu0 %3085, %v280_v38  }
  0x91   :  { %v3668_v43 = vpop.permute.xlu1 %353  ;;  %v3670_v44 = vpop.permute.xlu0 %348 }
  0x92   :  { %1038 = vperm.xlu1 %3086, %v283_v41   ;;  %1033 = vperm.xlu0 %3085, %v282_v42   ;;  %v151_v41 = vld [vmem:[%s5347_s5 + $0x28] sm:$0xff]  ;;  %v150_v42 = vld [vmem:[%s5347_s5 + $0x20] sm:$0xff] }
  0x95   :  { %v3678_v47 = vpop.permute.xlu1 %363  ;;  %v3680_v48 = vpop.permute.xlu0 %358 }
  0x96   :  { %1048 = vperm.xlu1 %3086, %v285_v45   ;;  %1043 = vperm.xlu0 %3085, %v284_v46   ;;  %v3114_v45 = vld [vmem:[%s5348_s4 + $0x4] ss:$8 sps:$4 sm:$0xff]  }
  0x97   :  { %1583 = vmatprep.mubr.bf16.mxu0 %v3114_v45  ;;  %v165_v45 = vld [vmem:[%s5347_s5 + $0x98] sm:$0xff] }
  0x99   :  { %v3688_v51 = vpop.permute.xlu1 %373  ;;  %v3690_v52 = vpop.permute.xlu0 %368 }
  0x9a   :  { %5397 = vst [vmem:[#allocation2_spill] sm:$0xff] %v3688_v51  ;;  %5398 = vst [vmem:[#allocation3_spill] sm:$0xff] %v3690_v52  ;;  %1058 = vperm.xlu1 %3086, %v287_v49   ;;  %1053 = vperm.xlu0 %3085, %v286_v50   ;;  %v153_v50 = vld [vmem:[%s5347_s5 + $0x38] sm:$0xff]  ;;  %v3986_v51 = vld [vmem:[%s5349_s6 + $0x10] sm:$0xff] }
  0x9b   :  { %5429 = vst [vmem:[#allocation34_spill] sm:$0xff] %v3986_v51 }
  0x9d   :  { %v3698_v55 = vpop.permute.xlu1 %383  ;;  %v3700_v56 = vpop.permute.xlu0 %378 }
  0x9e   :  { %5399 = vst [vmem:[#allocation4_spill] sm:$0xff] %v3698_v55  ;;  %5400 = vst [vmem:[#allocation5_spill] sm:$0xff] %v3700_v56  ;;  %1068 = vperm.xlu1 %3086, %v289_v53   ;;  %1063 = vperm.xlu0 %3085, %v288_v54   ;;  %v3117_v53 = vld [vmem:[%s5348_s4 + $0x44] ss:$8 sps:$4 sm:$0xff]   ;;  %v152_v54 = vld [vmem:[%s5347_s5 + $0x30] sm:$0xff] }
  0x9f   :  { %1615 = vmatprep.mubr.bf16.mxu1 %v3117_v53 }
  0xa1   :  { %v3708_v59 = vpop.permute.xlu1 %393  ;;  %v3710_v60 = vpop.permute.xlu0 %388 }
  0xa2   :  { %1078 = vperm.xlu1 %3086, %v291_v57   ;;  %1073 = vperm.xlu0 %3085, %v290_v58  }
  0xa5   :  { %v3718_v63 = vpop.permute.xlu1 %403  ;;  %v3720_v0 = vpop.permute.xlu0 %398 }
  0xa6   :  { %1088 = vperm.xlu1 %3086, %v293_v61   ;;  %1083 = vperm.xlu0 %3085, %v292_v62   ;;  %v155_v61 = vld [vmem:[%s5347_s5 + $0x48] sm:$0xff]  ;;  %v154_v62 = vld [vmem:[%s5347_s5 + $0x40] sm:$0xff] }
  0xa9   :  { %v3728_v3 = vpop.permute.xlu1 %413  ;;  %v3730_v4 = vpop.permute.xlu0 %408 }
  0xaa   :  { %1098 = vperm.xlu1 %3086, %v295_v1   ;;  %1093 = vperm.xlu0 %3085, %v294_v2  }
  0xad   :  { %v3738_v7 = vpop.permute.xlu1 %423  ;;  %v3740_v8 = vpop.permute.xlu0 %418 }
  0xae   :  { %5401 = vst [vmem:[#allocation6_spill] sm:$0xff] %v3738_v7  ;;  %1108 = vperm.xlu1 %3086, %v297_v5   ;;  %1103 = vperm.xlu0 %3085, %v296_v6   ;;  %v157_v5 = vld [vmem:[%s5347_s5 + $0x58] sm:$0xff]  ;;  %v156_v6 = vld [vmem:[%s5347_s5 + $0x50] sm:$0xff] }
  0xb1   :  { %v3748_v11 = vpop.permute.xlu1 %433  ;;  %v3750_v12 = vpop.permute.xlu0 %428 }
  0xb2   :  { %5402 = vst [vmem:[#allocation7_spill] sm:$0xff] %v3748_v11  ;;  %5403 = vst [vmem:[#allocation8_spill] sm:$0xff] %v3750_v12  ;;  %1118 = vperm.xlu1 %3086, %v299_v9   ;;  %1113 = vperm.xlu0 %3085, %v298_v10   ;;  %v4026_v12 = vld [vmem:[%s5349_s6 + $0x30] sm:$0xff] }
  0xb3   :  { %5435 = vst [vmem:[#allocation40_spill] sm:$0xff] %v4026_v12 }
  0xb5   :  { %v3758_v15 = vpop.permute.xlu1 %443  ;;  %v3760_v16 = vpop.permute.xlu0 %438 }
  0xb6   :  { %5404 = vst [vmem:[#allocation9_spill] sm:$0xff] %v3758_v15  ;;  %5405 = vst [vmem:[#allocation10_spill] sm:$0xff] %v3760_v16  ;;  %1128 = vperm.xlu1 %3086, %v301_v13   ;;  %1123 = vperm.xlu0 %3085, %v300_v14   ;;  %v159_v13 = vld [vmem:[%s5347_s5 + $0x68] sm:$0xff]  ;;  %v158_v14 = vld [vmem:[%s5347_s5 + $0x60] sm:$0xff] }
  0xb7   :  { %v4006_v16 = vld [vmem:[%s5349_s6 + $0x20] sm:$0xff] }
  0xb8   :  { %5431 = vst [vmem:[#allocation36_spill] sm:$0xff] %v4006_v16 }
  0xb9   :  { %v3768_v19 = vpop.permute.xlu1 %453  ;;  %v3770_v20 = vpop.permute.xlu0 %448 }
  0xba   :  { %5406 = vst [vmem:[#allocation11_spill] sm:$0xff] %v3768_v19  ;;  %5407 = vst [vmem:[#allocation12_spill] sm:$0xff] %v3770_v20  ;;  %1138 = vperm.xlu1 %3086, %v303_v17   ;;  %1133 = vperm.xlu0 %3085, %v302_v18  }
  0xbd   :  { %v3778_v23 = vpop.permute.xlu1 %463  ;;  %v3780_v24 = vpop.permute.xlu0 %458 }
  0xbe   :  { %5408 = vst [vmem:[#allocation13_spill] sm:$0xff] %v3778_v23  ;;  %5409 = vst [vmem:[#allocation14_spill] sm:$0xff] %v3780_v24  ;;  %1148 = vperm.xlu1 %3086, %v305_v21   ;;  %1143 = vperm.xlu0 %3085, %v304_v22   ;;  %v161_v21 = vld [vmem:[%s5347_s5 + $0x78] sm:$0xff]  ;;  %v160_v22 = vld [vmem:[%s5347_s5 + $0x70] sm:$0xff] }
  0xbf   :  { %v174_v24 = vld [vmem:[%s5347_s5 + $0xe0] sm:$0xff] }
  0xc1   :  { %v3788_v29 = vpop.permute.xlu1 %806  ;;  %v3790_v30 = vpop.permute.xlu0 %801 }
  0xc2   :  { %1238 = vperm.xlu1 %3086, %v147_v25   ;;  %1233 = vperm.xlu0 %3085, %v146_v26  }
  0xc5   :  { %v3798_v37 = vpop.permute.xlu1 %816  ;;  %v3800_v38 = vpop.permute.xlu0 %811 }
  0xc6   :  { %1248 = vperm.xlu1 %3086, %v149_v33   ;;  %1243 = vperm.xlu0 %3085, %v148_v34   ;;  %v163_v33 = vld [vmem:[%s5347_s5 + $0x88] sm:$0xff]  ;;  %v162_v34 = vld [vmem:[%s5347_s5 + $0x80] sm:$0xff] }
  0xc9   :  { %v3811_v46 = vpop.permute.xlu1 %826  ;;  %v3813_v49 = vpop.permute.xlu0 %821 }
  0xca   :  { %1258 = vperm.xlu1 %3086, %v151_v41   ;;  %1253 = vperm.xlu0 %3085, %v150_v42  }
  0xcd   :  { %v3824_v57 = vpop.permute.xlu1 %836  ;;  %v3826_v58 = vpop.permute.xlu0 %831 }
  0xce   :  { %1268 = vperm.xlu1 %3086, %v153_v50   ;;  %1263 = vperm.xlu0 %3085, %v152_v54   ;;  %v164_v50 = vld [vmem:[%s5347_s5 + $0x90] sm:$0xff] }
  0xd1   :  { %v3834_v1 = vpop.permute.xlu1 %846  ;;  %v3836_v2 = vpop.permute.xlu0 %841 }
  0xd2   :  { %5410 = vst [vmem:[#allocation15_spill] sm:$0xff] %v3834_v1  ;;  %1278 = vperm.xlu1 %3086, %v155_v61   ;;  %1273 = vperm.xlu0 %3085, %v154_v62   ;;  %v167_v61 = vld [vmem:[%s5347_s5 + $0xa8] sm:$0xff]  ;;  %v166_v62 = vld [vmem:[%s5347_s5 + $0xa0] sm:$0xff] }
  0xd5   :  { %v3844_v9 = vpop.permute.xlu1 %856  ;;  %v3846_v10 = vpop.permute.xlu0 %851 }
  0xd6   :  { %1288 = vperm.xlu1 %3086, %v157_v5   ;;  %1283 = vperm.xlu0 %3085, %v156_v6  }
  0xd9   :  { %v3854_v17 = vpop.permute.xlu1 %866  ;;  %v3856_v18 = vpop.permute.xlu0 %861 }
  0xda   :  { %5411 = vst [vmem:[#allocation16_spill] sm:$0xff] %v3854_v17  ;;  %5412 = vst [vmem:[#allocation17_spill] sm:$0xff] %v3856_v18  ;;  %1298 = vperm.xlu1 %3086, %v159_v13   ;;  %1293 = vperm.xlu0 %3085, %v158_v14   ;;  %v169_v13 = vld [vmem:[%s5347_s5 + $0xb8] sm:$0xff]  ;;  %v168_v14 = vld [vmem:[%s5347_s5 + $0xb0] sm:$0xff] }
  0xdd   :  { %v3864_v25 = vpop.permute.xlu1 %876  ;;  %v3866_v26 = vpop.permute.xlu0 %871 }
  0xde   :  { %5413 = vst [vmem:[#allocation18_spill] sm:$0xff] %v3864_v25  ;;  %5414 = vst [vmem:[#allocation19_spill] sm:$0xff] %v3866_v26  ;;  %1308 = vperm.xlu1 %3086, %v161_v21   ;;  %1303 = vperm.xlu0 %3085, %v160_v22  }
  0xe1   :  { %v3874_v41 = vpop.permute.xlu1 %886  ;;  %v3876_v42 = vpop.permute.xlu0 %881 }
  0xe2   :  { %1318 = vperm.xlu1 %3086, %v163_v33   ;;  %1313 = vperm.xlu0 %3085, %v162_v34   ;;  %v171_v33 = vld [vmem:[%s5347_s5 + $0xc8] sm:$0xff]  ;;  %v170_v34 = vld [vmem:[%s5347_s5 + $0xc0] sm:$0xff] }
  0xe5   :  { %v3884_v53 = vpop.permute.xlu1 %896  ;;  %v3886_v54 = vpop.permute.xlu0 %891 }
  0xe6   :  { %1328 = vperm.xlu1 %3086, %v165_v45   ;;  %1323 = vperm.xlu0 %3085, %v164_v50  }
  0xe9   :  { %v3894_v5 = vpop.permute.xlu1 %906  ;;  %v3896_v6 = vpop.permute.xlu0 %901 }
  0xea   :  { %5415 = vst [vmem:[#allocation20_spill] sm:$0xff] %v3894_v5  ;;  %1338 = vperm.xlu1 %3086, %v167_v61   ;;  %1333 = vperm.xlu0 %3085, %v166_v62   ;;  %v173_v62 = vld [vmem:[%s5347_s5 + $0xd8] sm:$0xff] }
  0xed   :  { %v3904_v21 = vpop.permute.xlu1 %916  ;;  %v3906_v22 = vpop.permute.xlu0 %911 }
  0xee   :  { %5416 = vst [vmem:[#allocation21_spill] sm:$0xff] %v3904_v21  ;;  %5417 = vst [vmem:[#allocation22_spill] sm:$0xff] %v3906_v22  ;;  %1348 = vperm.xlu1 %3086, %v169_v13   ;;  %1343 = vperm.xlu0 %3085, %v168_v14   ;;  %v172_v13 = vld [vmem:[%s5347_s5 + $0xd0] sm:$0xff] }
  0xf1   :  { %v3914_v45 = vpop.permute.xlu1 %926  ;;  %v3916_v50 = vpop.permute.xlu0 %921 }
  0xf2   :  { %5418 = vst [vmem:[#allocation23_spill] sm:$0xff] %v3914_v45  ;;  %5419 = vst [vmem:[#allocation24_spill] sm:$0xff] %v3916_v50  ;;  %1358 = vperm.xlu1 %3086, %v171_v33   ;;  %1353 = vperm.xlu0 %3085, %v170_v34   ;;  %v3918_v61 = vpop.f32.mrb[0].mxu0  ;;  %v175_v34 = vld [vmem:[%s5347_s5 + $0xe8] sm:$0xff] }
  0xf3   :  { %v3926_v14 = vpop.f32.mrb[1].mxu0  ;;  %v4001_v50 = vld [vmem:[%s5349_s6 + $0x28] sm:$0xff] }
  0xf4   :  { %v3932_v23 = vpop.f32.mrb[2].mxu0  ;;  %5430 = vst [vmem:[#allocation35_spill] sm:$0xff] %v4001_v50 }
  0xf5   :  { %v3928_v25 = vpop.permute.xlu1 %936  ;;  %v3930_v26 = vpop.permute.xlu0 %931 }
  0xf6   :  { %5420 = vst [vmem:[#allocation25_spill] sm:$0xff] %v3928_v25  ;;  %5421 = vst [vmem:[#allocation26_spill] sm:$0xff] %v3930_v26  ;;  %1368 = vperm.xlu1 %3086, %v173_v62   ;;  %1363 = vperm.xlu0 %3085, %v172_v13   ;;  %v675_v33 = vpop.f32.mrb[3].mxu0  ;;  %v177_v62 = vld [vmem:[%s5347_s5 + $0xf8] sm:$0xff]  ;;  %v176_v13 = vld [vmem:[%s5347_s5 + $0xf0] sm:$0xff] }
  0xf9   :  { %v3940_v17 = vpop.permute.xlu1 %946  ;;  %v3942_v55 = vpop.permute.xlu0 %941 }
  0xfa   :  { %5422 = vst [vmem:[#allocation27_spill] sm:$0xff] %v3940_v17  ;;  %5423 = vst [vmem:[#allocation28_spill] sm:$0xff] %v3942_v55  ;;  %1378 = vperm.xlu1 %3086, %v175_v34   ;;  %1373 = vperm.xlu0 %3085, %v174_v24   ;;  %v3944_v19 = vpop.f32.mrb[4].mxu0  ;;  %v3965_v34 = vld [vmem:[%s5349_s6 + $0x8] sm:$0xff]  ;;  %v3970_v55 = vld [vmem:[%s5349_s6] sm:$0xff] }
  0xfb   :  { %v3952_v25 = vpop.f32.mrb[5].mxu0  ;;  %5426 = vst [vmem:[#allocation31_spill] sm:$0xff] %v3965_v34  ;;  %5427 = vst [vmem:[#allocation32_spill] sm:$0xff] %v3970_v55 }
  0xfc   :  { %v3958_v17 = vpop.f32.mrb[6].mxu0 }
  0xfd   :  { %v3954_v20 = vpop.permute.xlu1 %956  ;;  %v3956_v26 = vpop.permute.xlu0 %951 }
  0xfe   :  { %5424 = vst [vmem:[#allocation29_spill] sm:$0xff] %v3954_v20  ;;  %5425 = vst [vmem:[#allocation30_spill] sm:$0xff] %v3956_v26  ;;  %1388 = vperm.xlu1 %3086, %v177_v62   ;;  %1383 = vperm.xlu0 %3085, %v176_v13   ;;  %v3960_v24 = vpop.f32.mrb[7].mxu0  ;;  %v3979_v13 = vld [vmem:[%s5349_s6 + $0x18] sm:$0xff] }
  0xff   :  { %5428 = vst [vmem:[#allocation33_spill] sm:$0xff] %v3979_v13 }
 0x101   :  { %v999_v18 = vpop.permute.xlu1 %998  ;;  %v994_v20 = vpop.permute.xlu0 %993 }
 0x102   :  { %1719 = vperm.xlu1 %3086, %v3965_v34   ;;  %1714 = vperm.xlu0 %3085, %v3970_v55   ;;  %v3974_v62 = vpop.f32.mrb[8].mxu0 }
 0x103   :  { %v3981_v26 = vpop.f32.mrb[9].mxu0 }
 0x104   :  { %v3992_v34 = vpop.f32.mrb[10].mxu0 }
 0x105   :  { %v3988_v45 = vpop.permute.xlu1 %1008  ;;  %v3990_v15 = vpop.permute.xlu0 %1003 }
 0x106   :  { %1729 = vperm.xlu1 %3086, %v3979_v13   ;;  %1724 = vperm.xlu0 %3085, %v3986_v51   ;;  %v3996_v55 = vpop.f32.mrb[11].mxu0  ;;  %v4019_v51 = vld [vmem:[%s5349_s6 + $0x38] sm:$0xff] }
 0x107   :  { %5433 = vst [vmem:[#allocation38_spill] sm:$0xff] %v4019_v51 }
 0x109   :  { %v4008_v52 = vpop.permute.xlu1 %1018  ;;  %v4010_v11 = vpop.permute.xlu0 %1013 }
 0x10a   :  { %1739 = vperm.xlu1 %3086, %v4001_v50   ;;  %1734 = vperm.xlu0 %3085, %v4006_v16   ;;  %v4014_v13 = vpop.f32.mrb[12].mxu0 }
 0x10b   :  { %5432 = vst [vmem:[#allocation37_spill] sm:$0xff] %v4014_v13  ;;  %v4021_v21 = vpop.f32.mrb[13].mxu0  ;;  %v4046_v13 = vld [vmem:[%s5349_s6 + $0x40] sm:$0xff] }
 0x10c   :  { %5434 = vst [vmem:[#allocation39_spill] sm:$0xff] %v4021_v21  ;;  %v4032_v50 = vpop.f32.mrb[14].mxu0  ;;  %v4041_v21 = vld [vmem:[%s5349_s6 + $0x48] sm:$0xff]  ;;  %5441 = vst [vmem:[#allocation46_spill] sm:$0xff] %v4046_v13 }
 0x10d   :  { %v4028_v22 = vpop.permute.xlu1 %1028  ;;  %v4030_v56 = vpop.permute.xlu0 %1023  ;;  %5438 = vst [vmem:[#allocation43_spill] sm:$0xff] %v4032_v50  ;;  %5440 = vst [vmem:[#allocation45_spill] sm:$0xff] %v4041_v21  ;;  %v4061_v50 = vadd.f32 %v3926_v14, %v3630_v28 }
 0x10e   :  { %5436 = vst [vmem:[#allocation41_spill] sm:$0xff] %v4028_v22  ;;  %5437 = vst [vmem:[#allocation42_spill] sm:$0xff] %v4030_v56  ;;  %1749 = vperm.xlu1 %3086, %v4019_v51   ;;  %1744 = vperm.xlu0 %3085, %v4026_v12   ;;  %v4036_v16 = vpop.f32.mrb[15].mxu0  ;;  %v4057_v12 = vld [vmem:[%s5349_s6 + $0x58] sm:$0xff] }
 0x10f   :  { %5439 = vst [vmem:[#allocation44_spill] sm:$0xff] %v4036_v16  ;;  %5444 = vst [vmem:[#allocation49_spill] sm:$0xff] %v4057_v12  ;;  %v4064_v16 = vadd.f32 %v675_v33, %v3640_v32  ;;  %v4080_v32 = vld [vmem:[%s5349_s6 + $0x68] sm:$0xff]  ;;  %v959_v14 = vmul.f32 %v3790_v30, %v4061_v50  ;;  %v4106_v30 = vadd.f32 %v3944_v19, %v3660_v40  ;;  %v4129_v19 = vld [vmem:[%s5349_s6 + $0x70] sm:$0xff] }
 0x110   :  { %5445 = vst [vmem:[#allocation50_spill] sm:$0xff] %v4061_v50 }
 0x111   :  { %v4048_v22 = vpop.permute.xlu1 %1038  ;;  %v4050_v56 = vpop.permute.xlu0 %1033  ;;  %5446 = vst [vmem:[#allocation51_spill] sm:$0xff] %v4064_v16  ;;  %v960_v33 = vmul.f32 %v3788_v29, %v4064_v16  ;;  %v1151_v7 = vadd.f32 %v994_v20, %v959_v14  ;;  %v4102_v29 = vadd.f32 %v3918_v61, %v3628_v27  ;;  %5452 = vst [vmem:[#allocation57_spill] sm:$0xff] %v4106_v30 }
 0x112   :  { %5442 = vst [vmem:[#allocation47_spill] sm:$0xff] %v4048_v22  ;;  %5443 = vst [vmem:[#allocation48_spill] sm:$0xff] %v4050_v56  ;;  %1759 = vperm.xlu1 %3086, %v4041_v21   ;;  %1754 = vperm.xlu0 %3085, %v4046_v13   ;;  %v3052_v51 = vpop.f32.mrb[16].mxu0  ;;  %v4069_v21 = vld [vmem:[%s5349_s6 + $0x50] sm:$0xff]  ;;  %v4118_v20 = vadd.f32 %v3952_v25, %v3650_v36  ;;  %v4135_v14 = vadd.f32 %v3958_v17, %v3658_v39 }
 0x113   :  { %v736_v22 = vpop.f32.mrb[17].mxu0  ;;  %5447 = vst [vmem:[#allocation52_spill] sm:$0xff] %v4069_v21  ;;  %v1152_v5 = vadd.f32 %v999_v18, %v960_v33  ;;  %5451 = vst [vmem:[#allocation56_spill] sm:$0xff] %v4102_v29  ;;  %v4139_v36 = vadd.f32 %v3960_v24, %v3648_v35  ;;  %v4150_v39 = vmul.f32 %v3826_v58, %v4106_v30  ;;  %v5487_v30 = vld [vmem:[#allocation10_spill] sm:$0xff] }
 0x114   :  { %v3053_v1 = vpop.f32.mrb[18].mxu0  ;;  %5453 = vst [vmem:[#allocation58_spill] sm:$0xff] %v4118_v20  ;;  %v4121_v27 = vadd.f32 %v736_v22, %v3710_v60  ;;  %5456 = vst [vmem:[#allocation61_spill] sm:$0xff] %v4135_v14  ;;  %v1183_v22 = vmax.f32 %v1151_v7, 0.0  ;;  %v4154_v35 = vadd.f32 %v3052_v51, %v3720_v0  ;;  %v4160_v7 = vld [vmem:[%s5349_s6 + $0x88] sm:$0xff]  ;;  %v4174_v0 = vld [vmem:[%s5349_s6 + $0x80] sm:$0xff] }
 0x115   :  { %v4071_v13 = vpop.permute.xlu1 %1048  ;;  %v4073_v56 = vpop.permute.xlu0 %1043  ;;  %5457 = vst [vmem:[#allocation62_spill] sm:$0xff] %v4139_v36  ;;  %v1184_v25 = vmax.f32 %v1152_v5, 0.0  ;;  %v4167_v5 = vadd.f32 %v3053_v1, %v3718_v63 }
 0x116   :  { %5448 = vst [vmem:[#allocation53_spill] sm:$0xff] %v4071_v13  ;;  %5449 = vst [vmem:[#allocation54_spill] sm:$0xff] %v4073_v56  ;;  %1769 = vperm.xlu1 %3086, %v4057_v12   ;;  %1764 = vperm.xlu0 %3085, %v4069_v21   ;;  %v739_v28 = vpop.f32.mrb[19].mxu0  ;;  %v4089_v56 = vld [vmem:[%s5349_s6 + $0x60] sm:$0xff]  ;;  %v4093_v12 = vadd.f32 %v3932_v23, %v3638_v31  ;;  %v4114_v23 = vld [vmem:[%s5349_s6 + $0x78] sm:$0xff]  ;;  %v975_v58 = vmul.f32 %v3876_v42, %v4121_v27 }
 0x117   :  { %5454 = vst [vmem:[#allocation59_spill] sm:$0xff] %v4121_v27  ;;  %v4124_v18 = vadd.f32 %v739_v28, %v3708_v59  ;;  %5458 = vst [vmem:[#allocation63_spill] sm:$0xff] %v4154_v35  ;;  %v4184_v42 = vadd.f32 %v3974_v62, %v3680_v48  ;;  %v1215_v33 = vpack.c.bf16 %v1184_v25, %v1183_v22 }
 0x118   :  { %5450 = vst [vmem:[#allocation55_spill] sm:$0xff] %v4093_v12  ;;  %v962_v61 = vmul.f32 %v3798_v37, %v4093_v12  ;;  %v961_v37 = vmul.f32 %v3800_v38, %v4102_v29  ;;  %v963_v38 = vmul.f32 %v3813_v49, %v4118_v20  ;;  %5459 = vst [vmem:[#allocation64_spill] sm:$0xff] %v4167_v5 }
 0x119   :  { %v4095_v21 = vpop.permute.xlu1 %1058  ;;  %v4097_v13 = vpop.permute.xlu0 %1053  ;;  %5455 = vst [vmem:[#allocation60_spill] sm:$0xff] %v4124_v18  ;;  %v976_v51 = vmul.f32 %v3874_v41, %v4124_v18  ;;  %v964_v49 = vmul.f32 %v3811_v46, %v4139_v36  ;;  %5460 = vst [vmem:[#allocation65_spill] sm:$0xff] %v4184_v42  ;;  %v4194_v46 = vadd.f32 %v3992_v34, %v3678_v47  ;;  %v3153_v36 = vld [vmem:[%s5348_s4 + $0xd0] ss:$8 sps:$4 sm:$0xff]  }
 0x11a   :  { %1779 = vperm.xlu1 %3086, %v4080_v32   ;;  %1774 = vperm.xlu0 %3085, %v4089_v56   ;;  %v4109_v31 = vpop.f32.mrb[20].mxu0  ;;  %v1154_v17 = vadd.f32 %v3988_v45, %v962_v61  ;;  %v4178_v45 = vmul.f32 %v3824_v57, %v4135_v14  ;;  %v1153_v63 = vadd.f32 %v3990_v15, %v961_v37 }
 0x11b   :  { %v752_v40 = vpop.f32.mrb[21].mxu0  ;;  %v4189_v61 = vadd.f32 %v3981_v26, %v3670_v44  ;;  %5462 = vst [vmem:[#allocation67_spill] sm:$0xff] %v4194_v46  ;;  %v977_v48 = vmul.f32 %v3886_v54, %v4154_v35  ;;  %v4207_v44 = vld [vmem:[%s5349_s6 + $0x98] sm:$0xff]  ;;  %v978_v26 = vmul.f32 %v3884_v53, %v4167_v5  ;;  %v4221_v22 = vadd.f32 %v3996_v55, %v3668_v43 }
 0x11c   :  { %v3057_v28 = vpop.f32.mrb[22].mxu0  ;;  %v1186_v57 = vmax.f32 %v1154_v17, 0.0  ;;  %v4199_v15 = vadd.f32 %v752_v40, %v3730_v4  ;;  %v4217_v4 = vld [vmem:[%s5349_s6 + $0x90] sm:$0xff]  ;;  %v1185_v40 = vmax.f32 %v1153_v63, 0.0  ;;  %v1156_v37 = vadd.f32 %v4008_v52, %v964_v49 }
 0x11d   :  { %v4141_v60 = vpop.permute.xlu1 %1068  ;;  %v4143_v59 = vpop.permute.xlu0 %1063  ;;  %5461 = vst [vmem:[#allocation66_spill] sm:$0xff] %v4189_v61  ;;  %5465 = vst [vmem:[#allocation70_spill] sm:$0xff] %v4221_v22  ;;  %v1155_v53 = vadd.f32 %v4010_v11, %v963_v38  ;;  %v967_v43 = vmul.f32 %v3836_v2, %v4189_v61  ;;  %v4236_v52 = vmul.f32 %v3844_v9, %v4194_v46  ;;  %v4248_v38 = vld [vmem:[%s5349_s6 + $0xa8] sm:$0xff]  ;;  %v5467_v2 = vld [vmem:[#allocation6_spill] sm:$0xff] }
 0x11e   :  { %1789 = vperm.xlu1 %3086, %v4114_v23   ;;  %1784 = vperm.xlu0 %3085, %v4129_v19   ;;  %v755_v24 = vpop.f32.mrb[23].mxu0  ;;  %5463 = vst [vmem:[#allocation68_spill] sm:$0xff] %v4199_v15  ;;  %v4240_v55 = vadd.f32 %v4109_v31, %v3740_v8  ;;  %v979_v11 = vmul.f32 %v3896_v6, %v4199_v15  ;;  %v5469_v9 = vld [vmem:[#allocation20_spill] sm:$0xff]  ;;  %v4258_v6 = vld [vmem:[%s5349_s6 + $0xa0] sm:$0xff] }
 0x11f   :  { %v4212_v47 = vadd.f32 %v755_v24, %v3728_v3  ;;  %v4251_v49 = vadd.f32 %v3057_v28, %v5467_v2  ;;  %v1216_v31 = vpack.c.bf16 %v1186_v57, %v1185_v40  ;;  %v5474_v57 = vld [vmem:[#allocation41_spill] sm:$0xff]  ;;  %v5477_v15 = vld [vmem:[#allocation8_spill] sm:$0xff] }
 0x120   :  { %5466 = vst [vmem:[#allocation71_spill] sm:$0xff] %v4240_v55  ;;  %v1158_v40 = vadd.f32 %v5474_v57, %v4178_v45  ;;  %v5479_v45 = vld [vmem:[#allocation21_spill] sm:$0xff] }
 0x121   :  { %v1079_v1 = vpop.permute.xlu1 %1078  ;;  %v1074_v41 = vpop.permute.xlu0 %1073  ;;  %5464 = vst [vmem:[#allocation69_spill] sm:$0xff] %v4212_v47  ;;  %5468 = vst [vmem:[#allocation6_spill] sm:$0xff] %v4251_v49  ;;  %v980_v63 = vmul.f32 %v5469_v9, %v4212_v47  ;;  %v5475_v9 = vld [vmem:[#allocation42_spill] sm:$0xff] }
 0x122   :  { %v1168_v27 = vadd.f32 %v1079_v1, %v976_v51  ;;  %v1167_v18 = vadd.f32 %v1074_v41, %v975_v58  ;;  %1799 = vperm.xlu1 %3086, %v4160_v7   ;;  %1794 = vperm.xlu0 %3085, %v4174_v0   ;;  %v4202_v62 = vpop.f32.mrb[24].mxu0  ;;  %v5470_v41 = vld [vmem:[#allocation15_spill] sm:$0xff]  ;;  %v1190_v35 = vmax.f32 %v1158_v40, 0.0 }
 0x123   :  { %v768_v25 = vpop.f32.mrb[25].mxu0  ;;  %v5492_v40 = vld [vmem:[#allocation23_spill] sm:$0xff] }
 0x124   :  { %v1200_v34 = vmax.f32 %v1168_v27, 0.0  ;;  %v1199_v54 = vmax.f32 %v1167_v18, 0.0  ;;  %v4227_v27 = vmul.f32 %v3846_v10, %v4184_v42  ;;  %v4229_v58 = vpop.f32.mrb[26].mxu0 }
 0x125   :  { %v1089_v17 = vpop.permute.xlu1 %1088  ;;  %v1084_v3 = vpop.permute.xlu0 %1083 }
 0x126   :  { %v1170_v18 = vadd.f32 %v1089_v17, %v978_v26  ;;  %v1169_v24 = vadd.f32 %v1084_v3, %v977_v48  ;;  %1809 = vperm.xlu1 %3086, %v4207_v44   ;;  %v1223_v51 = vpack.c.bf16 %v1200_v34, %v1199_v54  ;;  %1804 = vperm.xlu0 %3085, %v4217_v4   ;;  %v771_v10 = vpop.f32.mrb[27].mxu0  ;;  %v1188_v26 = vmax.f32 %v1156_v37, 0.0  ;;  %v5471_v17 = vld [vmem:[#allocation5_spill] sm:$0xff] }
 0x127   :  { %v968_v48 = vmul.f32 %v5470_v41, %v4221_v22  ;;  %v1187_v34 = vmax.f32 %v1155_v53, 0.0  ;;  %v5472_v3 = vld [vmem:[#allocation37_spill] sm:$0xff]  ;;  %v1157_v37 = vadd.f32 %v5475_v9, %v4150_v39  ;;  %v5476_v53 = vld [vmem:[#allocation22_spill] sm:$0xff]  ;;  %v5485_v9 = vld [vmem:[#allocation47_spill] sm:$0xff] }
 0x128   :  { %v1202_v1 = vmax.f32 %v1170_v18, 0.0  ;;  %v1201_v8 = vmax.f32 %v1169_v24, 0.0  ;;  %2908 = vmatprep.subr.bf16.mxu0 %v1223_v51  ;;  %3066 = vmatprep.subr.bf16.mxu1 %v1223_v51  ;;  %v4264_v18 = vadd.f32 %v5472_v3, %v5471_v17  ;;  %v981_v41 = vmul.f32 %v5476_v53, %v4240_v55  ;;  %v5483_v3 = vld [vmem:[#allocation39_spill] sm:$0xff] }
 0x129   :  { %v1099_v28 = vpop.permute.xlu1 %1098  ;;  %v1094_v54 = vpop.permute.xlu0 %1093  ;;  %2909 = vmatpush3.bf16.msra.mxu0 %v1215_v33  ;;  %3074 = vmatpush3.bf16.msra.mxu1 %v1215_v33  ;;  %v4274_v33 = vadd.f32 %v768_v25, %v5477_v15  ;;  %v4292_v15 = vld [vmem:[%s5349_s6 + $0xb0] sm:$0xff]  ;;  %v5482_v25 = vld [vmem:[#allocation3_spill] sm:$0xff]  ;;  %v1160_v53 = vadd.f32 %v5485_v9, %v968_v48  ;;  %v1189_v5 = vmax.f32 %v1157_v37, 0.0 }
 0x12a   :  { %5473 = vst [vmem:[#allocation20_spill] sm:$0xff] %v4264_v18  ;;  %v1172_v24 = vadd.f32 %v1099_v28, %v980_v63  ;;  %v1171_v51 = vadd.f32 %v1094_v54, %v979_v11  ;;  %1819 = vperm.xlu1 %3086, %v4248_v38   ;;  %v1224_v2 = vpack.c.bf16 %v1202_v1, %v1201_v8  ;;  %v4277_v17 = vpop.f32.mrb[28].mxu0  ;;  %v4282_v11 = vld [vmem:[%s5349_s6 + $0xb8] sm:$0xff]  ;;  %v5480_v1 = vld [vmem:[#allocation7_spill] sm:$0xff]  ;;  %v5489_v48 = vld [vmem:[#allocation24_spill] sm:$0xff] }
 0x12b   :  { %5478 = vst [vmem:[#allocation15_spill] sm:$0xff] %v4274_v33  ;;  %1814 = vperm.xlu0 %3085, %v4258_v6   ;;  %v982_v63 = vmul.f32 %v5479_v45, %v4251_v49  ;;  %v4287_v39 = vadd.f32 %v771_v10, %v5480_v1  ;;  %v784_v54 = vpop.f32.mrb[29].mxu0  ;;  %v4296_v57 = vadd.f32 %v5483_v3, %v5482_v25  ;;  %v5486_v45 = vld [vmem:[#allocation48_spill] sm:$0xff]  ;;  %v1192_v9 = vmax.f32 %v1160_v53, 0.0 }
 0x12c   :  { %v1204_v8 = vmax.f32 %v1172_v24, 0.0  ;;  %v1203_v28 = vmax.f32 %v1171_v51, 0.0  ;;  %2910 = vmatprep.subr.bf16.mxu0 %v1224_v2  ;;  %3067 = vmatprep.subr.bf16.mxu1 %v1224_v2  ;;  %v1159_v55 = vadd.f32 %v5486_v45, %v967_v43  ;;  %v1217_v24 = vpack.c.bf16 %v1188_v26, %v1187_v34  ;;  %v3065_v49 = vpop.f32.mrb[30].mxu0  ;;  %v5490_v26 = vld [vmem:[#allocation9_spill] sm:$0xff] }
 0x12d   :  { %5481 = vst [vmem:[#allocation5_spill] sm:$0xff] %v4287_v39  ;;  %5484 = vst [vmem:[#allocation37_spill] sm:$0xff] %v4296_v57  ;;  %v1109_v10 = vpop.permute.xlu1 %1108  ;;  %v1104_v1 = vpop.permute.xlu0 %1103  ;;  %2911 = vmatpush3.bf16.msra.mxu0 %v1216_v31  ;;  %3075 = vmatpush3.bf16.msra.mxu1 %v1216_v31  ;;  %v4303_v25 = vadd.f32 %v4202_v62, %v5487_v30  ;;  %v983_v43 = vmul.f32 %v5489_v48, %v4274_v33  ;;  %v4311_v31 = vld [vmem:[%s5349_s6 + $0xc8] sm:$0xff] }
 0x12e   :  { %v1174_v51 = vadd.f32 %v1109_v10, %v982_v63  ;;  %v1173_v2 = vadd.f32 %v1104_v1, %v981_v41  ;;  %1829 = vperm.xlu1 %3086, %v4282_v11   ;;  %v1225_v47 = vpack.c.bf16 %v1204_v8, %v1203_v28  ;;  %v787_v3 = vpop.f32.mrb[31].mxu0  ;;  %v4315_v34 = vadd.f32 %v4229_v58, %v5490_v26  ;;  %v4322_v41 = vld [vmem:[%s5349_s6 + $0xc0] sm:$0xff]  ;;  %v5494_v8 = vld [vmem:[#allocation44_spill] sm:$0xff]  ;;  %v5496_v58 = vld [vmem:[#allocation53_spill] sm:$0xff] }
 0x12f   :  { %5488 = vst [vmem:[#allocation41_spill] sm:$0xff] %v4303_v25  ;;  %1824 = vperm.xlu0 %3085, %v4292_v15   ;;  %v984_v37 = vmul.f32 %v5492_v40, %v4287_v39  ;;  %v5493_v63 = vld [vmem:[#allocation2_spill] sm:$0xff]  ;;  %v1191_v45 = vmax.f32 %v1159_v55, 0.0  ;;  %v1162_v10 = vadd.f32 %v5496_v58, %v4236_v52  ;;  %v1218_v53 = vpack.c.bf16 %v1190_v35, %v1189_v5  ;;  %v5500_v52 = vld [vmem:[#allocation12_spill] sm:$0xff] }
 0x130   :  { %5491 = vst [vmem:[#allocation42_spill] sm:$0xff] %v4315_v34  ;;  %v1206_v30 = vmax.f32 %v1174_v51, 0.0  ;;  %v1205_v62 = vmax.f32 %v1173_v2, 0.0  ;;  %2912 = vmatprep.subr.bf16.mxu0 %v1225_v47  ;;  %3068 = vmatprep.subr.bf16.mxu1 %v1225_v47  ;;  %v4326_v28 = vadd.f32 %v5494_v8, %v5493_v63  ;;  %v5497_v47 = vld [vmem:[#allocation54_spill] sm:$0xff]  ;;  %v5498_v63 = vld [vmem:[#allocation17_spill] sm:$0xff]  ;;  %v4338_v58 = vadd.f32 %v784_v54, %v5500_v52  ;;  %v4354_v54 = vld [vmem:[%s5349_s6 + $0xd0] sm:$0xff] }
 0x131   :  { %v1119_v1 = vpop.permute.xlu1 %1118  ;;  %v1114_v48 = vpop.permute.xlu0 %1113  ;;  %2913 = vmatpush3.bf16.msra.mxu0 %v1217_v24  ;;  %3076 = vmatpush3.bf16.msra.mxu1 %v1217_v24  ;;  %v1161_v51 = vadd.f32 %v5497_v47, %v4227_v27  ;;  %v971_v8 = vmul.f32 %v5498_v63, %v4296_v57  ;;  %v5499_v55 = vld [vmem:[#allocation26_spill] sm:$0xff]  ;;  %v4344_v27 = vld [vmem:[%s5349_s6 + $0xd8] sm:$0xff]  ;;  %v5508_v47 = vld [vmem:[#allocation16_spill] sm:$0xff]  ;;  %v1194_v52 = vmax.f32 %v1162_v10, 0.0 }
 0x132   :  { %5495 = vst [vmem:[#allocation22_spill] sm:$0xff] %v4326_v28  ;;  %v1176_v2 = vadd.f32 %v1119_v1, %v984_v37  ;;  %v1175_v26 = vadd.f32 %v1114_v48, %v983_v43  ;;  %1839 = vperm.xlu1 %3086, %v4311_v31   ;;  %v1226_v40 = vpack.c.bf16 %v1206_v30, %v1205_v62  ;;  %5501 = vst [vmem:[#allocation8_spill] sm:$0xff] %v4338_v58  ;;  %v5502_v24 = vld [vmem:[#allocation25_spill] sm:$0xff]  ;;  %v5503_v37 = vld [vmem:[#allocation11_spill] sm:$0xff] }
 0x133   :  { %v985_v33 = vmul.f32 %v5499_v55, %v4303_v25  ;;  %1834 = vperm.xlu0 %3085, %v4322_v41   ;;  %v986_v43 = vmul.f32 %v5502_v24, %v4315_v34  ;;  %v4349_v30 = vadd.f32 %v787_v3, %v5503_v37  ;;  %v5505_v62 = vld [vmem:[#allocation4_spill] sm:$0xff]  ;;  %v5506_v1 = vld [vmem:[#allocation43_spill] sm:$0xff]  ;;  %v972_v63 = vmul.f32 %v5508_v47, %v4326_v28  ;;  %v5512_v10 = vld [vmem:[#allocation13_spill] sm:$0xff] }
 0x134   :  { %v1208_v35 = vmax.f32 %v1176_v2, 0.0  ;;  %v1207_v5 = vmax.f32 %v1175_v26, 0.0  ;;  %2914 = vmatprep.subr.bf16.mxu0 %v1226_v40  ;;  %3069 = vmatprep.subr.bf16.mxu1 %v1226_v40  ;;  %v4358_v48 = vadd.f32 %v5506_v1, %v5505_v62  ;;  %v1219_v55 = vpack.c.bf16 %v1192_v9, %v1191_v45  ;;  %v5509_v1 = vld [vmem:[#allocation14_spill] sm:$0xff]  ;;  %v5511_v9 = vld [vmem:[#allocation28_spill] sm:$0xff]  ;;  %v5550_v28 = vld [vmem:[#allocation31_spill] sm:$0xff] }
 0x135   :  { %5504 = vst [vmem:[#allocation21_spill] sm:$0xff] %v4349_v30  ;;  %v1129_v3 = vpop.permute.xlu1 %1128  ;;  %v1124_v24 = vpop.permute.xlu0 %1123  ;;  %2915 = vmatpush3.bf16.msra.mxu0 %v1218_v53  ;;  %3077 = vmatpush3.bf16.msra.mxu1 %v1218_v53  ;;  %v1193_v2 = vmax.f32 %v1161_v51, 0.0  ;;  %v1164_v25 = vadd.f32 %v4095_v21, %v972_v63  ;;  %v1163_v62 = vadd.f32 %v4097_v13, %v971_v8  ;;  %v5514_v21 = vld [vmem:[#allocation27_spill] sm:$0xff] }
 0x136   :  { %5507 = vst [vmem:[#allocation7_spill] sm:$0xff] %v4358_v48  ;;  %v1178_v26 = vadd.f32 %v1129_v3, %v986_v43  ;;  %v1177_v40 = vadd.f32 %v1124_v24, %v985_v33  ;;  %1849 = vperm.xlu1 %3086, %v4344_v27   ;;  %v1227_v37 = vpack.c.bf16 %v1208_v35, %v1207_v5  ;;  %v4375_v33 = vld [vmem:[%s5349_s6 + $0xe8] sm:$0xff]  ;;  %v5516_v5 = vld [vmem:[#allocation18_spill] sm:$0xff] }
 0x137   :  { %v4367_v34 = vadd.f32 %v4277_v17, %v5509_v1  ;;  %v987_v45 = vmul.f32 %v5511_v9, %v4338_v58  ;;  %1844 = vperm.xlu0 %3085, %v4354_v54   ;;  %v4378_v51 = vadd.f32 %v3065_v49, %v5512_v10  ;;  %v988_v13 = vmul.f32 %v5514_v21, %v4349_v30  ;;  %v4385_v17 = vld [vmem:[%s5349_s6 + $0xe0] sm:$0xff]  ;;  %v5515_v43 = vld [vmem:[#allocation19_spill] sm:$0xff]  ;;  %v4398_v21 = vld [vmem:[%s5349_s6 + $0xf8] sm:$0xff] }
 0x138   :  { %v1210_v8 = vmax.f32 %v1178_v26, 0.0  ;;  %v1209_v53 = vmax.f32 %v1177_v40, 0.0  ;;  %2916 = vmatprep.subr.bf16.mxu0 %v1227_v37  ;;  %3070 = vmatprep.subr.bf16.mxu1 %v1227_v37  ;;  %v973_v35 = vmul.f32 %v5515_v43, %v4264_v18  ;;  %v974_v47 = vmul.f32 %v5516_v5, %v4358_v48 }
 0x139   :  { %5510 = vst [vmem:[#allocation3_spill] sm:$0xff] %v4367_v34  ;;  %5513 = vst [vmem:[#allocation39_spill] sm:$0xff] %v4378_v51  ;;  %v1139_v49 = vpop.permute.xlu1 %1138  ;;  %v1134_v63 = vpop.permute.xlu0 %1133  ;;  %2917 = vmatpush3.bf16.msra.mxu0 %v1219_v55  ;;  %3078 = vmatpush3.bf16.msra.mxu1 %v1219_v55  ;;  %v1220_v3 = vpack.c.bf16 %v1194_v52, %v1193_v2  ;;  %v1196_v37 = vmax.f32 %v1164_v25, 0.0  ;;  %v1195_v1 = vmax.f32 %v1163_v62, 0.0  ;;  %v5517_v55 = vld [vmem:[#allocation30_spill] sm:$0xff]  ;;  %v5518_v2 = vld [vmem:[#allocation29_spill] sm:$0xff] }
 0x13a   :  { %v1180_v24 = vadd.f32 %v1139_v49, %v988_v13  ;;  %v1179_v26 = vadd.f32 %v1134_v63, %v987_v45  ;;  %1859 = vperm.xlu1 %3086, %v4375_v33   ;;  %v1228_v40 = vpack.c.bf16 %v1210_v8, %v1209_v53  ;;  %v1166_v9 = vadd.f32 %v4141_v60, %v974_v47  ;;  %v4407_v60 = vld [vmem:[%s5349_s6 + $0xf0] sm:$0xff]  ;;  %v211_v49 = vld [vmem:[%s5350_s7 + $0x8] sm:$0xff] }
 0x13b   :  { %v1165_v10 = vadd.f32 %v4143_v59, %v973_v35  ;;  %1854 = vperm.xlu0 %3085, %v4385_v17   ;;  %v989_v52 = vmul.f32 %v5517_v55, %v4367_v34  ;;  %v990_v45 = vmul.f32 %v5518_v2, %v4378_v51  ;;  %v1221_v35 = vpack.c.bf16 %v1196_v37, %v1195_v1  ;;  %v3112_v55 = vld [vmem:[%s5348_s4] ss:$8 sps:$4 sm:$0xff]  }
 0x13c   :  { %v1212_v13 = vmax.f32 %v1180_v24, 0.0  ;;  %v1211_v25 = vmax.f32 %v1179_v26, 0.0  ;;  %2918 = vmatprep.subr.bf16.mxu0 %v1228_v40  ;;  %3071 = vmatprep.subr.bf16.mxu1 %v1228_v40  ;;  %v1198_v5 = vmax.f32 %v1166_v9, 0.0  ;;  %v213_v9 = vld [vmem:[%s5350_s7 + $0x18] sm:$0xff] }
 0x13d   :  { %v1149_v59 = vpop.permute.xlu1 %1148  ;;  %v1144_v62 = vpop.permute.xlu0 %1143  ;;  %2919 = vmatpush3.bf16.msra.mxu0 %v1220_v3  ;;  %3079 = vmatpush3.bf16.msra.mxu1 %v1220_v3  ;;  %v1197_v47 = vmax.f32 %v1165_v10, 0.0  ;;  %v210_v3 = vld [vmem:[%s5350_s7] sm:$0xff]  ;;  %v212_v10 = vld [vmem:[%s5350_s7 + $0x10] sm:$0xff] }
 0x13e   :  { %v1182_v8 = vadd.f32 %v1149_v59, %v990_v45  ;;  %v1181_v53 = vadd.f32 %v1144_v62, %v989_v52  ;;  %1869 = vperm.xlu1 %3086, %v4398_v21   ;;  %v1229_v43 = vpack.c.bf16 %v1212_v13, %v1211_v25  ;;  %v3115_v52 = vld [vmem:[%s5348_s4 + $0x40] ss:$8 sps:$4 sm:$0xff]   ;;  %v3118_v13 = vld [vmem:[%s5348_s4 + $0x14] ss:$8 sps:$4 sm:$0xff]  }
 0x13f   :  { %1864 = vperm.xlu0 %3085, %v4407_v60   ;;  %v1222_v1 = vpack.c.bf16 %v1198_v5, %v1197_v47  ;;  %v3120_v25 = vld [vmem:[%s5348_s4 + $0x54] ss:$8 sps:$4 sm:$0xff]   ;;  %v215_v59 = vld [vmem:[%s5350_s7 + $0x28] sm:$0xff]  ;;  %v214_v62 = vld [vmem:[%s5350_s7 + $0x20] sm:$0xff] }
 0x140   :  { %v1214_v63 = vmax.f32 %v1182_v8, 0.0  ;;  %v1213_v24 = vmax.f32 %v1181_v53, 0.0  ;;  %2920 = vmatprep.subr.bf16.mxu0 %v1229_v43  ;;  %3072 = vmatprep.subr.bf16.mxu1 %v1229_v43  ;;  %v217_v43 = vld [vmem:[%s5350_s7 + $0x38] sm:$0xff] }
 0x141   :  { %v4417_v26 = vpop.permute.xlu1 %1238  ;;  %v4419_v40 = vpop.permute.xlu0 %1233  ;;  %2921 = vmatpush3.bf16.msra.mxu0 %v1221_v35  ;;  %3080 = vmatpush3.bf16.msra.mxu1 %v1221_v35  ;;  %v216_v35 = vld [vmem:[%s5350_s7 + $0x30] sm:$0xff] }
 0x142   :  { %5519 = vst [vmem:[#allocation47_spill] sm:$0xff] %v4417_v26  ;;  %1915 = vperm.xlu1 %3086, %v211_v49   ;;  %v1230_v37 = vpack.c.bf16 %v1214_v63, %v1213_v24  ;;  %v3122_v5 = vld [vmem:[%s5348_s4 + $0x10] ss:$8 sps:$4 sm:$0xff]   ;;  %v3124_v24 = vld [vmem:[%s5348_s4 + $0x24] ss:$8 sps:$4 sm:$0xff]  }
 0x143   :  { %1910 = vperm.xlu0 %3085, %v210_v3   ;;  %v3123_v47 = vld [vmem:[%s5348_s4 + $0x50] ss:$8 sps:$4 sm:$0xff]   ;;  %v3126_v3 = vld [vmem:[%s5348_s4 + $0x64] ss:$8 sps:$4 sm:$0xff]  }
 0x144   :  { %2922 = vmatprep.subr.bf16.mxu0 %v1230_v37  ;;  %3073 = vmatprep.subr.bf16.mxu1 %v1230_v37  ;;  %v219_v37 = vld [vmem:[%s5350_s7 + $0x48] sm:$0xff] }
 0x145   :  { %v4433_v2 = vpop.permute.xlu1 %1248  ;;  %v4435_v45 = vpop.permute.xlu0 %1243  ;;  %2923 = vmatpush3.bf16.msra.mxu0 %v1222_v1  ;;  %3081 = vmatpush3.bf16.msra.mxu1 %v1222_v1  ;;  %v218_v1 = vld [vmem:[%s5350_s7 + $0x40] sm:$0xff] }
 0x146   :  { %5520 = vst [vmem:[#allocation48_spill] sm:$0xff] %v4433_v2  ;;  %5521 = vst [vmem:[#allocation10_spill] sm:$0xff] %v4435_v45  ;;  %1925 = vperm.xlu1 %3086, %v213_v9  }
 0x147   :  { %1920 = vperm.xlu0 %3085, %v212_v10  }
 0x148   :  { %1584 = vmatmul.mubr.bf16.vlgmr.msra.gmra.mrb[32].mxu0 %v3112_v55  ;;  %1616 = vmatmul.mubr.bf16.vlgmr.msra.gmra.mrb[0].mxu1 %v3115_v52  ;;  %v221_v55 = vld [vmem:[%s5350_s7 + $0x58] sm:$0xff]  ;;  %v220_v52 = vld [vmem:[%s5350_s7 + $0x50] sm:$0xff] }
 0x149   :  { %v4449_v8 = vpop.permute.xlu1 %1258  ;;  %v4451_v53 = vpop.permute.xlu0 %1253  ;;  %1591 = vmatprep.mubr.bf16.mxu0 %v3118_v13  ;;  %1623 = vmatprep.mubr.bf16.mxu1 %v3120_v25  ;;  %v3128_v13 = vld [vmem:[%s5348_s4 + $0x20] ss:$8 sps:$4 sm:$0xff]  }
 0x14a   :  { %5522 = vst [vmem:[#allocation24_spill] sm:$0xff] %v4449_v8  ;;  %5523 = vst [vmem:[#allocation9_spill] sm:$0xff] %v4451_v53  ;;  %1935 = vperm.xlu1 %3086, %v215_v59   ;;  %v3129_v25 = vld [vmem:[%s5348_s4 + $0x60] ss:$8 sps:$4 sm:$0xff]  }
 0x14b   :  { %1930 = vperm.xlu0 %3085, %v214_v62   ;;  %v3156_v53 = vld [vmem:[%s5348_s4 + $0xe0] ss:$8 sps:$4 sm:$0xff]  }
 0x14d   :  { %v4465_v49 = vpop.permute.xlu1 %1268  ;;  %v4467_v63 = vpop.permute.xlu0 %1263 }
 0x14e   :  { %5524 = vst [vmem:[#allocation23_spill] sm:$0xff] %v4465_v49  ;;  %5525 = vst [vmem:[#allocation2_spill] sm:$0xff] %v4467_v63  ;;  %1945 = vperm.xlu1 %3086, %v217_v43   ;;  %v3130_v43 = vld [vmem:[%s5348_s4 + $0x34] ss:$8 sps:$4 sm:$0xff]  }
 0x14f   :  { %1940 = vperm.xlu0 %3085, %v216_v35   ;;  %v3132_v35 = vld [vmem:[%s5348_s4 + $0x74] ss:$8 sps:$4 sm:$0xff]  }
 0x150   :  { %1592 = vmatmul.mubr.bf16.gmra.mrb[36].mxu0 %v3122_v5  ;;  %1624 = vmatmul.mubr.bf16.gmra.mrb[4].mxu1 %v3123_v47  ;;  %v223_v5 = vld [vmem:[%s5350_s7 + $0x68] sm:$0xff]  ;;  %v222_v47 = vld [vmem:[%s5350_s7 + $0x60] sm:$0xff] }
 0x151   :  { %v4481_v9 = vpop.permute.xlu1 %1278  ;;  %v4483_v10 = vpop.permute.xlu0 %1273  ;;  %1599 = vmatprep.mubr.bf16.mxu0 %v3124_v24  ;;  %1631 = vmatprep.mubr.bf16.mxu1 %v3126_v3 }
 0x152   :  { %5526 = vst [vmem:[#allocation44_spill] sm:$0xff] %v4481_v9  ;;  %5527 = vst [vmem:[#allocation53_spill] sm:$0xff] %v4483_v10  ;;  %1955 = vperm.xlu1 %3086, %v219_v37   ;;  %v225_v37 = vld [vmem:[%s5350_s7 + $0x78] sm:$0xff] }
 0x153   :  { %1950 = vperm.xlu0 %3085, %v218_v1   ;;  %v224_v1 = vld [vmem:[%s5350_s7 + $0x70] sm:$0xff] }
 0x155   :  { %v4497_v59 = vpop.permute.xlu1 %1288  ;;  %v4499_v62 = vpop.permute.xlu0 %1283 }
 0x156   :  { %5528 = vst [vmem:[#allocation54_spill] sm:$0xff] %v4497_v59  ;;  %5529 = vst [vmem:[#allocation17_spill] sm:$0xff] %v4499_v62  ;;  %1965 = vperm.xlu1 %3086, %v221_v55   ;;  %v3134_v55 = vld [vmem:[%s5348_s4 + $0x30] ss:$8 sps:$4 sm:$0xff]  }
 0x157   :  { %1960 = vperm.xlu0 %3085, %v220_v52   ;;  %v3135_v52 = vld [vmem:[%s5348_s4 + $0x70] ss:$8 sps:$4 sm:$0xff]  }
 0x158   :  { %1600 = vmatmul.mubr.bf16.gmra.mrb[40].mxu0 %v3128_v13  ;;  %1632 = vmatmul.mubr.bf16.gmra.mrb[8].mxu1 %v3129_v25 }
 0x159   :  { %v4513_v24 = vpop.permute.xlu1 %1298  ;;  %v4515_v3 = vpop.permute.xlu0 %1293  ;;  %1607 = vmatprep.mubr.bf16.mxu0 %v3130_v43  ;;  %1639 = vmatprep.mubr.bf16.mxu1 %v3132_v35  ;;  %v3136_v43 = vld [vmem:[%s5348_s4 + $0x84] ss:$8 sps:$4 sm:$0xff]  }
 0x15a   :  { %5530 = vst [vmem:[#allocation26_spill] sm:$0xff] %v4513_v24  ;;  %5531 = vst [vmem:[#allocation12_spill] sm:$0xff] %v4515_v3  ;;  %1975 = vperm.xlu1 %3086, %v223_v5   ;;  %v227_v35 = vld [vmem:[%s5350_s7 + $0x88] sm:$0xff]  ;;  %v226_v5 = vld [vmem:[%s5350_s7 + $0x80] sm:$0xff] }
 0x15b   :  { %1970 = vperm.xlu0 %3085, %v222_v47   ;;  %v5555_v3 = vld [vmem:[#allocation35_spill] sm:$0xff]  ;;  %v5558_v24 = vld [vmem:[#allocation46_spill] sm:$0xff] }
 0x15d   :  { %v4529_v13 = vpop.permute.xlu1 %1308  ;;  %v4531_v25 = vpop.permute.xlu0 %1303 }
 0x15e   :  { %5532 = vst [vmem:[#allocation25_spill] sm:$0xff] %v4529_v13  ;;  %5533 = vst [vmem:[#allocation11_spill] sm:$0xff] %v4531_v25  ;;  %1985 = vperm.xlu1 %3086, %v225_v37   ;;  %v229_v37 = vld [vmem:[%s5350_s7 + $0x98] sm:$0xff]  ;;  %v1872_v25 = vlaneseq }
 0x15f   :  { %1980 = vperm.xlu0 %3085, %v224_v1   ;;  %v228_v1 = vld [vmem:[%s5350_s7 + $0x90] sm:$0xff] }
 0x160   :  { %1608 = vmatmul.mubr.bf16.gmra.mrb[44].mxu0 %v3134_v55  ;;  %1640 = vmatmul.mubr.bf16.gmra.mrb[12].mxu1 %v3135_v52  ;;  %v3138_v55 = vld [vmem:[%s5348_s4 + $0x80] ss:$8 sps:$4 sm:$0xff]   ;;  %v1873_v63 = vshrl.u32 %v1872_v25, 7 }
 0x161   :  { %v4542_v47 = vpop.permute.xlu1 %1318  ;;  %v4544_v34 = vpop.permute.xlu0 %1313  ;;  %1647 = vmatprep.mubr.bf16.mxu1 %v3136_v43  ;;  %v3139_v43 = vld [vmem:[%s5348_s4 + $0x94] ss:$8 sps:$4 sm:$0xff]  }
 0x162   :  { %5534 = vst [vmem:[#allocation4_spill] sm:$0xff] %v4542_v47  ;;  %5535 = vst [vmem:[#allocation43_spill] sm:$0xff] %v4544_v34  ;;  %1995 = vperm.xlu1 %3086, %v227_v35   ;;  %v231_v35 = vld [vmem:[%s5350_s7 + $0xa8] sm:$0xff]  ;;  %v1874_v9 = vsub.s32 0, %v1873_v63 }
 0x163   :  { %1990 = vperm.xlu0 %3085, %v226_v5   ;;  %v230_v5 = vld [vmem:[%s5350_s7 + $0xa0] sm:$0xff] }
 0x165   :  { %v4555_v52 = vpop.permute.xlu1 %1328  ;;  %v4557_v51 = vpop.permute.xlu0 %1323 }
 0x166   :  { %5536 = vst [vmem:[#allocation16_spill] sm:$0xff] %v4555_v52  ;;  %5537 = vst [vmem:[#allocation14_spill] sm:$0xff] %v4557_v51  ;;  %2005 = vperm.xlu1 %3086, %v229_v37   ;;  %v233_v37 = vld [vmem:[%s5350_s7 + $0xb8] sm:$0xff] }
 0x167   :  { %2000 = vperm.xlu0 %3085, %v228_v1   ;;  %v232_v1 = vld [vmem:[%s5350_s7 + $0xb0] sm:$0xff] }
 0x168   :  { %1648 = vmatmul.mubr.bf16.gmra.mrb[16].mxu1 %v3138_v55  ;;  %v3141_v55 = vld [vmem:[%s5348_s4 + $0x90] ss:$8 sps:$4 sm:$0xff]  }
 0x169   :  { %v4568_v58 = vpop.permute.xlu1 %1338  ;;  %v4570_v30 = vpop.permute.xlu0 %1333  ;;  %1655 = vmatprep.mubr.bf16.mxu1 %v3139_v43  ;;  %v3142_v43 = vld [vmem:[%s5348_s4 + $0xa4] ss:$8 sps:$4 sm:$0xff]  }
 0x16a   :  { %5538 = vst [vmem:[#allocation28_spill] sm:$0xff] %v4568_v58  ;;  %5539 = vst [vmem:[#allocation13_spill] sm:$0xff] %v4570_v30  ;;  %2015 = vperm.xlu1 %3086, %v231_v35   ;;  %v235_v35 = vld [vmem:[%s5350_s7 + $0xc8] sm:$0xff]  ;;  %v3159_v58 = vld [vmem:[%s5348_s4 + $0xf0] ss:$8 sps:$4 sm:$0xff]  }
 0x16b   :  { %2010 = vperm.xlu0 %3085, %v230_v5   ;;  %v234_v5 = vld [vmem:[%s5350_s7 + $0xc0] sm:$0xff] }
 0x16d   :  { %v4581_v39 = vpop.permute.xlu1 %1348  ;;  %v4583_v18 = vpop.permute.xlu0 %1343 }
 0x16e   :  { %5540 = vst [vmem:[#allocation27_spill] sm:$0xff] %v4581_v39  ;;  %5541 = vst [vmem:[#allocation19_spill] sm:$0xff] %v4583_v18  ;;  %2025 = vperm.xlu1 %3086, %v233_v37   ;;  %v237_v37 = vld [vmem:[%s5350_s7 + $0xd8] sm:$0xff] }
 0x16f   :  { %2020 = vperm.xlu0 %3085, %v232_v1   ;;  %v236_v1 = vld [vmem:[%s5350_s7 + $0xd0] sm:$0xff]  ;;  %v5559_v18 = vld [vmem:[#allocation45_spill] sm:$0xff] }
 0x170   :  { %1656 = vmatmul.mubr.bf16.gmra.mrb[20].mxu1 %v3141_v55  ;;  %v3144_v55 = vld [vmem:[%s5348_s4 + $0xa0] ss:$8 sps:$4 sm:$0xff]  }
 0x171   :  { %v4594_v48 = vpop.permute.xlu1 %1358  ;;  %v4596_v14 = vpop.permute.xlu0 %1353  ;;  %1663 = vmatprep.mubr.bf16.mxu1 %v3142_v43  ;;  %v3145_v43 = vld [vmem:[%s5348_s4 + $0xb4] ss:$8 sps:$4 sm:$0xff]  }
 0x172   :  { %5542 = vst [vmem:[#allocation18_spill] sm:$0xff] %v4594_v48  ;;  %5543 = vst [vmem:[#allocation30_spill] sm:$0xff] %v4596_v14  ;;  %2035 = vperm.xlu1 %3086, %v235_v35   ;;  %v239_v35 = vld [vmem:[%s5350_s7 + $0xe8] sm:$0xff] }
 0x173   :  { %2030 = vperm.xlu0 %3085, %v234_v5   ;;  %v238_v5 = vld [vmem:[%s5350_s7 + $0xe0] sm:$0xff] }
 0x175   :  { %v4607_v57 = vpop.permute.xlu1 %1368  ;;  %v4609_v48 = vpop.permute.xlu0 %1363 }
 0x176   :  { %5544 = vst [vmem:[#allocation29_spill] sm:$0xff] %v4607_v57  ;;  %5545 = vst [vmem:[#allocation72_spill] sm:$0xff] %v4609_v48  ;;  %2045 = vperm.xlu1 %3086, %v237_v37   ;;  %v241_v37 = vld [vmem:[%s5350_s7 + $0xf8] sm:$0xff] }
 0x177   :  { %2040 = vperm.xlu0 %3085, %v236_v1   ;;  %v240_v1 = vld [vmem:[%s5350_s7 + $0xf0] sm:$0xff] }
 0x178   :  { %1664 = vmatmul.mubr.bf16.gmra.mrb[24].mxu1 %v3144_v55  ;;  %v3147_v55 = vld [vmem:[%s5348_s4 + $0xb0] ss:$8 sps:$4 sm:$0xff]  }
 0x179   :  { %v4620_v14 = vpop.permute.xlu1 %1378  ;;  %v4622_v57 = vpop.permute.xlu0 %1373  ;;  %1671 = vmatprep.mubr.bf16.mxu1 %v3145_v43  ;;  %v3148_v43 = vld [vmem:[%s5348_s4 + $0xc4] ss:$8 sps:$4 sm:$0xff]  }
 0x17a   :  { %5546 = vst [vmem:[#allocation73_spill] sm:$0xff] %v4620_v14  ;;  %5547 = vst [vmem:[#allocation74_spill] sm:$0xff] %v4622_v57  ;;  %2055 = vperm.xlu1 %3086, %v239_v35   ;;  %v3289_v57 = vmov 1  }
 0x17b   :  { %2050 = vperm.xlu0 %3085, %v238_v5  }
 0x17d   :  { %v4633_v48 = vpop.permute.xlu1 %1388  ;;  %v4635_v14 = vpop.permute.xlu0 %1383 }
 0x17e   :  { %5548 = vst [vmem:[#allocation75_spill] sm:$0xff] %v4633_v48  ;;  %5549 = vst [vmem:[#allocation76_spill] sm:$0xff] %v4635_v14  ;;  %2065 = vperm.xlu1 %3086, %v241_v37   ;;  %v5551_v48 = vld [vmem:[#allocation32_spill] sm:$0xff]  ;;  %v3150_v14 = vld [vmem:[%s5348_s4 + $0xc0] ss:$8 sps:$4 sm:$0xff]  }
 0x17f   :  { %2060 = vperm.xlu0 %3085, %v240_v1   ;;  %v3151_v37 = vld [vmem:[%s5348_s4 + $0xd4] ss:$8 sps:$4 sm:$0xff]  }
 0x180   :  { %1672 = vmatmul.mubr.bf16.gmra.mrb[28].mxu1 %v3147_v55  ;;  %v5552_v55 = vld [vmem:[#allocation34_spill] sm:$0xff] }
 0x181   :  { %v4640_v35 = vpop.permute.xlu1 %1719  ;;  %v4642_v5 = vpop.permute.xlu0 %1714  ;;  %1679 = vmatprep.mubr.bf16.mxu1 %v3148_v43  ;;  %v5553_v43 = vld [vmem:[#allocation33_spill] sm:$0xff] }
 0x182   :  { %3088 = vset.pattern.permute.xlu1 %v3289_v57 }
 0x183   :  { %3087 = vset.pattern.permute.xlu0 %v3289_v57  ;;  %2105 = vperm.xlu1 %3088, %v5550_v28  }
 0x184   :  { %2101 = vperm.xlu0 %3087, %v5551_v48   ;;  %v5554_v48 = vld [vmem:[#allocation36_spill] sm:$0xff] }
 0x185   :  { %v4649_v20 = vpop.permute.xlu1 %1729  ;;  %v4654_v1 = vpop.permute.xlu0 %1724 }
 0x187   :  { %2109 = vperm.xlu1 %3088, %v5552_v55   ;;  %v3154_v55 = vld [vmem:[%s5348_s4 + $0xe4] ss:$8 sps:$4 sm:$0xff]  }
 0x188   :  { %2113 = vperm.xlu0 %3087, %v5553_v43   ;;  %1680 = vmatmul.mubr.bf16.gmra.mrb[32].mxu1 %v3150_v14  ;;  %v5556_v43 = vld [vmem:[#allocation40_spill] sm:$0xff] }
 0x189   :  { %v4658_v57 = vpop.permute.xlu1 %1739  ;;  %1687 = vmatprep.mubr.bf16.mxu1 %v3151_v37  ;;  %v4660_v28 = vpop.permute.xlu0 %1734  ;;  %v5557_v37 = vld [vmem:[#allocation38_spill] sm:$0xff] }
 0x18b   :  { %2117 = vperm.xlu1 %3088, %v5554_v48  }
 0x18c   :  { %2121 = vperm.xlu0 %3087, %v5555_v3  }
 0x18d   :  { %v4667_v39 = vpop.permute.xlu1 %1749  ;;  %v4672_v14 = vpop.permute.xlu0 %1744 }
 0x18f   :  { %2125 = vperm.xlu1 %3088, %v5556_v43   ;;  %v3157_v43 = vld [vmem:[%s5348_s4 + $0xf4] ss:$8 sps:$4 sm:$0xff]  }
 0x190   :  { %2129 = vperm.xlu0 %3087, %v5557_v37   ;;  %1688 = vmatmul.mubr.bf16.gmra.mrb[36].mxu1 %v3153_v36  ;;  %v5560_v37 = vld [vmem:[#allocation52_spill] sm:$0xff] }
 0x191   :  { %v4676_v48 = vpop.permute.xlu1 %1759  ;;  %1695 = vmatprep.mubr.bf16.mxu1 %v3154_v55  ;;  %v4678_v3 = vpop.permute.xlu0 %1754  ;;  %v5561_v55 = vld [vmem:[#allocation49_spill] sm:$0xff] }
 0x193   :  { %2133 = vperm.xlu1 %3088, %v5558_v24  }
 0x194   :  { %2137 = vperm.xlu0 %3087, %v5559_v18  }
 0x195   :  { %v4685_v8 = vpop.permute.xlu1 %1769  ;;  %v4690_v36 = vpop.permute.xlu0 %1764 }
 0x197   :  { %2141 = vperm.xlu1 %3088, %v5560_v37  }
 0x198   :  { %2145 = vperm.xlu0 %3087, %v5561_v55   ;;  %1696 = vmatmul.mubr.bf16.gmra.mrb[40].mxu1 %v3156_v53 }
 0x199   :  { %v4694_v24 = vpop.permute.xlu1 %1779  ;;  %1703 = vmatprep.mubr.bf16.mxu1 %v3157_v43  ;;  %v4696_v18 = vpop.permute.xlu0 %1774 }
 0x19b   :  { %2149 = vperm.xlu1 %3088, %v4089_v56  }
 0x19c   :  { %2153 = vperm.xlu0 %3087, %v4080_v32  }
 0x19d   :  { %v4703_v42 = vpop.permute.xlu1 %1789  ;;  %v4705_v30 = vpop.permute.xlu0 %1784 }
 0x19f   :  { %2157 = vperm.xlu1 %3088, %v4129_v19  }
 0x1a0   :  { %2161 = vperm.xlu0 %3087, %v4114_v23   ;;  %1704 = vmatmul.mubr.bf16.gmra.mrb[44].mxu1 %v3159_v58 }
 0x1a1   :  { %v4709_v53 = vpop.permute.xlu1 %1799  ;;  %v4711_v43 = vpop.permute.xlu0 %1794 }
 0x1a3   :  { %2165 = vperm.xlu1 %3088, %v4174_v0  }
 0x1a4   :  { %2169 = vperm.xlu0 %3087, %v4160_v7  }
 0x1a5   :  { %v4715_v56 = vpop.permute.xlu1 %1809  ;;  %v4717_v32 = vpop.permute.xlu0 %1804 }
 0x1a7   :  { %2173 = vperm.xlu1 %3088, %v4217_v4  }
 0x1a8   :  { %2177 = vperm.xlu0 %3087, %v4207_v44  }
 0x1a9   :  { %v4721_v19 = vpop.permute.xlu1 %1819 }
 0x1aa   :  { %v4723_v23 = vpop.permute.xlu0 %1814 }
 0x1ab   :  { %2181 = vperm.xlu1 %3088, %v4258_v6  }
 0x1ac   :  { %2185 = vperm.xlu0 %3087, %v4248_v38  }
 0x1ad   :  { %v4727_v58 = vpop.permute.xlu1 %1829 }
 0x1ae   :  { %v4729_v0 = vpop.permute.xlu0 %1824 }
 0x1af   :  { %2189 = vperm.xlu1 %3088, %v4292_v15  }
 0x1b0   :  { %2193 = vperm.xlu0 %3087, %v4282_v11  }
 0x1b1   :  { %v4733_v7 = vpop.permute.xlu1 %1839 }
 0x1b2   :  { %v4735_v4 = vpop.permute.xlu0 %1834 }
 0x1b3   :  { %2197 = vperm.xlu1 %3088, %v4322_v41  }
 0x1b4   :  { %2201 = vperm.xlu0 %3087, %v4311_v31  }
 0x1b5   :  { %v4739_v44 = vpop.permute.xlu1 %1849 }
 0x1b6   :  { %5562 = vst [vmem:[#allocation31_spill] sm:$0xff] %v4739_v44  ;;  %v4741_v6 = vpop.permute.xlu0 %1844 }
 0x1b7   :  { %5563 = vst [vmem:[#allocation32_spill] sm:$0xff] %v4741_v6  ;;  %2205 = vperm.xlu1 %3088, %v4354_v54  }
 0x1b8   :  { %2209 = vperm.xlu0 %3087, %v4344_v27  }
 0x1b9   :  { %v4745_v38 = vpop.permute.xlu1 %1859 }
 0x1ba   :  { %5564 = vst [vmem:[#allocation34_spill] sm:$0xff] %v4745_v38  ;;  %v4747_v15 = vpop.permute.xlu0 %1854  ;;  %v49_v38 = vld [vmem:[%s5351_s1] sm:$0x3] }
 0x1bb   :  { %5565 = vst [vmem:[#allocation33_spill] sm:$0xff] %v4747_v15  ;;  %2213 = vperm.xlu1 %3088, %v4385_v17  }
 0x1bc   :  { %2217 = vperm.xlu0 %3087, %v4375_v33  }
 0x1bd   :  { %v1870_v11 = vpop.permute.xlu1 %1869 }
 0x1be   :  { %v1865_v41 = vpop.permute.xlu0 %1864 }
 0x1bf   :  { %2221 = vperm.xlu1 %3088, %v4407_v60  }
 0x1c0   :  { %2225 = vperm.xlu0 %3087, %v4398_v21  }
 0x1c1   :  { %v1916_v31 = vpop.permute.xlu1 %1915 }
 0x1c2   :  { %v1911_v37 = vpop.permute.xlu0 %1910 }
 0x1c5   :  { %v1926_v55 = vpop.permute.xlu1 %1925 }
 0x1c6   :  { %v1921_v54 = vpop.permute.xlu0 %1920 }
 0x1c9   :  { %v4753_v46 = vpop.permute.xlu1 %1935 }
 0x1ca   :  { %v4755_v27 = vpop.permute.xlu0 %1930 }
 0x1cd   :  { %v4757_v52 = vpop.permute.xlu1 %1945 }
 0x1ce   :  { %v4759_v29 = vpop.permute.xlu0 %1940 }
 0x1d1   :  { %v4761_v17 = vpop.permute.xlu1 %1955 }
 0x1d2   :  { %v4763_v33 = vpop.permute.xlu0 %1950 }
 0x1d5   :  { %v4765_v51 = vpop.permute.xlu1 %1965 }
 0x1d6   :  { %v4767_v60 = vpop.permute.xlu0 %1960 }
 0x1d9   :  { %v4769_v21 = vpop.permute.xlu1 %1975 }
 0x1da   :  { %v4771_v12 = vpop.permute.xlu0 %1970 }
 0x1dd   :  { %v4773_v47 = vpop.permute.xlu1 %1985 }
 0x1de   :  { %v4775_v59 = vpop.permute.xlu0 %1980 }
 0x1e1   :  { %v4777_v34 = vpop.permute.xlu1 %1995 }
 0x1e2   :  { %v4779_v62 = vpop.permute.xlu0 %1990 }
 0x1e5   :  { %v4781_v2 = vpop.permute.xlu1 %2005 }
 0x1e6   :  { %v4783_v45 = vpop.permute.xlu0 %2000 }
 0x1e9   :  { %v4785_v16 = vpop.permute.xlu1 %2015 }
 0x1ea   :  { %5566 = vst [vmem:[#allocation36_spill] sm:$0xff] %v4785_v16  ;;  %v4787_v13 = vpop.permute.xlu0 %2010 }
 0x1eb   :  { %5567 = vst [vmem:[#allocation35_spill] sm:$0xff] %v4787_v13 }
 0x1ed   :  { %v4789_v49 = vpop.permute.xlu1 %2025 }
 0x1ee   :  { %5568 = vst [vmem:[#allocation40_spill] sm:$0xff] %v4789_v49  ;;  %v4791_v22 = vpop.permute.xlu0 %2020  ;;  %v4806_v49 = vrot.slane %v49_v38, %v1874_v9 }
 0x1ef   :  { %5569 = vst [vmem:[#allocation38_spill] sm:$0xff] %v4791_v22  ;;  %v2230_v22 = vsub.s32 1, %v1873_v63 }
 0x1f0   :  { %v1907_v25 = vmul.f32 %v4806_v49, %v1870_v11  ;;  %v1876_v9 = vmul.f32 %v4806_v49, %v4642_v5 }
 0x1f1   :  { %v4793_v61 = vpop.permute.xlu1 %2035  ;;  %v4816_v50 = vrot.slane %v49_v38, %v2230_v22  ;;  %v1879_v22 = vmul.f32 %v4806_v49, %v4649_v20 }
 0x1f2   :  { %5570 = vst [vmem:[#allocation46_spill] sm:$0xff] %v4793_v61  ;;  %v4795_v26 = vpop.permute.xlu0 %2030 }
 0x1f3   :  { %5571 = vst [vmem:[#allocation45_spill] sm:$0xff] %v4795_v26  ;;  %v1906_v26 = vmul.f32 %v4806_v49, %v1865_v41  ;;  %v2068_v41 = vadd.f32 %v1911_v37, %v1876_v9 }
 0x1f5   :  { %v4797_v15 = vpop.permute.xlu1 %2045 }
 0x1f6   :  { %5572 = vst [vmem:[#allocation52_spill] sm:$0xff] %v4797_v15  ;;  %v4799_v10 = vpop.permute.xlu0 %2040 }
 0x1f7   :  { %5573 = vst [vmem:[#allocation49_spill] sm:$0xff] %v4799_v10 }
 0x1f9   :  { %v4804_v16 = vpop.permute.xlu1 %2055 }
 0x1fa   :  { %5574 = vst [vmem:[#allocation77_spill] sm:$0xff] %v4804_v16  ;;  %v4808_v6 = vpop.permute.xlu0 %2050  ;;  %v1877_v16 = vmul.f32 %v4806_v49, %v4640_v35 }
 0x1fb   :  { %5575 = vst [vmem:[#allocation78_spill] sm:$0xff] %v4808_v6 }
 0x1fc   :  { %v2069_v13 = vadd.f32 %v1916_v31, %v1877_v16  ;;  %v1880_v31 = vmul.f32 %v4806_v49, %v4660_v28  ;;  %v1882_v28 = vmul.f32 %v4806_v49, %v4672_v14  ;;  %v1889_v14 = vmul.f32 %v4806_v49, %v4694_v24 }
 0x1fd   :  { %v2066_v61 = vpop.permute.xlu1 %2065 }
 0x1fe   :  { %v4812_v15 = vadd.f32 %v2066_v61, %v1907_v25  ;;  %v2061_v44 = vpop.permute.xlu0 %2060  ;;  %v2072_v20 = vadd.f32 %v4755_v27, %v1880_v31  ;;  %v1885_v27 = vmul.f32 %v4806_v49, %v4676_v48  ;;  %v1888_v48 = vmul.f32 %v4806_v49, %v4696_v18 }
 0x1ff   :  { %v4814_v10 = vadd.f32 %v2061_v44, %v1906_v26  ;;  %v1878_v26 = vmul.f32 %v4806_v49, %v4654_v1 }
 0x200   :  { %5576 = vst [vmem:[#allocation79_spill] sm:$0xff] %v4812_v15  ;;  %v2077_v31 = vadd.f32 %v4761_v17, %v1885_v27 }
 0x201   :  { %5577 = vst [vmem:[#allocation80_spill] sm:$0xff] %v4814_v10  ;;  %v2070_v25 = vadd.f32 %v1921_v54, %v1878_v26  ;;  %v2071_v10 = vadd.f32 %v1926_v55, %v1879_v22  ;;  %v1881_v55 = vmul.f32 %v4806_v49, %v4658_v57  ;;  %v1884_v26 = vmul.f32 %v4806_v49, %v4678_v3 }
 0x202   :  { %v2106_v6 = vpop.permute.xlu1 %2105  ;;  %v1887_v57 = vmul.f32 %v4806_v49, %v4685_v8  ;;  %v1891_v3 = vmul.f32 %v4806_v49, %v4703_v42  ;;  %v1893_v8 = vmul.f32 %v4806_v49, %v4709_v53 }
 0x203   :  { %v2233_v63 = vmul.f32 %v4816_v50, %v2106_v6  ;;  %v2102_v11 = vpop.permute.xlu0 %2101  ;;  %v2076_v18 = vadd.f32 %v4763_v33, %v1884_v26  ;;  %v4877_v33 = vmul.f32 %v4806_v49, %v4717_v32  ;;  %v4887_v32 = vmul.f32 %v4806_v49, %v4723_v23 }
 0x204   :  { %v2232_v61 = vmul.f32 %v4816_v50, %v2102_v11  ;;  %v4904_v23 = vmul.f32 %v4806_v49, %v4735_v4  ;;  %v2083_v4 = vadd.f32 %v4773_v47, %v1891_v3 }
 0x205   :  { %v2265_v44 = vadd.f32 %v2233_v63, %v2069_v13 }
 0x206   :  { %v2264_v38 = vadd.f32 %v2232_v61, %v2068_v41  ;;  %v2110_v35 = vpop.permute.xlu1 %2109 }
 0x207   :  { %v2234_v5 = vmul.f32 %v4816_v50, %v2110_v35  ;;  %v2114_v15 = vpop.permute.xlu0 %2113  ;;  %v2854_v9 = vmul.f32 -1.442695, %v2265_v44  ;;  %v2073_v35 = vadd.f32 %v4753_v46, %v1881_v55 }
 0x208   :  { %v2853_v6 = vmul.f32 -1.442695, %v2264_v38  ;;  %v2235_v16 = vmul.f32 %v4816_v50, %v2114_v15  ;;  %v1883_v15 = vmul.f32 %v4806_v49, %v4667_v39  ;;  %v1886_v39 = vmul.f32 %v4806_v49, %v4690_v36 }
 0x209   :  { %v2266_v37 = vadd.f32 %v2234_v5, %v2070_v25  ;;  %v1890_v25 = vmul.f32 %v4806_v49, %v4705_v30  ;;  %v4862_v36 = vmul.f32 %v4806_v49, %v4711_v43  ;;  %v2074_v30 = vadd.f32 %v4759_v29, %v1882_v28 }
 0x20a   :  { %3160 = vpow2.f32 %v2853_v6  ;;  %v2267_v1 = vadd.f32 %v2235_v16, %v2071_v10  ;;  %v2118_v11 = vpop.permute.xlu1 %2117  ;;  %v2075_v29 = vadd.f32 %v4757_v52, %v1883_v15  ;;  %v4895_v15 = vmul.f32 %v4806_v49, %v4729_v0 }
 0x20b   :  { %v2236_v13 = vmul.f32 %v4816_v50, %v2118_v11  ;;  %v2122_v54 = vpop.permute.xlu0 %2121  ;;  %v2855_v63 = vmul.f32 -1.442695, %v2266_v37  ;;  %3162 = vpow2.f32 %v2854_v9  ;;  %v4873_v37 = vmul.f32 %v4806_v49, %v4715_v56 }
 0x20c   :  { %v2856_v41 = vmul.f32 -1.442695, %v2267_v1  ;;  %v2237_v44 = vmul.f32 %v4816_v50, %v2122_v54  ;;  %v4881_v11 = vmul.f32 %v4806_v49, %v4721_v19  ;;  %v4891_v19 = vmul.f32 %v4806_v49, %v4727_v58 }
 0x20d   :  { %v2268_v61 = vadd.f32 %v2236_v13, %v2072_v20  ;;  %3164 = vpow2.f32 %v2855_v63  ;;  %v4899_v28 = vmul.f32 %v4806_v49, %v4733_v7  ;;  %v2079_v58 = vadd.f32 %v4765_v51, %v1887_v57 }
 0x20e   :  { %v2126_v10 = vpop.permute.xlu1 %2125  ;;  %3166 = vpow2.f32 %v2856_v41  ;;  %v2269_v42 = vadd.f32 %v2237_v44, %v2073_v35 }
 0x20f   :  { %v2857_v22 = vmul.f32 -1.442695, %v2268_v61  ;;  %v2130_v38 = vpop.permute.xlu0 %2129  ;;  %v2238_v24 = vmul.f32 %v4816_v50, %v2126_v10  ;;  %v2078_v10 = vadd.f32 %v4767_v60, %v1886_v39 }
 0x210   :  { %v2239_v53 = vmul.f32 %v4816_v50, %v2130_v38  ;;  %v2858_v54 = vmul.f32 -1.442695, %v2269_v42  ;;  %v4909_v38 = vadd.f32 %v4769_v21, %v1889_v14  ;;  %v2082_v42 = vadd.f32 %v4775_v59, %v1890_v25 }
 0x211   :  { %3168 = vpow2.f32 %v2857_v22  ;;  %v2270_v17 = vadd.f32 %v2238_v24, %v2074_v30  ;;  %v2080_v24 = vadd.f32 %v4771_v12, %v1888_v48  ;;  %v2084_v48 = vadd.f32 %v4779_v62, %v4862_v36 }
 0x212   :  { %v2134_v5 = vpop.permute.xlu1 %2133  ;;  %v2271_v55 = vadd.f32 %v2239_v53, %v2075_v29  ;;  %v4927_v62 = vadd.f32 %v4781_v2, %v4873_v37 }
 0x213   :  { %v2240_v46 = vmul.f32 %v4816_v50, %v2134_v5  ;;  %v2138_v6 = vpop.permute.xlu0 %2137  ;;  %v2859_v26 = vmul.f32 -1.442695, %v2270_v17 }
 0x214   :  { %v3161_v16 = vpop.eup %3160  ;;  %v2241_v43 = vmul.f32 %v4816_v50, %v2138_v6  ;;  %v2860_v5 = vmul.f32 -1.442695, %v2271_v55 }
 0x215   :  { %v2392_v9 = vadd.f32 1.0, %v3161_v16  ;;  %v2272_v1 = vadd.f32 %v2240_v46, %v2076_v18  ;;  %v3163_v61 = vpop.eup %3162  ;;  %v2085_v46 = vadd.f32 %v4777_v34, %v1893_v8 }
 0x216   :  { %v2273_v20 = vadd.f32 %v2241_v43, %v2077_v31  ;;  %v2142_v13 = vpop.permute.xlu1 %2141  ;;  %v2393_v7 = vadd.f32 1.0, %v3163_v61 }
 0x217   :  { %3170 = vrcp.f32 %v2392_v9  ;;  %v2861_v63 = vmul.f32 -1.442695, %v2272_v1  ;;  %v2242_v56 = vmul.f32 %v4816_v50, %v2142_v13  ;;  %v2146_v41 = vpop.permute.xlu0 %2145  ;;  %v3165_v27 = vpop.eup %3164 }
 0x218   :  { %v2862_v52 = vmul.f32 -1.442695, %v2273_v20  ;;  %v2243_v22 = vmul.f32 %v4816_v50, %v2146_v41  ;;  %v3167_v0 = vpop.eup %3166  ;;  %v2394_v21 = vadd.f32 1.0, %v3165_v27 }
 0x219   :  { %3172 = vpow2.f32 %v2861_v63  ;;  %v2274_v35 = vadd.f32 %v2242_v56, %v2078_v10  ;;  %v2395_v30 = vadd.f32 1.0, %v3167_v0 }
 0x21a   :  { %v2150_v44 = vpop.permute.xlu1 %2149  ;;  %3174 = vpow2.f32 %v2858_v54  ;;  %v2275_v31 = vadd.f32 %v2243_v22, %v2079_v58 }
 0x21b   :  { %v2154_v60 = vpop.permute.xlu0 %2153  ;;  %v2924_v39 = vpop.f32.mrb[32].mxu0  ;;  %3176 = vpow2.f32 %v2862_v52  ;;  %v2863_v3 = vmul.f32 -1.442695, %v2274_v35  ;;  %v2244_v43 = vmul.f32 %v4816_v50, %v2150_v44 }
 0x21c   :  { %v2948_v51 = vpop.f32.mrb[0].mxu1  ;;  %v2925_v57 = vpop.f32.mrb[33].mxu0  ;;  %3178 = vpow2.f32 %v2859_v26  ;;  %v2864_v36 = vmul.f32 -1.442695, %v2275_v31 }
 0x21d   :  { %v3169_v18 = vpop.eup %3168  ;;  %v2926_v14 = vadd.f32 %v2925_v57, %v2924_v39  ;;  %v2949_v6 = vpop.f32.mrb[1].mxu1  ;;  %3180 = vrcp.f32 %v2393_v7  ;;  %v2276_v10 = vadd.f32 %v2244_v43, %v2080_v24 }
 0x21e   :  { %v2927_v16 = vpop.f32.mrb[34].mxu0  ;;  %v4915_v53 = vadd.f32 %v2949_v6, %v2948_v51  ;;  %v2951_v12 = vpop.f32.mrb[2].mxu1  ;;  %v2396_v8 = vadd.f32 1.0, %v3169_v18  ;;  %3182 = vpow2.f32 %v2860_v5  ;;  %v5578_v18 = vld [vmem:[#allocation35_spill] sm:$0xff] }
 0x21f   :  { %v2158_v47 = vpop.permute.xlu1 %2157  ;;  %v2162_v25 = vpop.permute.xlu0 %2161  ;;  %v1586_v9 = vadd.f32 %v2926_v14, %v4419_v40  ;;  %3184 = vrcp.f32 %v2394_v21  ;;  %v2245_v40 = vmul.f32 %v4816_v50, %v2154_v60 }
 0x220   :  { %v2246_v59 = vmul.f32 %v4816_v50, %v2158_v47  ;;  %v2928_v34 = vpop.f32.mrb[35].mxu0  ;;  %v2952_v1 = vpop.f32.mrb[3].mxu1  ;;  %v2247_v20 = vmul.f32 %v4816_v50, %v2162_v25  ;;  %3186 = vrcp.f32 %v2395_v30 }
 0x221   :  { %v3171_v29 = vpop.eup %3170  ;;  %v4923_v13 = vadd.f32 %v2928_v34, %v2927_v16  ;;  %v4929_v54 = vadd.f32 %v2952_v1, %v2951_v12  ;;  %3188 = vpow2.f32 %v2863_v3  ;;  %v2277_v12 = vadd.f32 %v2245_v40, %v4909_v38 }
 0x222   :  { %v2278_v17 = vadd.f32 %v2246_v59, %v2082_v42  ;;  %v2279_v61 = vadd.f32 %v2247_v20, %v2083_v4  ;;  %3190 = vrcp.f32 %v2396_v8  ;;  %v2488_v27 = vmul.f32 %v3171_v29, %v1586_v9  ;;  %v5579_v59 = vld [vmem:[#allocation50_spill] sm:$0xff] }
 0x223   :  { %v2166_v63 = vpop.permute.xlu1 %2165  ;;  %v3173_v56 = vpop.eup %3172  ;;  %v2086_v4 = vadd.f32 %v4783_v45, %v4877_v33  ;;  %3192 = vpow2.f32 %v2864_v36  ;;  %v2088_v42 = vadd.f32 %v5578_v18, %v4887_v32 }
 0x224   :  { %v2867_v41 = vmul.f32 -1.442695, %v2278_v17  ;;  %v2170_v55 = vpop.permute.xlu0 %2169  ;;  %v2930_v52 = vpop.f32.mrb[36].mxu0  ;;  %v2248_v58 = vmul.f32 %v4816_v50, %v2166_v63  ;;  %v2400_v22 = vadd.f32 1.0, %v3173_v56  ;;  %v2868_v44 = vmul.f32 -1.442695, %v2279_v61 }
 0x225   :  { %v2954_v2 = vpop.f32.mrb[4].mxu1  ;;  %v2931_v37 = vpop.f32.mrb[37].mxu0  ;;  %v2249_v0 = vmul.f32 %v4816_v50, %v2170_v55  ;;  %v4946_v25 = vadd.f32 %v2488_v27, %v5579_v59  ;;  %v2866_v63 = vmul.f32 -1.442695, %v2277_v12  ;;  %v5581_v27 = vld [vmem:[#allocation32_spill] sm:$0xff] }
 0x226   :  { %v3175_v26 = vpop.eup %3174  ;;  %v4934_v7 = vadd.f32 %v2931_v37, %v2930_v52  ;;  %v2955_v35 = vpop.f32.mrb[5].mxu1  ;;  %v2280_v24 = vadd.f32 %v2248_v58, %v2084_v48  ;;  %3194 = vpow2.f32 %v2867_v41  ;;  %v2865_v48 = vmul.f32 -1.442695, %v2276_v10  ;;  %v5580_v52 = vld [vmem:[#allocation31_spill] sm:$0xff] }
 0x227   :  { %v2933_v60 = vpop.f32.mrb[38].mxu0  ;;  %v3177_v39 = vpop.eup %3176  ;;  %v4938_v5 = vadd.f32 %v2955_v35, %v2954_v2  ;;  %v2281_v14 = vadd.f32 %v2249_v0, %v2085_v46  ;;  %v2397_v31 = vadd.f32 1.0, %v3175_v26  ;;  %3196 = vpow2.f32 %v2868_v44  ;;  %2552 = vadd.xlane.f32.xlu1 %v4946_v25  ;;  %v5582_v44 = vld [vmem:[#allocation36_spill] sm:$0xff] }
 0x228   :  { %v2957_v51 = vpop.f32.mrb[6].mxu1  ;;  %v2174_v57 = vpop.permute.xlu1 %2173  ;;  %v2401_v21 = vadd.f32 1.0, %v3177_v39  ;;  %v2869_v45 = vmul.f32 -1.442695, %v2280_v24  ;;  %3198 = vrcp.f32 %v2400_v22  ;;  %v4963_v10 = vmul.f32 %v4806_v49, %v5580_v52 }
 0x229   :  { %v2178_v6 = vpop.permute.xlu0 %2177  ;;  %v2934_v16 = vpop.f32.mrb[39].mxu0  ;;  %v2870_v3 = vmul.f32 -1.442695, %v2281_v14  ;;  %v2250_v46 = vmul.f32 %v4816_v50, %v2174_v57  ;;  %v4967_v58 = vmul.f32 %v4806_v49, %v5581_v27 }
 0x22a   :  { %v3179_v30 = vpop.eup %3178  ;;  %v2958_v33 = vpop.f32.mrb[7].mxu1  ;;  %3200 = vrcp.f32 %v2401_v21  ;;  %v2251_v34 = vmul.f32 %v4816_v50, %v2178_v6  ;;  %v4950_v8 = vadd.f32 %v2934_v16, %v2933_v60  ;;  %v5583_v21 = vld [vmem:[#allocation34_spill] sm:$0xff] }
 0x22b   :  { %v4943_v47 = vpop.eup %3180  ;;  %v2398_v9 = vadd.f32 1.0, %v3179_v30  ;;  %3202 = vpow2.f32 %v2869_v45  ;;  %v4955_v1 = vadd.f32 %v2958_v33, %v2957_v51  ;;  %v2936_v20 = vpop.f32.mrb[40].mxu0  ;;  %v2282_v56 = vadd.f32 %v2250_v46, %v2086_v4  ;;  %v5585_v45 = vld [vmem:[#allocation38_spill] sm:$0xff] }
 0x22c   :  { %v3183_v32 = vpop.eup %3182  ;;  %v2182_v38 = vpop.permute.xlu1 %2181  ;;  %3204 = vrcp.f32 %v2397_v31  ;;  %v2283_v40 = vadd.f32 %v2251_v34, %v4927_v62  ;;  %v2089_v62 = vadd.f32 %v5582_v44, %v4881_v11  ;;  %v4978_v14 = vmul.f32 %v4806_v49, %v5583_v21  ;;  %v5584_v31 = vld [vmem:[#allocation40_spill] sm:$0xff] }
 0x22d   :  { %v4952_v43 = vpop.eup %3184  ;;  %v2252_v29 = vmul.f32 %v4816_v50, %v2182_v38  ;;  %v2186_v17 = vpop.permute.xlu0 %2185  ;;  %3206 = vpow2.f32 %v2870_v3  ;;  %v2871_v0 = vmul.f32 -1.442695, %v2282_v56  ;;  %v2091_v12 = vadd.f32 %v5584_v31, %v4891_v19 }
 0x22e   :  { %v4958_v36 = vpop.eup %3186  ;;  %v2960_v41 = vpop.f32.mrb[8].mxu1  ;;  %3208 = vpow2.f32 %v2865_v48  ;;  %v2872_v35 = vmul.f32 -1.442695, %v2283_v40  ;;  %v2253_v24 = vmul.f32 %v4816_v50, %v2186_v17  ;;  %v2090_v33 = vadd.f32 %v5585_v45, %v4895_v15  ;;  %v5587_v15 = vld [vmem:[#allocation44_spill] sm:$0xff] }
 0x22f   :  { %v2937_v61 = vpop.f32.mrb[41].mxu0  ;;  %v3189_v55 = vpop.eup %3188  ;;  %v2284_v2 = vadd.f32 %v2252_v29, %v2088_v42  ;;  %3210 = vrcp.f32 %v2398_v9  ;;  %v2399_v59 = vadd.f32 1.0, %v3183_v32  ;;  %v5586_v9 = vld [vmem:[#allocation53_spill] sm:$0xff]  ;;  %v1621_v40 = vadd.f32 %v4929_v54, %v5587_v15 }
 0x230   :  { %v2961_v37 = vpop.f32.mrb[9].mxu1  ;;  %v2939_v26 = vpop.f32.mrb[42].mxu0  ;;  %v4974_v51 = vadd.f32 %v2937_v61, %v2936_v20  ;;  %3212 = vpow2.f32 %v2866_v63  ;;  %v2285_v48 = vadd.f32 %v2253_v24, %v2089_v62  ;;  %v1618_v29 = vadd.f32 %v4915_v53, %v5586_v9 }
 0x231   :  { %v4969_v22 = vpop.eup %3190  ;;  %v2963_v60 = vpop.f32.mrb[10].mxu1  ;;  %v2873_v4 = vmul.f32 -1.442695, %v2284_v2  ;;  %v4980_v11 = vadd.f32 %v2961_v37, %v2960_v41  ;;  %3214 = vpow2.f32 %v2871_v0  ;;  %v2402_v56 = vadd.f32 1.0, %v3189_v55  ;;  %v5588_v0 = vld [vmem:[#allocation33_spill] sm:$0xff] }
 0x232   :  { %v2190_v39 = vpop.permute.xlu1 %2189  ;;  %v2194_v57 = vpop.permute.xlu0 %2193  ;;  %3216 = vpow2.f32 %v2872_v35  ;;  %v2874_v20 = vmul.f32 -1.442695, %v2285_v48  ;;  %v5000_v55 = vmul.f32 %v4806_v49, %v5588_v0  ;;  %v5591_v49 = vld [vmem:[#allocation47_spill] sm:$0xff]  ;;  %v5592_v48 = vld [vmem:[#allocation52_spill] sm:$0xff] }
 0x233   :  { %v2940_v18 = vpop.f32.mrb[43].mxu0  ;;  %v3193_v42 = vpop.eup %3192  ;;  %v2254_v6 = vmul.f32 %v4816_v50, %v2190_v39  ;;  %v2255_v34 = vmul.f32 %v4816_v50, %v2194_v57  ;;  %3218 = vpow2.f32 %v2873_v4  ;;  %v5589_v57 = vld [vmem:[#allocation46_spill] sm:$0xff] }
 0x234   :  { %v2964_v16 = vpop.f32.mrb[11].mxu1  ;;  %v3195_v30 = vpop.eup %3194  ;;  %v2403_v27 = vadd.f32 1.0, %v3193_v42  ;;  %v4992_v2 = vadd.f32 %v2940_v18, %v2939_v26  ;;  %v2093_v26 = vadd.f32 %v5589_v57, %v4899_v28 }
 0x235   :  { %v3197_v3 = vpop.eup %3196  ;;  %v2406_v46 = vadd.f32 1.0, %v3195_v30  ;;  %v2942_v63 = vpop.f32.mrb[44].mxu0  ;;  %v2286_v41 = vadd.f32 %v2254_v6, %v2090_v33  ;;  %v4994_v37 = vadd.f32 %v2964_v16, %v2963_v60  ;;  %v2287_v35 = vadd.f32 %v2255_v34, %v2091_v12  ;;  %v5590_v6 = vld [vmem:[#allocation45_spill] sm:$0xff] }
 0x236   :  { %v3199_v38 = vpop.eup %3198  ;;  %v2407_v17 = vadd.f32 1.0, %v3197_v3  ;;  %v2966_v32 = vpop.f32.mrb[12].mxu1  ;;  %v2092_v16 = vadd.f32 %v5590_v6, %v4904_v23  ;;  %v1589_v30 = vadd.f32 %v4923_v13, %v5591_v49  ;;  %v5010_v3 = vadd.f32 %v5592_v48, %v4963_v10  ;;  %v5595_v10 = vld [vmem:[#allocation70_spill] sm:$0xff] }
 0x237   :  { %v3201_v19 = vpop.eup %3200  ;;  %3220 = vrcp.f32 %v2406_v46  ;;  %v2943_v61 = vpop.f32.mrb[45].mxu0  ;;  %v2496_v18 = vmul.f32 %v3199_v38, %v1618_v29  ;;  %v2875_v31 = vmul.f32 -1.442695, %v2286_v41  ;;  %v2876_v34 = vmul.f32 -1.442695, %v2287_v35  ;;  %v5593_v29 = vld [vmem:[#allocation2_spill] sm:$0xff] }
 0x238   :  { %v3203_v52 = vpop.eup %3202  ;;  %3222 = vrcp.f32 %v2407_v17  ;;  %v2967_v53 = vpop.f32.mrb[13].mxu1  ;;  %v2497_v60 = vmul.f32 %v3201_v19, %v1621_v40 }
 0x239   :  { %v2945_v44 = vpop.f32.mrb[46].mxu0  ;;  %v4996_v62 = vpop.eup %3204  ;;  %3224 = vrcp.f32 %v2399_v59  ;;  %v2408_v54 = vadd.f32 1.0, %v3203_v52  ;;  %v2944_v59 = vadd.f32 %v2943_v61, %v2942_v63  ;;  %v2968_v38 = vadd.f32 %v2967_v53, %v2966_v32  ;;  %v5596_v63 = vld [vmem:[#allocation49_spill] sm:$0xff] }
 0x23a   :  { %v2198_v39 = vpop.permute.xlu1 %2197  ;;  %v2969_v4 = vpop.f32.mrb[14].mxu1  ;;  %3226 = vpow2.f32 %v2874_v20  ;;  %v5594_v20 = vld [vmem:[#allocation66_spill] sm:$0xff]  ;;  %v2094_v41 = vadd.f32 %v5596_v63, %v4967_v58  ;;  %v5597_v61 = vld [vmem:[#allocation77_spill] sm:$0xff]  ;;  %v2489_v32 = vmul.f32 %v4943_v47, %v1589_v30 }
 0x23b   :  { %v3207_v24 = vpop.eup %3206  ;;  %v2946_v42 = vpop.f32.mrb[47].mxu0  ;;  %3228 = vrcp.f32 %v2402_v56  ;;  %v2256_v28 = vmul.f32 %v4816_v50, %v2198_v39  ;;  %v1610_v17 = vadd.f32 %v2944_v59, %v5593_v29  ;;  %v5018_v19 = vadd.f32 %v2496_v18, %v5594_v20  ;;  %v5598_v39 = vld [vmem:[#allocation11_spill] sm:$0xff] }
 0x23c   :  { %v3209_v21 = vpop.eup %3208  ;;  %v2202_v12 = vpop.permute.xlu0 %2201  ;;  %3230 = vrcp.f32 %v2403_v27  ;;  %v2409_v23 = vadd.f32 1.0, %v3207_v24  ;;  %v5021_v56 = vadd.f32 %v2497_v60, %v5595_v10  ;;  %v5027_v52 = vadd.f32 %v5597_v61, %v4978_v14  ;;  %v5601_v29 = vld [vmem:[#allocation51_spill] sm:$0xff] }
 0x23d   :  { %v2970_v45 = vpop.f32.mrb[15].mxu1  ;;  %v3211_v33 = vpop.eup %3210  ;;  %3232 = vrcp.f32 %v2408_v54  ;;  %v2257_v13 = vmul.f32 %v4816_v50, %v2202_v12  ;;  %v2288_v54 = vadd.f32 %v2256_v28, %v2092_v16  ;;  %v1642_v24 = vadd.f32 %v2968_v38, %v5598_v39  ;;  %2568 = vadd.xlane.f32.xlu0 %v5018_v19  ;;  %v5599_v28 = vld [vmem:[#allocation23_spill] sm:$0xff]  ;;  %v5600_v38 = vld [vmem:[#allocation25_spill] sm:$0xff] }
 0x23e   :  { %v5013_v46 = vpop.eup %3212  ;;  %v2972_v15 = vpop.f32.mrb[16].mxu1  ;;  %3234 = vpow2.f32 %v2875_v31  ;;  %v5030_v35 = vmul.f32 %v3211_v33, %v1610_v17  ;;  %2570 = vadd.xlane.f32.xlu1 %v5021_v56  ;;  %v2404_v18 = vadd.f32 1.0, %v3209_v21  ;;  %v2947_v47 = vadd.f32 %v2946_v42, %v2945_v44  ;;  %v5602_v44 = vld [vmem:[#allocation10_spill] sm:$0xff]  ;;  %v5603_v42 = vld [vmem:[#allocation48_spill] sm:$0xff] }
 0x23f   :  { %v3215_v9 = vpop.eup %3214  ;;  %v2973_v27 = vpop.f32.mrb[17].mxu1  ;;  %3236 = vrcp.f32 %v2409_v23  ;;  %v2971_v60 = vadd.f32 %v2970_v45, %v2969_v4  ;;  %v2289_v16 = vadd.f32 %v2257_v13, %v2093_v26  ;;  %v2521_v21 = vadd.f32 %v2489_v32, %v5601_v29 }
 0x240   :  { %v3217_v40 = vpop.eup %3216  ;;  %v2410_v0 = vadd.f32 1.0, %v3215_v9  ;;  %v2206_v58 = vpop.permute.xlu1 %2205  ;;  %3238 = vpow2.f32 %v2876_v34  ;;  %v1613_v59 = vadd.f32 %v2947_v47, %v5599_v28  ;;  %v1594_v4 = vadd.f32 %v4934_v7, %v5602_v44 }
 0x241   :  { %v3219_v53 = vpop.eup %3218  ;;  %v5035_v57 = vpop.f32.mrb[18].mxu1  ;;  %v2411_v30 = vadd.f32 1.0, %v3217_v40  ;;  %v2258_v33 = vmul.f32 %v4816_v50, %v2206_v58  ;;  %v1645_v9 = vadd.f32 %v2971_v60, %v5600_v38  ;;  %v1597_v26 = vadd.f32 %v4950_v8, %v5603_v42  ;;  %2554 = vadd.xlane.f32.xlu0 %v2521_v21 }
 0x242   :  { %v3221_v14 = vpop.eup %3220  ;;  %v2976_v6 = vpop.f32.mrb[19].mxu1  ;;  %3240 = vrcp.f32 %v2410_v0  ;;  %v2877_v45 = vmul.f32 -1.442695, %v2288_v54  ;;  %v2412_v13 = vadd.f32 1.0, %v3219_v53  ;;  %v2617_v10 = vmul.f32 %v2521_v21, %v2521_v21 }
 0x243   :  { %v3223_v49 = vpop.eup %3222  ;;  %v5037_v31 = vmul.f32 %v3221_v14, %v1642_v24  ;;  %v2210_v48 = vpop.permute.xlu0 %2209  ;;  %3242 = vrcp.f32 %v2404_v18  ;;  %v2878_v63 = vmul.f32 -1.442695, %v2289_v16  ;;  %v2974_v32 = vadd.f32 %v2973_v27, %v2972_v15  ;;  %v5604_v24 = vld [vmem:[#allocation78_spill] sm:$0xff]  ;;  %v5605_v18 = vld [vmem:[#allocation17_spill] sm:$0xff] }
 0x244   :  { %v3225_v12 = vpop.eup %3224  ;;  %v5049_v20 = vmul.f32 %v3223_v49, %v1645_v9  ;;  %v2259_v61 = vmul.f32 %v4816_v50, %v2210_v48  ;;  %v2978_v7 = vpop.f32.mrb[20].mxu1  ;;  %3244 = vrcp.f32 %v2411_v30  ;;  %v2290_v8 = vadd.f32 %v2258_v33, %v2094_v41  ;;  %2650 = vadd.xlane.f32.xlu1 %v2617_v10  ;;  %v5606_v49 = vld [vmem:[#allocation43_spill] sm:$0xff] }
 0x245   :  { %v3227_v23 = vpop.eup %3226  ;;  %v5047_v17 = vmul.f32 %v3225_v12, %v1613_v59  ;;  %v2616_v53 = vmul.f32 %v4946_v25, %v4946_v25  ;;  %v2979_v54 = vpop.f32.mrb[21].mxu1  ;;  %v2096_v58 = vadd.f32 %v5604_v24, %v5000_v55  ;;  %v2405_v14 = vadd.f32 1.0, %v5013_v46  ;;  %v5607_v46 = vld [vmem:[#allocation54_spill] sm:$0xff] }
 0x246   :  { %v3229_v34 = vpop.eup %3228  ;;  %v2413_v39 = vadd.f32 1.0, %v3227_v23  ;;  %v1626_v47 = vadd.f32 %v4938_v5, %v5605_v18  ;;  %3246 = vpow2.f32 %v2877_v45  ;;  %v2981_v15 = vpop.f32.mrb[22].mxu1  ;;  %v2491_v60 = vmul.f32 %v4958_v36, %v1597_v26  ;;  %v5609_v23 = vld [vmem:[#allocation55_spill] sm:$0xff] }
 0x247   :  { %v3231_v40 = vpop.eup %3230  ;;  %3248 = vrcp.f32 %v2412_v13  ;;  %v2214_v41 = vpop.permute.xlu1 %2213  ;;  %v1650_v30 = vadd.f32 %v2974_v32, %v5606_v49  ;;  %v2625_v25 = vmul.f32 %v5021_v56, %v5021_v56  ;;  %2648 = vadd.xlane.f32.xlu0 %v2616_v53  ;;  %v2490_v55 = vmul.f32 %v4952_v43, %v1594_v4 }
 0x248   :  { %v3233_v0 = vpop.eup %3232  ;;  %v2982_v16 = vpop.f32.mrb[23].mxu1  ;;  %v1629_v12 = vadd.f32 %v4955_v1, %v5607_v46  ;;  %3250 = vpow2.f32 %v2878_v63  ;;  %v2291_v5 = vadd.f32 %v2259_v61, %v5010_v3  ;;  %v2879_v36 = vmul.f32 -1.442695, %v2290_v8  ;;  %v5608_v3 = vld [vmem:[#allocation4_spill] sm:$0xff] }
 0x249   :  { %v3235_v27 = vpop.eup %3234  ;;  %3252 = vrcp.f32 %v2413_v39  ;;  %v2218_v48 = vpop.permute.xlu0 %2217  ;;  %v5067_v28 = vmul.f32 %v3233_v0, %v1650_v30  ;;  %2666 = vadd.xlane.f32.xlu1 %v2625_v25  ;;  %v2977_v59 = vadd.f32 %v2976_v6, %v5035_v57  ;;  %v2260_v38 = vmul.f32 %v4816_v50, %v2214_v41  ;;  %v5610_v57 = vld [vmem:[#allocation14_spill] sm:$0xff]  ;;  %v5611_v0 = vld [vmem:[#allocation56_spill] sm:$0xff]  ;;  %v5614_v25 = vld [vmem:[#allocation13_spill] sm:$0xff] }
 0x24a   :  { %v3237_v33 = vpop.eup %3236  ;;  %3254 = vrcp.f32 %v2405_v14  ;;  %v2624_v43 = vmul.f32 %v5018_v19, %v5018_v19  ;;  %v2980_v1 = vadd.f32 %v2979_v54, %v2978_v7  ;;  %v2499_v9 = vmul.f32 %v3231_v40, %v1629_v12  ;;  %v5612_v8 = vld [vmem:[#allocation16_spill] sm:$0xff] }
 0x24b   :  { %v3239_v56 = vpop.eup %3238  ;;  %v2414_v29 = vadd.f32 1.0, %v3235_v27  ;;  %v1653_v21 = vadd.f32 %v2977_v59, %v5608_v3  ;;  %v2523_v44 = vadd.f32 %v2491_v60, %v5609_v23  ;;  %v2880_v42 = vmul.f32 -1.442695, %v2291_v5  ;;  %v2984_v13 = vpop.f32.mrb[24].mxu1  ;;  %v5615_v5 = vld [vmem:[#allocation65_spill] sm:$0xff] }
 0x24c   :  { %v3241_v4 = vpop.eup %3240  ;;  %v2261_v26 = vmul.f32 %v4816_v50, %v2218_v48  ;;  %2664 = vadd.xlane.f32.xlu0 %v2624_v43  ;;  %v1658_v6 = vadd.f32 %v2980_v1, %v5610_v57  ;;  %v2983_v45 = vadd.f32 %v2982_v16, %v2981_v15  ;;  %v2498_v10 = vmul.f32 %v3229_v34, %v1626_v47  ;;  %v2985_v40 = vpop.f32.mrb[25].mxu1  ;;  %v5613_v34 = vld [vmem:[#allocation67_spill] sm:$0xff] }
 0x24d   :  { %v2415_v63 = vadd.f32 1.0, %v3239_v56  ;;  %3256 = vpow2.f32 %v2879_v36  ;;  %v5077_v19 = vmul.f32 %v3237_v33, %v1653_v21  ;;  %2558 = vadd.xlane.f32.xlu1 %v2523_v44  ;;  %v5079_v61 = vpop.eup %3242  ;;  %v2292_v32 = vadd.f32 %v2260_v38, %v2096_v58  ;;  %v2987_v54 = vpop.f32.mrb[26].mxu1  ;;  %v5616_v36 = vld [vmem:[#allocation28_spill] sm:$0xff] }
 0x24e   :  { %v5081_v7 = vmul.f32 %v3241_v4, %v1658_v6  ;;  %v2522_v39 = vadd.f32 %v2490_v55, %v5611_v0  ;;  %v1661_v53 = vadd.f32 %v2983_v45, %v5612_v8  ;;  %v3245_v24 = vpop.eup %3244  ;;  %3258 = vrcp.f32 %v2414_v29  ;;  %v2222_v14 = vpop.permute.xlu1 %2221  ;;  %v5618_v4 = vld [vmem:[#allocation9_spill] sm:$0xff] }
 0x24f   :  { %v2531_v18 = vadd.f32 %v2499_v9, %v5613_v34  ;;  %v2986_v47 = vadd.f32 %v2985_v40, %v2984_v13  ;;  %v2988_v15 = vpop.f32.mrb[27].mxu1  ;;  %3260 = vpow2.f32 %v2880_v42  ;;  %v2293_v60 = vadd.f32 %v2261_v26, %v5027_v52  ;;  %v2226_v30 = vpop.permute.xlu0 %2225  ;;  %v5617_v52 = vld [vmem:[#allocation24_spill] sm:$0xff] }
 0x250   :  { %v3247_v27 = vpop.eup %3246  ;;  %2556 = vadd.xlane.f32.xlu0 %v2522_v39  ;;  %v5087_v58 = vmul.f32 %v3245_v24, %v1661_v53  ;;  %v2989_v41 = vadd.f32 %v2988_v15, %v2987_v54  ;;  %3262 = vrcp.f32 %v2415_v63  ;;  %v2881_v46 = vmul.f32 -1.442695, %v2292_v32  ;;  %v5620_v32 = vld [vmem:[#allocation79_spill] sm:$0xff] }
 0x251   :  { %v3249_v49 = vpop.eup %3248  ;;  %2574 = vadd.xlane.f32.xlu1 %v2531_v18  ;;  %v1666_v16 = vadd.f32 %v2986_v47, %v5614_v25  ;;  %v2262_v12 = vmul.f32 %v4816_v50, %v2222_v14  ;;  %v2530_v33 = vadd.f32 %v2498_v10, %v5615_v5  ;;  %v1605_v56 = vadd.f32 %v4992_v2, %v5617_v52  ;;  %v5619_v2 = vld [vmem:[#allocation80_spill] sm:$0xff]  ;;  %v5622_v14 = vld [vmem:[#allocation26_spill] sm:$0xff]  ;;  %v5623_v15 = vld [vmem:[#allocation27_spill] sm:$0xff] }
 0x252   :  { %v3251_v55 = vpop.eup %3250  ;;  %v1669_v48 = vadd.f32 %v2989_v41, %v5616_v36  ;;  %v2416_v38 = vadd.f32 1.0, %v3247_v27  ;;  %v2619_v43 = vmul.f32 %v2523_v44, %v2523_v44  ;;  %v2882_v29 = vmul.f32 -1.442695, %v2293_v60  ;;  %v5626_v36 = vld [vmem:[#allocation58_spill] sm:$0xff] }
 0x253   :  { %v3253_v59 = vpop.eup %3252  ;;  %v5095_v1 = vmul.f32 %v3249_v49, %v1666_v16  ;;  %v2263_v3 = vmul.f32 %v4816_v50, %v2226_v30  ;;  %v2990_v23 = vpop.f32.mrb[28].mxu1  ;;  %v1602_v42 = vadd.f32 %v4974_v51, %v5618_v4  ;;  %v2417_v26 = vadd.f32 1.0, %v3251_v55  ;;  %v5621_v51 = vld [vmem:[#allocation19_spill] sm:$0xff]  ;;  %v5624_v30 = vld [vmem:[#allocation62_spill] sm:$0xff]  ;;  %v5625_v16 = vld [vmem:[#allocation12_spill] sm:$0xff] }
 0x254   :  { %v3255_v9 = vpop.eup %3254  ;;  %2572 = vadd.xlane.f32.xlu0 %v2530_v33  ;;  %v5098_v21 = vmul.f32 %v3253_v59, %v1669_v48  ;;  %v2991_v57 = vpop.f32.mrb[29].mxu1  ;;  %3264 = vpow2.f32 %v2881_v46  ;;  %v2294_v6 = vadd.f32 %v2262_v12, %v5619_v2  ;;  %v2618_v44 = vmul.f32 %v2522_v39, %v2522_v39 }
 0x255   :  { %2654 = vadd.xlane.f32.xlu1 %v2619_v43  ;;  %v2992_v45 = vadd.f32 %v2991_v57, %v2990_v23  ;;  %v2993_v13 = vpop.f32.mrb[30].mxu1  ;;  %v2493_v63 = vmul.f32 %v4996_v62, %v1605_v56  ;;  %3266 = vrcp.f32 %v2416_v38  ;;  %v2627_v50 = vmul.f32 %v2531_v18, %v2531_v18  ;;  %v5627_v56 = vld [vmem:[#allocation22_spill] sm:$0xff] }
 0x256   :  { %v2994_v40 = vpop.f32.mrb[31].mxu1  ;;  %3268 = vpow2.f32 %v2882_v29  ;;  %v2295_v0 = vadd.f32 %v2263_v3, %v5620_v32  ;;  %v2492_v24 = vmul.f32 %v4969_v22, %v1602_v42  ;;  %v1637_v39 = vadd.f32 %v4994_v37, %v5622_v14  ;;  %v5630_v57 = vld [vmem:[#allocation18_spill] sm:$0xff] }
 0x257   :  { %v3257_v10 = vpop.eup %3256  ;;  %v1674_v8 = vadd.f32 %v2992_v45, %v5621_v51  ;;  %v2995_v53 = vadd.f32 %v2994_v40, %v2993_v13  ;;  %3270 = vrcp.f32 %v2417_v26  ;;  %v2883_v62 = vmul.f32 -1.442695, %v2294_v6 }
 0x258   :  { %2652 = vadd.xlane.f32.xlu0 %v2618_v44  ;;  %v3259_v54 = vpop.eup %3258  ;;  %v2626_v47 = vmul.f32 %v2530_v33, %v2530_v33  ;;  %v2501_v41 = vmul.f32 %v3255_v9, %v1637_v39  ;;  %v2418_v49 = vadd.f32 1.0, %v3257_v10  ;;  %v2525_v25 = vadd.f32 %v2493_v63, %v5624_v30  ;;  %v5628_v9 = vld [vmem:[#allocation30_spill] sm:$0xff] }
 0x259   :  { %2670 = vadd.xlane.f32.xlu1 %v2627_v50  ;;  %v3261_v34 = vpop.eup %3260  ;;  %v5109_v18 = vmul.f32 %v3259_v54, %v1674_v8  ;;  %v1677_v27 = vadd.f32 %v2995_v53, %v5623_v15  ;;  %v1634_v22 = vadd.f32 %v4980_v11, %v5625_v16  ;;  %v2884_v55 = vmul.f32 -1.442695, %v2295_v0  ;;  %v5631_v54 = vld [vmem:[#allocation72_spill] sm:$0xff]  ;;  %v5632_v15 = vld [vmem:[#allocation29_spill] sm:$0xff] }
 0x25a   :  { %v3263_v60 = vpop.eup %3262  ;;  %v2419_v12 = vadd.f32 1.0, %v3261_v34  ;;  %3272 = vpow2.f32 %v2883_v62  ;;  %v2524_v48 = vadd.f32 %v2492_v24, %v5626_v36  ;;  %v2533_v38 = vadd.f32 %v2501_v41, %v5627_v56  ;;  %v5635_v36 = vld [vmem:[#allocation7_spill] sm:$0xff] }
 0x25b   :  { %v5115_v37 = vmul.f32 %v3263_v60, %v1677_v27  ;;  %v2996_v46 = vpop.f32.mrb[32].mxu1  ;;  %v2500_v33 = vmul.f32 %v5079_v61, %v1634_v22  ;;  %3274 = vrcp.f32 %v2418_v49  ;;  %v5629_v61 = vld [vmem:[#allocation37_spill] sm:$0xff]  ;;  %v2621_v45 = vmul.f32 %v2525_v25, %v2525_v25 }
 0x25c   :  { %2668 = vadd.xlane.f32.xlu0 %v2626_v47  ;;  %v2997_v5 = vpop.f32.mrb[33].mxu1  ;;  %3276 = vpow2.f32 %v2884_v55  ;;  %v2620_v40 = vmul.f32 %v2524_v48, %v2524_v48  ;;  %v2629_v51 = vmul.f32 %v2533_v38, %v2533_v38  ;;  %v5633_v49 = vld [vmem:[#allocation61_spill] sm:$0xff] }
 0x25d   :  { %2562 = vadd.xlane.f32.xlu1 %v2525_v25  ;;  %v2998_v59 = vadd.f32 %v2997_v5, %v2996_v46  ;;  %v2999_v52 = vpop.f32.mrb[34].mxu1  ;;  %3278 = vrcp.f32 %v2419_v12  ;;  %v2532_v42 = vadd.f32 %v2500_v33, %v5629_v61  ;;  %v2527_v30 = vadd.f32 %v5047_v17, %v5633_v49  ;;  %v5634_v46 = vld [vmem:[#allocation57_spill] sm:$0xff] }
 0x25e   :  { %v3000_v43 = vpop.f32.mrb[35].mxu1  ;;  %v3265_v11 = vpop.eup %3264  ;;  %v2526_v12 = vadd.f32 %v5030_v35, %v5634_v46  ;;  %v5638_v35 = vld [vmem:[#allocation73_spill] sm:$0xff] }
 0x25f   :  { %v1682_v29 = vadd.f32 %v2998_v59, %v5628_v9  ;;  %v3001_v3 = vadd.f32 %v3000_v43, %v2999_v52  ;;  %v3267_v23 = vpop.eup %3266  ;;  %v2420_v44 = vadd.f32 1.0, %v3265_v11  ;;  %v2628_v62 = vmul.f32 %v2532_v42, %v2532_v42  ;;  %v5636_v52 = vld [vmem:[#allocation74_spill] sm:$0xff]  ;;  %v5637_v43 = vld [vmem:[#allocation20_spill] sm:$0xff]  ;;  %v5645_v49 = vld [vmem:[#allocation69_spill] sm:$0xff] }
 0x260   :  { %2560 = vadd.xlane.f32.xlu0 %v2524_v48  ;;  %v3269_v4 = vpop.eup %3268  ;;  %v2535_v48 = vadd.f32 %v5049_v20, %v5635_v36  ;;  %v2534_v11 = vadd.f32 %v5037_v31, %v5637_v43  ;;  %v5653_v43 = vld [vmem:[#allocation21_spill] sm:$0xff] }
 0x261   :  { %2578 = vadd.xlane.f32.xlu1 %v2533_v38  ;;  %v5122_v26 = vmul.f32 %v3267_v23, %v1682_v29  ;;  %v1685_v2 = vadd.f32 %v3001_v3, %v5630_v57  ;;  %v3271_v6 = vpop.eup %3270  ;;  %v2421_v63 = vadd.f32 1.0, %v3269_v4  ;;  %3280 = vrcp.f32 %v2420_v44 }
 0x262   :  { %v2623_v23 = vmul.f32 %v2527_v30, %v2527_v30 }
 0x263   :  { %v5125_v13 = vmul.f32 %v3271_v6, %v1685_v2  ;;  %v3002_v10 = vpop.f32.mrb[36].mxu1  ;;  %3282 = vrcp.f32 %v2421_v63  ;;  %v2631_v6 = vmul.f32 %v2535_v48, %v2535_v48 }
 0x264   :  { %2576 = vadd.xlane.f32.xlu0 %v2532_v42  ;;  %v3003_v50 = vpop.f32.mrb[37].mxu1  ;;  %v3273_v53 = vpop.eup %3272  ;;  %v2622_v42 = vmul.f32 %v2526_v12, %v2526_v12 }
 0x265   :  { %2658 = vadd.xlane.f32.xlu1 %v2621_v45  ;;  %v3004_v32 = vadd.f32 %v3003_v50, %v3002_v10  ;;  %v3005_v0 = vpop.f32.mrb[38].mxu1  ;;  %v3275_v39 = vpop.eup %3274  ;;  %v2422_v41 = vadd.f32 1.0, %v3273_v53  ;;  %v5639_v45 = vld [vmem:[#allocation76_spill] sm:$0xff]  ;;  %v2630_v50 = vmul.f32 %v2534_v11, %v2534_v11 }
 0x266   :  { %v3006_v8 = vpop.f32.mrb[39].mxu1  ;;  %v3277_v34 = vpop.eup %3276 }
 0x267   :  { %v1690_v24 = vadd.f32 %v3004_v32, %v5631_v54  ;;  %v3007_v14 = vadd.f32 %v3006_v8, %v3005_v0  ;;  %v3279_v60 = vpop.eup %3278  ;;  %v2423_v22 = vadd.f32 1.0, %v3277_v34  ;;  %3284 = vrcp.f32 %v2422_v41  ;;  %v5640_v32 = vld [vmem:[#allocation75_spill] sm:$0xff]  ;;  %v5641_v8 = vld [vmem:[#allocation60_spill] sm:$0xff] }
 0x268   :  { %2656 = vadd.xlane.f32.xlu0 %v2620_v40  ;;  %v2537_v53 = vadd.f32 %v5077_v19, %v5641_v8 }
 0x269   :  { %2674 = vadd.xlane.f32.xlu1 %v2629_v51  ;;  %v5128_v47 = vmul.f32 %v3275_v39, %v1690_v24  ;;  %v1693_v27 = vadd.f32 %v3007_v14, %v5632_v15  ;;  %3286 = vrcp.f32 %v2423_v22  ;;  %v5642_v24 = vld [vmem:[#allocation59_spill] sm:$0xff] }
 0x26a   :  { %v2536_v14 = vadd.f32 %v5067_v28, %v5642_v24  ;;  %v2633_v39 = vmul.f32 %v2537_v53, %v2537_v53  ;;  %v5646_v28 = vld [vmem:[#allocation68_spill] sm:$0xff] }
 0x26b   :  { %v5133_v25 = vmul.f32 %v3279_v60, %v1693_v27  ;;  %v3008_v16 = vpop.f32.mrb[40].mxu1  ;;  %v3281_v38 = vpop.eup %3280  ;;  %v5644_v27 = vld [vmem:[#allocation63_spill] sm:$0xff] }
 0x26c   :  { %2672 = vadd.xlane.f32.xlu0 %v2628_v62  ;;  %v3009_v55 = vpop.f32.mrb[41].mxu1  ;;  %v2632_v34 = vmul.f32 %v2536_v14, %v2536_v14  ;;  %v5643_v62 = vld [vmem:[#allocation64_spill] sm:$0xff]  ;;  %v2538_v60 = vadd.f32 %v5081_v7, %v5644_v27  ;;  %v5648_v7 = vld [vmem:[#allocation71_spill] sm:$0xff] }
 0x26d   :  { %2566 = vadd.xlane.f32.xlu1 %v2527_v30  ;;  %v3010_v5 = vadd.f32 %v3009_v55, %v3008_v16  ;;  %v3011_v33 = vpop.f32.mrb[42].mxu1  ;;  %v3283_v3 = vpop.eup %3282  ;;  %v2539_v15 = vadd.f32 %v5087_v58, %v5643_v62  ;;  %v2541_v30 = vadd.f32 %v5098_v21, %v5645_v49  ;;  %v2540_v16 = vadd.f32 %v5095_v1, %v5646_v28  ;;  %v5647_v55 = vld [vmem:[#allocation6_spill] sm:$0xff]  ;;  %v5650_v1 = vld [vmem:[#allocation15_spill] sm:$0xff] }
 0x26e   :  { %v3012_v59 = vpop.f32.mrb[43].mxu1  ;;  %v2634_v19 = vmul.f32 %v2538_v60, %v2538_v60  ;;  %v2543_v46 = vadd.f32 %v5115_v37, %v5647_v55 }
 0x26f   :  { %v1698_v17 = vadd.f32 %v3010_v5, %v5636_v52  ;;  %v3013_v56 = vadd.f32 %v3012_v59, %v3011_v33  ;;  %v2635_v41 = vmul.f32 %v2539_v15, %v2539_v15  ;;  %v2637_v22 = vmul.f32 %v2541_v30, %v2541_v30  ;;  %v5649_v33 = vld [vmem:[#allocation5_spill] sm:$0xff]  ;;  %v5651_v52 = vld [vmem:[#allocation42_spill] sm:$0xff] }
 0x270   :  { %2564 = vadd.xlane.f32.xlu0 %v2526_v12  ;;  %v2636_v58 = vmul.f32 %v2540_v16, %v2540_v16  ;;  %v2542_v12 = vadd.f32 %v5109_v18, %v5648_v7  ;;  %v2639_v5 = vmul.f32 %v2543_v46, %v2543_v46  ;;  %v2545_v36 = vadd.f32 %v5125_v13, %v5649_v33  ;;  %v5652_v18 = vld [vmem:[#allocation41_spill] sm:$0xff] }
 0x271   :  { %2582 = vadd.xlane.f32.xlu1 %v2535_v48  ;;  %v5142_v9 = vmul.f32 %v3281_v38, %v1698_v17  ;;  %v1701_v29 = vadd.f32 %v3013_v56, %v5638_v35  ;;  %v3285_v63 = vpop.eup %3284  ;;  %v2544_v48 = vadd.f32 %v5122_v26, %v5650_v1  ;;  %v2547_v17 = vadd.f32 %v5133_v25, %v5651_v52  ;;  %v5654_v26 = vld [vmem:[#allocation8_spill] sm:$0xff] }
 0x272   :  { %v2638_v21 = vmul.f32 %v2542_v12, %v2542_v12  ;;  %v2641_v59 = vmul.f32 %v2545_v36, %v2545_v36  ;;  %v2546_v56 = vadd.f32 %v5128_v47, %v5652_v18  ;;  %v5656_v47 = vld [vmem:[#allocation3_spill] sm:$0xff] }
 0x273   :  { %v5145_v4 = vmul.f32 %v3283_v3, %v1701_v29  ;;  %v3014_v20 = vpop.f32.mrb[44].mxu1  ;;  %v3287_v51 = vpop.eup %3286  ;;  %v2640_v37 = vmul.f32 %v2544_v48, %v2544_v48  ;;  %v2643_v38 = vmul.f32 %v2547_v17, %v2547_v17  ;;  %v2548_v35 = vadd.f32 %v5142_v9, %v5654_v26  ;;  %v5655_v3 = vld [vmem:[#allocation39_spill] sm:$0xff] }
 0x274   :  { %2580 = vadd.xlane.f32.xlu0 %v2534_v11  ;;  %v3015_v61 = vpop.f32.mrb[45].mxu1  ;;  %v2642_v13 = vmul.f32 %v2546_v56, %v2546_v56 }
 0x275   :  { %2662 = vadd.xlane.f32.xlu1 %v2623_v23  ;;  %v3016_v57 = vadd.f32 %v3015_v61, %v3014_v20  ;;  %v3017_v2 = vpop.f32.mrb[46].mxu1  ;;  %v2549_v11 = vadd.f32 %v5145_v4, %v5653_v43  ;;  %v2644_v25 = vmul.f32 %v2548_v35, %v2548_v35 }
 0x276   :  { %v3018_v44 = vpop.f32.mrb[47].mxu1 }
 0x277   :  { %v1706_v31 = vadd.f32 %v3016_v57, %v5639_v45  ;;  %v3019_v10 = vadd.f32 %v3018_v44, %v3017_v2  ;;  %v2645_v29 = vmul.f32 %v2549_v11, %v2549_v11 }
 0x278   :  { %2660 = vadd.xlane.f32.xlu0 %v2622_v42 }
 0x279   :  { %2678 = vadd.xlane.f32.xlu1 %v2631_v6  ;;  %v5148_v40 = vmul.f32 %v3285_v63, %v1706_v31  ;;  %v1709_v0 = vadd.f32 %v3019_v10, %v5640_v32 }
 0x27b   :  { %v2519_v54 = vmul.f32 %v3287_v51, %v1709_v0  ;;  %v2550_v20 = vadd.f32 %v5148_v40, %v5656_v47 }
 0x27c   :  { %2676 = vadd.xlane.f32.xlu0 %v2630_v50 }
 0x27d   :  { %2586 = vadd.xlane.f32.xlu1 %v2537_v53  ;;  %v2551_v23 = vadd.f32 %v2519_v54, %v5655_v3  ;;  %v2646_v4 = vmul.f32 %v2550_v20, %v2550_v20 }
 0x27f   :  { %v2647_v61 = vmul.f32 %v2551_v23, %v2551_v23 }
 0x280   :  { %2584 = vadd.xlane.f32.xlu0 %v2536_v14 }
 0x281   :  { %2682 = vadd.xlane.f32.xlu1 %v2633_v39 }
 0x284   :  { %2680 = vadd.xlane.f32.xlu0 %v2632_v34 }
 0x285   :  { %2590 = vadd.xlane.f32.xlu1 %v2539_v15 }
 0x288   :  { %2588 = vadd.xlane.f32.xlu0 %v2538_v60 }
 0x289   :  { %2686 = vadd.xlane.f32.xlu1 %v2635_v41 }
 0x28c   :  { %2684 = vadd.xlane.f32.xlu0 %v2634_v19 }
 0x28d   :  { %2594 = vadd.xlane.f32.xlu1 %v2541_v30 }
 0x290   :  { %2592 = vadd.xlane.f32.xlu0 %v2540_v16 }
 0x291   :  { %2690 = vadd.xlane.f32.xlu1 %v2637_v22 }
 0x294   :  { %2688 = vadd.xlane.f32.xlu0 %v2636_v58 }
 0x295   :  { %2598 = vadd.xlane.f32.xlu1 %v2543_v46 }
 0x298   :  { %2596 = vadd.xlane.f32.xlu0 %v2542_v12 }
 0x299   :  { %2694 = vadd.xlane.f32.xlu1 %v2639_v5 }
 0x29c   :  { %2692 = vadd.xlane.f32.xlu0 %v2638_v21 }
 0x29d   :  { %2602 = vadd.xlane.f32.xlu1 %v2545_v36 }
 0x2a0   :  { %2600 = vadd.xlane.f32.xlu0 %v2544_v48 }
 0x2a1   :  { %2698 = vadd.xlane.f32.xlu1 %v2641_v59 }
 0x2a4   :  { %2696 = vadd.xlane.f32.xlu0 %v2640_v37 }
 0x2a5   :  { %2606 = vadd.xlane.f32.xlu1 %v2547_v17 }
 0x2a8   :  { %2604 = vadd.xlane.f32.xlu0 %v2546_v56 }
 0x2a9   :  { %2702 = vadd.xlane.f32.xlu1 %v2643_v38 }
 0x2ac   :  { %2700 = vadd.xlane.f32.xlu0 %v2642_v13 }
 0x2ad   :  { %2610 = vadd.xlane.f32.xlu1 %v2549_v11 }
 0x2b0   :  { %2608 = vadd.xlane.f32.xlu0 %v2548_v35 }
 0x2b1   :  { %2706 = vadd.xlane.f32.xlu1 %v2645_v29 }
 0x2b4   :  { %2704 = vadd.xlane.f32.xlu0 %v2644_v25  ;;  %v2553_v42 = vpop.xlane.xlu1 %2552 }
 0x2b5   :  { %2614 = vadd.xlane.f32.xlu1 %v2551_v23 }
 0x2b8   :  { %2612 = vadd.xlane.f32.xlu0 %v2550_v20 }
 0x2b9   :  { %2710 = vadd.xlane.f32.xlu1 %v2647_v61 }
 0x2bc   :  { %2708 = vadd.xlane.f32.xlu0 %v2646_v4 }
 0x2ca   :  { %v2569_v57 = vpop.xlane.xlu0 %2568 }
 0x2cb   :  { %v2571_v2 = vpop.xlane.xlu1 %2570 }
 0x2ce   :  { %v2555_v9 = vpop.xlane.xlu0 %2554 }
 0x2d1   :  { %v2651_v6 = vpop.xlane.xlu1 %2650 }
 0x2d2   :  { %v2714_v44 = vsel %vm2712_vm2, %v2555_v9, %v2651_v6 }
 0x2d3   :  { %2747 = vst.msk [vmem:[%s5352_s10 + $0x8] sm:$0xff] %vm2745_vm3, %v2714_v44 }
 0x2d4   :  { %v2649_v45 = vpop.xlane.xlu0 %2648 }
 0x2d5   :  { %v2713_v31 = vsel %vm2712_vm2, %v2553_v42, %v2649_v45 }
 0x2d6   :  { %v2667_v10 = vpop.xlane.xlu1 %2666  ;;  %2746 = vst.msk [vmem:[%s5352_s10] sm:$0xff] %vm2745_vm3, %v2713_v31 }
 0x2d7   :  { %v2722_v63 = vsel %vm2712_vm2, %v2571_v2, %v2667_v10 }
 0x2d8   :  { %2755 = vst.msk [vmem:[%s5352_s10 + $0x48] sm:$0xff] %vm2745_vm3, %v2722_v63 }
 0x2d9   :  { %v2665_v50 = vpop.xlane.xlu0 %2664 }
 0x2da   :  { %v2559_v40 = vpop.xlane.xlu1 %2558  ;;  %v2721_v32 = vsel %vm2712_vm2, %v2569_v57, %v2665_v50 }
 0x2db   :  { %2754 = vst.msk [vmem:[%s5352_s10 + $0x40] sm:$0xff] %vm2745_vm3, %v2721_v32 }
 0x2dd   :  { %v2557_v0 = vpop.xlane.xlu0 %2556 }
 0x2de   :  { %v2575_v51 = vpop.xlane.xlu1 %2574 }
 0x2e1   :  { %v2573_v8 = vpop.xlane.xlu0 %2572 }
 0x2e2   :  { %v2655_v53 = vpop.xlane.xlu1 %2654 }
 0x2e3   :  { %v2716_v54 = vsel %vm2712_vm2, %v2559_v40, %v2655_v53 }
 0x2e4   :  { %2749 = vst.msk [vmem:[%s5352_s10 + $0x18] sm:$0xff] %vm2745_vm3, %v2716_v54 }
 0x2e5   :  { %v2653_v24 = vpop.xlane.xlu0 %2652 }
 0x2e6   :  { %v2671_v14 = vpop.xlane.xlu1 %2670  ;;  %v2715_v39 = vsel %vm2712_vm2, %v2557_v0, %v2653_v24 }
 0x2e7   :  { %v2724_v34 = vsel %vm2712_vm2, %v2575_v51, %v2671_v14  ;;  %2748 = vst.msk [vmem:[%s5352_s10 + $0x10] sm:$0xff] %vm2745_vm3, %v2715_v39 }
 0x2e8   :  { %2757 = vst.msk [vmem:[%s5352_s10 + $0x58] sm:$0xff] %vm2745_vm3, %v2724_v34 }
 0x2e9   :  { %v2669_v62 = vpop.xlane.xlu0 %2668 }
 0x2ea   :  { %v2563_v15 = vpop.xlane.xlu1 %2562  ;;  %v2723_v27 = vsel %vm2712_vm2, %v2573_v8, %v2669_v62 }
 0x2eb   :  { %2756 = vst.msk [vmem:[%s5352_s10 + $0x50] sm:$0xff] %vm2745_vm3, %v2723_v27 }
 0x2ed   :  { %v2561_v60 = vpop.xlane.xlu0 %2560 }
 0x2ee   :  { %v2579_v41 = vpop.xlane.xlu1 %2578 }
 0x2f1   :  { %v2577_v19 = vpop.xlane.xlu0 %2576 }
 0x2f2   :  { %v2659_v49 = vpop.xlane.xlu1 %2658 }
 0x2f3   :  { %v2718_v30 = vsel %vm2712_vm2, %v2563_v15, %v2659_v49 }
 0x2f4   :  { %2751 = vst.msk [vmem:[%s5352_s10 + $0x28] sm:$0xff] %vm2745_vm3, %v2718_v30 }
 0x2f5   :  { %v2657_v28 = vpop.xlane.xlu0 %2656 }
 0x2f6   :  { %v2675_v16 = vpop.xlane.xlu1 %2674  ;;  %v2717_v22 = vsel %vm2712_vm2, %v2561_v60, %v2657_v28 }
 0x2f7   :  { %v2726_v58 = vsel %vm2712_vm2, %v2579_v41, %v2675_v16  ;;  %2750 = vst.msk [vmem:[%s5352_s10 + $0x20] sm:$0xff] %vm2745_vm3, %v2717_v22 }
 0x2f8   :  { %2759 = vst.msk [vmem:[%s5352_s10 + $0x68] sm:$0xff] %vm2745_vm3, %v2726_v58 }
 0x2f9   :  { %v2673_v55 = vpop.xlane.xlu0 %2672 }
 0x2fa   :  { %v2567_v46 = vpop.xlane.xlu1 %2566  ;;  %v2725_v7 = vsel %vm2712_vm2, %v2577_v19, %v2673_v55 }
 0x2fb   :  { %2758 = vst.msk [vmem:[%s5352_s10 + $0x60] sm:$0xff] %vm2745_vm3, %v2725_v7 }
 0x2fd   :  { %v2565_v12 = vpop.xlane.xlu0 %2564 }
 0x2fe   :  { %v2583_v5 = vpop.xlane.xlu1 %2582 }
 0x301   :  { %v2581_v21 = vpop.xlane.xlu0 %2580 }
 0x302   :  { %v2663_v33 = vpop.xlane.xlu1 %2662 }
 0x303   :  { %v2720_v36 = vsel %vm2712_vm2, %v2567_v46, %v2663_v33 }
 0x304   :  { %2753 = vst.msk [vmem:[%s5352_s10 + $0x38] sm:$0xff] %vm2745_vm3, %v2720_v36 }
 0x305   :  { %v2661_v1 = vpop.xlane.xlu0 %2660 }
 0x306   :  { %v2679_v48 = vpop.xlane.xlu1 %2678  ;;  %v2719_v59 = vsel %vm2712_vm2, %v2565_v12, %v2661_v1 }
 0x307   :  { %v2728_v37 = vsel %vm2712_vm2, %v2583_v5, %v2679_v48  ;;  %2752 = vst.msk [vmem:[%s5352_s10 + $0x30] sm:$0xff] %vm2745_vm3, %v2719_v59 }
 0x308   :  { %2761 = vst.msk [vmem:[%s5352_s10 + $0x78] sm:$0xff] %vm2745_vm3, %v2728_v37 }
 0x309   :  { %v2677_v52 = vpop.xlane.xlu0 %2676 }
 0x30a   :  { %v2587_v17 = vpop.xlane.xlu1 %2586  ;;  %v2727_v18 = vsel %vm2712_vm2, %v2581_v21, %v2677_v52 }
 0x30b   :  { %2760 = vst.msk [vmem:[%s5352_s10 + $0x70] sm:$0xff] %vm2745_vm3, %v2727_v18 }
 0x30d   :  { %v2585_v56 = vpop.xlane.xlu0 %2584 }
 0x30e   :  { %v2683_v38 = vpop.xlane.xlu1 %2682 }
 0x30f   :  { %v2730_v13 = vsel %vm2712_vm2, %v2587_v17, %v2683_v38 }
 0x310   :  { %2763 = vst.msk [vmem:[%s5352_s10 + $0x88] sm:$0xff] %vm2745_vm3, %v2730_v13 }
 0x311   :  { %v2681_v43 = vpop.xlane.xlu0 %2680 }
 0x312   :  { %v2591_v11 = vpop.xlane.xlu1 %2590  ;;  %v2729_v26 = vsel %vm2712_vm2, %v2585_v56, %v2681_v43 }
 0x313   :  { %2762 = vst.msk [vmem:[%s5352_s10 + $0x80] sm:$0xff] %vm2745_vm3, %v2729_v26 }
 0x315   :  { %v2589_v35 = vpop.xlane.xlu0 %2588 }
 0x316   :  { %v2687_v29 = vpop.xlane.xlu1 %2686 }
 0x317   :  { %v2732_v25 = vsel %vm2712_vm2, %v2591_v11, %v2687_v29 }
 0x318   :  { %2765 = vst.msk [vmem:[%s5352_s10 + $0x98] sm:$0xff] %vm2745_vm3, %v2732_v25 }
 0x319   :  { %v2685_v3 = vpop.xlane.xlu0 %2684 }
 0x31a   :  { %v2595_v23 = vpop.xlane.xlu1 %2594  ;;  %v2731_v47 = vsel %vm2712_vm2, %v2589_v35, %v2685_v3 }
 0x31b   :  { %2764 = vst.msk [vmem:[%s5352_s10 + $0x90] sm:$0xff] %vm2745_vm3, %v2731_v47 }
 0x31d   :  { %v2593_v20 = vpop.xlane.xlu0 %2592 }
 0x31e   :  { %v2691_v61 = vpop.xlane.xlu1 %2690 }
 0x31f   :  { %v2734_v4 = vsel %vm2712_vm2, %v2595_v23, %v2691_v61 }
 0x320   :  { %2767 = vst.msk [vmem:[%s5352_s10 + $0xa8] sm:$0xff] %vm2745_vm3, %v2734_v4 }
 0x321   :  { %v2689_v42 = vpop.xlane.xlu0 %2688 }
 0x322   :  { %v2599_v57 = vpop.xlane.xlu1 %2598  ;;  %v2733_v2 = vsel %vm2712_vm2, %v2593_v20, %v2689_v42 }
 0x323   :  { %2766 = vst.msk [vmem:[%s5352_s10 + $0xa0] sm:$0xff] %vm2745_vm3, %v2733_v2 }
 0x325   :  { %v2597_v9 = vpop.xlane.xlu0 %2596 }
 0x326   :  { %v2695_v6 = vpop.xlane.xlu1 %2694 }
 0x327   :  { %v2736_v44 = vsel %vm2712_vm2, %v2599_v57, %v2695_v6 }
 0x328   :  { %2769 = vst.msk [vmem:[%s5352_s10 + $0xb8] sm:$0xff] %vm2745_vm3, %v2736_v44 }
 0x329   :  { %v2693_v45 = vpop.xlane.xlu0 %2692 }
 0x32a   :  { %v2603_v31 = vpop.xlane.xlu1 %2602  ;;  %v2735_v10 = vsel %vm2712_vm2, %v2597_v9, %v2693_v45 }
 0x32b   :  { %2768 = vst.msk [vmem:[%s5352_s10 + $0xb0] sm:$0xff] %vm2745_vm3, %v2735_v10 }
 0x32d   :  { %v2601_v63 = vpop.xlane.xlu0 %2600 }
 0x32e   :  { %v2699_v50 = vpop.xlane.xlu1 %2698 }
 0x32f   :  { %v2738_v40 = vsel %vm2712_vm2, %v2603_v31, %v2699_v50 }
 0x330   :  { %2771 = vst.msk [vmem:[%s5352_s10 + $0xc8] sm:$0xff] %vm2745_vm3, %v2738_v40 }
 0x331   :  { %v2697_v32 = vpop.xlane.xlu0 %2696 }
 0x332   :  { %v2607_v0 = vpop.xlane.xlu1 %2606  ;;  %v2737_v51 = vsel %vm2712_vm2, %v2601_v63, %v2697_v32 }
 0x333   :  { %2770 = vst.msk [vmem:[%s5352_s10 + $0xc0] sm:$0xff] %vm2745_vm3, %v2737_v51 }
 0x335   :  { %v2605_v8 = vpop.xlane.xlu0 %2604 }
 0x336   :  { %v2703_v53 = vpop.xlane.xlu1 %2702 }
 0x337   :  { %v2740_v54 = vsel %vm2712_vm2, %v2607_v0, %v2703_v53 }
 0x338   :  { %2773 = vst.msk [vmem:[%s5352_s10 + $0xd8] sm:$0xff] %vm2745_vm3, %v2740_v54 }
 0x339   :  { %v2701_v24 = vpop.xlane.xlu0 %2700 }
 0x33a   :  { %v2611_v14 = vpop.xlane.xlu1 %2610  ;;  %v2739_v39 = vsel %vm2712_vm2, %v2605_v8, %v2701_v24 }
 0x33b   :  { %2772 = vst.msk [vmem:[%s5352_s10 + $0xd0] sm:$0xff] %vm2745_vm3, %v2739_v39 }
 0x33d   :  { %v2609_v34 = vpop.xlane.xlu0 %2608 }
 0x33e   :  { %v2707_v62 = vpop.xlane.xlu1 %2706 }
 0x33f   :  { %v2742_v15 = vsel %vm2712_vm2, %v2611_v14, %v2707_v62 }
 0x340   :  { %2775 = vst.msk [vmem:[%s5352_s10 + $0xe8] sm:$0xff] %vm2745_vm3, %v2742_v15 }
 0x341   :  { %v2705_v27 = vpop.xlane.xlu0 %2704 }
 0x342   :  { %v2615_v60 = vpop.xlane.xlu1 %2614  ;;  %v2741_v41 = vsel %vm2712_vm2, %v2609_v34, %v2705_v27 }
 0x343   :  { %2774 = vst.msk [vmem:[%s5352_s10 + $0xe0] sm:$0xff] %vm2745_vm3, %v2741_v41 }
 0x345   :  { %v2613_v19 = vpop.xlane.xlu0 %2612 }
 0x346   :  { %v2711_v49 = vpop.xlane.xlu1 %2710 }
 0x347   :  { %v2744_v30 = vsel %vm2712_vm2, %v2615_v60, %v2711_v49 }
 0x348   :  { %2777 = vst.msk [vmem:[%s5352_s10 + $0xf8] sm:$0xff] %vm2745_vm3, %v2744_v30 }
 0x349   :  { %v2709_v28 = vpop.xlane.xlu0 %2708 }
 0x34a   :  { %v2743_v16 = vsel %vm2712_vm2, %v2613_v19, %v2709_v28 }
 0x34b   :  { %2776 = vst.msk [vmem:[%s5352_s10 + $0xf0] sm:$0xff] %vm2745_vm3, %v2743_v16 }

// kernel: interfuse_forward.5
= control target key start
LH: loop header
LB: loop body
LE: loop exit
PB: predicated region body
PF: predicated region fallthrough
CT: control target
= control target key end

     0   :  { %v6900_v0 = vmov 0   ;;  %vm597_vm0 = vcmask 818176   ;;  %vm646_vm1 = vcmask 1041408   ;;  %s6884_s3 = inlined_call_operand.vmem [shape: f32[256,1], index: 3, kind: input, shape index: {}]   ;;  %s6885_s0 = inlined_call_operand.vmem [shape: bf16[1,100,128], index: 0, kind: input, shape index: {}]   ;;  %s6886_s2 = inlined_call_operand.vmem [shape: bf16[256,100], index: 2, kind: input, shape index: {}]   ;;  %s6887_s8 = inlined_call_operand.vmem [shape: f32[256,1], index: 8, kind: input, shape index: {}]   ;;  %s6888_s9 = inlined_call_operand.vmem [shape: f32[256,1], index: 9, kind: input, shape index: {}]   ;;  %s6889_s5 = inlined_call_operand.vmem [shape: f32[256,1], index: 5, kind: input, shape index: {}]   ;;  %s6890_s6 = inlined_call_operand.vmem [shape: f32[256,2], index: 6, kind: input, shape index: {}]   ;;  %s6891_s4 = inlined_call_operand.vmem [shape: bf16[256,256], index: 4, kind: input, shape index: {}]   ;;  %s6892_s7 = inlined_call_operand.vmem [shape: f32[256,1], index: 7, kind: input, shape index: {}]   ;;  %s6893_s10 = inlined_call_operand.vmem [shape: f32[256,1], index: 10, kind: input, shape index: {}]   ;;  %s6894_s11 = inlined_call_operand.vmem [shape: f32[256,1], index: 11, kind: input, shape index: {}]   ;;  %s6895_s1 = inlined_call_operand.vmem [shape: f32[1,2,128], index: 1, kind: input, shape index: {}]   ;;  %s6896_s13 = inlined_call_operand.vmem [shape: f32[256,1], index: 13, kind: input, shape index: {}]   ;;  %s6897_s12 = inlined_call_operand.vmem [shape: bf16[256,256], index: 12, kind: input, shape index: {}]   ;;  %s6898_s14 = inlined_call_operand.vmem [shape: f32[1,256,128], index: 14, kind: output, shape index: {}]  }
   0x1   :  { %4088 = vset.pattern.permute.xlu1 %v6900_v0  ;;  %4087 = vset.pattern.permute.xlu0 %v6900_v0  ;;  %v96_v1 = vld [vmem:[%s6884_s3 + $0x10] sm:$0xff]  ;;  %v94_v2 = vld [vmem:[%s6884_s3] sm:$0xff]  ;;  %v97_v4 = vld [vmem:[%s6884_s3 + $0x18] sm:$0xff] }
   0x2   :  { %330 = vperm.xlu1 %4088, %v96_v1   ;;  %320 = vperm.xlu0 %4087, %v94_v2   ;;  %v4093_v3 = vld [vmem:[%s6885_s0] sm:$0xff]   ;;  %v95_v5 = vld [vmem:[%s6884_s3 + $0x8] sm:$0xff]  ;;  %v4095_v9 = vld [vmem:[%s6885_s0 + $0x10] sm:$0xff]  }
   0x3   :  { %4023 = vmatprep.subr.bf16.mxu0 %v4093_v3  ;;  %4069 = vmatprep.subr.bf16.mxu1 %v4093_v3  ;;  %v4094_v6 = vld [vmem:[%s6885_s0 + $0x8] sm:$0xff]   ;;  %v98_v8 = vld [vmem:[%s6884_s3 + $0x20] sm:$0xff]  ;;  %v101_v10 = vld [vmem:[%s6884_s3 + $0x38] sm:$0xff] }
   0x4   :  { %4024 = vmatpush3.bf16.msra.mxu0 %v4093_v3  ;;  %4076 = vmatpush3.bf16.msra.mxu1 %v4093_v3  ;;  %v99_v7 = vld [vmem:[%s6884_s3 + $0x28] sm:$0xff]  ;;  %v100_v11 = vld [vmem:[%s6884_s3 + $0x30] sm:$0xff]  ;;  %v4096_v12 = vld [vmem:[%s6885_s0 + $0x18] sm:$0xff]  }
   0x5   :  { %4025 = vmatprep.subr.bf16.mxu0 %v4094_v6  ;;  %4070 = vmatprep.subr.bf16.mxu1 %v4094_v6  ;;  %v103_v13 = vld [vmem:[%s6884_s3 + $0x48] sm:$0xff]  ;;  %v102_v14 = vld [vmem:[%s6884_s3 + $0x40] sm:$0xff]  ;;  %v105_v18 = vld [vmem:[%s6884_s3 + $0x58] sm:$0xff] }
   0x6   :  { %335 = vperm.xlu1 %4088, %v97_v4   ;;  %325 = vperm.xlu0 %4087, %v95_v5   ;;  %v4100_v15 = vld [vmem:[%s6886_s2] sm:$0xff]   ;;  %v104_v19 = vld [vmem:[%s6884_s3 + $0x50] sm:$0xff]  ;;  %v4098_v20 = vld [vmem:[%s6885_s0 + $0x28] sm:$0xff]  }
   0x7   :  { %v4101_v16 = vld [vmem:[%s6886_s2 + $0x40] sm:$0xff]   ;;  %4037 = vmatprep.mubr.msk.bf16.mxu0 %vm597_vm0, %v4100_v15  ;;  %v4099_v21 = vld [vmem:[%s6885_s0 + $0x30] ss:$0 sps:$4 sm:$0x33]   ;;  %v107_v22 = vld [vmem:[%s6884_s3 + $0x68] sm:$0xff] }
   0x8   :  { %4026 = vmatpush3.bf16.msra.mxu0 %v4094_v6  ;;  %4077 = vmatpush3.bf16.msra.mxu1 %v4094_v6  ;;  %v4097_v17 = vld [vmem:[%s6885_s0 + $0x20] sm:$0xff]   ;;  %v648_v24 = vsel %vm646_vm1, %v4099_v21, 0  ;;  %v109_v25 = vld [vmem:[%s6884_s3 + $0x78] sm:$0xff]  ;;  %v108_v26 = vld [vmem:[%s6884_s3 + $0x70] sm:$0xff] }
   0x9   :  { %4027 = vmatprep.subr.bf16.mxu0 %v4095_v9  ;;  %4071 = vmatprep.subr.bf16.mxu1 %v4095_v9  ;;  %v106_v23 = vld [vmem:[%s6884_s3 + $0x60] sm:$0xff]  ;;  %v4102_v27 = vld [vmem:[%s6886_s2 + $0x8] sm:$0xff]   ;;  %v4104_v29 = vld [vmem:[%s6886_s2 + $0x10] sm:$0xff]  }
   0xa   :  { %345 = vperm.xlu1 %4088, %v99_v7   ;;  %340 = vperm.xlu0 %4087, %v98_v8   ;;  %v4103_v28 = vld [vmem:[%s6886_s2 + $0x48] sm:$0xff]   ;;  %v4105_v30 = vld [vmem:[%s6886_s2 + $0x50] sm:$0xff]   ;;  %v110_v32 = vld [vmem:[%s6884_s3 + $0x80] sm:$0xff] }
   0xb   :  { %4053 = vmatprep.mubr.msk.bf16.mxu1 %vm597_vm0, %v4101_v16  ;;  %v111_v31 = vld [vmem:[%s6884_s3 + $0x88] sm:$0xff]  ;;  %v113_v33 = vld [vmem:[%s6884_s3 + $0x98] sm:$0xff]  ;;  %v112_v34 = vld [vmem:[%s6884_s3 + $0x90] sm:$0xff] }
   0xc   :  { %4028 = vmatpush3.bf16.msra.mxu0 %v4095_v9  ;;  %4078 = vmatpush3.bf16.msra.mxu1 %v4095_v9  ;;  %v4106_v35 = vld [vmem:[%s6886_s2 + $0x18] sm:$0xff]   ;;  %v4108_v37 = vld [vmem:[%s6886_s2 + $0x20] sm:$0xff]   ;;  %v115_v39 = vld [vmem:[%s6884_s3 + $0xa8] sm:$0xff] }
   0xd   :  { %4029 = vmatprep.subr.bf16.mxu0 %v4096_v12  ;;  %4072 = vmatprep.subr.bf16.mxu1 %v4096_v12  ;;  %v4107_v36 = vld [vmem:[%s6886_s2 + $0x58] sm:$0xff]   ;;  %v4109_v38 = vld [vmem:[%s6886_s2 + $0x60] sm:$0xff]   ;;  %v116_v42 = vld [vmem:[%s6884_s3 + $0xb0] sm:$0xff] }
   0xe   :  { %355 = vperm.xlu1 %4088, %v101_v10   ;;  %350 = vperm.xlu0 %4087, %v100_v11   ;;  %v114_v40 = vld [vmem:[%s6884_s3 + $0xa0] sm:$0xff]  ;;  %v117_v41 = vld [vmem:[%s6884_s3 + $0xb8] sm:$0xff]  ;;  %v4110_v43 = vld [vmem:[%s6886_s2 + $0x28] sm:$0xff]  }
   0xf   :  { %v4111_v44 = vld [vmem:[%s6886_s2 + $0x68] sm:$0xff]   ;;  %v4112_v45 = vld [vmem:[%s6886_s2 + $0x30] sm:$0xff]   ;;  %v118_v48 = vld [vmem:[%s6884_s3 + $0xc0] sm:$0xff] }
  0x10   :  { %4030 = vmatpush3.bf16.msra.mxu0 %v4096_v12  ;;  %4079 = vmatpush3.bf16.msra.mxu1 %v4096_v12  ;;  %v4113_v46 = vld [vmem:[%s6886_s2 + $0x70] sm:$0xff]   ;;  %v119_v47 = vld [vmem:[%s6884_s3 + $0xc8] sm:$0xff]  ;;  %v121_v49 = vld [vmem:[%s6884_s3 + $0xd8] sm:$0xff] }
  0x11   :  { %4031 = vmatprep.subr.bf16.mxu0 %v4097_v17  ;;  %4073 = vmatprep.subr.bf16.mxu1 %v4097_v17  ;;  %v120_v50 = vld [vmem:[%s6884_s3 + $0xd0] sm:$0xff]  ;;  %v4114_v51 = vld [vmem:[%s6886_s2 + $0x38] sm:$0xff]   ;;  %v123_v53 = vld [vmem:[%s6884_s3 + $0xe8] sm:$0xff] }
  0x12   :  { %365 = vperm.xlu1 %4088, %v103_v13   ;;  %360 = vperm.xlu0 %4087, %v102_v14   ;;  %v4115_v52 = vld [vmem:[%s6886_s2 + $0x78] sm:$0xff]   ;;  %v122_v54 = vld [vmem:[%s6884_s3 + $0xe0] sm:$0xff]  ;;  %v124_v56 = vld [vmem:[%s6884_s3 + $0xf0] sm:$0xff] }
  0x13   :  { %v125_v55 = vld [vmem:[%s6884_s3 + $0xf8] sm:$0xff]  ;;  %v255_v57 = vld [vmem:[%s6887_s8 + $0x8] sm:$0xff]  ;;  %v254_v58 = vld [vmem:[%s6887_s8] sm:$0xff] }
  0x14   :  { %4032 = vmatpush3.bf16.msra.mxu0 %v4097_v17  ;;  %4080 = vmatpush3.bf16.msra.mxu1 %v4097_v17  ;;  %v257_v59 = vld [vmem:[%s6887_s8 + $0x18] sm:$0xff]  ;;  %v256_v60 = vld [vmem:[%s6887_s8 + $0x10] sm:$0xff]  ;;  %v259_v61 = vld [vmem:[%s6887_s8 + $0x28] sm:$0xff] }
  0x15   :  { %4033 = vmatprep.subr.bf16.mxu0 %v4098_v20  ;;  %4074 = vmatprep.subr.bf16.mxu1 %v4098_v20  ;;  %v258_v62 = vld [vmem:[%s6887_s8 + $0x20] sm:$0xff]  ;;  %v261_v63 = vld [vmem:[%s6887_s8 + $0x38] sm:$0xff]  ;;  %v260_v1 = vld [vmem:[%s6887_s8 + $0x30] sm:$0xff] }
  0x16   :  { %375 = vperm.xlu1 %4088, %v105_v18   ;;  %370 = vperm.xlu0 %4087, %v104_v19   ;;  %v263_v2 = vld [vmem:[%s6887_s8 + $0x48] sm:$0xff]  ;;  %v262_v3 = vld [vmem:[%s6887_s8 + $0x40] sm:$0xff]  ;;  %v265_v4 = vld [vmem:[%s6887_s8 + $0x58] sm:$0xff] }
  0x17   :  { %v264_v5 = vld [vmem:[%s6887_s8 + $0x50] sm:$0xff]  ;;  %v267_v6 = vld [vmem:[%s6887_s8 + $0x68] sm:$0xff]  ;;  %v266_v7 = vld [vmem:[%s6887_s8 + $0x60] sm:$0xff] }
  0x18   :  { %4034 = vmatpush3.bf16.msra.mxu0 %v4098_v20  ;;  %4081 = vmatpush3.bf16.msra.mxu1 %v4098_v20  ;;  %v269_v8 = vld [vmem:[%s6887_s8 + $0x78] sm:$0xff]  ;;  %v268_v9 = vld [vmem:[%s6887_s8 + $0x70] sm:$0xff]  ;;  %v271_v10 = vld [vmem:[%s6887_s8 + $0x88] sm:$0xff] }
  0x19   :  { %4083 = vmatprep.subr.msk.bf16.mxu0 %vm646_vm1, %v4099_v21  ;;  %4084 = vmatprep.subr.msk.bf16.mxu1 %vm646_vm1, %v4099_v21  ;;  %v270_v11 = vld [vmem:[%s6887_s8 + $0x80] sm:$0xff]  ;;  %v273_v12 = vld [vmem:[%s6887_s8 + $0x98] sm:$0xff]  ;;  %v272_v13 = vld [vmem:[%s6887_s8 + $0x90] sm:$0xff] }
  0x1a   :  { %385 = vperm.xlu1 %4088, %v107_v22   ;;  %380 = vperm.xlu0 %4087, %v106_v23   ;;  %v275_v14 = vld [vmem:[%s6887_s8 + $0xa8] sm:$0xff]  ;;  %v274_v15 = vld [vmem:[%s6887_s8 + $0xa0] sm:$0xff]  ;;  %v277_v16 = vld [vmem:[%s6887_s8 + $0xb8] sm:$0xff] }
  0x1b   :  { %v276_v17 = vld [vmem:[%s6887_s8 + $0xb0] sm:$0xff]  ;;  %v279_v18 = vld [vmem:[%s6887_s8 + $0xc8] sm:$0xff]  ;;  %v278_v19 = vld [vmem:[%s6887_s8 + $0xc0] sm:$0xff] }
  0x1c   :  { %4036 = vmatpush3.bf16.msra.mxu0 %v648_v24  ;;  %4082 = vmatpush3.bf16.msra.mxu1 %v648_v24  ;;  %v281_v20 = vld [vmem:[%s6887_s8 + $0xd8] sm:$0xff]  ;;  %v280_v21 = vld [vmem:[%s6887_s8 + $0xd0] sm:$0xff]  ;;  %v283_v22 = vld [vmem:[%s6887_s8 + $0xe8] sm:$0xff] }
  0x1d   :  { %v282_v23 = vld [vmem:[%s6887_s8 + $0xe0] sm:$0xff]  ;;  %v285_v24 = vld [vmem:[%s6887_s8 + $0xf8] sm:$0xff] }
  0x1e   :  { %395 = vperm.xlu1 %4088, %v109_v25   ;;  %390 = vperm.xlu0 %4087, %v108_v26   ;;  %v284_v25 = vld [vmem:[%s6887_s8 + $0xf0] sm:$0xff]  ;;  %v287_v26 = vld [vmem:[%s6888_s9 + $0x8] sm:$0xff] }
  0x1f   :  { %4038 = vmatmul.mubr.msk.bf16.vlgmr.msra.gmra.mrb[0].mxu0 %vm597_vm0, %v4102_v27  ;;  %4054 = vmatmul.mubr.msk.bf16.vlgmr.msra.gmra.mrb[0].mxu1 %vm597_vm0, %v4103_v28  ;;  %v286_v27 = vld [vmem:[%s6888_s9] sm:$0xff] }
  0x20   :  { %4041 = vmatprep.mubr.msk.bf16.mxu0 %vm597_vm0, %v4104_v29  ;;  %4057 = vmatprep.mubr.msk.bf16.mxu1 %vm597_vm0, %v4105_v30  ;;  %v289_v30 = vld [vmem:[%s6888_s9 + $0x18] sm:$0xff] }
  0x22   :  { %405 = vperm.xlu1 %4088, %v111_v31   ;;  %400 = vperm.xlu0 %4087, %v110_v32   ;;  %v288_v31 = vld [vmem:[%s6888_s9 + $0x10] sm:$0xff] }
  0x26   :  { %415 = vperm.xlu1 %4088, %v113_v33   ;;  %410 = vperm.xlu0 %4087, %v112_v34   ;;  %v291_v34 = vld [vmem:[%s6888_s9 + $0x28] sm:$0xff] }
  0x27   :  { %4042 = vmatmul.mubr.msk.bf16.gmra.mrb[4].mxu0 %vm597_vm0, %v4106_v35  ;;  %4058 = vmatmul.mubr.msk.bf16.gmra.mrb[4].mxu1 %vm597_vm0, %v4107_v36  ;;  %v290_v35 = vld [vmem:[%s6888_s9 + $0x20] sm:$0xff] }
  0x28   :  { %4045 = vmatprep.mubr.msk.bf16.mxu0 %vm597_vm0, %v4108_v37  ;;  %4061 = vmatprep.mubr.msk.bf16.mxu1 %vm597_vm0, %v4109_v38  ;;  %v293_v38 = vld [vmem:[%s6888_s9 + $0x38] sm:$0xff] }
  0x2a   :  { %425 = vperm.xlu1 %4088, %v115_v39   ;;  %420 = vperm.xlu0 %4087, %v114_v40   ;;  %v292_v39 = vld [vmem:[%s6888_s9 + $0x30] sm:$0xff] }
  0x2e   :  { %435 = vperm.xlu1 %4088, %v117_v41   ;;  %430 = vperm.xlu0 %4087, %v116_v42   ;;  %v295_v42 = vld [vmem:[%s6888_s9 + $0x48] sm:$0xff] }
  0x2f   :  { %4046 = vmatmul.mubr.msk.bf16.gmra.mrb[8].mxu0 %vm597_vm0, %v4110_v43  ;;  %4062 = vmatmul.mubr.msk.bf16.gmra.mrb[8].mxu1 %vm597_vm0, %v4111_v44  ;;  %v294_v43 = vld [vmem:[%s6888_s9 + $0x40] sm:$0xff] }
  0x30   :  { %4049 = vmatprep.mubr.msk.bf16.mxu0 %vm597_vm0, %v4112_v45  ;;  %4065 = vmatprep.mubr.msk.bf16.mxu1 %vm597_vm0, %v4113_v46  ;;  %v297_v46 = vld [vmem:[%s6888_s9 + $0x58] sm:$0xff] }
  0x32   :  { %445 = vperm.xlu1 %4088, %v119_v47   ;;  %440 = vperm.xlu0 %4087, %v118_v48   ;;  %v296_v47 = vld [vmem:[%s6888_s9 + $0x50] sm:$0xff] }
  0x36   :  { %455 = vperm.xlu1 %4088, %v121_v49   ;;  %450 = vperm.xlu0 %4087, %v120_v50   ;;  %v299_v50 = vld [vmem:[%s6888_s9 + $0x68] sm:$0xff] }
  0x37   :  { %4050 = vmatmul.mubr.msk.bf16.gmra.mrb[12].mxu0 %vm597_vm0, %v4114_v51  ;;  %4066 = vmatmul.mubr.msk.bf16.gmra.mrb[12].mxu1 %vm597_vm0, %v4115_v52  ;;  %v298_v51 = vld [vmem:[%s6888_s9 + $0x60] sm:$0xff] }
  0x3a   :  { %465 = vperm.xlu1 %4088, %v123_v53   ;;  %460 = vperm.xlu0 %4087, %v122_v54   ;;  %v301_v54 = vld [vmem:[%s6888_s9 + $0x78] sm:$0xff] }
  0x3e   :  { %475 = vperm.xlu1 %4088, %v125_v55   ;;  %470 = vperm.xlu0 %4087, %v124_v56   ;;  %v300_v55 = vld [vmem:[%s6888_s9 + $0x70] sm:$0xff] }
  0x42   :  { %818 = vperm.xlu1 %4088, %v255_v57   ;;  %813 = vperm.xlu0 %4087, %v254_v58   ;;  %v303_v58 = vld [vmem:[%s6888_s9 + $0x88] sm:$0xff] }
  0x46   :  { %828 = vperm.xlu1 %4088, %v257_v59   ;;  %823 = vperm.xlu0 %4087, %v256_v60   ;;  %v302_v59 = vld [vmem:[%s6888_s9 + $0x80] sm:$0xff] }
  0x4a   :  { %838 = vperm.xlu1 %4088, %v259_v61   ;;  %833 = vperm.xlu0 %4087, %v258_v62   ;;  %v305_v62 = vld [vmem:[%s6888_s9 + $0x98] sm:$0xff] }
  0x4e   :  { %848 = vperm.xlu1 %4088, %v261_v63   ;;  %843 = vperm.xlu0 %4087, %v260_v1   ;;  %v304_v63 = vld [vmem:[%s6888_s9 + $0x90] sm:$0xff] }
  0x52   :  { %858 = vperm.xlu1 %4088, %v263_v2   ;;  %853 = vperm.xlu0 %4087, %v262_v3   ;;  %v307_v3 = vld [vmem:[%s6888_s9 + $0xa8] sm:$0xff] }
  0x56   :  { %868 = vperm.xlu1 %4088, %v265_v4   ;;  %863 = vperm.xlu0 %4087, %v264_v5   ;;  %v306_v4 = vld [vmem:[%s6888_s9 + $0xa0] sm:$0xff] }
  0x5a   :  { %878 = vperm.xlu1 %4088, %v267_v6   ;;  %873 = vperm.xlu0 %4087, %v266_v7   ;;  %v309_v7 = vld [vmem:[%s6888_s9 + $0xb8] sm:$0xff] }
  0x5e   :  { %888 = vperm.xlu1 %4088, %v269_v8   ;;  %883 = vperm.xlu0 %4087, %v268_v9   ;;  %v308_v8 = vld [vmem:[%s6888_s9 + $0xb0] sm:$0xff] }
  0x62   :  { %898 = vperm.xlu1 %4088, %v271_v10   ;;  %893 = vperm.xlu0 %4087, %v270_v11   ;;  %v311_v11 = vld [vmem:[%s6888_s9 + $0xc8] sm:$0xff] }
  0x66   :  { %908 = vperm.xlu1 %4088, %v273_v12   ;;  %903 = vperm.xlu0 %4087, %v272_v13   ;;  %v310_v12 = vld [vmem:[%s6888_s9 + $0xc0] sm:$0xff] }
  0x6a   :  { %918 = vperm.xlu1 %4088, %v275_v14   ;;  %913 = vperm.xlu0 %4087, %v274_v15   ;;  %v313_v15 = vld [vmem:[%s6888_s9 + $0xd8] sm:$0xff] }
  0x6e   :  { %928 = vperm.xlu1 %4088, %v277_v16   ;;  %923 = vperm.xlu0 %4087, %v276_v17   ;;  %v312_v16 = vld [vmem:[%s6888_s9 + $0xd0] sm:$0xff] }
  0x72   :  { %938 = vperm.xlu1 %4088, %v279_v18   ;;  %933 = vperm.xlu0 %4087, %v278_v19   ;;  %v315_v19 = vld [vmem:[%s6888_s9 + $0xe8] sm:$0xff] }
  0x76   :  { %948 = vperm.xlu1 %4088, %v281_v20   ;;  %943 = vperm.xlu0 %4087, %v280_v21   ;;  %v314_v20 = vld [vmem:[%s6888_s9 + $0xe0] sm:$0xff] }
  0x7a   :  { %958 = vperm.xlu1 %4088, %v283_v22   ;;  %953 = vperm.xlu0 %4087, %v282_v23   ;;  %v317_v23 = vld [vmem:[%s6888_s9 + $0xf8] sm:$0xff] }
  0x7e   :  { %968 = vperm.xlu1 %4088, %v285_v24   ;;  %963 = vperm.xlu0 %4087, %v284_v25   ;;  %v316_v24 = vld [vmem:[%s6888_s9 + $0xf0] sm:$0xff] }
  0x81   :  { %v4702_v28 = vpop.permute.xlu1 %330  ;;  %v4704_v29 = vpop.permute.xlu0 %320 }
  0x82   :  { %1010 = vperm.xlu1 %4088, %v287_v26   ;;  %1005 = vperm.xlu0 %4087, %v286_v27   ;;  %v159_v27 = vld [vmem:[%s6889_s5 + $0x8] sm:$0xff] }
  0x85   :  { %v4712_v32 = vpop.permute.xlu1 %335  ;;  %v4714_v33 = vpop.permute.xlu0 %325 }
  0x86   :  { %1020 = vperm.xlu1 %4088, %v289_v30   ;;  %1015 = vperm.xlu0 %4087, %v288_v31   ;;  %v4862_v30 = vld [vmem:[%s6890_s6] sm:$0xff] }
  0x87   :  { %6960 = vst [vmem:[#allocation18_spill] sm:$0xff] %v4862_v30 }
  0x89   :  { %v4722_v36 = vpop.permute.xlu1 %345  ;;  %v4724_v37 = vpop.permute.xlu0 %340 }
  0x8a   :  { %1030 = vperm.xlu1 %4088, %v291_v34   ;;  %1025 = vperm.xlu0 %4087, %v290_v35   ;;  %v6899_v35 = vmov 1  }
  0x8d   :  { %v4732_v40 = vpop.permute.xlu1 %355  ;;  %v4734_v41 = vpop.permute.xlu0 %350 }
  0x8e   :  { %1040 = vperm.xlu1 %4088, %v293_v38   ;;  %1035 = vperm.xlu0 %4087, %v292_v39   ;;  %v161_v38 = vld [vmem:[%s6889_s5 + $0x18] sm:$0xff] }
  0x8f   :  { %v4876_v39 = vld [vmem:[%s6890_s6 + $0x18] sm:$0xff] }
  0x91   :  { %v4742_v44 = vpop.permute.xlu1 %365  ;;  %v4744_v45 = vpop.permute.xlu0 %360 }
  0x92   :  { %6944 = vst [vmem:[#allocation2_spill] sm:$0xff] %v4742_v44  ;;  %6945 = vst [vmem:[#allocation3_spill] sm:$0xff] %v4744_v45  ;;  %1050 = vperm.xlu1 %4088, %v295_v42   ;;  %1045 = vperm.xlu0 %4087, %v294_v43  }
  0x95   :  { %v4752_v48 = vpop.permute.xlu1 %375  ;;  %v4754_v49 = vpop.permute.xlu0 %370 }
  0x96   :  { %6946 = vst [vmem:[#allocation4_spill] sm:$0xff] %v4752_v48  ;;  %6947 = vst [vmem:[#allocation5_spill] sm:$0xff] %v4754_v49  ;;  %1060 = vperm.xlu1 %4088, %v297_v46   ;;  %1055 = vperm.xlu0 %4087, %v296_v47   ;;  %v163_v46 = vld [vmem:[%s6889_s5 + $0x28] sm:$0xff] }
  0x97   :  { %v4889_v47 = vld [vmem:[%s6890_s6 + $0x28] sm:$0xff] }
  0x98   :  { %v5103_v48 = vld [vmem:[%s6890_s6 + $0x8] sm:$0xff] }
  0x99   :  { %v4762_v52 = vpop.permute.xlu1 %385  ;;  %v4764_v53 = vpop.permute.xlu0 %380  ;;  %6988 = vst [vmem:[#allocation46_spill] sm:$0xff] %v5103_v48 }
  0x9a   :  { %6948 = vst [vmem:[#allocation6_spill] sm:$0xff] %v4762_v52  ;;  %6949 = vst [vmem:[#allocation7_spill] sm:$0xff] %v4764_v53  ;;  %1070 = vperm.xlu1 %4088, %v299_v50   ;;  %1065 = vperm.xlu0 %4087, %v298_v51  }
  0x9d   :  { %v4772_v56 = vpop.permute.xlu1 %395  ;;  %v4774_v57 = vpop.permute.xlu0 %390 }
  0x9e   :  { %6950 = vst [vmem:[#allocation8_spill] sm:$0xff] %v4772_v56  ;;  %6951 = vst [vmem:[#allocation9_spill] sm:$0xff] %v4774_v57  ;;  %1080 = vperm.xlu1 %4088, %v301_v54   ;;  %1075 = vperm.xlu0 %4087, %v300_v55   ;;  %v165_v54 = vld [vmem:[%s6889_s5 + $0x38] sm:$0xff]  ;;  %v4118_v55 = vld [vmem:[%s6891_s4 + $0x4] ss:$8 sps:$4 sm:$0xff]  }
  0x9f   :  { %1595 = vmatprep.mubr.bf16.mxu1 %v4118_v55  ;;  %v4970_v55 = vld [vmem:[%s6890_s6 + $0xc0] sm:$0xff]  ;;  %v187_v57 = vld [vmem:[%s6889_s5 + $0xe8] sm:$0xff] }
  0xa0   :  { %6974 = vst [vmem:[#allocation32_spill] sm:$0xff] %v4970_v55 }
  0xa1   :  { %v4782_v60 = vpop.permute.xlu1 %405  ;;  %v4784_v61 = vpop.permute.xlu0 %400 }
  0xa2   :  { %1090 = vperm.xlu1 %4088, %v303_v58   ;;  %1085 = vperm.xlu0 %4087, %v302_v59   ;;  %v4905_v58 = vld [vmem:[%s6890_s6 + $0x38] sm:$0xff] }
  0xa5   :  { %v4792_v1 = vpop.permute.xlu1 %415  ;;  %v4794_v2 = vpop.permute.xlu0 %410 }
  0xa6   :  { %1100 = vperm.xlu1 %4088, %v305_v62   ;;  %1095 = vperm.xlu0 %4087, %v304_v63   ;;  %v167_v63 = vld [vmem:[%s6889_s5 + $0x48] sm:$0xff] }
  0xa9   :  { %v4802_v5 = vpop.permute.xlu1 %425  ;;  %v4804_v6 = vpop.permute.xlu0 %420 }
  0xaa   :  { %1110 = vperm.xlu1 %4088, %v307_v3   ;;  %1105 = vperm.xlu0 %4087, %v306_v4   ;;  %v4918_v3 = vld [vmem:[%s6890_s6 + $0x80] sm:$0xff] }
  0xab   :  { %6962 = vst [vmem:[#allocation20_spill] sm:$0xff] %v4918_v3 }
  0xad   :  { %v4812_v9 = vpop.permute.xlu1 %435  ;;  %v4814_v10 = vpop.permute.xlu0 %430 }
  0xae   :  { %1120 = vperm.xlu1 %4088, %v309_v7   ;;  %1115 = vperm.xlu0 %4087, %v308_v8   ;;  %v169_v8 = vld [vmem:[%s6889_s5 + $0x58] sm:$0xff] }
  0xb1   :  { %v4822_v13 = vpop.permute.xlu1 %445  ;;  %v4824_v14 = vpop.permute.xlu0 %440 }
  0xb2   :  { %6952 = vst [vmem:[#allocation10_spill] sm:$0xff] %v4822_v13  ;;  %6953 = vst [vmem:[#allocation11_spill] sm:$0xff] %v4824_v14  ;;  %1130 = vperm.xlu1 %4088, %v311_v11   ;;  %1125 = vperm.xlu0 %4087, %v310_v12   ;;  %v4931_v11 = vld [vmem:[%s6890_s6 + $0x90] sm:$0xff] }
  0xb3   :  { %6965 = vst [vmem:[#allocation23_spill] sm:$0xff] %v4931_v11 }
  0xb5   :  { %v4832_v17 = vpop.permute.xlu1 %455  ;;  %v4834_v18 = vpop.permute.xlu0 %450 }
  0xb6   :  { %6954 = vst [vmem:[#allocation12_spill] sm:$0xff] %v4832_v17  ;;  %6955 = vst [vmem:[#allocation13_spill] sm:$0xff] %v4834_v18  ;;  %1140 = vperm.xlu1 %4088, %v313_v15   ;;  %1135 = vperm.xlu0 %4087, %v312_v16   ;;  %v171_v16 = vld [vmem:[%s6889_s5 + $0x68] sm:$0xff] }
  0xb9   :  { %v4842_v21 = vpop.permute.xlu1 %465  ;;  %v4844_v22 = vpop.permute.xlu0 %460 }
  0xba   :  { %6956 = vst [vmem:[#allocation14_spill] sm:$0xff] %v4842_v21  ;;  %6957 = vst [vmem:[#allocation15_spill] sm:$0xff] %v4844_v22  ;;  %1150 = vperm.xlu1 %4088, %v315_v19   ;;  %1145 = vperm.xlu0 %4087, %v314_v20   ;;  %v4944_v19 = vld [vmem:[%s6890_s6 + $0xa0] sm:$0xff]  ;;  %v5043_v21 = vld [vmem:[%s6890_s6 + $0x68] sm:$0xff] }
  0xbb   :  { %6968 = vst [vmem:[#allocation26_spill] sm:$0xff] %v4944_v19 }
  0xbd   :  { %v4852_v25 = vpop.permute.xlu1 %475  ;;  %v4854_v26 = vpop.permute.xlu0 %470 }
  0xbe   :  { %6958 = vst [vmem:[#allocation16_spill] sm:$0xff] %v4852_v25  ;;  %6959 = vst [vmem:[#allocation17_spill] sm:$0xff] %v4854_v26  ;;  %1160 = vperm.xlu1 %4088, %v317_v23   ;;  %1155 = vperm.xlu0 %4087, %v316_v24   ;;  %v173_v24 = vld [vmem:[%s6889_s5 + $0x78] sm:$0xff] }
  0xc1   :  { %v4864_v31 = vpop.permute.xlu1 %818  ;;  %v4866_v34 = vpop.permute.xlu0 %813 }
  0xc2   :  { %1250 = vperm.xlu1 %4088, %v159_v27   ;;  %4089 = vset.pattern.permute.xlu0 %v6899_v35  ;;  %v4957_v27 = vld [vmem:[%s6890_s6 + $0xb0] sm:$0xff] }
  0xc3   :  { %2113 = vperm.xlu0 %4089, %v4862_v30   ;;  %6971 = vst [vmem:[#allocation29_spill] sm:$0xff] %v4957_v27 }
  0xc5   :  { %v4878_v42 = vpop.permute.xlu1 %828  ;;  %v4880_v43 = vpop.permute.xlu0 %823 }
  0xc6   :  { %1260 = vperm.xlu1 %4088, %v161_v38  }
  0xc7   :  { %2125 = vperm.xlu0 %4089, %v4876_v39  }
  0xc9   :  { %v4891_v50 = vpop.permute.xlu1 %838  ;;  %v4893_v51 = vpop.permute.xlu0 %833 }
  0xca   :  { %1270 = vperm.xlu1 %4088, %v163_v46  }
  0xcb   :  { %2133 = vperm.xlu0 %4089, %v4889_v47  }
  0xcd   :  { %v4907_v59 = vpop.permute.xlu1 %848  ;;  %v4909_v62 = vpop.permute.xlu0 %843 }
  0xce   :  { %6961 = vst [vmem:[#allocation19_spill] sm:$0xff] %v4907_v59  ;;  %1280 = vperm.xlu1 %4088, %v165_v54   ;;  %v175_v54 = vld [vmem:[%s6889_s5 + $0x88] sm:$0xff]  ;;  %v160_v59 = vld [vmem:[%s6889_s5 + $0x10] sm:$0xff] }
  0xcf   :  { %2141 = vperm.xlu0 %4089, %v4905_v58  }
  0xd1   :  { %v4920_v4 = vpop.permute.xlu1 %858  ;;  %v4922_v7 = vpop.permute.xlu0 %853 }
  0xd2   :  { %6963 = vst [vmem:[#allocation21_spill] sm:$0xff] %v4920_v4  ;;  %6964 = vst [vmem:[#allocation22_spill] sm:$0xff] %v4922_v7  ;;  %1290 = vperm.xlu1 %4088, %v167_v63  }
  0xd3   :  { %2177 = vperm.xlu0 %4089, %v4918_v3  }
  0xd5   :  { %v4933_v12 = vpop.permute.xlu1 %868  ;;  %v4935_v15 = vpop.permute.xlu0 %863 }
  0xd6   :  { %6966 = vst [vmem:[#allocation24_spill] sm:$0xff] %v4933_v12  ;;  %6967 = vst [vmem:[#allocation25_spill] sm:$0xff] %v4935_v15  ;;  %1300 = vperm.xlu1 %4088, %v169_v8  }
  0xd7   :  { %2185 = vperm.xlu0 %4089, %v4931_v11   ;;  %v5009_v11 = vld [vmem:[%s6890_s6 + $0x58] sm:$0xff] }
  0xd9   :  { %v4946_v20 = vpop.permute.xlu1 %878  ;;  %v4948_v23 = vpop.permute.xlu0 %873 }
  0xda   :  { %6969 = vst [vmem:[#allocation27_spill] sm:$0xff] %v4946_v20  ;;  %6970 = vst [vmem:[#allocation28_spill] sm:$0xff] %v4948_v23  ;;  %1310 = vperm.xlu1 %4088, %v171_v16   ;;  %v177_v16 = vld [vmem:[%s6889_s5 + $0x98] sm:$0xff] }
  0xdb   :  { %2193 = vperm.xlu0 %4089, %v4944_v19   ;;  %v185_v20 = vld [vmem:[%s6889_s5 + $0xd8] sm:$0xff] }
  0xdd   :  { %v4959_v38 = vpop.permute.xlu1 %888  ;;  %v4961_v46 = vpop.permute.xlu0 %883 }
  0xde   :  { %6972 = vst [vmem:[#allocation30_spill] sm:$0xff] %v4959_v38  ;;  %6973 = vst [vmem:[#allocation31_spill] sm:$0xff] %v4961_v46  ;;  %1320 = vperm.xlu1 %4088, %v173_v24   ;;  %v4983_v24 = vld [vmem:[%s6890_s6 + $0x48] sm:$0xff] }
  0xdf   :  { %2201 = vperm.xlu0 %4089, %v4957_v27   ;;  %v5022_v38 = vld [vmem:[%s6890_s6 + $0xe8] sm:$0xff] }
  0xe0   :  { %6978 = vst [vmem:[#allocation36_spill] sm:$0xff] %v5022_v38 }
  0xe1   :  { %v4972_v63 = vpop.permute.xlu1 %898  ;;  %v4974_v8 = vpop.permute.xlu0 %893 }
  0xe2   :  { %1330 = vperm.xlu1 %4088, %v175_v54   ;;  %v179_v54 = vld [vmem:[%s6889_s5 + $0xa8] sm:$0xff] }
  0xe3   :  { %2209 = vperm.xlu0 %4089, %v4970_v55   ;;  %v4996_v55 = vld [vmem:[%s6890_s6 + $0xd8] sm:$0xff] }
  0xe4   :  { %6975 = vst [vmem:[#allocation33_spill] sm:$0xff] %v4996_v55 }
  0xe5   :  { %v4985_v35 = vpop.permute.xlu1 %908  ;;  %v4987_v0 = vpop.permute.xlu0 %903 }
  0xe6   :  { %1340 = vperm.xlu1 %4088, %v177_v16   ;;  %v181_v16 = vld [vmem:[%s6889_s5 + $0xb8] sm:$0xff] }
  0xe7   :  { %2149 = vperm.xlu0 %4089, %v4983_v24  }
  0xe9   :  { %v4998_v27 = vpop.permute.xlu1 %918  ;;  %v5000_v19 = vpop.permute.xlu0 %913 }
  0xea   :  { %6976 = vst [vmem:[#allocation34_spill] sm:$0xff] %v4998_v27  ;;  %1350 = vperm.xlu1 %4088, %v179_v54   ;;  %v183_v54 = vld [vmem:[%s6889_s5 + $0xc8] sm:$0xff] }
  0xeb   :  { %2221 = vperm.xlu0 %4089, %v4996_v55  }
  0xed   :  { %v5011_v3 = vpop.permute.xlu1 %928  ;;  %v5013_v30 = vpop.permute.xlu0 %923 }
  0xee   :  { %6977 = vst [vmem:[#allocation35_spill] sm:$0xff] %v5011_v3  ;;  %1360 = vperm.xlu1 %4088, %v181_v16  }
  0xef   :  { %2157 = vperm.xlu0 %4089, %v5009_v11  }
  0xf1   :  { %v5024_v46 = vpop.permute.xlu1 %938  ;;  %v5026_v25 = vpop.permute.xlu0 %933 }
  0xf2   :  { %6979 = vst [vmem:[#allocation37_spill] sm:$0xff] %v5024_v46  ;;  %6980 = vst [vmem:[#allocation38_spill] sm:$0xff] %v5026_v25  ;;  %1370 = vperm.xlu1 %4088, %v183_v54   ;;  %v5029_v55 = vpop.f32.mrb[0].mxu0  ;;  %v5031_v16 = vpop.f32.mrb[0].mxu1  ;;  %v5064_v46 = vld [vmem:[%s6890_s6 + $0xf8] sm:$0xff] }
  0xf3   :  { %2229 = vperm.xlu0 %4089, %v5022_v38   ;;  %v5036_v56 = vpop.f32.mrb[1].mxu0  ;;  %v5038_v23 = vpop.f32.mrb[1].mxu1  ;;  %6983 = vst [vmem:[#allocation41_spill] sm:$0xff] %v5064_v46  ;;  %v189_v25 = vld [vmem:[%s6889_s5 + $0xf8] sm:$0xff] }
  0xf4   :  { %v5049_v26 = vpop.f32.mrb[2].mxu0  ;;  %v5051_v22 = vpop.f32.mrb[2].mxu1 }
  0xf5   :  { %v5045_v54 = vpop.permute.xlu1 %948  ;;  %v5047_v38 = vpop.permute.xlu0 %943 }
  0xf6   :  { %6981 = vst [vmem:[#allocation39_spill] sm:$0xff] %v5045_v54  ;;  %6982 = vst [vmem:[#allocation40_spill] sm:$0xff] %v5047_v38  ;;  %1380 = vperm.xlu1 %4088, %v185_v20   ;;  %v5053_v52 = vpop.f32.mrb[3].mxu0  ;;  %v5055_v53 = vpop.f32.mrb[3].mxu1 }
  0xf7   :  { %2165 = vperm.xlu0 %4089, %v5043_v21  }
  0xf9   :  { %v5066_v54 = vpop.permute.xlu1 %958  ;;  %v5068_v4 = vpop.permute.xlu0 %953 }
  0xfa   :  { %6984 = vst [vmem:[#allocation42_spill] sm:$0xff] %v5066_v54  ;;  %6985 = vst [vmem:[#allocation43_spill] sm:$0xff] %v5068_v4  ;;  %1390 = vperm.xlu1 %4088, %v187_v57   ;;  %v5071_v20 = vpop.f32.mrb[4].mxu0  ;;  %v5073_v12 = vpop.f32.mrb[4].mxu1  ;;  %v5085_v54 = vld [vmem:[%s6890_s6 + $0x78] sm:$0xff] }
  0xfb   :  { %2237 = vperm.xlu0 %4089, %v5064_v46   ;;  %v5078_v7 = vpop.f32.mrb[5].mxu0  ;;  %v5080_v13 = vpop.f32.mrb[5].mxu1 }
  0xfc   :  { %v5091_v4 = vpop.f32.mrb[6].mxu0  ;;  %v5093_v17 = vpop.f32.mrb[6].mxu1 }
  0xfd   :  { %v5087_v57 = vpop.permute.xlu1 %968  ;;  %v5089_v46 = vpop.permute.xlu0 %963 }
  0xfe   :  { %6986 = vst [vmem:[#allocation44_spill] sm:$0xff] %v5087_v57  ;;  %6987 = vst [vmem:[#allocation45_spill] sm:$0xff] %v5089_v46  ;;  %1400 = vperm.xlu1 %4088, %v189_v25   ;;  %v5095_v38 = vpop.f32.mrb[7].mxu0  ;;  %v5097_v44 = vpop.f32.mrb[7].mxu1  ;;  %v158_v46 = vld [vmem:[%s6889_s5] sm:$0xff]  ;;  %v6989_v25 = vmov 0  }
  0xff   :  { %2173 = vperm.xlu0 %4089, %v5085_v54  }
 0x101   :  { %v5105_v15 = vpop.permute.xlu1 %1010  ;;  %v5107_v57 = vpop.permute.xlu0 %1005 }
 0x102   :  { %1731 = vperm.xlu1 %4088, %v5103_v48   ;;  %v5114_v14 = vpop.f32.mrb[8].mxu0  ;;  %v5116_v45 = vpop.f32.mrb[8].mxu1 }
 0x103   :  { %4091 = vset.pattern.permute.xlu0 %v6989_v25  ;;  %6990 = vst [vmem:[#allocation47_spill] sm:$0xff] %v5114_v14  ;;  %6991 = vst [vmem:[#allocation48_spill] sm:$0xff] %v5116_v45  ;;  %v5118_v18 = vpop.f32.mrb[9].mxu0  ;;  %v5120_v49 = vpop.f32.mrb[9].mxu1  ;;  %v162_v14 = vld [vmem:[%s6889_s5 + $0x20] sm:$0xff] }
 0x104   :  { %1245 = vperm.xlu0 %4091, %v158_v46   ;;  %6992 = vst [vmem:[#allocation49_spill] sm:$0xff] %v5118_v18  ;;  %6993 = vst [vmem:[#allocation50_spill] sm:$0xff] %v5120_v49  ;;  %v5129_v48 = vpop.f32.mrb[10].mxu0  ;;  %v5131_v25 = vpop.f32.mrb[10].mxu1 }
 0x105   :  { %v5122_v27 = vpop.permute.xlu1 %1020  ;;  %v5124_v3 = vpop.permute.xlu0 %1015  ;;  %6994 = vst [vmem:[#allocation51_spill] sm:$0xff] %v5129_v48  ;;  %6995 = vst [vmem:[#allocation52_spill] sm:$0xff] %v5131_v25 }
 0x106   :  { %1741 = vperm.xlu1 %4088, %v4876_v39   ;;  %v5134_v45 = vpop.f32.mrb[11].mxu0  ;;  %v5136_v46 = vpop.f32.mrb[11].mxu1 }
 0x107   :  { %6996 = vst [vmem:[#allocation53_spill] sm:$0xff] %v5134_v45  ;;  %6997 = vst [vmem:[#allocation54_spill] sm:$0xff] %v5136_v46 }
 0x108   :  { %1255 = vperm.xlu0 %4091, %v160_v59  }
 0x109   :  { %v5138_v49 = vpop.permute.xlu1 %1030  ;;  %v5140_v18 = vpop.permute.xlu0 %1025 }
 0x10a   :  { %6998 = vst [vmem:[#allocation55_spill] sm:$0xff] %v5138_v49  ;;  %6999 = vst [vmem:[#allocation56_spill] sm:$0xff] %v5140_v18  ;;  %1751 = vperm.xlu1 %4088, %v4889_v47   ;;  %v5146_v48 = vpop.f32.mrb[12].mxu0  ;;  %v5148_v25 = vpop.f32.mrb[12].mxu1  ;;  %v164_v18 = vld [vmem:[%s6889_s5 + $0x30] sm:$0xff] }
 0x10b   :  { %7000 = vst [vmem:[#allocation57_spill] sm:$0xff] %v5146_v48  ;;  %7001 = vst [vmem:[#allocation58_spill] sm:$0xff] %v5148_v25  ;;  %v5150_v39 = vpop.f32.mrb[13].mxu0  ;;  %v5152_v45 = vpop.f32.mrb[13].mxu1  ;;  %v166_v48 = vld [vmem:[%s6889_s5 + $0x40] sm:$0xff] }
 0x10c   :  { %1265 = vperm.xlu0 %4091, %v162_v14   ;;  %7002 = vst [vmem:[#allocation59_spill] sm:$0xff] %v5150_v39  ;;  %7003 = vst [vmem:[#allocation60_spill] sm:$0xff] %v5152_v45  ;;  %v5161_v49 = vpop.f32.mrb[14].mxu0  ;;  %v5163_v47 = vpop.f32.mrb[14].mxu1 }
 0x10d   :  { %v5154_v59 = vpop.permute.xlu1 %1040  ;;  %v5156_v46 = vpop.permute.xlu0 %1035  ;;  %7004 = vst [vmem:[#allocation61_spill] sm:$0xff] %v5161_v49  ;;  %7005 = vst [vmem:[#allocation62_spill] sm:$0xff] %v5163_v47 }
 0x10e   :  { %1761 = vperm.xlu1 %4088, %v4905_v58   ;;  %v5166_v25 = vpop.f32.mrb[15].mxu0  ;;  %v5168_v14 = vpop.f32.mrb[15].mxu1  ;;  %v168_v58 = vld [vmem:[%s6889_s5 + $0x50] sm:$0xff] }
 0x10f   :  { %7006 = vst [vmem:[#allocation63_spill] sm:$0xff] %v5168_v14  ;;  %v5192_v14 = vadd.f32 %v5053_v52, %v4714_v33  ;;  %v5212_v33 = vadd.f32 %v5038_v23, %v4784_v61  ;;  %v5216_v52 = vadd.f32 %v5049_v26, %v4712_v32  ;;  %v5236_v32 = vadd.f32 %v5073_v12, %v4814_v10 }
 0x110   :  { %1275 = vperm.xlu0 %4091, %v164_v18   ;;  %v5188_v18 = vadd.f32 %v5036_v56, %v4704_v29  ;;  %v5207_v29 = vadd.f32 %v5031_v16, %v4794_v2  ;;  %v5220_v56 = vadd.f32 %v5051_v22, %v4792_v1  ;;  %v5255_v10 = vadd.f32 %v5095_v38, %v4722_v36 }
 0x111   :  { %v5170_v45 = vpop.permute.xlu1 %1050  ;;  %v5172_v39 = vpop.permute.xlu0 %1045  ;;  %7009 = vst [vmem:[#allocation66_spill] sm:$0xff] %v5192_v14  ;;  %7012 = vst [vmem:[#allocation69_spill] sm:$0xff] %v5212_v33  ;;  %v972_v61 = vmul.f32 %v4864_v31, %v5192_v14  ;;  %v987_v31 = vmul.f32 %v4974_v8, %v5212_v33  ;;  %v5275_v12 = vadd.f32 %v5080_v13, %v4804_v6 }
 0x112   :  { %1771 = vperm.xlu1 %4088, %v4983_v24   ;;  %7008 = vst [vmem:[#allocation65_spill] sm:$0xff] %v5188_v18  ;;  %7011 = vst [vmem:[#allocation68_spill] sm:$0xff] %v5207_v29  ;;  %v971_v2 = vmul.f32 %v4866_v34, %v5188_v18  ;;  %v989_v26 = vmul.f32 %v4987_v0, %v5207_v29  ;;  %v974_v34 = vmul.f32 %v4878_v42, %v5216_v52 }
 0x113   :  { %7013 = vst [vmem:[#allocation70_spill] sm:$0xff] %v5216_v52  ;;  %7014 = vst [vmem:[#allocation71_spill] sm:$0xff] %v5220_v56  ;;  %v990_v36 = vmul.f32 %v4985_v35, %v5220_v56  ;;  %v5279_v42 = vadd.f32 %v5091_v4, %v4732_v40  ;;  %v5285_v23 = vmul.f32 %v5013_v30, %v5236_v32  ;;  %v174_v40 = vld [vmem:[%s6889_s5 + $0x80] sm:$0xff] }
 0x114   :  { %1285 = vperm.xlu0 %4091, %v166_v48   ;;  %7017 = vst [vmem:[#allocation74_spill] sm:$0xff] %v5236_v32  ;;  %7019 = vst [vmem:[#allocation76_spill] sm:$0xff] %v5255_v10  ;;  %v1163_v0 = vadd.f32 %v5107_v57, %v971_v2  ;;  %v5289_v35 = vadd.f32 %v5093_v17, %v4812_v9  ;;  %v5293_v6 = vadd.f32 %v5097_v44, %v4802_v5 }
 0x115   :  { %v5178_v49 = vpop.permute.xlu1 %1060  ;;  %v5180_v47 = vpop.permute.xlu0 %1055  ;;  %7020 = vst [vmem:[#allocation77_spill] sm:$0xff] %v5275_v12  ;;  %7021 = vst [vmem:[#allocation78_spill] sm:$0xff] %v5279_v42  ;;  %v976_v30 = vmul.f32 %v4891_v50, %v5255_v10  ;;  %v1166_v44 = vadd.f32 %v5122_v27, %v974_v34  ;;  %v7024_v50 = vld [vmem:[#allocation19_spill] sm:$0xff]  ;;  %v7026_v27 = vld [vmem:[#allocation34_spill] sm:$0xff] }
 0x116   :  { %7007 = vst [vmem:[#allocation64_spill] sm:$0xff] %v5180_v47  ;;  %1781 = vperm.xlu1 %4088, %v5009_v11   ;;  %v170_v47 = vld [vmem:[%s6889_s5 + $0x60] sm:$0xff]  ;;  %v5203_v11 = vadd.f32 %v5029_v55, %v4702_v28  ;;  %v5224_v28 = vadd.f32 %v5055_v53, %v4782_v60  ;;  %v172_v53 = vld [vmem:[%s6889_s5 + $0x70] sm:$0xff]  ;;  %7022 = vst [vmem:[#allocation79_spill] sm:$0xff] %v5289_v35  ;;  %v1195_v17 = vmax.f32 %v1163_v0, 0.0 }
 0x117   :  { %7023 = vst [vmem:[#allocation80_spill] sm:$0xff] %v5293_v6  ;;  %v978_v8 = vmul.f32 %v7024_v50, %v5279_v42  ;;  %v7031_v34 = vld [vmem:[#allocation56_spill] sm:$0xff]  ;;  %v1198_v50 = vmax.f32 %v1166_v44, 0.0  ;;  %v7041_v44 = vld [vmem:[#allocation25_spill] sm:$0xff] }
 0x118   :  { %1295 = vperm.xlu0 %4091, %v168_v58   ;;  %7010 = vst [vmem:[#allocation67_spill] sm:$0xff] %v5203_v11  ;;  %7015 = vst [vmem:[#allocation72_spill] sm:$0xff] %v5224_v28  ;;  %v973_v60 = vmul.f32 %v4880_v43, %v5203_v11  ;;  %v1164_v43 = vadd.f32 %v5105_v15, %v972_v61  ;;  %v7028_v58 = vld [vmem:[#allocation47_spill] sm:$0xff] }
 0x119   :  { %v5194_v48 = vpop.permute.xlu1 %1070  ;;  %v5196_v24 = vpop.permute.xlu0 %1065  ;;  %v7030_v61 = vld [vmem:[#allocation55_spill] sm:$0xff] }
 0x11a   :  { %1791 = vperm.xlu1 %4088, %v5043_v21   ;;  %v5232_v21 = vadd.f32 %v5071_v20, %v4734_v41  ;;  %v5251_v41 = vadd.f32 %v5078_v7, %v4724_v37  ;;  %v5267_v37 = vld [vmem:[%s6890_s6 + $0x88] sm:$0xff]  ;;  %v988_v7 = vmul.f32 %v4972_v63, %v5224_v28  ;;  %v1196_v9 = vmax.f32 %v1164_v43, 0.0  ;;  %v5308_v63 = vld [vmem:[%s6890_s6 + $0x98] sm:$0xff] }
 0x11b   :  { %v1165_v5 = vadd.f32 %v5124_v3, %v973_v60  ;;  %v7025_v20 = vld [vmem:[#allocation35_spill] sm:$0xff]  ;;  %v992_v3 = vmul.f32 %v7026_v27, %v5293_v6 }
 0x11c   :  { %1305 = vperm.xlu0 %4091, %v170_v47   ;;  %7016 = vst [vmem:[#allocation73_spill] sm:$0xff] %v5232_v21  ;;  %7018 = vst [vmem:[#allocation75_spill] sm:$0xff] %v5251_v41  ;;  %v977_v15 = vmul.f32 %v4909_v62, %v5232_v21  ;;  %v975_v62 = vmul.f32 %v4893_v51, %v5251_v41  ;;  %v991_v51 = vmul.f32 %v5000_v19, %v5275_v12  ;;  %v7027_v47 = vld [vmem:[#allocation5_spill] sm:$0xff]  ;;  %v7035_v27 = vld [vmem:[#allocation3_spill] sm:$0xff] }
 0x11d   :  { %v5238_v1 = vpop.permute.xlu1 %1080  ;;  %v5240_v22 = vpop.permute.xlu0 %1075  ;;  %v994_v57 = vmul.f32 %v7025_v20, %v5289_v35  ;;  %v5320_v2 = vadd.f32 %v7028_v58, %v7027_v47  ;;  %v5335_v20 = vld [vmem:[%s6890_s6 + $0xa8] sm:$0xff]  ;;  %v7036_v47 = vld [vmem:[#allocation49_spill] sm:$0xff] }
 0x11e   :  { %1801 = vperm.xlu1 %4088, %v5085_v54   ;;  %v1167_v43 = vadd.f32 %v7031_v34, %v975_v62  ;;  %v5339_v62 = vadd.f32 %v7036_v47, %v7035_v27 }
 0x11f   :  { %7029 = vst [vmem:[#allocation19_spill] sm:$0xff] %v5320_v2 }
 0x120   :  { %1315 = vperm.xlu0 %4091, %v172_v53   ;;  %v1168_v53 = vadd.f32 %v7030_v61, %v976_v30  ;;  %v1197_v30 = vmax.f32 %v1165_v5, 0.0  ;;  %7037 = vst [vmem:[#allocation34_spill] sm:$0xff] %v5339_v62  ;;  %v981_v5 = vmul.f32 %v7041_v44, %v5320_v2  ;;  %v7076_v2 = vld [vmem:[#allocation14_spill] sm:$0xff] }
 0x121   :  { %v1091_v13 = vpop.permute.xlu1 %1090  ;;  %v1086_v38 = vpop.permute.xlu0 %1085 }
 0x122   :  { %v1180_v4 = vadd.f32 %v1091_v13, %v988_v7  ;;  %v1179_v55 = vadd.f32 %v1086_v38, %v987_v31  ;;  %1811 = vperm.xlu1 %4088, %v5267_v37   ;;  %v176_v31 = vld [vmem:[%s6889_s5 + $0x90] sm:$0xff]  ;;  %v1227_v38 = vpack.c.bf16 %v1196_v9, %v1195_v17  ;;  %v1228_v44 = vpack.c.bf16 %v1198_v50, %v1197_v30 }
 0x123   :  { %v7057_v50 = vld [vmem:[#allocation24_spill] sm:$0xff] }
 0x124   :  { %v1212_v16 = vmax.f32 %v1180_v4, 0.0  ;;  %v1211_v54 = vmax.f32 %v1179_v55, 0.0  ;;  %1325 = vperm.xlu0 %4091, %v174_v40   ;;  %v7032_v40 = vld [vmem:[#allocation13_spill] sm:$0xff]  ;;  %v7033_v4 = vld [vmem:[#allocation48_spill] sm:$0xff] }
 0x125   :  { %v1101_v60 = vpop.permute.xlu1 %1100  ;;  %v1096_v19 = vpop.permute.xlu0 %1095  ;;  %v5330_v55 = vadd.f32 %v7033_v4, %v7032_v40  ;;  %v1200_v40 = vmax.f32 %v1168_v53, 0.0  ;;  %v1170_v53 = vadd.f32 %v5154_v59, %v978_v8  ;;  %v7055_v59 = vld [vmem:[#allocation22_spill] sm:$0xff] }
 0x126   :  { %v1182_v0 = vadd.f32 %v1101_v60, %v990_v36  ;;  %v1181_v7 = vadd.f32 %v1096_v19, %v989_v26  ;;  %1821 = vperm.xlu1 %4088, %v5308_v63   ;;  %v1235_v13 = vpack.c.bf16 %v1212_v16, %v1211_v54  ;;  %v7038_v26 = vld [vmem:[#allocation11_spill] sm:$0xff]  ;;  %v7039_v36 = vld [vmem:[#allocation50_spill] sm:$0xff]  ;;  %v7042_v16 = vld [vmem:[#allocation4_spill] sm:$0xff] }
 0x127   :  { %7034 = vst [vmem:[#allocation35_spill] sm:$0xff] %v5330_v55  ;;  %v5343_v58 = vadd.f32 %v7039_v36, %v7038_v26  ;;  %v7043_v54 = vld [vmem:[#allocation51_spill] sm:$0xff]  ;;  %v7045_v60 = vld [vmem:[#allocation2_spill] sm:$0xff]  ;;  %v7046_v19 = vld [vmem:[#allocation53_spill] sm:$0xff] }
 0x128   :  { %v1214_v9 = vmax.f32 %v1182_v0, 0.0  ;;  %v1213_v17 = vmax.f32 %v1181_v7, 0.0  ;;  %1335 = vperm.xlu0 %4091, %v176_v31   ;;  %3799 = vmatprep.subr.bf16.mxu1 %v1235_v13  ;;  %v5349_v61 = vadd.f32 %v7043_v54, %v7042_v16  ;;  %v5353_v34 = vadd.f32 %v7046_v19, %v7045_v60  ;;  %v178_v31 = vld [vmem:[%s6889_s5 + $0xa0] sm:$0xff]  ;;  %v7048_v26 = vld [vmem:[#allocation40_spill] sm:$0xff] }
 0x129   :  { %7040 = vst [vmem:[#allocation5_spill] sm:$0xff] %v5343_v58  ;;  %v1111_v4 = vpop.permute.xlu1 %1110  ;;  %v1106_v27 = vpop.permute.xlu0 %1105  ;;  %3800 = vmatpush3.bf16.msra.mxu1 %v1227_v38  ;;  %v1199_v0 = vmax.f32 %v1167_v43, 0.0  ;;  %v5361_v36 = vmul.f32 %v7048_v26, %v5330_v55  ;;  %v1169_v16 = vadd.f32 %v5156_v46, %v977_v15  ;;  %v5368_v38 = vld [vmem:[%s6890_s6 + $0xb8] sm:$0xff]  ;;  %v7049_v43 = vld [vmem:[#allocation12_spill] sm:$0xff]  ;;  %v7052_v54 = vld [vmem:[#allocation10_spill] sm:$0xff]  ;;  %v979_v46 = vmul.f32 %v7055_v59, %v5339_v62 }
 0x12a   :  { %7044 = vst [vmem:[#allocation47_spill] sm:$0xff] %v5349_v61  ;;  %7047 = vst [vmem:[#allocation55_spill] sm:$0xff] %v5353_v34  ;;  %v1184_v7 = vadd.f32 %v1111_v4, %v992_v3  ;;  %v1183_v13 = vadd.f32 %v1106_v27, %v991_v51  ;;  %1831 = vperm.xlu1 %4088, %v5335_v20   ;;  %v1236_v47 = vpack.c.bf16 %v1214_v9, %v1213_v17  ;;  %v7050_v3 = vld [vmem:[#allocation52_spill] sm:$0xff]  ;;  %v7053_v9 = vld [vmem:[#allocation54_spill] sm:$0xff] }
 0x12b   :  { %v5372_v51 = vadd.f32 %v7050_v3, %v7049_v43  ;;  %v5376_v17 = vadd.f32 %v7053_v9, %v7052_v54  ;;  %v7056_v15 = vld [vmem:[#allocation38_spill] sm:$0xff]  ;;  %v982_v30 = vmul.f32 %v7057_v50, %v5349_v61  ;;  %v7058_v4 = vld [vmem:[#allocation21_spill] sm:$0xff]  ;;  %v1202_v54 = vmax.f32 %v1170_v53, 0.0  ;;  %v7059_v50 = vld [vmem:[#allocation39_spill] sm:$0xff] }
 0x12c   :  { %v1216_v60 = vmax.f32 %v1184_v7, 0.0  ;;  %v1215_v19 = vmax.f32 %v1183_v13, 0.0  ;;  %1345 = vperm.xlu0 %4091, %v178_v31   ;;  %3801 = vmatprep.subr.bf16.mxu1 %v1236_v47  ;;  %v995_v8 = vmul.f32 %v7056_v15, %v5343_v58  ;;  %v980_v27 = vmul.f32 %v7058_v4, %v5353_v34  ;;  %v180_v31 = vld [vmem:[%s6889_s5 + $0xb0] sm:$0xff]  ;;  %v7061_v53 = vld [vmem:[#allocation9_spill] sm:$0xff] }
 0x12d   :  { %7051 = vst [vmem:[#allocation56_spill] sm:$0xff] %v5372_v51  ;;  %7054 = vst [vmem:[#allocation13_spill] sm:$0xff] %v5376_v17  ;;  %v1121_v26 = vpop.permute.xlu1 %1120  ;;  %v1116_v43 = vpop.permute.xlu0 %1115  ;;  %3802 = vmatpush3.bf16.msra.mxu1 %v1228_v44  ;;  %v1229_v7 = vpack.c.bf16 %v1200_v40, %v1199_v0  ;;  %v1201_v9 = vmax.f32 %v1169_v16, 0.0  ;;  %v1171_v15 = vadd.f32 %v5172_v39, %v979_v46  ;;  %v5396_v44 = vld [vmem:[%s6890_s6 + $0xc8] sm:$0xff]  ;;  %v7062_v16 = vld [vmem:[#allocation57_spill] sm:$0xff] }
 0x12e   :  { %v1186_v13 = vadd.f32 %v1121_v26, %v994_v57  ;;  %v1185_v47 = vadd.f32 %v1116_v43, %v5285_v23  ;;  %1841 = vperm.xlu1 %4088, %v5368_v38   ;;  %v1237_v3 = vpack.c.bf16 %v1216_v60, %v1215_v19  ;;  %v1172_v59 = vadd.f32 %v5170_v45, %v980_v27  ;;  %v7060_v57 = vld [vmem:[#allocation37_spill] sm:$0xff]  ;;  %v7064_v39 = vld [vmem:[#allocation7_spill] sm:$0xff]  ;;  %v7067_v46 = vld [vmem:[#allocation6_spill] sm:$0xff] }
 0x12f   :  { %v998_v40 = vmul.f32 %v7059_v50, %v5372_v51  ;;  %v996_v23 = vmul.f32 %v7060_v57, %v5376_v17  ;;  %v5404_v45 = vadd.f32 %v7062_v16, %v7061_v53  ;;  %v7065_v60 = vld [vmem:[#allocation59_spill] sm:$0xff]  ;;  %v5412_v27 = vadd.f32 %v5166_v25, %v7067_v46  ;;  %v7073_v46 = vld [vmem:[#allocation17_spill] sm:$0xff]  ;;  %v5691_v34 = vld [vmem:[%s6890_s6 + $0xf0] sm:$0xff] }
 0x130   :  { %v1218_v0 = vmax.f32 %v1186_v13, 0.0  ;;  %v1217_v4 = vmax.f32 %v1185_v47, 0.0  ;;  %1355 = vperm.xlu0 %4091, %v180_v31   ;;  %3803 = vmatprep.subr.bf16.mxu1 %v1237_v3  ;;  %v5408_v19 = vadd.f32 %v7065_v60, %v7064_v39  ;;  %v1174_v26 = vadd.f32 %v5178_v49, %v982_v30  ;;  %v182_v31 = vld [vmem:[%s6889_s5 + $0xc0] sm:$0xff]  ;;  %v7069_v13 = vld [vmem:[#allocation64_spill] sm:$0xff]  ;;  %v7070_v16 = vld [vmem:[#allocation15_spill] sm:$0xff] }
 0x131   :  { %7063 = vst [vmem:[#allocation48_spill] sm:$0xff] %v5404_v45  ;;  %7068 = vst [vmem:[#allocation49_spill] sm:$0xff] %v5412_v27  ;;  %v1131_v43 = vpop.permute.xlu1 %1130  ;;  %v1126_v50 = vpop.permute.xlu0 %1125  ;;  %3804 = vmatpush3.bf16.msra.mxu1 %v1229_v7  ;;  %v1173_v47 = vadd.f32 %v7069_v13, %v981_v5  ;;  %v7071_v39 = vld [vmem:[#allocation60_spill] sm:$0xff]  ;;  %v1230_v60 = vpack.c.bf16 %v1202_v54, %v1201_v9  ;;  %v1204_v49 = vmax.f32 %v1172_v59, 0.0  ;;  %v1203_v30 = vmax.f32 %v1171_v15, 0.0  ;;  %v7074_v7 = vld [vmem:[#allocation58_spill] sm:$0xff] }
 0x132   :  { %7066 = vst [vmem:[#allocation3_spill] sm:$0xff] %v5408_v19  ;;  %v1188_v3 = vadd.f32 %v1131_v43, %v996_v23  ;;  %v1187_v57 = vadd.f32 %v1126_v50, %v995_v8  ;;  %1851 = vperm.xlu1 %4088, %v5396_v44   ;;  %v1238_v53 = vpack.c.bf16 %v1218_v0, %v1217_v4  ;;  %v7077_v51 = vld [vmem:[#allocation63_spill] sm:$0xff]  ;;  %v7079_v23 = vld [vmem:[#allocation28_spill] sm:$0xff]  ;;  %v7081_v43 = vld [vmem:[#allocation61_spill] sm:$0xff]  ;;  %v1206_v15 = vmax.f32 %v1174_v26, 0.0 }
 0x133   :  { %v5422_v25 = vadd.f32 %v7071_v39, %v7070_v16  ;;  %v5426_v61 = vadd.f32 %v7074_v7, %v7073_v46  ;;  %v5430_v55 = vadd.f32 %v7077_v51, %v7076_v2  ;;  %v983_v0 = vmul.f32 %v7079_v23, %v5408_v19  ;;  %v7080_v4 = vld [vmem:[#allocation8_spill] sm:$0xff]  ;;  %v7083_v9 = vld [vmem:[#allocation27_spill] sm:$0xff]  ;;  %v7087_v23 = vld [vmem:[#allocation62_spill] sm:$0xff] }
 0x134   :  { %v1220_v5 = vmax.f32 %v1188_v3, 0.0  ;;  %v1219_v8 = vmax.f32 %v1187_v57, 0.0  ;;  %1365 = vperm.xlu0 %4091, %v182_v31   ;;  %3805 = vmatprep.subr.bf16.mxu1 %v1238_v53  ;;  %v5436_v54 = vadd.f32 %v7081_v43, %v7080_v4  ;;  %v984_v59 = vmul.f32 %v7083_v9, %v5412_v27  ;;  %v184_v2 = vld [vmem:[%s6889_s5 + $0xd0] sm:$0xff]  ;;  %v7084_v57 = vld [vmem:[#allocation33_spill] sm:$0xff]  ;;  %v7085_v16 = vld [vmem:[#allocation43_spill] sm:$0xff] }
 0x135   :  { %7072 = vst [vmem:[#allocation11_spill] sm:$0xff] %v5422_v25  ;;  %7075 = vst [vmem:[#allocation50_spill] sm:$0xff] %v5426_v61  ;;  %v1141_v50 = vpop.permute.xlu1 %1140  ;;  %v1136_v13 = vpop.permute.xlu0 %1135  ;;  %3806 = vmatpush3.bf16.msra.mxu1 %v1230_v60  ;;  %v1205_v51 = vmax.f32 %v1173_v47, 0.0  ;;  %v999_v39 = vmul.f32 %v7085_v16, %v5422_v25  ;;  %v1231_v46 = vpack.c.bf16 %v1204_v49, %v1203_v30  ;;  %v7086_v60 = vld [vmem:[#allocation16_spill] sm:$0xff]  ;;  %v7089_v47 = vld [vmem:[#allocation42_spill] sm:$0xff] }
 0x136   :  { %7078 = vst [vmem:[#allocation25_spill] sm:$0xff] %v5430_v55  ;;  %7082 = vst [vmem:[#allocation4_spill] sm:$0xff] %v5436_v54  ;;  %v1190_v31 = vadd.f32 %v1141_v50, %v998_v40  ;;  %v1189_v3 = vadd.f32 %v1136_v13, %v5361_v36  ;;  %1861 = vperm.xlu1 %4088, %v7084_v57   ;;  %v1239_v53 = vpack.c.bf16 %v1220_v5, %v1219_v8  ;;  %v7090_v5 = vld [vmem:[#allocation31_spill] sm:$0xff]  ;;  %v7091_v49 = vld [vmem:[#allocation30_spill] sm:$0xff] }
 0x137   :  { %v1176_v26 = vadd.f32 %v5194_v48, %v984_v59  ;;  %v1175_v7 = vadd.f32 %v5196_v24, %v983_v0  ;;  %v5451_v4 = vadd.f32 %v7087_v23, %v7086_v60  ;;  %v1000_v40 = vmul.f32 %v7089_v47, %v5430_v55  ;;  %v186_v24 = vld [vmem:[%s6889_s5 + $0xe0] sm:$0xff]  ;;  %v7092_v13 = vld [vmem:[#allocation36_spill] sm:$0xff]  ;;  %v7093_v16 = vld [vmem:[#allocation45_spill] sm:$0xff] }
 0x138   :  { %v1222_v43 = vmax.f32 %v1190_v31, 0.0  ;;  %v1221_v36 = vmax.f32 %v1189_v3, 0.0  ;;  %1375 = vperm.xlu0 %4091, %v184_v2   ;;  %3807 = vmatprep.subr.bf16.mxu1 %v1239_v53  ;;  %v985_v8 = vmul.f32 %v7090_v5, %v5404_v45  ;;  %v986_v30 = vmul.f32 %v7091_v49, %v5436_v54  ;;  %v7107_v45 = vld [vmem:[#allocation23_spill] sm:$0xff]  ;;  %v249_v55 = vld [vmem:[%s6892_s7 + $0xd8] sm:$0xff]  ;;  %v7120_v17 = vld [vmem:[#allocation46_spill] sm:$0xff] }
 0x139   :  { %7088 = vst [vmem:[#allocation51_spill] sm:$0xff] %v5451_v4  ;;  %v1151_v48 = vpop.permute.xlu1 %1150  ;;  %v1146_v9 = vpop.permute.xlu0 %1145  ;;  %3808 = vmatpush3.bf16.msra.mxu1 %v1231_v46  ;;  %v1232_v0 = vpack.c.bf16 %v1206_v15, %v1205_v51  ;;  %v1208_v31 = vmax.f32 %v1176_v26, 0.0  ;;  %v1207_v3 = vmax.f32 %v1175_v7, 0.0  ;;  %v1001_v60 = vmul.f32 %v7093_v16, %v5426_v61  ;;  %v7094_v46 = vld [vmem:[#allocation44_spill] sm:$0xff]  ;;  %v245_v61 = vld [vmem:[%s6892_s7 + $0xb8] sm:$0xff] }
 0x13a   :  { %v1192_v59 = vadd.f32 %v1151_v48, %v1000_v40  ;;  %v1191_v50 = vadd.f32 %v1146_v9, %v999_v39  ;;  %1871 = vperm.xlu1 %4088, %v7092_v13   ;;  %v1240_v2 = vpack.c.bf16 %v1222_v43, %v1221_v36  ;;  %v1178_v57 = vadd.f32 %v5238_v1, %v986_v30  ;;  %v188_v39 = vld [vmem:[%s6889_s5 + $0xf0] sm:$0xff]  ;;  %v4116_v13 = vld [vmem:[%s6891_s4] ss:$8 sps:$4 sm:$0xff]  }
 0x13b   :  { %v1177_v53 = vadd.f32 %v5240_v22, %v985_v8  ;;  %v1002_v23 = vmul.f32 %v7094_v46, %v5451_v4  ;;  %v7095_v22 = vld [vmem:[#allocation41_spill] sm:$0xff]  ;;  %v1233_v40 = vpack.c.bf16 %v1208_v31, %v1207_v3  ;;  %v223_v8 = vld [vmem:[%s6892_s7 + $0x8] sm:$0xff]  ;;  %v5492_v31 = vld [vmem:[%s6890_s6 + $0x10] sm:$0xff] }
 0x13c   :  { %v1224_v47 = vmax.f32 %v1192_v59, 0.0  ;;  %v1223_v5 = vmax.f32 %v1191_v50, 0.0  ;;  %1385 = vperm.xlu0 %4091, %v186_v24   ;;  %3809 = vmatprep.subr.bf16.mxu1 %v1240_v2  ;;  %v1210_v43 = vmax.f32 %v1178_v57, 0.0  ;;  %v225_v59 = vld [vmem:[%s6892_s7 + $0x18] sm:$0xff]  ;;  %v7096_v50 = vld [vmem:[#allocation18_spill] sm:$0xff] }
 0x13d   :  { %v1161_v15 = vpop.permute.xlu1 %1160  ;;  %v1156_v51 = vpop.permute.xlu0 %1155  ;;  %3810 = vmatpush3.bf16.msra.mxu1 %v1232_v0  ;;  %v1209_v36 = vmax.f32 %v1177_v53, 0.0  ;;  %v4119_v3 = vld [vmem:[%s6891_s4 + $0x14] ss:$8 sps:$4 sm:$0xff]   ;;  %v227_v53 = vld [vmem:[%s6892_s7 + $0x28] sm:$0xff] }
 0x13e   :  { %v1194_v1 = vadd.f32 %v1161_v15, %v1002_v23  ;;  %v1193_v26 = vadd.f32 %v1156_v51, %v1001_v60  ;;  %1881 = vperm.xlu1 %4088, %v7095_v22   ;;  %v1241_v7 = vpack.c.bf16 %v1224_v47, %v1223_v5  ;;  %v5508_v60 = vld [vmem:[%s6890_s6 + $0x20] sm:$0xff]  ;;  %v229_v23 = vld [vmem:[%s6892_s7 + $0x38] sm:$0xff]  ;;  %v5524_v15 = vld [vmem:[%s6890_s6 + $0x30] sm:$0xff] }
 0x13f   :  { %v1234_v0 = vpack.c.bf16 %v1210_v43, %v1209_v36  ;;  %v4121_v47 = vld [vmem:[%s6891_s4 + $0x10] ss:$8 sps:$4 sm:$0xff]   ;;  %v4122_v51 = vld [vmem:[%s6891_s4 + $0x24] ss:$8 sps:$4 sm:$0xff]   ;;  %v4124_v43 = vld [vmem:[%s6891_s4 + $0x20] ss:$8 sps:$4 sm:$0xff]  }
 0x140   :  { %v1226_v49 = vmax.f32 %v1194_v1, 0.0  ;;  %v1225_v30 = vmax.f32 %v1193_v26, 0.0  ;;  %1395 = vperm.xlu0 %4091, %v188_v39   ;;  %3811 = vmatprep.subr.bf16.mxu1 %v1241_v7  ;;  %v231_v1 = vld [vmem:[%s6892_s7 + $0x48] sm:$0xff]  ;;  %v5540_v22 = vld [vmem:[%s6890_s6 + $0x40] sm:$0xff] }
 0x141   :  { %v5476_v48 = vpop.permute.xlu1 %1250  ;;  %3812 = vmatpush3.bf16.msra.mxu1 %v1233_v40  ;;  %v233_v40 = vld [vmem:[%s6892_s7 + $0x58] sm:$0xff]  ;;  %v4136_v25 = vld [vmem:[%s6891_s4 + $0x60] ss:$8 sps:$4 sm:$0xff]  }
 0x142   :  { %1927 = vperm.xlu1 %4088, %v223_v8   ;;  %v5478_v9 = vpop.permute.xlu0 %2113  ;;  %v1242_v24 = vpack.c.bf16 %v1226_v49, %v1225_v30  ;;  %v5556_v8 = vld [vmem:[%s6890_s6 + $0x50] sm:$0xff] }
 0x143   :  { %v4125_v49 = vld [vmem:[%s6891_s4 + $0x34] ss:$8 sps:$4 sm:$0xff]  }
 0x144   :  { %1726 = vperm.xlu0 %4091, %v7096_v50   ;;  %3813 = vmatprep.subr.bf16.mxu1 %v1242_v24  ;;  %v235_v24 = vld [vmem:[%s6892_s7 + $0x68] sm:$0xff] }
 0x145   :  { %v5487_v2 = vpop.permute.xlu1 %1260  ;;  %3814 = vmatpush3.bf16.msra.mxu1 %v1234_v0 }
 0x146   :  { %7097 = vst [vmem:[#allocation2_spill] sm:$0xff] %v5487_v2  ;;  %1937 = vperm.xlu1 %4088, %v225_v59   ;;  %v5497_v57 = vpop.permute.xlu0 %2125  ;;  %v5572_v59 = vld [vmem:[%s6890_s6 + $0x60] sm:$0xff] }
 0x148   :  { %1736 = vperm.xlu0 %4091, %v5492_v31   ;;  %1596 = vmatmul.mubr.bf16.vlgmr.msra.gmra.mrb[16].mxu1 %v4116_v13  ;;  %v237_v13 = vld [vmem:[%s6892_s7 + $0x78] sm:$0xff] }
 0x149   :  { %v5503_v16 = vpop.permute.xlu1 %1270  ;;  %1603 = vmatprep.mubr.bf16.mxu1 %v4119_v3  ;;  %v4127_v3 = vld [vmem:[%s6891_s4 + $0x30] ss:$8 sps:$4 sm:$0xff]  }
 0x14a   :  { %7098 = vst [vmem:[#allocation53_spill] sm:$0xff] %v5503_v16  ;;  %1947 = vperm.xlu1 %4088, %v227_v53   ;;  %v5510_v46 = vpop.permute.xlu0 %2133 }
 0x14c   :  { %1746 = vperm.xlu0 %4091, %v5508_v60  }
 0x14d   :  { %v5519_v5 = vpop.permute.xlu1 %1280 }
 0x14e   :  { %7099 = vst [vmem:[#allocation40_spill] sm:$0xff] %v5519_v5  ;;  %1957 = vperm.xlu1 %4088, %v229_v23   ;;  %v5529_v39 = vpop.permute.xlu0 %2141  ;;  %v5588_v23 = vld [vmem:[%s6890_s6 + $0x70] sm:$0xff] }
 0x150   :  { %1756 = vperm.xlu0 %4091, %v5524_v15   ;;  %1604 = vmatmul.mubr.bf16.gmra.mrb[20].mxu1 %v4121_v47  ;;  %v4128_v47 = vld [vmem:[%s6891_s4 + $0x44] ss:$8 sps:$4 sm:$0xff]  }
 0x151   :  { %v5535_v26 = vpop.permute.xlu1 %1290  ;;  %1611 = vmatprep.mubr.bf16.mxu1 %v4122_v51 }
 0x152   :  { %7100 = vst [vmem:[#allocation12_spill] sm:$0xff] %v5535_v26  ;;  %1967 = vperm.xlu1 %4088, %v231_v1   ;;  %v5542_v7 = vpop.permute.xlu0 %2177  ;;  %v239_v1 = vld [vmem:[%s6892_s7 + $0x88] sm:$0xff] }
 0x154   :  { %1766 = vperm.xlu0 %4091, %v5540_v22  }
 0x155   :  { %v5551_v36 = vpop.permute.xlu1 %1300 }
 0x156   :  { %7101 = vst [vmem:[#allocation52_spill] sm:$0xff] %v5551_v36  ;;  %1977 = vperm.xlu1 %4088, %v233_v40   ;;  %v5561_v30 = vpop.permute.xlu0 %2185  ;;  %v5675_v36 = vld [vmem:[%s6890_s6 + $0xe0] sm:$0xff] }
 0x158   :  { %1776 = vperm.xlu0 %4091, %v5556_v8   ;;  %1612 = vmatmul.mubr.bf16.gmra.mrb[24].mxu1 %v4124_v43 }
 0x159   :  { %v5567_v0 = vpop.permute.xlu1 %1310  ;;  %1619 = vmatprep.mubr.bf16.mxu1 %v4125_v49  ;;  %v241_v49 = vld [vmem:[%s6892_s7 + $0x98] sm:$0xff] }
 0x15a   :  { %7102 = vst [vmem:[#allocation10_spill] sm:$0xff] %v5567_v0  ;;  %1987 = vperm.xlu1 %4088, %v235_v24   ;;  %v5574_v50 = vpop.permute.xlu0 %2193  ;;  %v7105_v24 = vld [vmem:[#allocation20_spill] sm:$0xff] }
 0x15c   :  { %1786 = vperm.xlu0 %4091, %v5572_v59  }
 0x15d   :  { %v5583_v53 = vpop.permute.xlu1 %1320 }
 0x15e   :  { %7103 = vst [vmem:[#allocation54_spill] sm:$0xff] %v5583_v53  ;;  %1997 = vperm.xlu1 %4088, %v237_v13   ;;  %v5593_v51 = vpop.permute.xlu0 %2201  ;;  %v4130_v13 = vld [vmem:[%s6891_s4 + $0x40] ss:$8 sps:$4 sm:$0xff]   ;;  %v4133_v53 = vld [vmem:[%s6891_s4 + $0x50] ss:$8 sps:$4 sm:$0xff]  }
 0x160   :  { %1796 = vperm.xlu0 %4091, %v5588_v23   ;;  %1620 = vmatmul.mubr.bf16.gmra.mrb[28].mxu1 %v4127_v3  ;;  %v4131_v3 = vld [vmem:[%s6891_s4 + $0x54] ss:$8 sps:$4 sm:$0xff]  }
 0x161   :  { %v5599_v40 = vpop.permute.xlu1 %1330  ;;  %1627 = vmatprep.mubr.bf16.mxu1 %v4128_v47 }
 0x162   :  { %7104 = vst [vmem:[#allocation22_spill] sm:$0xff] %v5599_v40  ;;  %2007 = vperm.xlu1 %4088, %v239_v1   ;;  %v5601_v43 = vpop.permute.xlu0 %2209  ;;  %v243_v1 = vld [vmem:[%s6892_s7 + $0xa8] sm:$0xff] }
 0x164   :  { %1806 = vperm.xlu0 %4091, %v7105_v24  }
 0x165   :  { %v5610_v54 = vpop.permute.xlu1 %1340 }
 0x166   :  { %7106 = vst [vmem:[#allocation38_spill] sm:$0xff] %v5610_v54  ;;  %2017 = vperm.xlu1 %4088, %v241_v49   ;;  %v5615_v47 = vpop.permute.xlu0 %2149  ;;  %v7109_v49 = vld [vmem:[#allocation26_spill] sm:$0xff] }
 0x168   :  { %1816 = vperm.xlu0 %4091, %v7107_v45   ;;  %1628 = vmatmul.mubr.bf16.gmra.mrb[32].mxu1 %v4130_v13  ;;  %v4134_v45 = vld [vmem:[%s6891_s4 + $0x64] ss:$8 sps:$4 sm:$0xff]  }
 0x169   :  { %v5621_v24 = vpop.permute.xlu1 %1350  ;;  %1635 = vmatprep.mubr.bf16.mxu1 %v4131_v3  ;;  %v247_v3 = vld [vmem:[%s6892_s7 + $0xc8] sm:$0xff] }
 0x16a   :  { %7108 = vst [vmem:[#allocation24_spill] sm:$0xff] %v5621_v24  ;;  %2027 = vperm.xlu1 %4088, %v243_v1   ;;  %v5623_v4 = vpop.permute.xlu0 %2221  ;;  %v7111_v1 = vld [vmem:[#allocation29_spill] sm:$0xff] }
 0x16c   :  { %1826 = vperm.xlu0 %4091, %v7109_v49  }
 0x16d   :  { %v5632_v27 = vpop.permute.xlu1 %1360 }
 0x16e   :  { %7110 = vst [vmem:[#allocation21_spill] sm:$0xff] %v5632_v27  ;;  %2037 = vperm.xlu1 %4088, %v245_v61   ;;  %v5637_v13 = vpop.permute.xlu0 %2157  ;;  %v7113_v61 = vld [vmem:[#allocation32_spill] sm:$0xff] }
 0x170   :  { %1836 = vperm.xlu0 %4091, %v7111_v1   ;;  %1636 = vmatmul.mubr.bf16.gmra.mrb[36].mxu1 %v4133_v53  ;;  %v5659_v53 = vld [vmem:[%s6890_s6 + $0xd0] sm:$0xff]  ;;  %v251_v1 = vld [vmem:[%s6892_s7 + $0xe8] sm:$0xff] }
 0x171   :  { %v5643_v49 = vpop.permute.xlu1 %1370  ;;  %1643 = vmatprep.mubr.bf16.mxu1 %v4134_v45  ;;  %v4137_v45 = vld [vmem:[%s6891_s4 + $0x74] ss:$8 sps:$4 sm:$0xff]  }
 0x172   :  { %7112 = vst [vmem:[#allocation39_spill] sm:$0xff] %v5643_v49  ;;  %2047 = vperm.xlu1 %4088, %v247_v3   ;;  %v5645_v19 = vpop.permute.xlu0 %2229 }
 0x174   :  { %1846 = vperm.xlu0 %4091, %v7113_v61  }
 0x175   :  { %v5654_v0 = vpop.permute.xlu1 %1380 }
 0x176   :  { %7114 = vst [vmem:[#allocation37_spill] sm:$0xff] %v5654_v0  ;;  %2057 = vperm.xlu1 %4088, %v249_v55   ;;  %v5664_v3 = vpop.permute.xlu0 %2165  ;;  %v253_v55 = vld [vmem:[%s6892_s7 + $0xf8] sm:$0xff] }
 0x178   :  { %1856 = vperm.xlu0 %4091, %v5659_v53   ;;  %1644 = vmatmul.mubr.bf16.gmra.mrb[40].mxu1 %v4136_v25  ;;  %v4139_v25 = vld [vmem:[%s6891_s4 + $0x70] ss:$8 sps:$4 sm:$0xff]  }
 0x179   :  { %v5670_v61 = vpop.permute.xlu1 %1390  ;;  %1651 = vmatprep.mubr.bf16.mxu1 %v4137_v45  ;;  %v4140_v45 = vld [vmem:[%s6891_s4 + $0x84] ss:$8 sps:$4 sm:$0xff]  }
 0x17a   :  { %7115 = vst [vmem:[#allocation9_spill] sm:$0xff] %v5670_v61  ;;  %2067 = vperm.xlu1 %4088, %v251_v1   ;;  %v5677_v0 = vpop.permute.xlu0 %2237 }
 0x17b   :  { %7116 = vst [vmem:[#allocation57_spill] sm:$0xff] %v5677_v0  ;;  %v7119_v0 = vmov 1  }
 0x17c   :  { %1866 = vperm.xlu0 %4091, %v5675_v36  }
 0x17d   :  { %v5686_v61 = vpop.permute.xlu1 %1400 }
 0x17e   :  { %7117 = vst [vmem:[#allocation7_spill] sm:$0xff] %v5686_v61  ;;  %2077 = vperm.xlu1 %4088, %v253_v55   ;;  %v5696_v1 = vpop.permute.xlu0 %2173  ;;  %v222_v61 = vld [vmem:[%s6892_s7] sm:$0xff] }
 0x17f   :  { %7118 = vst [vmem:[#allocation59_spill] sm:$0xff] %v5696_v1  ;;  %v4142_v55 = vld [vmem:[%s6891_s4 + $0x80] ss:$8 sps:$4 sm:$0xff]  }
 0x180   :  { %1876 = vperm.xlu0 %4091, %v5691_v34   ;;  %1652 = vmatmul.mubr.bf16.gmra.mrb[44].mxu1 %v4139_v25  ;;  %v224_v25 = vld [vmem:[%s6892_s7 + $0x10] sm:$0xff] }
 0x181   :  { %v5699_v62 = vpop.permute.xlu1 %1731  ;;  %1659 = vmatprep.mubr.bf16.mxu1 %v4140_v45  ;;  %v4143_v45 = vld [vmem:[%s6891_s4 + $0x94] ss:$8 sps:$4 sm:$0xff]  }
 0x182   :  { %4090 = vset.pattern.permute.xlu1 %v7119_v0 }
 0x183   :  { %2117 = vperm.xlu1 %4090, %v7120_v17   ;;  %v5706_v26 = vpop.permute.xlu0 %1245 }
 0x184   :  { %1922 = vperm.xlu0 %4091, %v222_v61   ;;  %v226_v61 = vld [vmem:[%s6892_s7 + $0x20] sm:$0xff] }
 0x185   :  { %v5711_v1 = vpop.permute.xlu1 %1741 }
 0x187   :  { %2121 = vperm.xlu1 %4090, %v5492_v31   ;;  %v5720_v17 = vpop.permute.xlu0 %1255  ;;  %v4145_v31 = vld [vmem:[%s6891_s4 + $0x90] ss:$8 sps:$4 sm:$0xff]  }
 0x188   :  { %7121 = vst [vmem:[#allocation6_spill] sm:$0xff] %v5720_v17  ;;  %1932 = vperm.xlu0 %4091, %v224_v25   ;;  %1660 = vmatmul.mubr.bf16.gmra.mrb[48].mxu1 %v4142_v55  ;;  %v228_v55 = vld [vmem:[%s6892_s7 + $0x30] sm:$0xff]  ;;  %v4146_v25 = vld [vmem:[%s6891_s4 + $0xa4] ss:$8 sps:$4 sm:$0xff]  }
 0x189   :  { %v5722_v0 = vpop.permute.xlu1 %1751  ;;  %1667 = vmatprep.mubr.bf16.mxu1 %v4143_v45 }
 0x18b   :  { %2129 = vperm.xlu1 %4090, %v5508_v60   ;;  %v5728_v58 = vpop.permute.xlu0 %1265 }
 0x18c   :  { %1942 = vperm.xlu0 %4091, %v226_v61   ;;  %v230_v61 = vld [vmem:[%s6892_s7 + $0x40] sm:$0xff] }
 0x18d   :  { %v5733_v49 = vpop.permute.xlu1 %1761 }
 0x18f   :  { %2137 = vperm.xlu1 %4090, %v5524_v15   ;;  %v5742_v60 = vpop.permute.xlu0 %1275  ;;  %v4148_v15 = vld [vmem:[%s6891_s4 + $0xa0] ss:$8 sps:$4 sm:$0xff]  }
 0x190   :  { %7122 = vst [vmem:[#allocation64_spill] sm:$0xff] %v5742_v60  ;;  %1952 = vperm.xlu0 %4091, %v228_v55   ;;  %1668 = vmatmul.mubr.bf16.gmra.mrb[52].mxu1 %v4145_v31  ;;  %v232_v31 = vld [vmem:[%s6892_s7 + $0x50] sm:$0xff] }
 0x191   :  { %v5744_v45 = vpop.permute.xlu1 %1771  ;;  %1675 = vmatprep.mubr.bf16.mxu1 %v4146_v25  ;;  %v4149_v55 = vld [vmem:[%s6891_s4 + $0xb4] ss:$8 sps:$4 sm:$0xff]  }
 0x193   :  { %2145 = vperm.xlu1 %4090, %v5540_v22   ;;  %v5750_v42 = vpop.permute.xlu0 %1285 }
 0x194   :  { %7123 = vst [vmem:[#allocation15_spill] sm:$0xff] %v5750_v42  ;;  %1962 = vperm.xlu0 %4091, %v230_v61   ;;  %v234_v61 = vld [vmem:[%s6892_s7 + $0x60] sm:$0xff] }
 0x195   :  { %v5755_v21 = vpop.permute.xlu1 %1781 }
 0x197   :  { %2181 = vperm.xlu1 %4090, %v5267_v37   ;;  %v5764_v22 = vpop.permute.xlu0 %1295  ;;  %v4151_v37 = vld [vmem:[%s6891_s4 + $0xb0] ss:$8 sps:$4 sm:$0xff]  }
 0x198   :  { %7124 = vst [vmem:[#allocation60_spill] sm:$0xff] %v5764_v22  ;;  %1972 = vperm.xlu0 %4091, %v232_v31   ;;  %1676 = vmatmul.mubr.bf16.gmra.mrb[56].mxu1 %v4148_v15  ;;  %v236_v15 = vld [vmem:[%s6892_s7 + $0x70] sm:$0xff]  ;;  %v4152_v31 = vld [vmem:[%s6891_s4 + $0xc4] ss:$8 sps:$4 sm:$0xff]  }
 0x199   :  { %v5766_v25 = vpop.permute.xlu1 %1791  ;;  %1683 = vmatprep.mubr.bf16.mxu1 %v4149_v55 }
 0x19a   :  { %7125 = vst [vmem:[#allocation17_spill] sm:$0xff] %v5766_v25 }
 0x19b   :  { %2189 = vperm.xlu1 %4090, %v5308_v63   ;;  %v5772_v42 = vpop.permute.xlu0 %1305 }
 0x19c   :  { %7126 = vst [vmem:[#allocation58_spill] sm:$0xff] %v5772_v42  ;;  %1982 = vperm.xlu0 %4091, %v234_v61   ;;  %v238_v61 = vld [vmem:[%s6892_s7 + $0x80] sm:$0xff] }
 0x19d   :  { %v5777_v35 = vpop.permute.xlu1 %1801 }
 0x19e   :  { %7127 = vst [vmem:[#allocation14_spill] sm:$0xff] %v5777_v35 }
 0x19f   :  { %2197 = vperm.xlu1 %4090, %v5335_v20   ;;  %v5786_v63 = vpop.permute.xlu0 %1315  ;;  %v4154_v20 = vld [vmem:[%s6891_s4 + $0xc0] ss:$8 sps:$4 sm:$0xff]  }
 0x1a0   :  { %7128 = vst [vmem:[#allocation63_spill] sm:$0xff] %v5786_v63  ;;  %1992 = vperm.xlu0 %4091, %v236_v15   ;;  %1684 = vmatmul.mubr.bf16.gmra.mrb[60].mxu1 %v4151_v37  ;;  %v240_v37 = vld [vmem:[%s6892_s7 + $0x90] sm:$0xff] }
 0x1a1   :  { %v5788_v55 = vpop.permute.xlu1 %1811  ;;  %1691 = vmatprep.mubr.bf16.mxu1 %v4152_v31  ;;  %v4155_v15 = vld [vmem:[%s6891_s4 + $0xd4] ss:$8 sps:$4 sm:$0xff]  }
 0x1a3   :  { %2205 = vperm.xlu1 %4090, %v5368_v38   ;;  %v5794_v42 = vpop.permute.xlu0 %1325 }
 0x1a4   :  { %7129 = vst [vmem:[#allocation28_spill] sm:$0xff] %v5794_v42  ;;  %2002 = vperm.xlu0 %4091, %v238_v61   ;;  %v242_v61 = vld [vmem:[%s6892_s7 + $0xa0] sm:$0xff] }
 0x1a5   :  { %v5799_v22 = vpop.permute.xlu1 %1821 }
 0x1a7   :  { %2213 = vperm.xlu1 %4090, %v5396_v44   ;;  %v5808_v38 = vpop.permute.xlu0 %1335  ;;  %v4157_v44 = vld [vmem:[%s6891_s4 + $0xd0] ss:$8 sps:$4 sm:$0xff]  }
 0x1a8   :  { %7130 = vst [vmem:[#allocation8_spill] sm:$0xff] %v5808_v38  ;;  %2012 = vperm.xlu0 %4091, %v240_v37   ;;  %1692 = vmatmul.mubr.bf16.gmra.mrb[64].mxu1 %v4154_v20  ;;  %v244_v20 = vld [vmem:[%s6892_s7 + $0xb0] sm:$0xff]  ;;  %v4158_v37 = vld [vmem:[%s6891_s4 + $0xe4] ss:$8 sps:$4 sm:$0xff]  }
 0x1a9   :  { %v5810_v31 = vpop.permute.xlu1 %1831  ;;  %1699 = vmatprep.mubr.bf16.mxu1 %v4155_v15 }
 0x1aa   :  { %7131 = vst [vmem:[#allocation61_spill] sm:$0xff] %v5810_v31 }
 0x1ab   :  { %2217 = vperm.xlu1 %4090, %v5659_v53   ;;  %v5816_v63 = vpop.permute.xlu0 %1345 }
 0x1ac   :  { %7132 = vst [vmem:[#allocation27_spill] sm:$0xff] %v5816_v63  ;;  %2022 = vperm.xlu0 %4091, %v242_v61   ;;  %v246_v61 = vld [vmem:[%s6892_s7 + $0xc0] sm:$0xff] }
 0x1ad   :  { %v5821_v35 = vpop.permute.xlu1 %1841 }
 0x1ae   :  { %7133 = vst [vmem:[#allocation33_spill] sm:$0xff] %v5821_v35  ;;  %v2576_v35 = vld [vmem:[%s6893_s10 + $0x60] sm:$0xff] }
 0x1af   :  { %2153 = vperm.xlu1 %4090, %v5556_v8   ;;  %v5830_v53 = vpop.permute.xlu0 %1355  ;;  %v4160_v8 = vld [vmem:[%s6891_s4 + $0xe0] ss:$8 sps:$4 sm:$0xff]  }
 0x1b0   :  { %7134 = vst [vmem:[#allocation43_spill] sm:$0xff] %v5830_v53  ;;  %2032 = vperm.xlu0 %4091, %v244_v20   ;;  %1700 = vmatmul.mubr.bf16.gmra.mrb[68].mxu1 %v4157_v44  ;;  %v248_v44 = vld [vmem:[%s6892_s7 + $0xd0] sm:$0xff] }
 0x1b1   :  { %v5832_v15 = vpop.permute.xlu1 %1851  ;;  %1707 = vmatprep.mubr.bf16.mxu1 %v4158_v37  ;;  %v4161_v20 = vld [vmem:[%s6891_s4 + $0xf4] ss:$8 sps:$4 sm:$0xff]  }
 0x1b2   :  { %7135 = vst [vmem:[#allocation16_spill] sm:$0xff] %v5832_v15  ;;  %v2799_v15 = vld [vmem:[%s6894_s11 + $0x58] sm:$0xff] }
 0x1b3   :  { %2225 = vperm.xlu1 %4090, %v5675_v36   ;;  %v5838_v32 = vpop.permute.xlu0 %1365 }
 0x1b4   :  { %7136 = vst [vmem:[#allocation62_spill] sm:$0xff] %v5838_v32  ;;  %2042 = vperm.xlu0 %4091, %v246_v61   ;;  %v250_v61 = vld [vmem:[%s6892_s7 + $0xe0] sm:$0xff] }
 0x1b5   :  { %v5843_v27 = vpop.permute.xlu1 %1861 }
 0x1b6   :  { %7137 = vst [vmem:[#allocation42_spill] sm:$0xff] %v5843_v27 }
 0x1b7   :  { %2161 = vperm.xlu1 %4090, %v5572_v59   ;;  %v5852_v36 = vpop.permute.xlu0 %1375  ;;  %v4163_v59 = vld [vmem:[%s6891_s4 + $0xf0] ss:$8 sps:$4 sm:$0xff]  }
 0x1b8   :  { %7138 = vst [vmem:[#allocation31_spill] sm:$0xff] %v5852_v36  ;;  %2052 = vperm.xlu0 %4091, %v248_v44   ;;  %1708 = vmatmul.mubr.bf16.gmra.mrb[72].mxu1 %v4160_v8  ;;  %v252_v8 = vld [vmem:[%s6892_s7 + $0xf0] sm:$0xff]  ;;  %v7143_v36 = vmov 0  }
 0x1b9   :  { %v5854_v37 = vpop.permute.xlu1 %1871  ;;  %1715 = vmatprep.mubr.bf16.mxu1 %v4161_v20  ;;  %v2580_v20 = vld [vmem:[%s6893_s10 + $0x80] sm:$0xff] }
 0x1ba   :  { %7139 = vst [vmem:[#allocation30_spill] sm:$0xff] %v5854_v37 }
 0x1bb   :  { %2233 = vperm.xlu1 %4090, %v5691_v34   ;;  %v5860_v32 = vpop.permute.xlu0 %1385 }
 0x1bc   :  { %7140 = vst [vmem:[#allocation36_spill] sm:$0xff] %v5860_v32  ;;  %2062 = vperm.xlu0 %4091, %v250_v61   ;;  %v2581_v61 = vld [vmem:[%s6893_s10 + $0x88] sm:$0xff] }
 0x1bd   :  { %v5865_v5 = vpop.permute.xlu1 %1881 }
 0x1be   :  { %7141 = vst [vmem:[#allocation45_spill] sm:$0xff] %v5865_v5 }
 0x1bf   :  { %2169 = vperm.xlu1 %4090, %v5588_v23   ;;  %v5871_v44 = vpop.permute.xlu0 %1395 }
 0x1c0   :  { %7142 = vst [vmem:[#allocation44_spill] sm:$0xff] %v5871_v44  ;;  %2072 = vperm.xlu0 %4091, %v252_v8   ;;  %1716 = vmatmul.mubr.bf16.gmra.mrb[76].mxu1 %v4163_v59  ;;  %v2564_v59 = vld [vmem:[%s6893_s10] sm:$0xff] }
 0x1c1   :  { %v5873_v34 = vpop.permute.xlu1 %1927  ;;  %v2804_v8 = vld [vmem:[%s6894_s11 + $0x80] sm:$0xff] }
 0x1c3   :  { %4092 = vset.pattern.permute.xlu1 %v7143_v36  ;;  %v5882_v32 = vpop.permute.xlu0 %1726  ;;  %v2565_v36 = vld [vmem:[%s6893_s10 + $0x8] sm:$0xff] }
 0x1c4   :  { %2678 = vperm.xlu1 %4092, %v2580_v20   ;;  %2683 = vperm.xlu0 %4091, %v2581_v61   ;;  %v2788_v20 = vld [vmem:[%s6894_s11] sm:$0xff] }
 0x1c5   :  { %v5884_v23 = vpop.permute.xlu1 %1937 }
 0x1c7   :  { %v5892_v44 = vpop.permute.xlu0 %1736 }
 0x1c8   :  { %2598 = vperm.xlu1 %4092, %v2564_v59   ;;  %2902 = vperm.xlu0 %4091, %v2804_v8   ;;  %v2805_v59 = vld [vmem:[%s6894_s11 + $0x88] sm:$0xff]  ;;  %v2582_v8 = vld [vmem:[%s6893_s10 + $0x90] sm:$0xff] }
 0x1c9   :  { %v5894_v5 = vpop.permute.xlu1 %1947 }
 0x1cb   :  { %v5902_v61 = vpop.permute.xlu0 %1746 }
 0x1cc   :  { %2603 = vperm.xlu1 %4092, %v2565_v36   ;;  %2822 = vperm.xlu0 %4091, %v2788_v20   ;;  %v2789_v36 = vld [vmem:[%s6894_s11 + $0x8] sm:$0xff]  ;;  %v2566_v20 = vld [vmem:[%s6893_s10 + $0x10] sm:$0xff] }
 0x1cd   :  { %v5904_v53 = vpop.permute.xlu1 %1957 }
 0x1cf   :  { %v5912_v6 = vpop.permute.xlu0 %1756 }
 0x1d0   :  { %2907 = vperm.xlu1 %4092, %v2805_v59   ;;  %2688 = vperm.xlu0 %4091, %v2582_v8   ;;  %v2583_v59 = vld [vmem:[%s6893_s10 + $0x98] sm:$0xff]  ;;  %v2806_v8 = vld [vmem:[%s6894_s11 + $0x90] sm:$0xff] }
 0x1d1   :  { %v5914_v12 = vpop.permute.xlu1 %1967 }
 0x1d3   :  { %v5922_v24 = vpop.permute.xlu0 %1766 }
 0x1d4   :  { %7144 = vst [vmem:[#allocation41_spill] sm:$0xff] %v5922_v24  ;;  %2827 = vperm.xlu1 %4092, %v2789_v36   ;;  %2608 = vperm.xlu0 %4091, %v2566_v20   ;;  %v2567_v36 = vld [vmem:[%s6893_s10 + $0x18] sm:$0xff]  ;;  %v2790_v20 = vld [vmem:[%s6894_s11 + $0x10] sm:$0xff] }
 0x1d5   :  { %v5924_v63 = vpop.permute.xlu1 %1977 }
 0x1d7   :  { %v5932_v60 = vpop.permute.xlu0 %1776 }
 0x1d8   :  { %7145 = vst [vmem:[#allocation18_spill] sm:$0xff] %v5932_v60  ;;  %2693 = vperm.xlu1 %4092, %v2583_v59   ;;  %2912 = vperm.xlu0 %4091, %v2806_v8   ;;  %v2807_v59 = vld [vmem:[%s6894_s11 + $0x98] sm:$0xff]  ;;  %v2584_v8 = vld [vmem:[%s6893_s10 + $0xa0] sm:$0xff] }
 0x1d9   :  { %v5934_v10 = vpop.permute.xlu1 %1987 }
 0x1da   :  { %7146 = vst [vmem:[#allocation20_spill] sm:$0xff] %v5934_v10 }
 0x1db   :  { %v5942_v41 = vpop.permute.xlu0 %1786 }
 0x1dc   :  { %7147 = vst [vmem:[#allocation23_spill] sm:$0xff] %v5942_v41  ;;  %2613 = vperm.xlu1 %4092, %v2567_v36   ;;  %2832 = vperm.xlu0 %4091, %v2790_v20   ;;  %v2791_v36 = vld [vmem:[%s6894_s11 + $0x18] sm:$0xff]  ;;  %v2568_v20 = vld [vmem:[%s6893_s10 + $0x20] sm:$0xff] }
 0x1dd   :  { %v5944_v56 = vpop.permute.xlu1 %1997 }
 0x1de   :  { %7148 = vst [vmem:[#allocation26_spill] sm:$0xff] %v5944_v56 }
 0x1df   :  { %v5952_v29 = vpop.permute.xlu0 %1796 }
 0x1e0   :  { %7149 = vst [vmem:[#allocation29_spill] sm:$0xff] %v5952_v29  ;;  %2917 = vperm.xlu1 %4092, %v2807_v59   ;;  %2698 = vperm.xlu0 %4091, %v2584_v8   ;;  %v2585_v59 = vld [vmem:[%s6893_s10 + $0xa8] sm:$0xff]  ;;  %v2808_v8 = vld [vmem:[%s6894_s11 + $0xa0] sm:$0xff] }
 0x1e1   :  { %v5954_v54 = vpop.permute.xlu1 %2007 }
 0x1e3   :  { %v5962_v56 = vpop.permute.xlu0 %1806 }
 0x1e4   :  { %2837 = vperm.xlu1 %4092, %v2791_v36   ;;  %2618 = vperm.xlu0 %4091, %v2568_v20   ;;  %v2569_v36 = vld [vmem:[%s6893_s10 + $0x28] sm:$0xff]  ;;  %v2792_v20 = vld [vmem:[%s6894_s11 + $0x20] sm:$0xff] }
 0x1e5   :  { %v5964_v41 = vpop.permute.xlu1 %2017 }
 0x1e7   :  { %v5972_v29 = vpop.permute.xlu0 %1816 }
 0x1e8   :  { %2703 = vperm.xlu1 %4092, %v2585_v59   ;;  %2922 = vperm.xlu0 %4091, %v2808_v8   ;;  %v2809_v59 = vld [vmem:[%s6894_s11 + $0xa8] sm:$0xff]  ;;  %v2586_v8 = vld [vmem:[%s6893_s10 + $0xb0] sm:$0xff] }
 0x1e9   :  { %v5974_v38 = vpop.permute.xlu1 %2027 }
 0x1ea   :  { %7150 = vst [vmem:[#allocation32_spill] sm:$0xff] %v5974_v38 }
 0x1eb   :  { %v5982_v16 = vpop.permute.xlu0 %1826 }
 0x1ec   :  { %2623 = vperm.xlu1 %4092, %v2569_v36   ;;  %2842 = vperm.xlu0 %4091, %v2792_v20   ;;  %v2793_v36 = vld [vmem:[%s6894_s11 + $0x28] sm:$0xff]  ;;  %v2570_v20 = vld [vmem:[%s6893_s10 + $0x30] sm:$0xff] }
 0x1ed   :  { %v5984_v28 = vpop.permute.xlu1 %2037 }
 0x1ee   :  { %7151 = vst [vmem:[#allocation46_spill] sm:$0xff] %v5984_v28 }
 0x1ef   :  { %v5992_v33 = vpop.permute.xlu0 %1836 }
 0x1f0   :  { %7152 = vst [vmem:[#allocation81_spill] sm:$0xff] %v5992_v33  ;;  %2927 = vperm.xlu1 %4092, %v2809_v59   ;;  %2708 = vperm.xlu0 %4091, %v2586_v8   ;;  %v2587_v59 = vld [vmem:[%s6893_s10 + $0xb8] sm:$0xff]  ;;  %v2810_v8 = vld [vmem:[%s6894_s11 + $0xb0] sm:$0xff] }
 0x1f1   :  { %v5994_v40 = vpop.permute.xlu1 %2047 }
 0x1f2   :  { %7153 = vst [vmem:[#allocation82_spill] sm:$0xff] %v5994_v40  ;;  %v1884_v40 = vlaneseq }
 0x1f3   :  { %v6002_v52 = vpop.permute.xlu0 %1846 }
 0x1f4   :  { %7154 = vst [vmem:[#allocation83_spill] sm:$0xff] %v6002_v52  ;;  %2847 = vperm.xlu1 %4092, %v2793_v36   ;;  %2628 = vperm.xlu0 %4091, %v2570_v20   ;;  %v2571_v36 = vld [vmem:[%s6893_s10 + $0x38] sm:$0xff]  ;;  %v2794_v20 = vld [vmem:[%s6894_s11 + $0x30] sm:$0xff] }
 0x1f5   :  { %v6004_v42 = vpop.permute.xlu1 %2057 }
 0x1f6   :  { %7155 = vst [vmem:[#allocation84_spill] sm:$0xff] %v6004_v42 }
 0x1f7   :  { %v6012_v11 = vpop.permute.xlu0 %1856 }
 0x1f8   :  { %7156 = vst [vmem:[#allocation85_spill] sm:$0xff] %v6012_v11  ;;  %2713 = vperm.xlu1 %4092, %v2587_v59   ;;  %2932 = vperm.xlu0 %4091, %v2810_v8   ;;  %v2811_v59 = vld [vmem:[%s6894_s11 + $0xb8] sm:$0xff]  ;;  %v2588_v8 = vld [vmem:[%s6893_s10 + $0xc0] sm:$0xff]  ;;  %v1885_v11 = vshrl.u32 %v1884_v40, 7 }
 0x1f9   :  { %v6014_v60 = vpop.permute.xlu1 %2067  ;;  %v2812_v40 = vld [vmem:[%s6894_s11 + $0xc0] sm:$0xff] }
 0x1fa   :  { %7157 = vst [vmem:[#allocation86_spill] sm:$0xff] %v6014_v60  ;;  %v1886_v2 = vsub.s32 0, %v1885_v11  ;;  %v2242_v17 = vsub.s32 1, %v1885_v11 }
 0x1fb   :  { %v6022_v37 = vpop.permute.xlu0 %1866 }
 0x1fc   :  { %7158 = vst [vmem:[#allocation87_spill] sm:$0xff] %v6022_v37  ;;  %2633 = vperm.xlu1 %4092, %v2571_v36   ;;  %2852 = vperm.xlu0 %4091, %v2794_v20   ;;  %v2795_v36 = vld [vmem:[%s6894_s11 + $0x38] sm:$0xff]  ;;  %v2572_v20 = vld [vmem:[%s6893_s10 + $0x40] sm:$0xff] }
 0x1fd   :  { %v6024_v10 = vpop.permute.xlu1 %2077 }
 0x1fe   :  { %7159 = vst [vmem:[#allocation88_spill] sm:$0xff] %v6024_v10 }
 0x1ff   :  { %v6032_v60 = vpop.permute.xlu0 %1876 }
 0x200   :  { %7160 = vst [vmem:[#allocation89_spill] sm:$0xff] %v6032_v60  ;;  %2937 = vperm.xlu1 %4092, %v2811_v59   ;;  %2718 = vperm.xlu0 %4091, %v2588_v8   ;;  %v2589_v59 = vld [vmem:[%s6893_s10 + $0xc8] sm:$0xff]  ;;  %v61_v8 = vld [vmem:[%s6895_s1] sm:$0x3] }
 0x201   :  { %v6055_v28 = vrot.slane %v61_v8, %v1886_v2  ;;  %v6057_v11 = vrot.slane %v61_v8, %v2242_v17  ;;  %v2813_v17 = vld [vmem:[%s6894_s11 + $0xc8] sm:$0xff] }
 0x202   :  { %v6040_v10 = vpop.permute.xlu1 %2117 }
 0x203   :  { %v1923_v37 = vpop.permute.xlu0 %1922  ;;  %v1892_v14 = vmul.f32 %v6055_v28, %v5902_v61  ;;  %v2574_v61 = vld [vmem:[%s6893_s10 + $0x50] sm:$0xff]  ;;  %v1888_v38 = vmul.f32 %v6055_v28, %v5882_v32  ;;  %v2244_v32 = vmul.f32 %v6057_v11, %v5478_v9  ;;  %v2593_v9 = vld [vmem:[%s6893_s10 + $0xe8] sm:$0xff] }
 0x204   :  { %2857 = vperm.xlu1 %4092, %v2795_v36   ;;  %2638 = vperm.xlu0 %4091, %v2572_v20   ;;  %v2573_v36 = vld [vmem:[%s6893_s10 + $0x48] sm:$0xff]  ;;  %v2796_v20 = vld [vmem:[%s6894_s11 + $0x40] sm:$0xff] }
 0x206   :  { %v6051_v60 = vpop.permute.xlu1 %2121 }
 0x207   :  { %v6053_v52 = vpop.permute.xlu0 %1932 }
 0x208   :  { %2723 = vperm.xlu1 %4092, %v2589_v59   ;;  %2942 = vperm.xlu0 %4091, %v2812_v40   ;;  %v2590_v59 = vld [vmem:[%s6893_s10 + $0xd0] sm:$0xff] }
 0x20a   :  { %v2130_v42 = vpop.permute.xlu1 %2129 }
 0x20b   :  { %v2248_v18 = vmul.f32 %v6057_v11, %v2130_v42  ;;  %v1943_v2 = vpop.permute.xlu0 %1942 }
 0x20c   :  { %v2084_v33 = vadd.f32 %v1943_v2, %v1892_v14  ;;  %2643 = vperm.xlu1 %4092, %v2573_v36   ;;  %2862 = vperm.xlu0 %4091, %v2796_v20   ;;  %v2797_v14 = vld [vmem:[%s6894_s11 + $0x48] sm:$0xff] }
 0x20e   :  { %v2280_v40 = vadd.f32 %v2248_v18, %v2084_v33  ;;  %v6074_v8 = vpop.permute.xlu1 %2137  ;;  %v2591_v18 = vld [vmem:[%s6893_s10 + $0xd8] sm:$0xff]  ;;  %v2814_v33 = vld [vmem:[%s6894_s11 + $0xd0] sm:$0xff] }
 0x20f   :  { %v6076_v24 = vpop.permute.xlu0 %1952 }
 0x210   :  { %2947 = vperm.xlu1 %4092, %v2813_v17   ;;  %2728 = vperm.xlu0 %4091, %v2590_v59   ;;  %v3716_v42 = vmul.f32 -1.442695, %v2280_v40  ;;  %v2575_v59 = vld [vmem:[%s6893_s10 + $0x58] sm:$0xff]  ;;  %v2798_v40 = vld [vmem:[%s6894_s11 + $0x50] sm:$0xff] }
 0x212   :  { %v6084_v36 = vpop.permute.xlu1 %2145  ;;  %4212 = vpow2.f32 %v3716_v42 }
 0x213   :  { %7161 = vst [vmem:[#allocation90_spill] sm:$0xff] %v6084_v36  ;;  %v6086_v20 = vpop.permute.xlu0 %1962 }
 0x214   :  { %7162 = vst [vmem:[#allocation91_spill] sm:$0xff] %v6086_v20  ;;  %2867 = vperm.xlu1 %4092, %v2797_v14   ;;  %2648 = vperm.xlu0 %4091, %v2574_v61  }
 0x216   :  { %v6094_v2 = vpop.permute.xlu1 %2181 }
 0x217   :  { %v6096_v17 = vpop.permute.xlu0 %1972 }
 0x218   :  { %7163 = vst [vmem:[#allocation92_spill] sm:$0xff] %v6096_v17  ;;  %2733 = vperm.xlu1 %4092, %v2591_v18   ;;  %2952 = vperm.xlu0 %4091, %v2814_v33   ;;  %v2815_v33 = vld [vmem:[%s6894_s11 + $0xd8] sm:$0xff]  ;;  %v2592_v17 = vld [vmem:[%s6893_s10 + $0xe0] sm:$0xff] }
 0x21a   :  { %v6104_v42 = vpop.permute.xlu1 %2189 }
 0x21b   :  { %v6106_v14 = vpop.permute.xlu0 %1982  ;;  %v3815_v61 = vpop.f32.mrb[16].mxu1 }
 0x21c   :  { %7164 = vst [vmem:[#allocation93_spill] sm:$0xff] %v6106_v14  ;;  %2653 = vperm.xlu1 %4092, %v2575_v59   ;;  %2872 = vperm.xlu0 %4091, %v2798_v40   ;;  %v3816_v20 = vpop.f32.mrb[17].mxu1  ;;  %v4213_v59 = vpop.eup %4212 }
 0x21d   :  { %v6108_v36 = vadd.f32 %v3816_v20, %v3815_v61  ;;  %v3818_v18 = vpop.f32.mrb[18].mxu1  ;;  %v2080_v20 = vadd.f32 %v1923_v37, %v1888_v38  ;;  %v1889_v37 = vmul.f32 %v6055_v28, %v5699_v62 }
 0x21e   :  { %v6118_v27 = vpop.permute.xlu1 %2197  ;;  %v3819_v14 = vpop.f32.mrb[19].mxu1 }
 0x21f   :  { %7165 = vst [vmem:[#allocation94_spill] sm:$0xff] %v6118_v27  ;;  %v6120_v40 = vpop.permute.xlu0 %1992  ;;  %v6122_v61 = vadd.f32 %v3819_v14, %v3818_v18  ;;  %v2408_v27 = vadd.f32 1.0, %v4213_v59  ;;  %v2276_v14 = vadd.f32 %v2244_v32, %v2080_v20  ;;  %v2816_v59 = vld [vmem:[%s6894_s11 + $0xe0] sm:$0xff]  ;;  %v2081_v62 = vadd.f32 %v5873_v34, %v1889_v37 }
 0x220   :  { %7166 = vst [vmem:[#allocation95_spill] sm:$0xff] %v6120_v40  ;;  %2957 = vperm.xlu1 %4092, %v2815_v33   ;;  %2738 = vperm.xlu0 %4091, %v2592_v17   ;;  %v2245_v17 = vmul.f32 %v6057_v11, %v6040_v10  ;;  %v2800_v34 = vld [vmem:[%s6894_s11 + $0x60] sm:$0xff] }
 0x221   :  { %4214 = vrcp.f32 %v2408_v27  ;;  %v3712_v20 = vmul.f32 -1.442695, %v2276_v14 }
 0x222   :  { %v6132_v31 = vpop.permute.xlu1 %2205 }
 0x223   :  { %7167 = vst [vmem:[#allocation96_spill] sm:$0xff] %v6132_v31  ;;  %v6134_v40 = vpop.permute.xlu0 %2002  ;;  %v3821_v38 = vpop.f32.mrb[20].mxu1  ;;  %4216 = vpow2.f32 %v3712_v20 }
 0x224   :  { %2877 = vperm.xlu1 %4092, %v2799_v15   ;;  %2658 = vperm.xlu0 %4091, %v2576_v35   ;;  %v3822_v18 = vpop.f32.mrb[21].mxu1  ;;  %v2277_v35 = vadd.f32 %v2245_v17, %v2081_v62  ;;  %v1891_v17 = vmul.f32 %v6055_v28, %v5711_v1  ;;  %v2594_v62 = vld [vmem:[%s6893_s10 + $0xf0] sm:$0xff] }
 0x225   :  { %v6140_v33 = vadd.f32 %v3822_v18, %v3821_v38  ;;  %v3824_v25 = vpop.f32.mrb[22].mxu1  ;;  %v2577_v38 = vld [vmem:[%s6893_s10 + $0x68] sm:$0xff] }
 0x226   :  { %v6149_v31 = vpop.permute.xlu1 %2213  ;;  %v3825_v10 = vpop.f32.mrb[23].mxu1 }
 0x227   :  { %7168 = vst [vmem:[#allocation97_spill] sm:$0xff] %v6149_v31  ;;  %v6151_v15 = vpop.permute.xlu0 %2012  ;;  %v6153_v32 = vadd.f32 %v3825_v10, %v3824_v25  ;;  %v3713_v31 = vmul.f32 -1.442695, %v2277_v35  ;;  %v1890_v10 = vmul.f32 %v6055_v28, %v5892_v44  ;;  %v2247_v44 = vmul.f32 %v6057_v11, %v5497_v57 }
 0x228   :  { %2743 = vperm.xlu1 %4092, %v2593_v9   ;;  %2962 = vperm.xlu0 %4091, %v2816_v59   ;;  %v2817_v59 = vld [vmem:[%s6894_s11 + $0xe8] sm:$0xff] }
 0x229   :  { %7169 = vst [vmem:[#allocation98_spill] sm:$0xff] %v6153_v32  ;;  %4218 = vpow2.f32 %v3713_v31  ;;  %v2082_v32 = vadd.f32 %v6053_v52, %v1890_v10 }
 0x22a   :  { %v6161_v27 = vpop.permute.xlu1 %2217 }
 0x22b   :  { %7170 = vst [vmem:[#allocation99_spill] sm:$0xff] %v6161_v27  ;;  %v6163_v37 = vpop.permute.xlu0 %2022  ;;  %v3827_v18 = vpop.f32.mrb[24].mxu1  ;;  %v2246_v27 = vmul.f32 %v6057_v11, %v6051_v60 }
 0x22c   :  { %2663 = vperm.xlu1 %4092, %v2577_v38   ;;  %2882 = vperm.xlu0 %4091, %v2800_v34   ;;  %v3828_v25 = vpop.f32.mrb[25].mxu1  ;;  %v2083_v38 = vadd.f32 %v5884_v23, %v1891_v17  ;;  %v2578_v23 = vld [vmem:[%s6893_s10 + $0x70] sm:$0xff] }
 0x22d   :  { %v3829_v14 = vadd.f32 %v3828_v25, %v3827_v18  ;;  %v3830_v9 = vpop.f32.mrb[26].mxu1  ;;  %v4215_v25 = vpop.eup %4214 }
 0x22e   :  { %v6175_v35 = vpop.permute.xlu1 %2153  ;;  %v3831_v20 = vpop.f32.mrb[27].mxu1  ;;  %v2279_v60 = vadd.f32 %v2247_v44, %v2083_v38  ;;  %v2818_v38 = vld [vmem:[%s6894_s11 + $0xf0] sm:$0xff] }
 0x22f   :  { %v1614_v1 = vadd.f32 %v3829_v14, %v5728_v58  ;;  %v6179_v34 = vadd.f32 %v3831_v20, %v3830_v9  ;;  %v6181_v18 = vpop.permute.xlu0 %2032  ;;  %v2801_v58 = vld [vmem:[%s6894_s11 + $0x68] sm:$0xff]  ;;  %v2278_v9 = vadd.f32 %v2246_v27, %v2082_v32  ;;  %v2595_v20 = vld [vmem:[%s6893_s10 + $0xf8] sm:$0xff]  ;;  %v1895_v32 = vmul.f32 %v6055_v28, %v5733_v49 }
 0x230   :  { %2967 = vperm.xlu1 %4092, %v2817_v59   ;;  %2748 = vperm.xlu0 %4091, %v2594_v62   ;;  %v1893_v59 = vmul.f32 %v6055_v28, %v5722_v0  ;;  %v3715_v44 = vmul.f32 -1.442695, %v2279_v60  ;;  %v2249_v49 = vmul.f32 %v6057_v11, %v5510_v46  ;;  %v2260_v46 = vmul.f32 %v6057_v11, %v5542_v7 }
 0x231   :  { %v6194_v17 = vmul.f32 %v4215_v25, %v1614_v1  ;;  %v4217_v1 = vpop.eup %4216 }
 0x232   :  { %v6196_v31 = vpop.permute.xlu1 %2225  ;;  %v2085_v0 = vadd.f32 %v5894_v5, %v1893_v59  ;;  %v2579_v5 = vld [vmem:[%s6893_s10 + $0x78] sm:$0xff]  ;;  %4220 = vpow2.f32 %v3715_v44  ;;  %v3092_v44 = vld [vmem:[%s6896_s13] sm:$0xff] }
 0x233   :  { %v6198_v14 = vpop.permute.xlu0 %2042  ;;  %v3833_v52 = vpop.f32.mrb[28].mxu1 }
 0x234   :  { %2887 = vperm.xlu1 %4092, %v2801_v58   ;;  %2668 = vperm.xlu0 %4091, %v2578_v23   ;;  %v3834_v57 = vpop.f32.mrb[29].mxu1  ;;  %v1904_v58 = vmul.f32 %v6055_v28, %v5962_v56  ;;  %v2802_v56 = vld [vmem:[%s6894_s11 + $0x70] sm:$0xff]  ;;  %v4219_v59 = vpop.eup %4218 }
 0x235   :  { %v6202_v62 = vadd.f32 %v3834_v57, %v3833_v52  ;;  %v3836_v10 = vpop.f32.mrb[30].mxu1  ;;  %v2087_v57 = vadd.f32 %v5904_v53, %v1895_v32  ;;  %v2251_v53 = vmul.f32 %v6057_v11, %v5529_v39 }
 0x236   :  { %v6212_v27 = vpop.permute.xlu1 %2161  ;;  %v3837_v25 = vpop.f32.mrb[31].mxu1  ;;  %v2096_v60 = vadd.f32 %v6134_v40, %v1904_v58  ;;  %v2281_v40 = vadd.f32 %v2249_v49, %v2085_v0  ;;  %v1906_v49 = vmul.f32 %v6055_v28, %v5972_v29  ;;  %v6276_v29 = vmul.f32 %v6057_v11, %v5601_v43 }
 0x237   :  { %7171 = vst [vmem:[#allocation100_spill] sm:$0xff] %v6202_v62  ;;  %7172 = vst [vmem:[#allocation101_spill] sm:$0xff] %v6212_v27  ;;  %v6217_v23 = vadd.f32 %v3837_v25, %v3836_v10  ;;  %v6219_v52 = vpop.permute.xlu0 %2052  ;;  %v3714_v62 = vmul.f32 -1.442695, %v2278_v9  ;;  %v2404_v27 = vadd.f32 1.0, %v4217_v1  ;;  %v1905_v9 = vmul.f32 %v6055_v28, %v5788_v55 }
 0x238   :  { %2753 = vperm.xlu1 %4092, %v2595_v20   ;;  %2972 = vperm.xlu0 %4091, %v2818_v38   ;;  %v2261_v20 = vmul.f32 %v6057_v11, %v6094_v2  ;;  %v2283_v32 = vadd.f32 %v2251_v53, %v2087_v57  ;;  %v2405_v55 = vadd.f32 1.0, %v4219_v59  ;;  %v2292_v58 = vadd.f32 %v2260_v46, %v2096_v60  ;;  %v2819_v2 = vld [vmem:[%s6894_s11 + $0xf8] sm:$0xff] }
 0x239   :  { %7173 = vst [vmem:[#allocation102_spill] sm:$0xff] %v6217_v23  ;;  %v2097_v25 = vadd.f32 %v5954_v54, %v1905_v9  ;;  %4222 = vpow2.f32 %v3714_v62  ;;  %v2262_v54 = vmul.f32 %v6057_v11, %v5561_v30  ;;  %v6256_v62 = vmul.f32 %v6057_v11, %v5574_v50 }
 0x23a   :  { %v6235_v10 = vpop.permute.xlu1 %2233  ;;  %4224 = vrcp.f32 %v2404_v27  ;;  %v3717_v57 = vmul.f32 -1.442695, %v2281_v40  ;;  %v6268_v59 = vmul.f32 %v6057_v11, %v5593_v51  ;;  %v1897_v30 = vmul.f32 %v6055_v28, %v5744_v45  ;;  %v2803_v51 = vld [vmem:[%s6894_s11 + $0x78] sm:$0xff]  ;;  %v3094_v45 = vld [vmem:[%s6896_s13 + $0x10] sm:$0xff] }
 0x23b   :  { %v6241_v38 = vpop.permute.xlu0 %2062  ;;  %v3839_v1 = vpop.f32.mrb[32].mxu1  ;;  %v2293_v60 = vadd.f32 %v2261_v20, %v2097_v25  ;;  %v1899_v50 = vmul.f32 %v6055_v28, %v5755_v21  ;;  %v3719_v53 = vmul.f32 -1.442695, %v2283_v32  ;;  %4226 = vrcp.f32 %v2405_v55 }
 0x23c   :  { %2673 = vperm.xlu1 %4092, %v2579_v5   ;;  %2892 = vperm.xlu0 %4091, %v2802_v56   ;;  %v3840_v39 = vpop.f32.mrb[33].mxu1  ;;  %v3728_v9 = vmul.f32 -1.442695, %v2292_v58  ;;  %v2098_v46 = vadd.f32 %v6151_v15, %v1906_v49  ;;  %v2253_v21 = vmul.f32 %v6057_v11, %v5615_v47  ;;  %v6289_v40 = vmul.f32 %v6057_v11, %v5623_v4 }
 0x23d   :  { %v6244_v23 = vadd.f32 %v3840_v39, %v3839_v1  ;;  %v3842_v7 = vpop.f32.mrb[34].mxu1  ;;  %v2089_v43 = vadd.f32 %v5914_v12, %v1897_v30  ;;  %v2091_v20 = vadd.f32 %v5924_v63, %v1899_v50  ;;  %v1907_v15 = vmul.f32 %v6055_v28, %v5799_v22  ;;  %v4221_v63 = vpop.eup %4220 }
 0x23e   :  { %v6258_v27 = vpop.permute.xlu1 %2169  ;;  %v3843_v0 = vpop.f32.mrb[35].mxu1  ;;  %4228 = vpow2.f32 %v3717_v57  ;;  %v3729_v1 = vmul.f32 -1.442695, %v2293_v60  ;;  %v2263_v32 = vmul.f32 %v6057_v11, %v6104_v42  ;;  %v2255_v4 = vmul.f32 %v6057_v11, %v5637_v13 }
 0x23f   :  { %7174 = vst [vmem:[#allocation103_spill] sm:$0xff] %v6258_v27  ;;  %v6262_v5 = vadd.f32 %v3843_v0, %v3842_v7  ;;  %v6264_v56 = vpop.permute.xlu0 %2072  ;;  %v6305_v12 = vmul.f32 %v6057_v11, %v5645_v19  ;;  %v6309_v47 = vmul.f32 %v6057_v11, %v5664_v3  ;;  %4230 = vpow2.f32 %v3719_v53  ;;  %v3093_v19 = vld [vmem:[%s6896_s13 + $0x8] sm:$0xff]  ;;  %v3096_v3 = vld [vmem:[%s6896_s13 + $0x20] sm:$0xff] }
 0x240   :  { %2977 = vperm.xlu1 %4092, %v2819_v2   ;;  %3126 = vperm.xlu0 %4091, %v3092_v44   ;;  %v1894_v42 = vmul.f32 %v6055_v28, %v5912_v6  ;;  %v2099_v55 = vadd.f32 %v5964_v41, %v1907_v15  ;;  %4232 = vpow2.f32 %v3728_v9  ;;  %v2294_v13 = vadd.f32 %v2262_v54, %v2098_v46  ;;  %v7181_v15 = vld [vmem:[#allocation16_spill] sm:$0xff] }
 0x241   :  { %7175 = vst [vmem:[#allocation104_spill] sm:$0xff] %v6262_v5  ;;  %v2285_v2 = vadd.f32 %v2253_v21, %v2089_v43  ;;  %v2287_v44 = vadd.f32 %v2255_v4, %v2091_v20  ;;  %v1598_v0 = vadd.f32 %v6108_v36, %v5706_v26  ;;  %v1908_v54 = vmul.f32 %v6055_v28, %v5982_v16  ;;  %v7178_v16 = vld [vmem:[#allocation17_spill] sm:$0xff] }
 0x242   :  { %v2250_v49 = vmul.f32 %v6057_v11, %v6074_v8  ;;  %4234 = vpow2.f32 %v3729_v1  ;;  %v2295_v60 = vadd.f32 %v2263_v32, %v2099_v55  ;;  %v2407_v53 = vadd.f32 1.0, %v4221_v63  ;;  %v7179_v8 = vld [vmem:[#allocation61_spill] sm:$0xff]  ;;  %v7182_v63 = vld [vmem:[#allocation42_spill] sm:$0xff] }
 0x243   :  { %v6297_v25 = vpop.permute.xlu1 %2678  ;;  %v6299_v39 = vpop.permute.xlu0 %2683  ;;  %v2086_v9 = vadd.f32 %v6076_v24, %v1894_v42  ;;  %v1601_v26 = vadd.f32 %v6122_v61, %v5476_v48  ;;  %v3730_v21 = vmul.f32 -1.442695, %v2294_v13  ;;  %v2100_v43 = vadd.f32 %v6163_v37, %v1908_v54  ;;  %v3095_v48 = vld [vmem:[%s6896_s13 + $0x18] sm:$0xff]  ;;  %v3098_v24 = vld [vmem:[%s6896_s13 + $0x30] sm:$0xff]  ;;  %v7183_v13 = vld [vmem:[#allocation94_spill] sm:$0xff] }
 0x244   :  { %v3845_v22 = vpop.f32.mrb[36].mxu1  ;;  %2897 = vperm.xlu1 %4092, %v2803_v51   ;;  %3136 = vperm.xlu0 %4091, %v3094_v45   ;;  %v4223_v7 = vpop.eup %4222  ;;  %v6337_v51 = vmul.f32 %v6055_v28, %v7178_v16  ;;  %v1909_v45 = vmul.f32 %v6055_v28, %v7179_v8  ;;  %v7180_v61 = vld [vmem:[#allocation33_spill] sm:$0xff]  ;;  %v6352_v1 = vmul.f32 %v6055_v28, %v7181_v15  ;;  %v3721_v42 = vmul.f32 -1.442695, %v2285_v2 }
 0x245   :  { %v3846_v58 = vpop.f32.mrb[37].mxu1  ;;  %v4225_v57 = vpop.eup %4224  ;;  %v1911_v20 = vmul.f32 %v6055_v28, %v7180_v61  ;;  %v2406_v32 = vadd.f32 1.0, %v4223_v7  ;;  %v1915_v37 = vmul.f32 %v6055_v28, %v7182_v63  ;;  %v3731_v55 = vmul.f32 -1.442695, %v2295_v60  ;;  %v7188_v15 = vld [vmem:[#allocation65_spill] sm:$0xff]  ;;  %v7189_v63 = vld [vmem:[#allocation96_spill] sm:$0xff] }
 0x246   :  { %v6322_v6 = vadd.f32 %v3846_v58, %v3845_v22  ;;  %v3848_v41 = vpop.f32.mrb[38].mxu1  ;;  %v2500_v4 = vmul.f32 %v4225_v57, %v1598_v0  ;;  %v4227_v22 = vpop.eup %4226  ;;  %v2265_v58 = vmul.f32 %v6057_v11, %v7183_v13  ;;  %4236 = vrcp.f32 %v2407_v53  ;;  %v3097_v0 = vld [vmem:[%s6896_s13 + $0x28] sm:$0xff]  ;;  %v7184_v57 = vld [vmem:[#allocation32_spill] sm:$0xff] }
 0x247   :  { %v3849_v30 = vpop.f32.mrb[39].mxu1  ;;  %v2599_v50 = vpop.permute.xlu1 %2598  ;;  %v2282_v54 = vadd.f32 %v2250_v49, %v2086_v9  ;;  %v2101_v60 = vadd.f32 %v7184_v57, %v1909_v45  ;;  %4238 = vpow2.f32 %v3730_v21  ;;  %v2296_v8 = vadd.f32 %v6256_v62, %v2100_v43  ;;  %v3100_v49 = vld [vmem:[%s6896_s13 + $0x40] sm:$0xff]  ;;  %v7186_v9 = vld [vmem:[#allocation41_spill] sm:$0xff]  ;;  %v7191_v57 = vld [vmem:[#allocation84_spill] sm:$0xff] }
 0x248   :  { %7176 = vst [vmem:[#allocation105_spill] sm:$0xff] %v6322_v6  ;;  %v6331_v36 = vadd.f32 %v3849_v30, %v3848_v41  ;;  %v6333_v46 = vpop.permute.xlu0 %2902  ;;  %3131 = vperm.xlu1 %4092, %v3093_v19   ;;  %3146 = vperm.xlu0 %4091, %v3096_v3   ;;  %v6358_v41 = vmul.f32 -1.442695, %v2287_v44  ;;  %v2501_v30 = vmul.f32 %v4227_v22, %v1601_v26  ;;  %v4229_v2 = vpop.eup %4228  ;;  %4240 = vrcp.f32 %v2406_v32  ;;  %v4166_v62 = vld [vmem:[%s6897_s12 + $0x4] ss:$8 sps:$4 sm:$0xff]   ;;  %v3099_v32 = vld [vmem:[%s6896_s13 + $0x38] sm:$0xff] }
 0x249   :  { %v4231_v53 = vpop.eup %4230  ;;  %v1896_v26 = vmul.f32 %v6055_v28, %v7186_v9  ;;  %v2532_v45 = vadd.f32 %v2500_v4, %v7188_v15  ;;  %4242 = vpow2.f32 %v3731_v55  ;;  %v2297_v22 = vadd.f32 %v2265_v58, %v2101_v60  ;;  %v3102_v4 = vld [vmem:[%s6896_s13 + $0x50] sm:$0xff]  ;;  %v7192_v58 = vld [vmem:[#allocation66_spill] sm:$0xff]  ;;  %3476 = vmatprep.mubr.bf16.mxu0 %v4166_v62 }
 0x24a   :  { %7177 = vst [vmem:[#allocation106_spill] sm:$0xff] %v6331_v36  ;;  %v4233_v43 = vpop.eup %4232  ;;  %v2267_v13 = vmul.f32 %v6057_v11, %v7189_v63  ;;  %v2107_v9 = vadd.f32 %v7191_v57, %v1915_v37  ;;  %v2533_v60 = vadd.f32 %v2501_v30, %v7192_v58  ;;  %v7193_v63 = vld [vmem:[#allocation46_spill] sm:$0xff]  ;;  %v2411_v6 = vadd.f32 1.0, %v4231_v53 }
 0x24b   :  { %v2604_v19 = vpop.permute.xlu1 %2603  ;;  %v3851_v3 = vpop.f32.mrb[40].mxu1  ;;  %v2756_v55 = vmul.f32 %v2599_v50, %v2532_v45  ;;  %v2420_v27 = vadd.f32 1.0, %v4233_v43  ;;  %4244 = vpow2.f32 %v3721_v42  ;;  %v7194_v50 = vld [vmem:[#allocation83_spill] sm:$0xff]  ;;  %v3733_v30 = vmul.f32 -1.442695, %v2297_v22  ;;  %v7196_v43 = vld [vmem:[#allocation6_spill] sm:$0xff] }
 0x24c   :  { %v2823_v16 = vpop.permute.xlu0 %2822  ;;  %3141 = vperm.xlu1 %4092, %v3095_v48   ;;  %3156 = vperm.xlu0 %4091, %v3098_v24   ;;  %v3852_v7 = vpop.f32.mrb[41].mxu1  ;;  %v7187_v48 = vld [vmem:[#allocation81_spill] sm:$0xff]  ;;  %v2757_v5 = vmul.f32 %v2604_v19, %v2533_v60  ;;  %v3101_v42 = vld [vmem:[%s6896_s13 + $0x48] sm:$0xff]  ;;  %v3104_v19 = vld [vmem:[%s6896_s13 + $0x60] sm:$0xff]  ;;  %v1606_v22 = vadd.f32 %v6140_v33, %v7196_v43 }
 0x24d   :  { %v6365_v61 = vadd.f32 %v3852_v7, %v3851_v3  ;;  %v3854_v44 = vpop.f32.mrb[42].mxu1  ;;  %v1910_v24 = vmul.f32 %v6055_v28, %v7187_v48  ;;  %v3718_v48 = vmul.f32 -1.442695, %v2282_v54  ;;  %v2980_v37 = vadd.f32 %v2823_v16, %v2756_v55  ;;  %v7195_v16 = vld [vmem:[#allocation90_spill] sm:$0xff] }
 0x24e   :  { %v3855_v21 = vpop.f32.mrb[43].mxu1  ;;  %v1912_v54 = vmul.f32 %v6055_v28, %v7194_v50  ;;  %v2252_v53 = vmul.f32 %v6057_v11, %v7195_v16  ;;  %v7199_v60 = vld [vmem:[#allocation2_spill] sm:$0xff]  ;;  %v7201_v50 = vld [vmem:[#allocation20_spill] sm:$0xff] }
 0x24f   :  { %7185 = vst [vmem:[#allocation17_spill] sm:$0xff] %v6365_v61  ;;  %v6380_v3 = vadd.f32 %v3855_v21, %v3854_v44  ;;  %v6382_v7 = vpop.permute.xlu1 %2907  ;;  %v4235_v44 = vpop.eup %4234  ;;  %v2409_v21 = vadd.f32 1.0, %v4229_v2  ;;  %v3732_v61 = vmul.f32 -1.442695, %v2296_v8  ;;  %v2102_v36 = vadd.f32 %v6181_v18, %v1910_v24 }
 0x250   :  { %v6392_v15 = vpop.permute.xlu0 %2688  ;;  %3151 = vperm.xlu1 %4092, %v3097_v0   ;;  %3166 = vperm.xlu0 %4091, %v3100_v49   ;;  %v2303_v2 = vadd.f32 %v6289_v40, %v2107_v9  ;;  %4246 = vpow2.f32 %v3718_v48  ;;  %v4237_v62 = vpop.eup %4236  ;;  %v7197_v9 = vld [vmem:[#allocation91_spill] sm:$0xff] }
 0x251   :  { %7190 = vst [vmem:[#allocation61_spill] sm:$0xff] %v6380_v3  ;;  %v2103_v3 = vadd.f32 %v7193_v63, %v1911_v20  ;;  %v2421_v20 = vadd.f32 1.0, %v4235_v44  ;;  %4248 = vpow2.f32 %v3732_v61  ;;  %v2298_v40 = vadd.f32 %v6268_v59, %v2102_v36  ;;  %v7198_v36 = vld [vmem:[#allocation97_spill] sm:$0xff]  ;;  %v7200_v44 = vld [vmem:[#allocation98_spill] sm:$0xff] }
 0x252   :  { %4250 = vrcp.f32 %v2420_v27  ;;  %v2088_v48 = vadd.f32 %v7197_v9, %v1896_v26  ;;  %v2269_v27 = vmul.f32 %v6057_v11, %v7198_v36  ;;  %v1609_v33 = vadd.f32 %v7200_v44, %v7199_v60 }
 0x253   :  { %v2299_v45 = vadd.f32 %v2267_v13, %v2103_v3  ;;  %v2828_v0 = vpop.permute.xlu1 %2827  ;;  %v3857_v49 = vpop.f32.mrb[44].mxu1  ;;  %v3012_v13 = vmax.f32 %v2980_v37, 0.0  ;;  %4252 = vpow2.f32 %v3733_v30  ;;  %v2093_v30 = vadd.f32 %v7201_v50, %v6337_v51 }
 0x254   :  { %v2981_v8 = vadd.f32 %v2828_v0, %v2757_v5  ;;  %v6399_v57 = vpop.permute.xlu0 %2608  ;;  %3161 = vperm.xlu1 %4092, %v3099_v32   ;;  %3176 = vperm.xlu0 %4091, %v3102_v4   ;;  %v3858_v18 = vpop.f32.mrb[45].mxu1  ;;  %4254 = vrcp.f32 %v2421_v20  ;;  %v2104_v0 = vadd.f32 %v6198_v14, %v1912_v54  ;;  %v3106_v20 = vld [vmem:[%s6896_s13 + $0x70] sm:$0xff]  ;;  %v3739_v14 = vmul.f32 -1.442695, %v2303_v2 }
 0x255   :  { %v6410_v5 = vadd.f32 %v3858_v18, %v3857_v49  ;;  %v3860_v24 = vpop.f32.mrb[46].mxu1  ;;  %v4239_v4 = vpop.eup %4238  ;;  %v3735_v55 = vmul.f32 -1.442695, %v2299_v45  ;;  %4256 = vpow2.f32 %v6358_v41  ;;  %v3734_v45 = vmul.f32 -1.442695, %v2298_v40  ;;  %v3103_v49 = vld [vmem:[%s6896_s13 + $0x58] sm:$0xff] }
 0x256   :  { %v3013_v3 = vmax.f32 %v2981_v8, 0.0  ;;  %v3861_v32 = vpop.f32.mrb[47].mxu1  ;;  %v4241_v59 = vpop.eup %4240  ;;  %4258 = vrcp.f32 %v2409_v21  ;;  %v7202_v8 = vld [vmem:[#allocation82_spill] sm:$0xff]  ;;  %v2284_v54 = vadd.f32 %v2252_v53, %v2088_v48  ;;  %v6455_v48 = vadd.f32 %v6309_v47, %v2093_v30 }
 0x257   :  { %v6415_v58 = vadd.f32 %v3861_v32, %v3860_v24  ;;  %v6417_v61 = vpop.permute.xlu1 %2693  ;;  %v4243_v26 = vpop.eup %4242  ;;  %v2105_v18 = vadd.f32 %v7202_v8, %v6352_v1  ;;  %v2502_v41 = vmul.f32 %v4241_v59, %v1606_v22  ;;  %4260 = vrcp.f32 %v2411_v6  ;;  %v7204_v22 = vld [vmem:[#allocation18_spill] sm:$0xff] }
 0x258   :  { %v6423_v63 = vpack.c.bf16 %v3013_v3, %v3012_v13  ;;  %v6425_v37 = vpop.permute.xlu0 %2912  ;;  %3171 = vperm.xlu1 %4092, %v3101_v42   ;;  %3186 = vperm.xlu0 %4091, %v3104_v19   ;;  %v2422_v42 = vadd.f32 1.0, %v4239_v4  ;;  %v7203_v19 = vld [vmem:[#allocation30_spill] sm:$0xff]  ;;  %v2423_v24 = vadd.f32 1.0, %v4243_v26  ;;  %4262 = vpow2.f32 %v3735_v55  ;;  %v6443_v1 = vpop.eup %4244  ;;  %v3105_v4 = vld [vmem:[%s6896_s13 + $0x68] sm:$0xff]  ;;  %v7205_v55 = vld [vmem:[#allocation85_spill] sm:$0xff] }
 0x259   :  { %v6441_v51 = vmul.f32 %v6055_v28, %v7203_v19  ;;  %v2301_v43 = vadd.f32 %v2269_v27, %v2105_v18  ;;  %v2503_v13 = vmul.f32 %v4237_v62, %v1609_v33  ;;  %v1898_v32 = vmul.f32 %v6055_v28, %v7204_v22  ;;  %v3108_v62 = vld [vmem:[%s6896_s13 + $0x80] sm:$0xff]  ;;  %v7207_v33 = vld [vmem:[#allocation28_spill] sm:$0xff] }
 0x25a   :  { %4264 = vpow2.f32 %v3734_v45  ;;  %v2300_v6 = vadd.f32 %v6276_v29, %v2104_v0  ;;  %v4247_v9 = vpop.eup %4246  ;;  %v6459_v59 = vmul.f32 %v6055_v28, %v7205_v55  ;;  %v7206_v29 = vld [vmem:[#allocation67_spill] sm:$0xff]  ;;  %v3720_v44 = vmul.f32 -1.442695, %v2284_v54  ;;  %v7210_v54 = vld [vmem:[#allocation22_spill] sm:$0xff]  ;;  %v7213_v55 = vld [vmem:[#allocation69_spill] sm:$0xff] }
 0x25b   :  { %v2614_v16 = vpop.permute.xlu1 %2613  ;;  %v3863_v40 = vpop.f32.mrb[48].mxu1  ;;  %4266 = vrcp.f32 %v2422_v42  ;;  %v2534_v36 = vadd.f32 %v2502_v41, %v7206_v29  ;;  %v3737_v47 = vmul.f32 -1.442695, %v2301_v43  ;;  %v7209_v42 = vld [vmem:[#allocation87_spill] sm:$0xff] }
 0x25c   :  { %v2833_v3 = vpop.permute.xlu0 %2832  ;;  %3181 = vperm.xlu1 %4092, %v3103_v49   ;;  %3196 = vperm.xlu0 %4091, %v3106_v20   ;;  %v3864_v21 = vpop.f32.mrb[49].mxu1  ;;  %4268 = vpow2.f32 %v3739_v14  ;;  %v7208_v49 = vld [vmem:[#allocation70_spill] sm:$0xff]  ;;  %v1916_v41 = vmul.f32 %v6055_v28, %v7209_v42  ;;  %v3736_v19 = vmul.f32 -1.442695, %v2300_v6 }
 0x25d   :  { %v3865_v2 = vadd.f32 %v3864_v21, %v3863_v40  ;;  %v3866_v53 = vpop.f32.mrb[50].mxu1  ;;  %v4249_v60 = vpop.eup %4248  ;;  %4270 = vrcp.f32 %v2423_v24  ;;  %v2758_v30 = vmul.f32 %v6399_v57, %v2534_v36  ;;  %v2535_v20 = vadd.f32 %v2503_v13, %v7208_v49  ;;  %v3107_v24 = vld [vmem:[%s6896_s13 + $0x78] sm:$0xff]  ;;  %v3110_v57 = vld [vmem:[%s6896_s13 + $0x90] sm:$0xff] }
 0x25e   :  { %v3867_v27 = vpop.f32.mrb[51].mxu1  ;;  %v4251_v0 = vpop.eup %4250  ;;  %v7211_v13 = vld [vmem:[#allocation89_spill] sm:$0xff]  ;;  %v2424_v22 = vadd.f32 1.0, %v4249_v60  ;;  %4272 = vpow2.f32 %v3720_v44  ;;  %v7214_v60 = vld [vmem:[#allocation72_spill] sm:$0xff] }
 0x25f   :  { %v1662_v26 = vadd.f32 %v3865_v2, %v7207_v33  ;;  %v3868_v50 = vadd.f32 %v3867_v27, %v3866_v53  ;;  %v6463_v45 = vpop.permute.xlu1 %2917  ;;  %v4253_v18 = vpop.eup %4252  ;;  %v6480_v21 = vmul.f32 %v6055_v28, %v7211_v13  ;;  %v2759_v2 = vmul.f32 %v2614_v16, %v2535_v20  ;;  %v3109_v20 = vld [vmem:[%s6896_s13 + $0x88] sm:$0xff] }
 0x260   :  { %v6467_v8 = vpop.permute.xlu0 %2698  ;;  %3191 = vperm.xlu1 %4092, %v3105_v4   ;;  %3206 = vperm.xlu0 %4091, %v3108_v62   ;;  %v4255_v43 = vpop.eup %4254  ;;  %v2982_v53 = vadd.f32 %v2833_v3, %v2758_v30  ;;  %v7212_v4 = vld [vmem:[#allocation92_spill] sm:$0xff]  ;;  %4274 = vpow2.f32 %v3737_v47 }
 0x261   :  { %v2516_v14 = vmul.f32 %v4251_v0, %v1662_v26  ;;  %v1665_v40 = vadd.f32 %v3868_v50, %v7210_v54  ;;  %v6482_v6 = vpop.eup %4256  ;;  %v2090_v62 = vadd.f32 %v7212_v4, %v1898_v32  ;;  %v2410_v50 = vadd.f32 1.0, %v4247_v9  ;;  %v3112_v9 = vld [vmem:[%s6896_s13 + $0xa0] sm:$0xff] }
 0x262   :  { %v4259_v26 = vpop.eup %4258  ;;  %v2425_v0 = vadd.f32 1.0, %v4253_v18  ;;  %4276 = vpow2.f32 %v3736_v19  ;;  %v3014_v19 = vmax.f32 %v2982_v53, 0.0 }
 0x263   :  { %v2548_v29 = vadd.f32 %v2516_v14, %v7213_v55  ;;  %v2517_v36 = vmul.f32 %v4255_v43, %v1665_v40  ;;  %v2838_v27 = vpop.permute.xlu1 %2837  ;;  %v3869_v33 = vpop.f32.mrb[52].mxu1  ;;  %4278 = vrcp.f32 %v2424_v22  ;;  %v7215_v14 = vld [vmem:[#allocation53_spill] sm:$0xff]  ;;  %v7216_v43 = vld [vmem:[#allocation8_spill] sm:$0xff] }
 0x264   :  { %v2983_v49 = vadd.f32 %v2838_v27, %v2759_v2  ;;  %v6486_v42 = vpop.permute.xlu0 %2618  ;;  %3201 = vperm.xlu1 %4092, %v3107_v24   ;;  %3216 = vperm.xlu0 %4091, %v3110_v57   ;;  %v3870_v16 = vpop.f32.mrb[53].mxu1  ;;  %v1617_v54 = vadd.f32 %v6179_v34, %v7215_v14  ;;  %4280 = vrcp.f32 %v2425_v0  ;;  %v2108_v34 = vadd.f32 %v6241_v38, %v1916_v41  ;;  %v7218_v0 = vld [vmem:[#allocation99_spill] sm:$0xff] }
 0x265   :  { %v6488_v3 = vpop.eup %4260  ;;  %v2549_v32 = vadd.f32 %v2517_v36, %v7214_v60  ;;  %v3871_v44 = vadd.f32 %v3870_v16, %v3869_v33  ;;  %v3872_v30 = vpop.f32.mrb[54].mxu1  ;;  %v2772_v47 = vmul.f32 %v6297_v25, %v2548_v29  ;;  %v2254_v25 = vmul.f32 %v6057_v11, %v6175_v35  ;;  %v3114_v35 = vld [vmem:[%s6896_s13 + $0xb0] sm:$0xff] }
 0x266   :  { %v4263_v18 = vpop.eup %4262  ;;  %v3015_v40 = vmax.f32 %v2983_v49, 0.0  ;;  %v3873_v24 = vpop.f32.mrb[55].mxu1  ;;  %v2270_v60 = vmul.f32 %v6057_v11, %v7218_v0  ;;  %4282 = vrcp.f32 %v2410_v50  ;;  %v7221_v50 = vld [vmem:[#allocation75_spill] sm:$0xff] }
 0x267   :  { %v4265_v57 = vpop.eup %4264  ;;  %v1670_v13 = vadd.f32 %v3871_v44, %v7216_v43  ;;  %v3874_v2 = vadd.f32 %v3873_v24, %v3872_v30  ;;  %v6501_v4 = vpop.permute.xlu1 %2703  ;;  %v2773_v55 = vmul.f32 %v6299_v39, %v2549_v32  ;;  %v2996_v36 = vadd.f32 %v6333_v46, %v2772_v47  ;;  %v7217_v39 = vld [vmem:[#allocation38_spill] sm:$0xff]  ;;  %v3111_v46 = vld [vmem:[%s6896_s13 + $0x98] sm:$0xff] }
 0x268   :  { %v4267_v27 = vpop.eup %4266  ;;  %v6508_v22 = vpack.c.bf16 %v3015_v40, %v3014_v19  ;;  %v6510_v53 = vpop.permute.xlu0 %2922  ;;  %3211 = vperm.xlu1 %4092, %v3109_v20   ;;  %3226 = vperm.xlu0 %4091, %v3112_v9   ;;  %v2427_v33 = vadd.f32 1.0, %v4263_v18  ;;  %v2426_v32 = vadd.f32 1.0, %v4265_v57  ;;  %v2272_v44 = vmul.f32 %v6057_v11, %v6196_v31  ;;  %v7219_v20 = vld [vmem:[#allocation68_spill] sm:$0xff] }
 0x269   :  { %v6512_v29 = vpop.eup %4268  ;;  %v2518_v49 = vmul.f32 %v4267_v27, %v1670_v13  ;;  %v1673_v16 = vadd.f32 %v3874_v2, %v7217_v39  ;;  %v2997_v38 = vadd.f32 %v6382_v7, %v2773_v55  ;;  %v2505_v30 = vmul.f32 %v4259_v26, %v1617_v54  ;;  %v7220_v26 = vld [vmem:[#allocation71_spill] sm:$0xff] }
 0x26a   :  { %v4271_v41 = vpop.eup %4270  ;;  %v3028_v19 = vmax.f32 %v2996_v36, 0.0  ;;  %v6527_v24 = vadd.f32 %v2254_v25, %v2090_v62  ;;  %v2106_v7 = vadd.f32 %v6219_v52, %v6459_v59  ;;  %v2304_v43 = vadd.f32 %v2272_v44, %v2108_v34  ;;  %v3113_v62 = vld [vmem:[%s6896_s13 + $0xa8] sm:$0xff]  ;;  %v3116_v52 = vld [vmem:[%s6896_s13 + $0xc0] sm:$0xff]  ;;  %v7222_v25 = vld [vmem:[#allocation76_spill] sm:$0xff] }
 0x26b   :  { %v2550_v9 = vadd.f32 %v2518_v49, %v7219_v20  ;;  %v2519_v47 = vmul.f32 %v4271_v41, %v1673_v16  ;;  %v2624_v18 = vpop.permute.xlu1 %2623  ;;  %v3875_v14 = vpop.f32.mrb[56].mxu1  ;;  %v3029_v40 = vmax.f32 %v2997_v38, 0.0  ;;  %4284 = vrcp.f32 %v2427_v33  ;;  %v7223_v16 = vld [vmem:[#allocation64_spill] sm:$0xff]  ;;  %v7225_v38 = vld [vmem:[#allocation27_spill] sm:$0xff] }
 0x26c   :  { %v2843_v13 = vpop.permute.xlu0 %2842  ;;  %3221 = vperm.xlu1 %4092, %v3111_v46   ;;  %3236 = vperm.xlu0 %4091, %v3114_v35   ;;  %v3876_v57 = vpop.f32.mrb[57].mxu1  ;;  %4286 = vrcp.f32 %v2426_v32  ;;  %v2536_v27 = vadd.f32 %v6194_v17, %v7221_v50  ;;  %v2537_v34 = vadd.f32 %v2505_v30, %v7222_v25  ;;  %v7224_v46 = vld [vmem:[#allocation100_spill] sm:$0xff]  ;;  %v2302_v17 = vadd.f32 %v2270_v60, %v2106_v7 }
 0x26d   :  { %v6531_v31 = vpop.eup %4272  ;;  %v2551_v54 = vadd.f32 %v2519_v47, %v7220_v26  ;;  %v3877_v2 = vadd.f32 %v3876_v57, %v3875_v14  ;;  %v3878_v55 = vpop.f32.mrb[58].mxu1  ;;  %v3084_v36 = vpack.c.bf16 %v3029_v40, %v3028_v19  ;;  %v2774_v49 = vmul.f32 %v6392_v15, %v2550_v9  ;;  %v7226_v40 = vld [vmem:[#allocation24_spill] sm:$0xff] }
 0x26e   :  { %v4275_v59 = vpop.eup %4274  ;;  %v3879_v33 = vpop.f32.mrb[59].mxu1  ;;  %v6546_v35 = vadd.f32 %v7224_v46, %v7223_v16  ;;  %v3740_v47 = vmul.f32 -1.442695, %v2304_v43  ;;  %v2760_v30 = vmul.f32 %v6486_v42, %v2536_v27  ;;  %v2110_v9 = vadd.f32 %v6264_v56, %v6480_v21  ;;  %v3118_v42 = vld [vmem:[%s6896_s13 + $0xd0] sm:$0xff] }
 0x26f   :  { %v4277_v39 = vpop.eup %4276  ;;  %v1678_v41 = vadd.f32 %v3877_v2, %v7225_v38  ;;  %v3880_v0 = vadd.f32 %v3879_v33, %v3878_v55  ;;  %v6549_v44 = vpop.permute.xlu1 %2927  ;;  %3911 = vmatprep.subr.bf16.mxu0 %v3084_v36  ;;  %v2775_v32 = vmul.f32 %v6417_v61, %v2551_v54  ;;  %v2998_v15 = vadd.f32 %v6425_v37, %v2774_v49  ;;  %v3115_v61 = vld [vmem:[%s6896_s13 + $0xb8] sm:$0xff]  ;;  %v3117_v49 = vld [vmem:[%s6896_s13 + $0xc8] sm:$0xff] }
 0x270   :  { %v4279_v20 = vpop.eup %4278  ;;  %v6553_v14 = vpop.permute.xlu0 %2708  ;;  %3231 = vperm.xlu1 %4092, %v3113_v62   ;;  %3246 = vperm.xlu0 %4091, %v3116_v52   ;;  %v2429_v37 = vadd.f32 1.0, %v4275_v59  ;;  %v2428_v43 = vadd.f32 1.0, %v4277_v39  ;;  %v2761_v26 = vmul.f32 %v2624_v18, %v2537_v34  ;;  %v2984_v56 = vadd.f32 %v2843_v13, %v2760_v30  ;;  %v7227_v54 = vld [vmem:[#allocation77_spill] sm:$0xff]  ;;  %v7228_v13 = vld [vmem:[#allocation80_spill] sm:$0xff] }
 0x271   :  { %v2520_v19 = vmul.f32 %v4279_v20, %v1678_v41  ;;  %v1681_v57 = vadd.f32 %v3880_v0, %v7226_v40  ;;  %3912 = vmatpush3.bf16.msra.mxu0 %v6423_v63  ;;  %v2999_v60 = vadd.f32 %v6463_v45, %v2775_v32  ;;  %v4281_v7 = vpop.eup %4280  ;;  %v2274_v21 = vmul.f32 %v6057_v11, %v6235_v10  ;;  %v3120_v0 = vld [vmem:[%s6896_s13 + $0xe0] sm:$0xff]  ;;  %v7230_v40 = vld [vmem:[#allocation40_spill] sm:$0xff] }
 0x272   :  { %v3738_v52 = vmul.f32 -1.442695, %v2302_v17  ;;  %4288 = vpow2.f32 %v3740_v47  ;;  %v3030_v59 = vmax.f32 %v2998_v15, 0.0  ;;  %v4283_v39 = vpop.eup %4282  ;;  %v3016_v16 = vmax.f32 %v2984_v56, 0.0  ;;  %v7229_v17 = vld [vmem:[#allocation43_spill] sm:$0xff] }
 0x273   :  { %v2552_v63 = vadd.f32 %v2520_v19, %v7227_v54  ;;  %v2521_v2 = vmul.f32 %v4281_v7, %v1681_v57  ;;  %v2848_v55 = vpop.permute.xlu1 %2847  ;;  %v3881_v36 = vpop.f32.mrb[60].mxu1  ;;  %v3031_v62 = vmax.f32 %v2999_v60, 0.0  ;;  %v2306_v18 = vadd.f32 %v2274_v21, %v2110_v9  ;;  %v7231_v57 = vld [vmem:[#allocation102_spill] sm:$0xff] }
 0x274   :  { %v2985_v50 = vadd.f32 %v2848_v55, %v2761_v26  ;;  %v6570_v27 = vpop.permute.xlu0 %2628  ;;  %3241 = vperm.xlu1 %4092, %v3115_v61   ;;  %3256 = vperm.xlu0 %4091, %v3118_v42   ;;  %v3882_v45 = vpop.f32.mrb[61].mxu1  ;;  %4290 = vrcp.f32 %v2428_v43  ;;  %v3722_v19 = vmul.f32 -1.442695, %v6527_v24  ;;  %v1625_v61 = vadd.f32 %v7231_v57, %v7230_v40  ;;  %v3119_v24 = vld [vmem:[%s6896_s13 + $0xd8] sm:$0xff] }
 0x275   :  { %v2553_v25 = vadd.f32 %v2521_v2, %v7228_v13  ;;  %v2776_v10 = vmul.f32 %v6467_v8, %v2552_v63  ;;  %v3883_v34 = vadd.f32 %v3882_v45, %v3881_v36  ;;  %v3884_v33 = vpop.f32.mrb[62].mxu1  ;;  %v3085_v41 = vpack.c.bf16 %v3031_v62, %v3030_v59  ;;  %v4285_v32 = vpop.eup %4284  ;;  %v7235_v59 = vld [vmem:[#allocation23_spill] sm:$0xff]  ;;  %v7241_v40 = vld [vmem:[#allocation93_spill] sm:$0xff] }
 0x276   :  { %v3017_v46 = vmax.f32 %v2985_v50, 0.0  ;;  %v3885_v38 = vpop.f32.mrb[63].mxu1  ;;  %v4287_v9 = vpop.eup %4286  ;;  %4292 = vrcp.f32 %v2429_v37  ;;  %v3742_v7 = vmul.f32 -1.442695, %v2306_v18  ;;  %v7233_v37 = vld [vmem:[#allocation86_spill] sm:$0xff]  ;;  %v2412_v21 = vadd.f32 1.0, %v6531_v31 }
 0x277   :  { %v2777_v20 = vmul.f32 %v6501_v4, %v2553_v25  ;;  %v3000_v8 = vadd.f32 %v6510_v53, %v2776_v10  ;;  %v1686_v47 = vadd.f32 %v3883_v34, %v7229_v17  ;;  %v3886_v30 = vadd.f32 %v3885_v38, %v3884_v33  ;;  %v2714_v15 = vpop.permute.xlu1 %2713  ;;  %3913 = vmatprep.subr.bf16.mxu0 %v3085_v41  ;;  %v7232_v53 = vld [vmem:[#allocation21_spill] sm:$0xff]  ;;  %v7236_v13 = vld [vmem:[#allocation79_spill] sm:$0xff] }
 0x278   :  { %v3078_v42 = vpack.c.bf16 %v3017_v46, %v3016_v16  ;;  %v2933_v60 = vpop.permute.xlu0 %2932  ;;  %3251 = vperm.xlu1 %4092, %v3117_v49   ;;  %3266 = vperm.xlu0 %4091, %v3120_v0   ;;  %v2109_v56 = vadd.f32 %v7233_v37, %v6441_v51  ;;  %4294 = vpow2.f32 %v3738_v52  ;;  %v2506_v54 = vmul.f32 %v4283_v39, %v6546_v35  ;;  %v7238_v38 = vld [vmem:[#allocation101_spill] sm:$0xff] }
 0x279   :  { %v3001_v4 = vadd.f32 %v6549_v44, %v2777_v20  ;;  %v2522_v43 = vmul.f32 %v4287_v9, %v1686_v47  ;;  %v1689_v26 = vadd.f32 %v3886_v30, %v7232_v53  ;;  %3914 = vmatpush3.bf16.msra.mxu0 %v6508_v22  ;;  %v3122_v44 = vld [vmem:[%s6896_s13 + $0xf0] sm:$0xff]  ;;  %v3032_v63 = vmax.f32 %v3000_v8, 0.0  ;;  %v7234_v22 = vld [vmem:[#allocation74_spill] sm:$0xff] }
 0x27a   :  { %v2413_v45 = vadd.f32 1.0, %v6443_v1  ;;  %v1900_v51 = vmul.f32 %v6055_v28, %v7235_v59  ;;  %4296 = vpow2.f32 %v3722_v19  ;;  %v2507_v31 = vmul.f32 %v6488_v3, %v1625_v61  ;;  %v3121_v1 = vld [vmem:[%s6896_s13 + $0xe8] sm:$0xff]  ;;  %v7237_v3 = vld [vmem:[#allocation73_spill] sm:$0xff]  ;;  %v7239_v47 = vld [vmem:[#allocation78_spill] sm:$0xff] }
 0x27b   :  { %v3033_v2 = vmax.f32 %v3001_v4, 0.0  ;;  %v2523_v55 = vmul.f32 %v4285_v32, %v1689_v26  ;;  %v2554_v36 = vadd.f32 %v2522_v43, %v7234_v22  ;;  %v2634_v62 = vpop.permute.xlu1 %2633  ;;  %v3887_v50 = vpop.f32.mrb[64].mxu1  ;;  %4298 = vpow2.f32 %v3742_v7  ;;  %v7240_v9 = vld [vmem:[#allocation62_spill] sm:$0xff] }
 0x27c   :  { %v2853_v35 = vpop.permute.xlu0 %2852  ;;  %3261 = vperm.xlu1 %4092, %v3119_v24   ;;  %v3888_v52 = vpop.f32.mrb[65].mxu1  ;;  %3276 = vperm.xlu0 %4091, %v3122_v44   ;;  %v2305_v49 = vadd.f32 %v6305_v12, %v2109_v56  ;;  %4300 = vrcp.f32 %v2412_v21  ;;  %v2538_v39 = vadd.f32 %v2506_v54, %v7237_v3  ;;  %v2256_v41 = vmul.f32 %v6057_v11, %v7238_v38  ;;  %v7246_v3 = vld [vmem:[#allocation104_spill] sm:$0xff] }
 0x27d   :  { %v3086_v18 = vpack.c.bf16 %v3033_v2, %v3032_v63  ;;  %v2555_v25 = vadd.f32 %v2523_v55, %v7236_v13  ;;  %v2778_v10 = vmul.f32 %v6553_v14, %v2554_v36  ;;  %v3890_v34 = vpop.f32.mrb[66].mxu1  ;;  %v4289_v33 = vpop.eup %4288  ;;  %v3889_v16 = vadd.f32 %v3888_v52, %v3887_v50 }
 0x27e   :  { %v3891_v46 = vpop.f32.mrb[67].mxu1  ;;  %v4291_v8 = vpop.eup %4290  ;;  %v2762_v17 = vmul.f32 %v6570_v27, %v2538_v39  ;;  %v2539_v30 = vadd.f32 %v2507_v31, %v7239_v47  ;;  %4302 = vrcp.f32 %v2413_v45  ;;  %v2092_v57 = vadd.f32 %v7241_v40, %v1900_v51  ;;  %v7242_v27 = vld [vmem:[#allocation39_spill] sm:$0xff] }
 0x27f   :  { %v2779_v0 = vmul.f32 %v2714_v15, %v2555_v25  ;;  %v3002_v32 = vadd.f32 %v2933_v60, %v2778_v10  ;;  %v3892_v14 = vadd.f32 %v3891_v46, %v3890_v34  ;;  %v2938_v20 = vpop.permute.xlu1 %2937  ;;  %3915 = vmatprep.subr.bf16.mxu0 %v3086_v18  ;;  %v1694_v12 = vadd.f32 %v3889_v16, %v7240_v9  ;;  %v3123_v15 = vld [vmem:[%s6896_s13 + $0xf8] sm:$0xff] }
 0x280   :  { %v2719_v19 = vpop.permute.xlu0 %2718  ;;  %3271 = vperm.xlu1 %4092, %v3121_v1   ;;  %3916 = vmatpush3.bf16.msra.mxu0 %v3078_v42  ;;  %v2432_v61 = vadd.f32 1.0, %v4289_v33  ;;  %v4293_v60 = vpop.eup %4292  ;;  %v2763_v4 = vmul.f32 %v2634_v62, %v2539_v30  ;;  %v2986_v43 = vadd.f32 %v2853_v35, %v2762_v17  ;;  %v3725_v24 = vmul.f32 -1.442695, %v6455_v48  ;;  %v7243_v62 = vld [vmem:[#allocation15_spill] sm:$0xff]  ;;  %v7244_v35 = vld [vmem:[#allocation5_spill] sm:$0xff]  ;;  %v7248_v17 = vld [vmem:[#allocation14_spill] sm:$0xff] }
 0x281   :  { %v3003_v7 = vadd.f32 %v2938_v20, %v2779_v0  ;;  %v1697_v53 = vadd.f32 %v3892_v14, %v7242_v27  ;;  %v2524_v26 = vmul.f32 %v4291_v8, %v1694_v12  ;;  %v3034_v37 = vmax.f32 %v3002_v32, 0.0  ;;  %v7247_v14 = vld [vmem:[#allocation13_spill] sm:$0xff]  ;;  %v7252_v27 = vld [vmem:[#allocation88_spill] sm:$0xff] }
 0x282   :  { %v4295_v54 = vpop.eup %4294  ;;  %v2431_v44 = vadd.f32 1.0, %v6512_v29  ;;  %v3741_v63 = vmul.f32 -1.442695, %v2305_v49  ;;  %v2288_v2 = vadd.f32 %v2256_v41, %v2092_v57  ;;  %4304 = vrcp.f32 %v2432_v61  ;;  %v7245_v49 = vld [vmem:[#allocation12_spill] sm:$0xff]  ;;  %v7249_v30 = vld [vmem:[#allocation45_spill] sm:$0xff] }
 0x283   :  { %v3035_v56 = vmax.f32 %v3003_v7, 0.0  ;;  %v2858_v42 = vpop.permute.xlu1 %2857  ;;  %v3893_v21 = vpop.f32.mrb[68].mxu1  ;;  %v1630_v50 = vadd.f32 %v6244_v23, %v7243_v62  ;;  %v3018_v31 = vmax.f32 %v2986_v43, 0.0  ;;  %v2556_v52 = vadd.f32 %v2524_v26, %v7244_v35  ;;  %v7250_v57 = vld [vmem:[#allocation57_spill] sm:$0xff] }
 0x284   :  { %v2987_v55 = vadd.f32 %v2858_v42, %v2763_v4  ;;  %v2639_v22 = vpop.permute.xlu0 %2638  ;;  %3281 = vperm.xlu1 %4092, %v3123_v15   ;;  %v3894_v36 = vpop.f32.mrb[69].mxu1  ;;  %v2525_v13 = vmul.f32 %v4293_v60, %v1697_v53  ;;  %4306 = vpow2.f32 %v3725_v24  ;;  %v2430_v10 = vadd.f32 1.0, %v4295_v54  ;;  %v7251_v4 = vld [vmem:[#allocation26_spill] sm:$0xff] }
 0x285   :  { %v3087_v45 = vpack.c.bf16 %v3035_v56, %v3034_v37  ;;  %v6625_v59 = vadd.f32 %v3894_v36, %v3893_v21  ;;  %v3896_v48 = vpop.f32.mrb[70].mxu1  ;;  %v4297_v51 = vpop.eup %4296  ;;  %4308 = vpow2.f32 %v3741_v63  ;;  %v3724_v23 = vmul.f32 -1.442695, %v2288_v2  ;;  %v7253_v37 = vld [vmem:[#allocation34_spill] sm:$0xff]  ;;  %v7254_v63 = vld [vmem:[#allocation29_spill] sm:$0xff]  ;;  %v7255_v2 = vld [vmem:[#allocation103_spill] sm:$0xff] }
 0x286   :  { %v3019_v18 = vmax.f32 %v2987_v55, 0.0  ;;  %v3897_v29 = vpop.f32.mrb[71].mxu1  ;;  %v4299_v25 = vpop.eup %4298  ;;  %v1633_v39 = vadd.f32 %v7246_v3, %v7245_v49  ;;  %4310 = vrcp.f32 %v2431_v44  ;;  %v2414_v38 = vadd.f32 1.0, %v4297_v51  ;;  %v7256_v36 = vld [vmem:[#allocation36_spill] sm:$0xff]  ;;  %v7257_v51 = vld [vmem:[#allocation55_spill] sm:$0xff] }
 0x287   :  { %v6628_v34 = vadd.f32 %v3897_v29, %v3896_v48  ;;  %v2724_v1 = vpop.permute.xlu1 %2723  ;;  %3917 = vmatprep.subr.bf16.mxu0 %v3087_v45  ;;  %v4301_v33 = vpop.eup %4300  ;;  %v2434_v41 = vadd.f32 1.0, %v4299_v25  ;;  %v2780_v0 = vmul.f32 %v2719_v19, %v2556_v52  ;;  %v2557_v20 = vadd.f32 %v2525_v13, %v7247_v14  ;;  %v7258_v13 = vld [vmem:[#allocation95_spill] sm:$0xff] }
 0x288   :  { %v3079_v16 = vpack.c.bf16 %v3019_v18, %v3018_v31  ;;  %v2943_v46 = vpop.permute.xlu0 %2942  ;;  %v2508_v32 = vmul.f32 %v4301_v33, %v1630_v50  ;;  %v4303_v8 = vpop.eup %4302  ;;  %v1903_v47 = vmul.f32 %v6055_v28, %v7248_v17  ;;  %v1919_v9 = vmul.f32 %v6055_v28, %v7249_v30 }
 0x289   :  { %4312 = vrcp.f32 %v2430_v10  ;;  %v2275_v61 = vmul.f32 %v6057_v11, %v7250_v57  ;;  %v2415_v7 = vadd.f32 1.0, %v6482_v6  ;;  %v2509_v19 = vmul.f32 %v4303_v8, %v1633_v39  ;;  %v7259_v10 = vld [vmem:[#allocation31_spill] sm:$0xff] }
 0x28a   :  { %3918 = vmatpush3.bf16.msra.mxu0 %v3079_v16  ;;  %4314 = vpow2.f32 %v3724_v23  ;;  %v2095_v43 = vadd.f32 %v7251_v4, %v1903_v47  ;;  %v2111_v53 = vadd.f32 %v7252_v27, %v1919_v9  ;;  %v2540_v56 = vadd.f32 %v2508_v32, %v7253_v37  ;;  %v7261_v32 = vld [vmem:[#allocation37_spill] sm:$0xff]  ;;  %v7262_v27 = vld [vmem:[#allocation44_spill] sm:$0xff] }
 0x28b   :  { %v2644_v12 = vpop.permute.xlu1 %2643  ;;  %v3899_v40 = vpop.f32.mrb[72].mxu1  ;;  %4316 = vrcp.f32 %v2414_v38  ;;  %v2781_v42 = vmul.f32 %v2724_v1, %v2557_v20  ;;  %v3004_v21 = vadd.f32 %v2943_v46, %v2780_v0  ;;  %v1902_v6 = vmul.f32 %v6055_v28, %v7254_v63  ;;  %v7263_v37 = vld [vmem:[#allocation60_spill] sm:$0xff] }
 0x28c   :  { %v2863_v15 = vpop.permute.xlu0 %2862  ;;  %v3900_v60 = vpop.f32.mrb[73].mxu1  ;;  %4318 = vrcp.f32 %v2434_v41  ;;  %v2258_v55 = vmul.f32 %v6057_v11, %v7255_v2  ;;  %v2764_v48 = vmul.f32 %v2639_v22, %v2540_v56  ;;  %v2541_v31 = vadd.f32 %v2509_v19, %v7257_v51  ;;  %v7260_v22 = vld [vmem:[#allocation59_spill] sm:$0xff] }
 0x28d   :  { %v3901_v26 = vadd.f32 %v3900_v60, %v3899_v40  ;;  %v3902_v24 = vpop.f32.mrb[74].mxu1  ;;  %v4305_v44 = vpop.eup %4304  ;;  %4320 = vrcp.f32 %v2415_v7  ;;  %v2307_v29 = vadd.f32 %v2275_v61, %v2111_v53  ;;  %v2094_v25 = vadd.f32 %v7258_v13, %v1902_v6 }
 0x28e   :  { %v3903_v54 = vpop.f32.mrb[75].mxu1  ;;  %v4307_v18 = vpop.eup %4306  ;;  %v1702_v28 = vadd.f32 %v6625_v59, %v7259_v10  ;;  %v3036_v23 = vmax.f32 %v3004_v21, 0.0  ;;  %v2765_v49 = vmul.f32 %v2644_v12, %v2541_v31  ;;  %v2988_v3 = vadd.f32 %v2863_v15, %v2764_v48  ;;  %v7266_v21 = vld [vmem:[#allocation106_spill] sm:$0xff] }
 0x28f   :  { %v1710_v62 = vadd.f32 %v3901_v26, %v7256_v36  ;;  %v6648_v50 = vadd.f32 %v3903_v54, %v3902_v24  ;;  %v2948_v45 = vpop.permute.xlu1 %2947  ;;  %v4309_v33 = vpop.eup %4308  ;;  %v2259_v46 = vmul.f32 %v6057_v11, %v7260_v22  ;;  %v2290_v38 = vadd.f32 %v2258_v55, %v2094_v25  ;;  %v7270_v22 = vld [vmem:[#allocation47_spill] sm:$0xff] }
 0x290   :  { %v3005_v35 = vadd.f32 %v2948_v45, %v2781_v42  ;;  %v2729_v52 = vpop.permute.xlu0 %2728  ;;  %v4311_v16 = vpop.eup %4310  ;;  %v1705_v14 = vadd.f32 %v6628_v34, %v7261_v32  ;;  %v3743_v57 = vmul.f32 -1.442695, %v2307_v29  ;;  %v3020_v61 = vmax.f32 %v2988_v3, 0.0  ;;  %v7265_v42 = vld [vmem:[#allocation52_spill] sm:$0xff] }
 0x291   :  { %v6654_v1 = vmul.f32 %v4305_v44, %v1710_v62  ;;  %v2291_v30 = vadd.f32 %v2259_v46, %v2095_v43  ;;  %v2433_v60 = vadd.f32 1.0, %v4309_v33  ;;  %v3726_v4 = vmul.f32 -1.442695, %v2290_v38  ;;  %v7264_v43 = vld [vmem:[#allocation105_spill] sm:$0xff]  ;;  %v7267_v62 = vld [vmem:[#allocation35_spill] sm:$0xff]  ;;  %v7268_v29 = vld [vmem:[#allocation56_spill] sm:$0xff] }
 0x292   :  { %v3037_v39 = vmax.f32 %v3005_v35, 0.0  ;;  %v1638_v56 = vadd.f32 %v7264_v43, %v7263_v37  ;;  %v1641_v54 = vadd.f32 %v7266_v21, %v7265_v42  ;;  %v2527_v63 = vmul.f32 %v4311_v16, %v1705_v14  ;;  %v7269_v33 = vld [vmem:[#allocation19_spill] sm:$0xff] }
 0x293   :  { %v2868_v41 = vpop.permute.xlu1 %2867  ;;  %v3905_v0 = vpop.f32.mrb[76].mxu1  ;;  %4322 = vpow2.f32 %v3743_v57  ;;  %v3727_v51 = vmul.f32 -1.442695, %v2291_v30 }
 0x294   :  { %v3088_v20 = vpack.c.bf16 %v3037_v39, %v3036_v23  ;;  %v2989_v8 = vadd.f32 %v2868_v41, %v2765_v49  ;;  %v2649_v59 = vpop.permute.xlu0 %2648  ;;  %v3906_v17 = vpop.f32.mrb[77].mxu1  ;;  %4324 = vrcp.f32 %v2433_v60  ;;  %v2559_v13 = vadd.f32 %v2527_v63, %v7268_v29 }
 0x295   :  { %v4313_v47 = vpop.eup %4312  ;;  %v3907_v9 = vadd.f32 %v3906_v17, %v3905_v0  ;;  %v3908_v12 = vpop.f32.mrb[78].mxu1  ;;  %4326 = vpow2.f32 %v3726_v4  ;;  %v7274_v4 = vld [vmem:[#allocation10_spill] sm:$0xff] }
 0x296   :  { %v4315_v40 = vpop.eup %4314  ;;  %v2526_v7 = vmul.f32 %v4313_v47, %v1702_v28  ;;  %v3021_v19 = vmax.f32 %v2989_v8, 0.0  ;;  %v3909_v11 = vpop.f32.mrb[79].mxu1  ;;  %3919 = vmatprep.subr.bf16.mxu0 %v3088_v20  ;;  %v2417_v28 = vadd.f32 1.0, %v4307_v18  ;;  %v7271_v18 = vld [vmem:[#allocation9_spill] sm:$0xff] }
 0x297   :  { %v4317_v15 = vpop.eup %4316  ;;  %v1718_v34 = vadd.f32 %v3907_v9, %v7262_v27  ;;  %v6661_v53 = vadd.f32 %v3909_v11, %v3908_v12  ;;  %v2734_v26 = vpop.permute.xlu1 %2733  ;;  %v2416_v2 = vadd.f32 1.0, %v4315_v40  ;;  %v1713_v17 = vadd.f32 %v6648_v50, %v7271_v18  ;;  %v7272_v11 = vld [vmem:[#allocation58_spill] sm:$0xff]  ;;  %v7275_v27 = vld [vmem:[#allocation61_spill] sm:$0xff] }
 0x298   :  { %v4319_v24 = vpop.eup %4318  ;;  %v3080_v44 = vpack.c.bf16 %v3021_v19, %v3020_v61  ;;  %v2953_v6 = vpop.permute.xlu0 %2952  ;;  %v2558_v45 = vadd.f32 %v2526_v7, %v7267_v62  ;;  %v2510_v48 = vmul.f32 %v4317_v15, %v1638_v56  ;;  %v2783_v49 = vmul.f32 %v2734_v26, %v2559_v13  ;;  %v7273_v15 = vld [vmem:[#allocation17_spill] sm:$0xff]  ;;  %v7276_v56 = vld [vmem:[#allocation11_spill] sm:$0xff] }
 0x299   :  { %v6667_v55 = vmul.f32 %v4319_v24, %v1718_v34  ;;  %v4321_v36 = vpop.eup %4320  ;;  %4328 = vrcp.f32 %v2416_v2  ;;  %v1646_v60 = vadd.f32 %v7273_v15, %v7272_v11  ;;  %v1649_v34 = vadd.f32 %v7275_v27, %v7274_v4 }
 0x29a   :  { %3920 = vmatpush3.bf16.msra.mxu0 %v3080_v44  ;;  %v2782_v35 = vmul.f32 %v2729_v52, %v2558_v45  ;;  %v2511_v25 = vmul.f32 %v4321_v36, %v1641_v54  ;;  %v2542_v23 = vadd.f32 %v2510_v48, %v7269_v33  ;;  %4330 = vpow2.f32 %v3727_v51  ;;  %v7278_v48 = vld [vmem:[#allocation3_spill] sm:$0xff] }
 0x29b   :  { %v2654_v31 = vpop.permute.xlu1 %2653  ;;  %4332 = vrcp.f32 %v2417_v28  ;;  %v2560_v42 = vadd.f32 %v6654_v1, %v7276_v56 }
 0x29c   :  { %v2873_v10 = vpop.permute.xlu0 %2872  ;;  %v3006_v3 = vadd.f32 %v2953_v6, %v2782_v35  ;;  %v2766_v16 = vmul.f32 %v2649_v59, %v2542_v23  ;;  %v2543_v46 = vadd.f32 %v2511_v25, %v7270_v22  ;;  %v7277_v6 = vld [vmem:[#allocation25_spill] sm:$0xff] }
 0x29d   :  { %v4323_v8 = vpop.eup %4322  ;;  %v7279_v25 = vld [vmem:[#allocation49_spill] sm:$0xff] }
 0x29e   :  { %v3038_v0 = vmax.f32 %v3006_v3, 0.0  ;;  %v2767_v52 = vmul.f32 %v2654_v31, %v2543_v46  ;;  %v2990_v32 = vadd.f32 %v2873_v10, %v2766_v16  ;;  %v4325_v12 = vpop.eup %4324  ;;  %v2435_v7 = vadd.f32 1.0, %v4323_v8  ;;  %v7280_v16 = vld [vmem:[#allocation7_spill] sm:$0xff] }
 0x29f   :  { %v2958_v39 = vpop.permute.xlu1 %2957  ;;  %v4327_v40 = vpop.eup %4326  ;;  %v2529_v24 = vmul.f32 %v4325_v12, %v1713_v17  ;;  %v1721_v22 = vadd.f32 %v6661_v53, %v7280_v16  ;;  %v7281_v8 = vld [vmem:[#allocation63_spill] sm:$0xff]  ;;  %v7282_v17 = vld [vmem:[#allocation54_spill] sm:$0xff]  ;;  %v4193_v16 = vld [vmem:[%s6897_s12 + $0x90] ss:$8 sps:$4 sm:$0xff]  }
 0x2a0   :  { %v3007_v38 = vadd.f32 %v2958_v39, %v2783_v49  ;;  %v2739_v41 = vpop.permute.xlu0 %2738  ;;  %v3022_v59 = vmax.f32 %v2990_v32, 0.0  ;;  %v2418_v37 = vadd.f32 1.0, %v4327_v40  ;;  %4334 = vrcp.f32 %v2435_v7  ;;  %v7283_v40 = vld [vmem:[#allocation50_spill] sm:$0xff] }
 0x2a1   :  { %v2784_v63 = vmul.f32 %v2739_v41, %v2560_v42  ;;  %v2561_v2 = vadd.f32 %v2529_v24, %v7277_v6  ;;  %v1654_v18 = vadd.f32 %v6410_v5, %v7281_v8  ;;  %v2562_v53 = vadd.f32 %v6667_v55, %v7283_v40  ;;  %v7286_v24 = vld [vmem:[#allocation4_spill] sm:$0xff]  ;;  %v4208_v8 = vld [vmem:[%s6897_s12 + $0xe0] ss:$8 sps:$4 sm:$0xff]  }
 0x2a2   :  { %v3039_v14 = vmax.f32 %v3007_v38, 0.0  ;;  %4336 = vrcp.f32 %v2418_v37 }
 0x2a3   :  { %v2878_v20 = vpop.permute.xlu1 %2877  ;;  %v4329_v61 = vpop.eup %4328 }
 0x2a4   :  { %v3089_v47 = vpack.c.bf16 %v3039_v14, %v3038_v0  ;;  %v2991_v30 = vadd.f32 %v2878_v20, %v2767_v52  ;;  %v2659_v9 = vpop.permute.xlu0 %2658  ;;  %v4331_v43 = vpop.eup %4330  ;;  %v2512_v21 = vmul.f32 %v4329_v61, %v1646_v60  ;;  %v7285_v60 = vld [vmem:[#allocation48_spill] sm:$0xff] }
 0x2a5   :  { %v4333_v54 = vpop.eup %4332  ;;  %v2419_v45 = vadd.f32 1.0, %v4331_v43 }
 0x2a6   :  { %v3023_v57 = vmax.f32 %v2991_v30, 0.0  ;;  %3921 = vmatprep.subr.bf16.mxu0 %v3089_v47  ;;  %v2513_v36 = vmul.f32 %v4333_v54, %v1649_v34  ;;  %v2544_v51 = vadd.f32 %v2512_v21, %v7278_v48  ;;  %v1657_v47 = vadd.f32 %v6415_v58, %v7282_v17  ;;  %v4170_v48 = vld [vmem:[%s6897_s12 + $0x24] ss:$8 sps:$4 sm:$0xff]   ;;  %v4211_v17 = vld [vmem:[%s6897_s12 + $0xf0] ss:$8 sps:$4 sm:$0xff]  }
 0x2a7   :  { %v2744_v19 = vpop.permute.xlu1 %2743  ;;  %4338 = vrcp.f32 %v2419_v45  ;;  %v4169_v45 = vld [vmem:[%s6897_s12 + $0x10] ss:$8 sps:$4 sm:$0xff]  }
 0x2a8   :  { %v3081_v26 = vpack.c.bf16 %v3023_v57, %v3022_v59  ;;  %v2963_v50 = vpop.permute.xlu0 %2962  ;;  %v2785_v31 = vmul.f32 %v2744_v19, %v2561_v2  ;;  %v2768_v13 = vmul.f32 %v2659_v9, %v2544_v51  ;;  %v2545_v1 = vadd.f32 %v2513_v36, %v7279_v25  ;;  %v7284_v19 = vld [vmem:[#allocation51_spill] sm:$0xff]  ;;  %v4179_v25 = vld [vmem:[%s6897_s12 + $0x54] ss:$8 sps:$4 sm:$0xff]  }
 0x2a9   :  { %v3008_v35 = vadd.f32 %v2963_v50, %v2784_v63  ;;  %v4164_v36 = vld [vmem:[%s6897_s12] ss:$8 sps:$4 sm:$0xff]  }
 0x2aa   :  { %3922 = vmatpush3.bf16.msra.mxu0 %v3081_v26  ;;  %v4335_v0 = vpop.eup %4334  ;;  %v4172_v51 = vld [vmem:[%s6897_s12 + $0x20] ss:$8 sps:$4 sm:$0xff]  }
 0x2ab   :  { %v2664_v44 = vpop.permute.xlu1 %2663  ;;  %v3040_v33 = vmax.f32 %v3008_v35, 0.0  ;;  %v2531_v9 = vmul.f32 %v4335_v0, %v1721_v22  ;;  %v4175_v35 = vld [vmem:[%s6897_s12 + $0x30] ss:$8 sps:$4 sm:$0xff]   ;;  %v4194_v22 = vld [vmem:[%s6897_s12 + $0xa4] ss:$8 sps:$4 sm:$0xff]  }
 0x2ac   :  { %v2883_v62 = vpop.permute.xlu0 %2882  ;;  %v2769_v23 = vmul.f32 %v2664_v44, %v2545_v1  ;;  %v4337_v14 = vpop.eup %4336  ;;  %v4181_v1 = vld [vmem:[%s6897_s12 + $0x50] ss:$8 sps:$4 sm:$0xff]   ;;  %v4200_v0 = vld [vmem:[%s6897_s12 + $0xc4] ss:$8 sps:$4 sm:$0xff]  }
 0x2ad   :  { %v2992_v49 = vadd.f32 %v2883_v62, %v2768_v13  ;;  %v2514_v59 = vmul.f32 %v4337_v14, %v1654_v18  ;;  %v2563_v11 = vadd.f32 %v2531_v9, %v7284_v19  ;;  %v4167_v62 = vld [vmem:[%s6897_s12 + $0x14] ss:$8 sps:$4 sm:$0xff]   ;;  %v4178_v13 = vld [vmem:[%s6897_s12 + $0x40] ss:$8 sps:$4 sm:$0xff]   ;;  %v4205_v14 = vld [vmem:[%s6897_s12 + $0xd0] ss:$8 sps:$4 sm:$0xff]  }
 0x2ae   :  { %v4209_v18 = vld [vmem:[%s6897_s12 + $0xf4] ss:$8 sps:$4 sm:$0xff]  }
 0x2af   :  { %v2968_v29 = vpop.permute.xlu1 %2967  ;;  %v3024_v52 = vmax.f32 %v2992_v49, 0.0  ;;  %v2546_v4 = vadd.f32 %v2514_v59, %v7285_v60  ;;  %v4188_v49 = vld [vmem:[%s6897_s12 + $0x84] ss:$8 sps:$4 sm:$0xff]  }
 0x2b0   :  { %v3009_v10 = vadd.f32 %v2968_v29, %v2785_v31  ;;  %v2749_v28 = vpop.permute.xlu0 %2748  ;;  %v4173_v31 = vld [vmem:[%s6897_s12 + $0x34] ss:$8 sps:$4 sm:$0xff]   ;;  %v4176_v29 = vld [vmem:[%s6897_s12 + $0x44] ss:$8 sps:$4 sm:$0xff]  }
 0x2b1   :  { %v4339_v57 = vpop.eup %4338  ;;  %v2786_v7 = vmul.f32 %v2749_v28, %v2562_v53  ;;  %v4184_v28 = vld [vmem:[%s6897_s12 + $0x60] ss:$8 sps:$4 sm:$0xff]  }
 0x2b2   :  { %v3041_v3 = vmax.f32 %v3009_v10, 0.0  ;;  %v2515_v15 = vmul.f32 %v4339_v57, %v1657_v47  ;;  %v4182_v10 = vld [vmem:[%s6897_s12 + $0x64] ss:$8 sps:$4 sm:$0xff]  }
 0x2b3   :  { %v2888_v39 = vpop.permute.xlu1 %2887 }
 0x2b4   :  { %v3090_v46 = vpack.c.bf16 %v3041_v3, %v3040_v33  ;;  %v2993_v38 = vadd.f32 %v2888_v39, %v2769_v23  ;;  %v2669_v41 = vpop.permute.xlu0 %2668  ;;  %v2547_v50 = vadd.f32 %v2515_v15, %v7286_v24  ;;  %v4185_v33 = vld [vmem:[%s6897_s12 + $0x74] ss:$8 sps:$4 sm:$0xff]   ;;  %v4187_v23 = vld [vmem:[%s6897_s12 + $0x70] ss:$8 sps:$4 sm:$0xff]   ;;  %v4190_v3 = vld [vmem:[%s6897_s12 + $0x80] ss:$8 sps:$4 sm:$0xff]  }
 0x2b5   :  { %v2770_v26 = vmul.f32 %v2669_v41, %v2546_v4  ;;  %v4191_v39 = vld [vmem:[%s6897_s12 + $0x94] ss:$8 sps:$4 sm:$0xff]   ;;  %v4199_v41 = vld [vmem:[%s6897_s12 + $0xb0] ss:$8 sps:$4 sm:$0xff]  }
 0x2b6   :  { %v3025_v32 = vmax.f32 %v2993_v38, 0.0  ;;  %3923 = vmatprep.subr.bf16.mxu0 %v3090_v46  ;;  %v4196_v46 = vld [vmem:[%s6897_s12 + $0xa0] ss:$8 sps:$4 sm:$0xff]   ;;  %v4197_v38 = vld [vmem:[%s6897_s12 + $0xb4] ss:$8 sps:$4 sm:$0xff]  }
 0x2b7   :  { %v2754_v20 = vpop.permute.xlu1 %2753 }
 0x2b8   :  { %v3082_v30 = vpack.c.bf16 %v3025_v32, %v3024_v52  ;;  %v2973_v12 = vpop.permute.xlu0 %2972  ;;  %v2787_v5 = vmul.f32 %v2754_v20, %v2563_v11  ;;  %v4202_v52 = vld [vmem:[%s6897_s12 + $0xc0] ss:$8 sps:$4 sm:$0xff]   ;;  %v4203_v32 = vld [vmem:[%s6897_s12 + $0xd4] ss:$8 sps:$4 sm:$0xff]   ;;  %v4206_v20 = vld [vmem:[%s6897_s12 + $0xe4] ss:$8 sps:$4 sm:$0xff]  }
 0x2b9   :  { %v3010_v27 = vadd.f32 %v2973_v12, %v2786_v7 }
 0x2ba   :  { %3924 = vmatpush3.bf16.msra.mxu0 %v3082_v30 }
 0x2bb   :  { %v2674_v61 = vpop.permute.xlu1 %2673  ;;  %v3042_v43 = vmax.f32 %v3010_v27, 0.0 }
 0x2bc   :  { %v2893_v34 = vpop.permute.xlu0 %2892  ;;  %v2771_v55 = vmul.f32 %v2674_v61, %v2547_v50 }
 0x2bd   :  { %v2994_v56 = vadd.f32 %v2893_v34, %v2770_v26 }
 0x2bf   :  { %v2978_v58 = vpop.permute.xlu1 %2977  ;;  %v3026_v63 = vmax.f32 %v2994_v56, 0.0 }
 0x2c0   :  { %v3011_v37 = vadd.f32 %v2978_v58, %v2787_v5  ;;  %v3127_v40 = vpop.permute.xlu0 %3126 }
 0x2c2   :  { %v3043_v42 = vmax.f32 %v3011_v37, 0.0 }
 0x2c3   :  { %v2898_v21 = vpop.permute.xlu1 %2897 }
 0x2c4   :  { %v3091_v54 = vpack.c.bf16 %v3043_v42, %v3042_v43  ;;  %v2995_v44 = vadd.f32 %v2898_v21, %v2771_v55  ;;  %v3137_v4 = vpop.permute.xlu0 %3136 }
 0x2c6   :  { %v3027_v6 = vmax.f32 %v2995_v44, 0.0  ;;  %3925 = vmatprep.subr.bf16.mxu0 %v3091_v54 }
 0x2c7   :  { %v3132_v61 = vpop.permute.xlu1 %3131 }
 0x2c8   :  { %v3083_v2 = vpack.c.bf16 %v3027_v6, %v3026_v63  ;;  %v3147_v55 = vpop.permute.xlu0 %3146 }
 0x2ca   :  { %3926 = vmatpush3.bf16.msra.mxu0 %v3083_v2 }
 0x2cb   :  { %v3142_v58 = vpop.permute.xlu1 %3141 }
 0x2cd   :  { %3477 = vmatmul.mubr.bf16.vlgmr.msra.gmra.mrb[16].mxu0 %v4164_v36 }
 0x2ce   :  { %3484 = vmatprep.mubr.bf16.mxu0 %v4167_v62  ;;  %v3157_v62 = vpop.permute.xlu0 %3156 }
 0x2cf   :  { %v3152_v54 = vpop.permute.xlu1 %3151 }
 0x2d5   :  { %3485 = vmatmul.mubr.bf16.gmra.mrb[20].mxu0 %v4169_v45 }
 0x2d6   :  { %3492 = vmatprep.mubr.bf16.mxu0 %v4170_v48 }
 0x2dd   :  { %3493 = vmatmul.mubr.bf16.gmra.mrb[24].mxu0 %v4172_v51 }
 0x2de   :  { %3500 = vmatprep.mubr.bf16.mxu0 %v4173_v31  ;;  %v3162_v31 = vpop.permute.xlu1 %3161 }
 0x2e5   :  { %3501 = vmatmul.mubr.bf16.gmra.mrb[28].mxu0 %v4175_v35 }
 0x2e6   :  { %3508 = vmatprep.mubr.bf16.mxu0 %v4176_v29 }
 0x2ed   :  { %3509 = vmatmul.mubr.bf16.gmra.mrb[32].mxu0 %v4178_v13 }
 0x2ee   :  { %3516 = vmatprep.mubr.bf16.mxu0 %v4179_v25 }
 0x2f5   :  { %3517 = vmatmul.mubr.bf16.gmra.mrb[36].mxu0 %v4181_v1 }
 0x2f6   :  { %3524 = vmatprep.mubr.bf16.mxu0 %v4182_v10  ;;  %v3167_v10 = vpop.permute.xlu0 %3166 }
 0x2fd   :  { %3525 = vmatmul.mubr.bf16.gmra.mrb[40].mxu0 %v4184_v28 }
 0x2fe   :  { %3532 = vmatprep.mubr.bf16.mxu0 %v4185_v33 }
 0x305   :  { %3533 = vmatmul.mubr.bf16.gmra.mrb[44].mxu0 %v4187_v23 }
 0x306   :  { %3540 = vmatprep.mubr.bf16.mxu0 %v4188_v49  ;;  %v3172_v49 = vpop.permute.xlu1 %3171 }
 0x30d   :  { %3541 = vmatmul.mubr.bf16.gmra.mrb[48].mxu0 %v4190_v3 }
 0x30e   :  { %3548 = vmatprep.mubr.bf16.mxu0 %v4191_v39 }
 0x315   :  { %3549 = vmatmul.mubr.bf16.gmra.mrb[52].mxu0 %v4193_v16 }
 0x316   :  { %3556 = vmatprep.mubr.bf16.mxu0 %v4194_v22 }
 0x31d   :  { %3557 = vmatmul.mubr.bf16.gmra.mrb[56].mxu0 %v4196_v46 }
 0x31e   :  { %3564 = vmatprep.mubr.bf16.mxu0 %v4197_v38  ;;  %v3177_v38 = vpop.permute.xlu0 %3176 }
 0x325   :  { %3565 = vmatmul.mubr.bf16.gmra.mrb[60].mxu0 %v4199_v41 }
 0x326   :  { %3572 = vmatprep.mubr.bf16.mxu0 %v4200_v0 }
 0x32d   :  { %3573 = vmatmul.mubr.bf16.gmra.mrb[64].mxu0 %v4202_v52 }
 0x32e   :  { %3580 = vmatprep.mubr.bf16.mxu0 %v4203_v32  ;;  %v3182_v32 = vpop.permute.xlu1 %3181 }
 0x335   :  { %3581 = vmatmul.mubr.bf16.gmra.mrb[68].mxu0 %v4205_v14 }
 0x336   :  { %3588 = vmatprep.mubr.bf16.mxu0 %v4206_v20 }
 0x33d   :  { %3589 = vmatmul.mubr.bf16.gmra.mrb[72].mxu0 %v4208_v8 }
 0x33e   :  { %3596 = vmatprep.mubr.bf16.mxu0 %v4209_v18 }
 0x345   :  { %3597 = vmatmul.mubr.bf16.gmra.mrb[76].mxu0 %v4211_v17 }
 0x3a0   :  { %v3927_v47 = vpop.f32.mrb[16].mxu0 }
 0x3a1   :  { %v3928_v30 = vpop.f32.mrb[17].mxu0 }
 0x3a2   :  { %v3929_v9 = vadd.f32 %v3928_v30, %v3927_v47  ;;  %v3930_v12 = vpop.f32.mrb[18].mxu0  ;;  %v3187_v47 = vpop.permute.xlu0 %3186 }
 0x3a3   :  { %v3931_v53 = vpop.f32.mrb[19].mxu0 }
 0x3a4   :  { %v3479_v59 = vadd.f32 %v3929_v9, %v3127_v40  ;;  %v3932_v57 = vadd.f32 %v3931_v53, %v3930_v12  ;;  %v3192_v40 = vpop.permute.xlu1 %3191 }
 0x3a6   :  { %3605 = vst [vmem:[%s6898_s14] sm:$0xff] %v3479_v59  ;;  %v3482_v7 = vadd.f32 %v3932_v57, %v3132_v61 }
 0x3a8   :  { %3606 = vst [vmem:[%s6898_s14 + $0x8] sm:$0xff] %v3482_v7  ;;  %v3933_v19 = vpop.f32.mrb[20].mxu0 }
 0x3a9   :  { %v3934_v11 = vpop.f32.mrb[21].mxu0 }
 0x3aa   :  { %v3935_v15 = vadd.f32 %v3934_v11, %v3933_v19  ;;  %v3936_v60 = vpop.f32.mrb[22].mxu0  ;;  %v3197_v19 = vpop.permute.xlu0 %3196 }
 0x3ab   :  { %v3937_v5 = vpop.f32.mrb[23].mxu0 }
 0x3ac   :  { %v3487_v27 = vadd.f32 %v3935_v15, %v3137_v4  ;;  %v3938_v34 = vadd.f32 %v3937_v5, %v3936_v60  ;;  %v3202_v4 = vpop.permute.xlu1 %3201 }
 0x3ae   :  { %3607 = vst [vmem:[%s6898_s14 + $0x10] sm:$0xff] %v3487_v27  ;;  %v3490_v26 = vadd.f32 %v3938_v34, %v3142_v58 }
 0x3b0   :  { %3608 = vst [vmem:[%s6898_s14 + $0x18] sm:$0xff] %v3490_v26  ;;  %v3939_v24 = vpop.f32.mrb[24].mxu0 }
 0x3b1   :  { %v3940_v50 = vpop.f32.mrb[25].mxu0 }
 0x3b2   :  { %v3941_v37 = vadd.f32 %v3940_v50, %v3939_v24  ;;  %v3942_v43 = vpop.f32.mrb[26].mxu0  ;;  %v3207_v24 = vpop.permute.xlu0 %3206 }
 0x3b3   :  { %v3943_v56 = vpop.f32.mrb[27].mxu0 }
 0x3b4   :  { %v3495_v42 = vadd.f32 %v3941_v37, %v3147_v55  ;;  %v3944_v21 = vadd.f32 %v3943_v56, %v3942_v43  ;;  %v3212_v55 = vpop.permute.xlu1 %3211 }
 0x3b6   :  { %3609 = vst [vmem:[%s6898_s14 + $0x20] sm:$0xff] %v3495_v42  ;;  %v3498_v44 = vadd.f32 %v3944_v21, %v3152_v54 }
 0x3b8   :  { %3610 = vst [vmem:[%s6898_s14 + $0x28] sm:$0xff] %v3498_v44  ;;  %v3945_v63 = vpop.f32.mrb[28].mxu0 }
 0x3b9   :  { %v3946_v6 = vpop.f32.mrb[29].mxu0 }
 0x3ba   :  { %v3947_v2 = vadd.f32 %v3946_v6, %v3945_v63  ;;  %v3948_v36 = vpop.f32.mrb[30].mxu0  ;;  %v3217_v63 = vpop.permute.xlu0 %3216 }
 0x3bb   :  { %v3949_v45 = vpop.f32.mrb[31].mxu0 }
 0x3bc   :  { %v3503_v48 = vadd.f32 %v3947_v2, %v3157_v62  ;;  %v3950_v51 = vadd.f32 %v3949_v45, %v3948_v36  ;;  %v3222_v62 = vpop.permute.xlu1 %3221 }
 0x3be   :  { %3611 = vst [vmem:[%s6898_s14 + $0x30] sm:$0xff] %v3503_v48  ;;  %v3506_v35 = vadd.f32 %v3950_v51, %v3162_v31 }
 0x3c0   :  { %3612 = vst [vmem:[%s6898_s14 + $0x38] sm:$0xff] %v3506_v35  ;;  %v3951_v29 = vpop.f32.mrb[32].mxu0 }
 0x3c1   :  { %v3952_v13 = vpop.f32.mrb[33].mxu0 }
 0x3c2   :  { %v3953_v25 = vadd.f32 %v3952_v13, %v3951_v29  ;;  %v3954_v1 = vpop.f32.mrb[34].mxu0  ;;  %v3227_v29 = vpop.permute.xlu0 %3226 }
 0x3c3   :  { %v3955_v28 = vpop.f32.mrb[35].mxu0 }
 0x3c4   :  { %v3511_v33 = vadd.f32 %v3953_v25, %v3167_v10  ;;  %v3956_v23 = vadd.f32 %v3955_v28, %v3954_v1  ;;  %v3232_v10 = vpop.permute.xlu1 %3231 }
 0x3c6   :  { %3613 = vst [vmem:[%s6898_s14 + $0x40] sm:$0xff] %v3511_v33  ;;  %v3514_v3 = vadd.f32 %v3956_v23, %v3172_v49 }
 0x3c8   :  { %3614 = vst [vmem:[%s6898_s14 + $0x48] sm:$0xff] %v3514_v3  ;;  %v3957_v39 = vpop.f32.mrb[36].mxu0 }
 0x3c9   :  { %v3958_v16 = vpop.f32.mrb[37].mxu0 }
 0x3ca   :  { %v3959_v22 = vadd.f32 %v3958_v16, %v3957_v39  ;;  %v3960_v46 = vpop.f32.mrb[38].mxu0  ;;  %v3237_v39 = vpop.permute.xlu0 %3236 }
 0x3cb   :  { %v3961_v41 = vpop.f32.mrb[39].mxu0 }
 0x3cc   :  { %v3519_v0 = vadd.f32 %v3959_v22, %v3177_v38  ;;  %v3962_v52 = vadd.f32 %v3961_v41, %v3960_v46  ;;  %v3242_v38 = vpop.permute.xlu1 %3241 }
 0x3ce   :  { %3615 = vst [vmem:[%s6898_s14 + $0x50] sm:$0xff] %v3519_v0  ;;  %v3522_v14 = vadd.f32 %v3962_v52, %v3182_v32 }
 0x3d0   :  { %3616 = vst [vmem:[%s6898_s14 + $0x58] sm:$0xff] %v3522_v14  ;;  %v3963_v20 = vpop.f32.mrb[40].mxu0 }
 0x3d1   :  { %v3964_v8 = vpop.f32.mrb[41].mxu0 }
 0x3d2   :  { %v3965_v18 = vadd.f32 %v3964_v8, %v3963_v20  ;;  %v3966_v17 = vpop.f32.mrb[42].mxu0  ;;  %v3247_v20 = vpop.permute.xlu0 %3246 }
 0x3d3   :  { %v3967_v30 = vpop.f32.mrb[43].mxu0 }
 0x3d4   :  { %v3527_v9 = vadd.f32 %v3965_v18, %v3187_v47  ;;  %v3968_v12 = vadd.f32 %v3967_v30, %v3966_v17  ;;  %v3252_v47 = vpop.permute.xlu1 %3251 }
 0x3d6   :  { %3617 = vst [vmem:[%s6898_s14 + $0x60] sm:$0xff] %v3527_v9  ;;  %v3530_v53 = vadd.f32 %v3968_v12, %v3192_v40 }
 0x3d8   :  { %3618 = vst [vmem:[%s6898_s14 + $0x68] sm:$0xff] %v3530_v53  ;;  %v3969_v59 = vpop.f32.mrb[44].mxu0 }
 0x3d9   :  { %v3970_v57 = vpop.f32.mrb[45].mxu0 }
 0x3da   :  { %v3971_v61 = vadd.f32 %v3970_v57, %v3969_v59  ;;  %v3972_v7 = vpop.f32.mrb[46].mxu0  ;;  %v3257_v59 = vpop.permute.xlu0 %3256 }
 0x3db   :  { %v3973_v11 = vpop.f32.mrb[47].mxu0 }
 0x3dc   :  { %v3535_v15 = vadd.f32 %v3971_v61, %v3197_v19  ;;  %v3974_v60 = vadd.f32 %v3973_v11, %v3972_v7  ;;  %v3262_v19 = vpop.permute.xlu1 %3261 }
 0x3de   :  { %3619 = vst [vmem:[%s6898_s14 + $0x70] sm:$0xff] %v3535_v15  ;;  %v3538_v5 = vadd.f32 %v3974_v60, %v3202_v4 }
 0x3e0   :  { %3620 = vst [vmem:[%s6898_s14 + $0x78] sm:$0xff] %v3538_v5  ;;  %v3975_v27 = vpop.f32.mrb[48].mxu0 }
 0x3e1   :  { %v3976_v34 = vpop.f32.mrb[49].mxu0 }
 0x3e2   :  { %v3977_v58 = vadd.f32 %v3976_v34, %v3975_v27  ;;  %v3978_v26 = vpop.f32.mrb[50].mxu0  ;;  %v3267_v27 = vpop.permute.xlu0 %3266 }
 0x3e3   :  { %v3979_v50 = vpop.f32.mrb[51].mxu0 }
 0x3e4   :  { %v3543_v37 = vadd.f32 %v3977_v58, %v3207_v24  ;;  %v3980_v43 = vadd.f32 %v3979_v50, %v3978_v26  ;;  %v3272_v24 = vpop.permute.xlu1 %3271 }
 0x3e6   :  { %3621 = vst [vmem:[%s6898_s14 + $0x80] sm:$0xff] %v3543_v37  ;;  %v3546_v56 = vadd.f32 %v3980_v43, %v3212_v55 }
 0x3e8   :  { %3622 = vst [vmem:[%s6898_s14 + $0x88] sm:$0xff] %v3546_v56  ;;  %v3981_v42 = vpop.f32.mrb[52].mxu0 }
 0x3e9   :  { %v3982_v21 = vpop.f32.mrb[53].mxu0 }
 0x3ea   :  { %v3983_v54 = vadd.f32 %v3982_v21, %v3981_v42  ;;  %v3984_v44 = vpop.f32.mrb[54].mxu0  ;;  %v3277_v42 = vpop.permute.xlu0 %3276 }
 0x3eb   :  { %v3985_v6 = vpop.f32.mrb[55].mxu0 }
 0x3ec   :  { %v3551_v2 = vadd.f32 %v3983_v54, %v3217_v63  ;;  %v3986_v36 = vadd.f32 %v3985_v6, %v3984_v44  ;;  %v3282_v63 = vpop.permute.xlu1 %3281 }
 0x3ee   :  { %3623 = vst [vmem:[%s6898_s14 + $0x90] sm:$0xff] %v3551_v2  ;;  %v3554_v45 = vadd.f32 %v3986_v36, %v3222_v62 }
 0x3f0   :  { %3624 = vst [vmem:[%s6898_s14 + $0x98] sm:$0xff] %v3554_v45  ;;  %v3987_v48 = vpop.f32.mrb[56].mxu0 }
 0x3f1   :  { %v3988_v51 = vpop.f32.mrb[57].mxu0 }
 0x3f2   :  { %v3989_v31 = vadd.f32 %v3988_v51, %v3987_v48  ;;  %v3990_v35 = vpop.f32.mrb[58].mxu0 }
 0x3f3   :  { %v3991_v13 = vpop.f32.mrb[59].mxu0 }
 0x3f4   :  { %v3559_v25 = vadd.f32 %v3989_v31, %v3227_v29  ;;  %v3992_v1 = vadd.f32 %v3991_v13, %v3990_v35 }
 0x3f6   :  { %3625 = vst [vmem:[%s6898_s14 + $0xa0] sm:$0xff] %v3559_v25  ;;  %v3562_v28 = vadd.f32 %v3992_v1, %v3232_v10 }
 0x3f8   :  { %3626 = vst [vmem:[%s6898_s14 + $0xa8] sm:$0xff] %v3562_v28  ;;  %v3993_v33 = vpop.f32.mrb[60].mxu0 }
 0x3f9   :  { %v3994_v23 = vpop.f32.mrb[61].mxu0 }
 0x3fa   :  { %v3995_v49 = vadd.f32 %v3994_v23, %v3993_v33  ;;  %v3996_v3 = vpop.f32.mrb[62].mxu0 }
 0x3fb   :  { %v3997_v16 = vpop.f32.mrb[63].mxu0 }
 0x3fc   :  { %v3567_v22 = vadd.f32 %v3995_v49, %v3237_v39  ;;  %v3998_v46 = vadd.f32 %v3997_v16, %v3996_v3 }
 0x3fe   :  { %3627 = vst [vmem:[%s6898_s14 + $0xb0] sm:$0xff] %v3567_v22  ;;  %v3570_v41 = vadd.f32 %v3998_v46, %v3242_v38 }
 0x400   :  { %3628 = vst [vmem:[%s6898_s14 + $0xb8] sm:$0xff] %v3570_v41  ;;  %v3999_v0 = vpop.f32.mrb[64].mxu0 }
 0x401   :  { %v4000_v52 = vpop.f32.mrb[65].mxu0 }
 0x402   :  { %v4001_v32 = vadd.f32 %v4000_v52, %v3999_v0  ;;  %v4002_v14 = vpop.f32.mrb[66].mxu0 }
 0x403   :  { %v4003_v8 = vpop.f32.mrb[67].mxu0 }
 0x404   :  { %v3575_v18 = vadd.f32 %v4001_v32, %v3247_v20  ;;  %v4004_v17 = vadd.f32 %v4003_v8, %v4002_v14 }
 0x406   :  { %3629 = vst [vmem:[%s6898_s14 + $0xc0] sm:$0xff] %v3575_v18  ;;  %v3578_v30 = vadd.f32 %v4004_v17, %v3252_v47 }
 0x408   :  { %3630 = vst [vmem:[%s6898_s14 + $0xc8] sm:$0xff] %v3578_v30  ;;  %v4005_v9 = vpop.f32.mrb[68].mxu0 }
 0x409   :  { %v4006_v12 = vpop.f32.mrb[69].mxu0 }
 0x40a   :  { %v4007_v40 = vadd.f32 %v4006_v12, %v4005_v9  ;;  %v4008_v53 = vpop.f32.mrb[70].mxu0 }
 0x40b   :  { %v4009_v57 = vpop.f32.mrb[71].mxu0 }
 0x40c   :  { %v3583_v61 = vadd.f32 %v4007_v40, %v3257_v59  ;;  %v4010_v7 = vadd.f32 %v4009_v57, %v4008_v53 }
 0x40e   :  { %3631 = vst [vmem:[%s6898_s14 + $0xd0] sm:$0xff] %v3583_v61  ;;  %v3586_v11 = vadd.f32 %v4010_v7, %v3262_v19 }
 0x410   :  { %3632 = vst [vmem:[%s6898_s14 + $0xd8] sm:$0xff] %v3586_v11  ;;  %v4011_v15 = vpop.f32.mrb[72].mxu0 }
 0x411   :  { %v4012_v60 = vpop.f32.mrb[73].mxu0 }
 0x412   :  { %v4013_v4 = vadd.f32 %v4012_v60, %v4011_v15  ;;  %v4014_v5 = vpop.f32.mrb[74].mxu0 }
 0x413   :  { %v4015_v34 = vpop.f32.mrb[75].mxu0 }
 0x414   :  { %v3591_v58 = vadd.f32 %v4013_v4, %v3267_v27  ;;  %v4016_v26 = vadd.f32 %v4015_v34, %v4014_v5 }
 0x416   :  { %3633 = vst [vmem:[%s6898_s14 + $0xe0] sm:$0xff] %v3591_v58  ;;  %v3594_v50 = vadd.f32 %v4016_v26, %v3272_v24 }
 0x418   :  { %3634 = vst [vmem:[%s6898_s14 + $0xe8] sm:$0xff] %v3594_v50  ;;  %v4017_v37 = vpop.f32.mrb[76].mxu0 }
 0x419   :  { %v4018_v43 = vpop.f32.mrb[77].mxu0 }
 0x41a   :  { %v4019_v55 = vadd.f32 %v4018_v43, %v4017_v37  ;;  %v4020_v56 = vpop.f32.mrb[78].mxu0 }
 0x41b   :  { %v4021_v21 = vpop.f32.mrb[79].mxu0 }
 0x41c   :  { %v3599_v54 = vadd.f32 %v4019_v55, %v3277_v42  ;;  %v4022_v44 = vadd.f32 %v4021_v21, %v4020_v56 }
 0x41e   :  { %3635 = vst [vmem:[%s6898_s14 + $0xf0] sm:$0xff] %v3599_v54  ;;  %v3602_v6 = vadd.f32 %v4022_v44, %v3282_v63 }
 0x420   :  { %3636 = vst [vmem:[%s6898_s14 + $0xf8] sm:$0xff] %v3602_v6 }

</bundles_post_ra>
